<compile_context>
chip_gen: v5e
topology: v5e:2x2
jax: 0.10.0
libtpu: 0.0.40
codegen_flags: <defaults>
</compile_context>

<pallas_src>
import jax
import jax.numpy as jnp
from jax.experimental import pallas as pl
from jax.experimental.pallas import tpu as pltpu

NEG_INF = -1e9


def _layer_norm(x, gamma, beta, eps=1e-5):
    # x: (N, D) f32 ; gamma/beta broadcastable to (N, D)
    mu = jnp.mean(x, axis=-1, keepdims=True)
    xc = x - mu
    var = jnp.mean(xc * xc, axis=-1, keepdims=True)
    return xc * jax.lax.rsqrt(var + eps) * gamma + beta


def _text_encoder_kernel(
    x_ref, kb_ref, oh_ref,
    ln1g_ref, ln1b_ref,
    wqkv_ref, bqkv_ref, wo_ref, bo_ref,
    ln2g_ref, ln2b_ref, w1_ref, b1_ref, w2_ref, b2_ref,
    flng_ref, flnb_ref, wproj_ref,
    out_ref,
    h_ref, bias_ref,
):
    li = pl.program_id(1)
    n_layers = pl.num_programs(1)

    Bb, L, D = x_ref.shape
    HD3 = wqkv_ref.shape[2]
    HD = HD3 // 3
    Dh = wo_ref.shape[1] and (HD // (HD3 // 3 // (HD // (HD // 1))))  # placeholder, replaced below
    # Derive head count / head dim from the out-projection block: (1, H*Dh, D).
    # H is carried statically via the bias/ctx slicing below.
    N = Bb * L

    # ---- per-batch-block setup (runs once, at the first layer step) ----
    @pl.when(li == 0)
    def _():
        # Resident hidden state.
        h_ref[...] = x_ref[...].astype(jnp.float32)
        # Combined additive attention bias: causal + key padding, (Bb, L, L).
        q_pos = jax.lax.broadcasted_iota(jnp.int32, (L, L), 0)
        k_pos = jax.lax.broadcasted_iota(jnp.int32, (L, L), 1)
        causal = jnp.where(k_pos > q_pos, jnp.float32(NEG_INF), jnp.float32(0.0))
        bias_ref[...] = causal[None, :, :] + kb_ref[...][:, None, :]

    h2 = h_ref[...].reshape(N, D)
    bias = bias_ref[...]

    # ---- self attention (pre-LN), fused QKV + fused out-proj ----
    x1 = _layer_norm(h2, ln1g_ref[0], ln1b_ref[0])
    qkv = jnp.dot(x1.astype(jnp.bfloat16), wqkv_ref[0],
                  preferred_element_type=jnp.float32) + bqkv_ref[0]

    # Head geometry (static): HD = H * Dh; Dh taken from closure via kernel spec.
    # We recover it from the global set by the wrapper.
    H = _text_encoder_kernel._num_heads
    Dh = HD // H
    scale = Dh ** -0.5

    ctx = []
    for hd in range(H):  # static unroll; per-head FLOPs are small vs. the GEMMs
        q = qkv[:, hd * Dh:(hd + 1) * Dh].reshape(Bb, L, Dh)
        k = qkv[:, HD + hd * Dh: HD + (hd + 1) * Dh].reshape(Bb, L, Dh)
        v = qkv[:, 2 * HD + hd * Dh: 2 * HD + (hd + 1) * Dh].reshape(Bb, L, Dh)
        q_b = (q * scale).astype(jnp.bfloat16)
        k_b = k.astype(jnp.bfloat16)
        s = jnp.einsum("bqd,bkd->bqk", q_b, k_b,
                       preferred_element_type=jnp.float32) + bias
        s = s - jnp.max(s, axis=-1, keepdims=True)
        e = jnp.exp(s)
        p = e * pl.reciprocal(jnp.sum(e, axis=-1, keepdims=True), approx=True)
        c = jnp.einsum("bqk,bkd->bqd", p.astype(jnp.bfloat16),
                       v.astype(jnp.bfloat16),
                       preferred_element_type=jnp.float32)
        ctx.append(c.reshape(N, Dh))
    ctx_all = jnp.concatenate(ctx, axis=-1)                      # (N, H*Dh)
    attn = jnp.dot(ctx_all.astype(jnp.bfloat16), wo_ref[0],
                   preferred_element_type=jnp.float32)
    h2 = h2 + attn + bo_ref[0]

    # ---- MLP (quick-GELU, CLIP/PLIP activation) ----
    x2 = _layer_norm(h2, ln2g_ref[0], ln2b_ref[0])
    m = jnp.dot(x2.astype(jnp.bfloat16), w1_ref[0],
                preferred_element_type=jnp.float32) + b1_ref[0]
    m = m * jax.nn.sigmoid(1.702 * m)
    m = jnp.dot(m.astype(jnp.bfloat16), w2_ref[0],
                preferred_element_type=jnp.float32) + b2_ref[0]
    h2 = h2 + m

    h_ref[...] = h2.reshape(Bb, L, D)

    # ---- final LN + EOS pooling + text projection, only on the last layer ----
    @pl.when(li == n_layers - 1)
    def _():
        hf = _layer_norm(h2, flng_ref[...], flnb_ref[...]).reshape(Bb, L, D)
        pooled = jnp.sum(hf * oh_ref[...][:, :, None], axis=1)          # (Bb, D)
        feats = jnp.dot(pooled.astype(jnp.bfloat16), wproj_ref[...],
                        preferred_element_type=jnp.float32)
        out_ref[...] = feats.astype(out_ref.dtype)


def _vmem_limit_bytes():
    """Per-generation VMEM limit: ~3/4 of physical, capped at 100 MiB."""
    cap = 64 * 1024 * 1024
    try:
        cap = int(getattr(pltpu.get_tpu_info(), "vmem_capacity_bytes", cap))
    except Exception:
        pass
    return min((cap * 3) // 4, 100 * 1024 * 1024)


def _fuse_params(params, compute_dtype=jnp.bfloat16):
    """Concatenate per-head Q/K/V weights into one wide GEMM and cast weights
    to the streaming dtype (bf16 by default); biases / LN params stay f32."""
    NL, H, D, Dh = params["wq"].shape
    HD = H * Dh
    to_wide = lambda w: jnp.transpose(w, (0, 2, 1, 3)).reshape(NL, D, HD)
    wqkv = jnp.concatenate(
        [to_wide(params["wq"]), to_wide(params["wk"]), to_wide(params["wv"])],
        axis=-1).astype(compute_dtype)                         # (NL, D, 3*HD)
    bqkv = jnp.concatenate(
        [params["bq"].reshape(NL, 1, HD),
         params["bk"].reshape(NL, 1, HD),
         params["bv"].reshape(NL, 1, HD)], axis=-1).astype(jnp.float32)
    wo = params["wo"].reshape(NL, HD, D).astype(compute_dtype)  # (NL, HD, D)
    fused = dict(
        wqkv=wqkv, bqkv=bqkv, wo=wo,
        bo=params["bo"].astype(jnp.float32),
        ln1_g=params["ln1_g"].astype(jnp.float32),
        ln1_b=params["ln1_b"].astype(jnp.float32),
        ln2_g=params["ln2_g"].astype(jnp.float32),
        ln2_b=params["ln2_b"].astype(jnp.float32),
        w1=params["w1"].astype(compute_dtype),
        b1=params["b1"].astype(jnp.float32),
        w2=params["w2"].astype(compute_dtype),
        b2=params["b2"].astype(jnp.float32),
        fln_g=params["fln_g"].astype(jnp.float32),
        fln_b=params["fln_b"].astype(jnp.float32),
        wproj=params["wproj"].astype(compute_dtype),
    )
    return fused, H, Dh


def plip_text_encoder_forward(prompts, tokenized_prompts, params,
                              *, eos_token_id=46810, pad_token_id=49407,
                              batch_block=8, compute_dtype=jnp.bfloat16):
    """prompts: (B, L, D) embeddings; tokenized_prompts: (B, L) int32."""
    B, L, D = prompts.shape
    NL = params["wq"].shape[0]
    F = params["w1"].shape[-1]
    P = params["wproj"].shape[-1]
    assert B % batch_block == 0 and L % 8 == 0

    fused, H, Dh = _fuse_params(params, compute_dtype)
    HD = H * Dh
    _text_encoder_kernel._num_heads = H  # static head count for the kernel body

    # O(B*L) mask / pooling-index prep (mirrors the torch mask helpers).
    key_bias = jnp.where(tokenized_prompts != pad_token_id, 0.0, NEG_INF).astype(jnp.float32)
    eos_pos = jnp.argmax((tokenized_prompts == eos_token_id).astype(jnp.int32), axis=-1)
    onehot = (jnp.arange(L)[None, :] == eos_pos[:, None]).astype(jnp.float32)

    grid = (B // batch_block, NL)

    per_layer_vec = lambda bi, li: (li, 0, 0)        # (NL, 1, X) params
    per_batch_3d = lambda bi, li: (bi, 0, 0)
    per_batch_2d = lambda bi, li: (bi, 0)
    shared_2d = lambda bi, li: (0, 0)

    in_specs = [
        pl.BlockSpec((batch_block, L, D), per_batch_3d),     # prompts
        pl.BlockSpec((batch_block, L), per_batch_2d),        # key padding bias
        pl.BlockSpec((batch_block, L), per_batch_2d),        # EOS one-hot
        pl.BlockSpec((1, 1, D), per_layer_vec),              # ln1_g
        pl.BlockSpec((1, 1, D), per_layer_vec),              # ln1_b
        pl.BlockSpec((1, D, 3 * HD), per_layer_vec),         # wqkv (bf16)
        pl.BlockSpec((1, 1, 3 * HD), per_layer_vec),         # bqkv
        pl.BlockSpec((1, HD, D), per_layer_vec),             # wo (bf16)
        pl.BlockSpec((1, 1, D), per_layer_vec),              # bo
        pl.BlockSpec((1, 1, D), per_layer_vec),              # ln2_g
        pl.BlockSpec((1, 1, D), per_layer_vec),              # ln2_b
        pl.BlockSpec((1, D, F), per_layer_vec),              # w1 (bf16)
        pl.BlockSpec((1, 1, F), per_layer_vec),              # b1
        pl.BlockSpec((1, F, D), per_layer_vec),              # w2 (bf16)
        pl.BlockSpec((1, 1, D), per_layer_vec),              # b2
        pl.BlockSpec((1, D), shared_2d),                     # final_ln gamma
        pl.BlockSpec((1, D), shared_2d),                     # final_ln beta
        pl.BlockSpec((D, P), shared_2d),                     # text projection (bf16)
    ]
    out_spec = pl.BlockSpec((batch_block, P), per_batch_2d)

    return pl.pallas_call(
        _text_encoder_kernel,
        out_shape=jax.ShapeDtypeStruct((B, P), prompts.dtype),
        grid_spec=pltpu.PrefetchScalarGridSpec(
            num_scalar_prefetch=0,
            grid=grid,
            in_specs=in_specs,
            out_specs=out_spec,
            scratch_shapes=[
                pltpu.VMEM((batch_block, L, D), jnp.float32),   # resident hidden
                pltpu.VMEM((batch_block, L, L), jnp.float32),   # attention bias
            ],
        ),
        compiler_params=pltpu.CompilerParams(
            dimension_semantics=("parallel", "arbitrary"),
            vmem_limit_bytes=_vmem_limit_bytes(),
        ),
    )(prompts, key_bias, onehot,
      fused["ln1_g"], fused["ln1_b"],
      fused["wqkv"], fused["bqkv"], fused["wo"], fused["bo"],
      fused["ln2_g"], fused["ln2_b"],
      fused["w1"], fused["b1"], fused["w2"], fused["b2"],
      fused["fln_g"], fused["fln_b"], fused["wproj"])


def plip_text_encoder_reference(prompts, tokenized_prompts, params,
                                *, eos_token_id=46810, pad_token_id=49407):
    """Plain-JAX reference of the same forward pass (f32, per-head layout)."""
    B, L, D = prompts.shape
    NL, H, _, Dh = params["wq"].shape

    key_bias = jnp.where(tokenized_prompts != pad_token_id, 0.0, NEG_INF).astype(jnp.float32)
    causal = jnp.where(jnp.arange(L)[None, :] > jnp.arange(L)[:, None], NEG_INF, 0.0)
    bias = causal[None, None, :, :] + key_bias[:, None, None, :]

    def ln(x, g, b, eps=1e-5):
        mu = x.mean(-1, keepdims=True)
        xc = x - mu
        var = (xc * xc).mean(-1, keepdims=True)
        return xc * jax.lax.rsqrt(var + eps) * g + b

    h = prompts.astype(jnp.float32)
    scale = Dh ** -0.5
    for l in range(NL):
        x1 = ln(h, params["ln1_g"][l, 0], params["ln1_b"][l, 0])
        q = jnp.einsum("bld,hdk->bhlk", x1, params["wq"][l]) + params["bq"][l][None]
        k = jnp.einsum("bld,hdk->bhlk", x1, params["wk"][l]) + params["bk"][l][None]
        v = jnp.einsum("bld,hdk->bhlk", x1, params["wv"][l]) + params["bv"][l][None]
        s = jnp.einsum("bhqd,bhkd->bhqk", q * scale, k) + bias
        p = jax.nn.softmax(s, axis=-1)
        c = jnp.einsum("bhqk,bhkd->bhqd", p, v)
        attn = jnp.einsum("bhld,hdo->blo", c, params["wo"][l]) + params["bo"][l][0]
        h = h + attn
        x2 = ln(h, params["ln2_g"][l, 0], params["ln2_b"][l, 0])
        m = jnp.einsum("bld,df->blf", x2, params["w1"][l]) + params["b1"][l][0]
        m = m * jax.nn.sigmoid(1.702 * m)
        m = jnp.einsum("blf,fd->bld", m, params["w2"][l]) + params["b2"][l][0]
        h = h + m

    hf = ln(h, params["fln_g"][0], params["fln_b"][0])
    eos_pos = jnp.argmax((tokenized_prompts == eos_token_id).astype(jnp.int32), axis=-1)
    pooled = hf[jnp.arange(B), eos_pos]
    return jnp.dot(pooled, params["wproj"])


def init_params(key, *, n_layers, D, H, Dh, F, P, dtype=jnp.float32):
    ks = jax.random.split(key, 13)
    nrm = lambda k, shp, std: (std * jax.random.normal(k, shp)).astype(dtype)
    return dict(
        ln1_g=jnp.ones((n_layers, 1, D), dtype),
        ln1_b=jnp.zeros((n_layers, 1, D), dtype),
        wq=nrm(ks[0], (n_layers, H, D, Dh), 0.05),
        bq=nrm(ks[1], (n_layers, H, 1, Dh), 0.02),
        wk=nrm(ks[2], (n_layers, H, D, Dh), 0.05),
        bk=nrm(ks[3], (n_layers, H, 1, Dh), 0.02),
        wv=nrm(ks[4], (n_layers, H, D, Dh), 0.05),
        bv=nrm(ks[5], (n_layers, H, 1, Dh), 0.02),
        wo=nrm(ks[6], (n_layers, H, Dh, D), 0.05),
        bo=nrm(ks[7], (n_layers, 1, D), 0.02),
        ln2_g=jnp.ones((n_layers, 1, D), dtype),
        ln2_b=jnp.zeros((n_layers, 1, D), dtype),
        w1=nrm(ks[8], (n_layers, D, F), 0.05),
        b1=nrm(ks[9], (n_layers, 1, F), 0.02),
        w2=nrm(ks[10], (n_layers, F, D), 0.05),
        b2=nrm(ks[11], (n_layers, 1, D), 0.02),
        fln_g=jnp.ones((1, D), dtype),
        fln_b=jnp.zeros((1, D), dtype),
        wproj=nrm(ks[12], (D, P), 0.05),
    )


if __name__ == "__main__":
    # Small shapes consistent with a CLIP-style text encoder.
    B, L, D = 16, 16, 128          # classes(batch), seq len, hidden
    H, Dh, F, P = 4, 32, 256, 128  # heads, head dim, MLP width, projection dim
    NL = 2                         # encoder layers
    EOS, PAD, SOS = 46810, 49407, 49406

    key = jax.random.PRNGKey(0)
    k_p, k_w, k_tok = jax.random.split(key, 3)

    params = init_params(k_w, n_layers=NL, D=D, H=H, Dh=Dh, F=F, P=P)

    # Prompt embeddings (as produced by the prompt learner).
    prompts = (0.02 * jax.random.normal(k_p, (B, L, D))).astype(jnp.float32)

    # Synthetic tokenized prompts: [SOS, words..., EOS, PAD, PAD, ...]
    name_len = 3 + (jnp.arange(B) % 5)
    pos = jnp.arange(L)[None, :]
    eos_at = 1 + name_len[:, None]
    words = jax.random.randint(k_tok, (B, L), 1000, 2000)
    toks = jnp.where(pos == 0, SOS, words)
    toks = jnp.where(pos == eos_at, EOS, toks)
    toks = jnp.where(pos > eos_at, PAD, toks)
    tokenized_prompts = toks.astype(jnp.int32)

    feats = plip_text_encoder_forward(prompts, tokenized_prompts, params,
                                      batch_block=8)
    feats = jax.block_until_ready(feats)

    # Reference with bf16-rounded weights (kernel streams weights in bf16),
    # computed in f32 — isolates activation-precision differences only.
    params_rounded = jax.tree_util.tree_map(
        lambda x: x.astype(jnp.bfloat16).astype(jnp.float32), params)
    ref = plip_text_encoder_reference(prompts, tokenized_prompts, params_rounded)

    assert feats.shape == (B, P), feats.shape
    assert bool(jnp.all(jnp.isfinite(feats)))
    err = float(jnp.max(jnp.abs(feats - ref.astype(feats.dtype))))
    assert err < 5e-2, f"max abs err vs reference: {err}"
    print("KERNEL_OK")
</pallas_src>

<mosaic_0001>
module attributes {stable_mosaic.version = 11 : i64} {
  func.func @_text_encoder_kernel(%arg0: i32, %arg1: i32, %arg2: memref<8x16x128xf32, #tpu.memory_space<vmem>>, %arg3: memref<8x16xf32, #tpu.memory_space<vmem>>, %arg4: memref<8x16xf32, #tpu.memory_space<vmem>>, %arg5: memref<1x1x128xf32, #tpu.memory_space<vmem>>, %arg6: memref<1x1x128xf32, #tpu.memory_space<vmem>>, %arg7: memref<1x128x384xbf16, #tpu.memory_space<vmem>>, %arg8: memref<1x1x384xf32, #tpu.memory_space<vmem>>, %arg9: memref<1x128x128xbf16, #tpu.memory_space<vmem>>, %arg10: memref<1x1x128xf32, #tpu.memory_space<vmem>>, %arg11: memref<1x1x128xf32, #tpu.memory_space<vmem>>, %arg12: memref<1x1x128xf32, #tpu.memory_space<vmem>>, %arg13: memref<1x128x256xbf16, #tpu.memory_space<vmem>>, %arg14: memref<1x1x256xf32, #tpu.memory_space<vmem>>, %arg15: memref<1x256x128xbf16, #tpu.memory_space<vmem>>, %arg16: memref<1x1x128xf32, #tpu.memory_space<vmem>>, %arg17: memref<1x128xf32, #tpu.memory_space<vmem>>, %arg18: memref<1x128xf32, #tpu.memory_space<vmem>>, %arg19: memref<128x128xbf16, #tpu.memory_space<vmem>>, %arg20: memref<8x128xf32, #tpu.memory_space<vmem>>, %arg21: memref<8x16x128xf32, #tpu.memory_space<vmem>>, %arg22: memref<8x16x16xf32, #tpu.memory_space<vmem>>) attributes {dimension_semantics = [#tpu.dimension_semantics<parallel>, #tpu.dimension_semantics<arbitrary>], iteration_bounds = array<i64: 2, 2>, scalar_prefetch = 0 : i64, scratch_operands = 2 : i64, tpu.core_type = #tpu.core_type<tc>, window_params = [{transform_indices = @transform_0, window_bounds = array<i64: 8, 16, 128>}, {transform_indices = @transform_1, window_bounds = array<i64: 8, 16>}, {transform_indices = @transform_2, window_bounds = array<i64: 8, 16>}, {transform_indices = @transform_3, window_bounds = array<i64: 1, 1, 128>}, {transform_indices = @transform_4, window_bounds = array<i64: 1, 1, 128>}, {transform_indices = @transform_5, window_bounds = array<i64: 1, 128, 384>}, {transform_indices = @transform_6, window_bounds = array<i64: 1, 1, 384>}, {transform_indices = @transform_7, window_bounds = array<i64: 1, 128, 128>}, {transform_indices = @transform_8, window_bounds = array<i64: 1, 1, 128>}, {transform_indices = @transform_9, window_bounds = array<i64: 1, 1, 128>}, {transform_indices = @transform_10, window_bounds = array<i64: 1, 1, 128>}, {transform_indices = @transform_11, window_bounds = array<i64: 1, 128, 256>}, {transform_indices = @transform_12, window_bounds = array<i64: 1, 1, 256>}, {transform_indices = @transform_13, window_bounds = array<i64: 1, 256, 128>}, {transform_indices = @transform_14, window_bounds = array<i64: 1, 1, 128>}, {pipeline_mode = #tpu.pipeline_mode<synchronous>, transform_indices = @transform_15, window_bounds = array<i64: 1, 128>}, {pipeline_mode = #tpu.pipeline_mode<synchronous>, transform_indices = @transform_16, window_bounds = array<i64: 1, 128>}, {pipeline_mode = #tpu.pipeline_mode<synchronous>, transform_indices = @transform_17, window_bounds = array<i64: 128, 128>}, {transform_indices = @transform_18, window_bounds = array<i64: 8, 128>}]} {
    %c0_i32 = arith.constant 0 : i32
    %0 = arith.cmpi eq, %arg1, %c0_i32 : i32
    %1 = arith.extui %0 : i1 to i32
    %c0_i32_0 = arith.constant 0 : i32
    %2 = arith.cmpi ne, %1, %c0_i32_0 : i32
    scf.if %2 {
      %c0_81 = arith.constant 0 : index
      %c0_82 = arith.constant 0 : index
      %c0_83 = arith.constant 0 : index
      %206 = vector.load %arg2[%c0_81, %c0_82, %c0_83] : memref<8x16x128xf32, #tpu.memory_space<vmem>>, vector<8x16x128xf32>
      %c0_84 = arith.constant 0 : index
      %c0_85 = arith.constant 0 : index
      %c0_86 = arith.constant 0 : index
      %207 = vector.load %arg21[%c0_84, %c0_85, %c0_86] : memref<8x16x128xf32, #tpu.memory_space<vmem>>, vector<8x16x128xf32>
      tpu.vector_store %arg21[%c0_84, %c0_85, %c0_86], %206 {strides = array<i32>} : memref<8x16x128xf32, #tpu.memory_space<vmem>>, vector<8x16x128xf32>,
      %208 = tpu.iota {dimensions = array<i32: 0>} : vector<16x16xi32>
      %209 = tpu.iota {dimensions = array<i32: 1>} : vector<16x16xi32>
      %210 = arith.cmpi sgt, %209, %208 : vector<16x16xi32>
      %cst_87 = arith.constant -1.000000e+09 : f32
      %cst_88 = arith.constant 0.000000e+00 : f32
      %211 = vector.broadcast %cst_87 : f32 to vector<16x16xf32>
      %212 = vector.broadcast %cst_88 : f32 to vector<16x16xf32>
      %213 = arith.select %210, %211, %212 : vector<16x16xi1>, vector<16x16xf32>
      %214 = vector.shape_cast %213 : vector<16x16xf32> to vector<1x16x16xf32>
      %c0_89 = arith.constant 0 : index
      %c0_90 = arith.constant 0 : index
      %215 = vector.load %arg3[%c0_89, %c0_90] : memref<8x16xf32, #tpu.memory_space<vmem>>, vector<8x16xf32>
      %216 = vector.shape_cast %215 : vector<8x16xf32> to vector<8x1x16xf32>
      %217 = vector.broadcast %214 : vector<1x16x16xf32> to vector<8x16x16xf32>
      %218 = vector.broadcast %216 : vector<8x1x16xf32> to vector<8x16x16xf32>
      %219 = arith.addf %217, %218 : vector<8x16x16xf32>
      %c0_91 = arith.constant 0 : index
      %c0_92 = arith.constant 0 : index
      %c0_93 = arith.constant 0 : index
      %220 = vector.load %arg22[%c0_91, %c0_92, %c0_93] : memref<8x16x16xf32, #tpu.memory_space<vmem>>, vector<8x16x16xf32>
      tpu.vector_store %arg22[%c0_91, %c0_92, %c0_93], %219 {strides = array<i32>} : memref<8x16x16xf32, #tpu.memory_space<vmem>>, vector<8x16x16xf32>,
    } else {
    }
    %c0 = arith.constant 0 : index
    %c0_1 = arith.constant 0 : index
    %c0_2 = arith.constant 0 : index
    %3 = vector.load %arg21[%c0, %c0_1, %c0_2] : memref<8x16x128xf32, #tpu.memory_space<vmem>>, vector<8x16x128xf32>
    %4 = vector.shape_cast %3 : vector<8x16x128xf32> to vector<128x128xf32>
    %c0_3 = arith.constant 0 : index
    %c0_4 = arith.constant 0 : index
    %c0_5 = arith.constant 0 : index
    %5 = vector.load %arg22[%c0_3, %c0_4, %c0_5] : memref<8x16x16xf32, #tpu.memory_space<vmem>>, vector<8x16x16xf32>
    %c0_6 = arith.constant 0 : index
    %c0_7 = arith.constant 0 : index
    %c0_8 = arith.constant 0 : index
    %6 = vector.load %arg5[%c0_6, %c0_7, %c0_8] : memref<1x1x128xf32, #tpu.memory_space<vmem>>, vector<1x1x128xf32>
    %7 = vector.shape_cast %6 : vector<1x1x128xf32> to vector<1x128xf32>
    %c0_9 = arith.constant 0 : index
    %c0_10 = arith.constant 0 : index
    %c0_11 = arith.constant 0 : index
    %8 = vector.load %arg6[%c0_9, %c0_10, %c0_11] : memref<1x1x128xf32, #tpu.memory_space<vmem>>, vector<1x1x128xf32>
    %9 = vector.shape_cast %8 : vector<1x1x128xf32> to vector<1x128xf32>
    %cst = arith.constant dense<0.000000e+00> : vector<128xf32>
    %10 = vector.multi_reduction <add>, %4, %cst [1] : vector<128x128xf32> to vector<128xf32>
    %11 = vector.shape_cast %10 : vector<128xf32> to vector<128x1xf32>
    %cst_12 = arith.constant 1.280000e+02 : f32
    %12 = vector.broadcast %cst_12 : f32 to vector<128x1xf32>
    %13 = arith.divf %11, %12 : vector<128x1xf32>
    %14 = vector.broadcast %13 : vector<128x1xf32> to vector<128x128xf32>
    %15 = arith.subf %4, %14 : vector<128x128xf32>
    %16 = arith.mulf %15, %15 : vector<128x128xf32>
    %cst_13 = arith.constant dense<0.000000e+00> : vector<128xf32>
    %17 = vector.multi_reduction <add>, %16, %cst_13 [1] : vector<128x128xf32> to vector<128xf32>
    %18 = vector.shape_cast %17 : vector<128xf32> to vector<128x1xf32>
    %cst_14 = arith.constant 1.280000e+02 : f32
    %19 = vector.broadcast %cst_14 : f32 to vector<128x1xf32>
    %20 = arith.divf %18, %19 : vector<128x1xf32>
    %cst_15 = arith.constant 9.99999974E-6 : f32
    %21 = vector.broadcast %cst_15 : f32 to vector<128x1xf32>
    %22 = arith.addf %20, %21 : vector<128x1xf32>
    %23 = math.rsqrt %22 : vector<128x1xf32>
    %24 = vector.broadcast %23 : vector<128x1xf32> to vector<128x128xf32>
    %25 = arith.mulf %15, %24 : vector<128x128xf32>
    %26 = vector.broadcast %7 : vector<1x128xf32> to vector<128x128xf32>
    %27 = arith.mulf %25, %26 : vector<128x128xf32>
    %28 = vector.broadcast %9 : vector<1x128xf32> to vector<128x128xf32>
    %29 = arith.addf %27, %28 : vector<128x128xf32>
    %30 = arith.truncf %29 : vector<128x128xf32> to vector<128x128xbf16>
    %c0_16 = arith.constant 0 : index
    %c0_17 = arith.constant 0 : index
    %c0_18 = arith.constant 0 : index
    %31 = vector.load %arg7[%c0_16, %c0_17, %c0_18] : memref<1x128x384xbf16, #tpu.memory_space<vmem>>, vector<1x128x384xbf16>
    %32 = vector.shape_cast %31 : vector<1x128x384xbf16> to vector<128x384xbf16>
    %cst_19 = arith.constant dense<0.000000e+00> : vector<128x384xf32>
    %33 = tpu.matmul %30, %32, %cst_19 {dimension_numbers = #tpu.dot_dimension_numbers<[1], [0], [0], [1], [0, 0, 1, 1], [], []>} : vector<128x128xbf16>, vector<128x384xbf16>, vector<128x384xf32> -> vector<128x384xf32>
    %c0_20 = arith.constant 0 : index
    %c0_21 = arith.constant 0 : index
    %c0_22 = arith.constant 0 : index
    %34 = vector.load %arg8[%c0_20, %c0_21, %c0_22] : memref<1x1x384xf32, #tpu.memory_space<vmem>>, vector<1x1x384xf32>
    %35 = vector.shape_cast %34 : vector<1x1x384xf32> to vector<1x384xf32>
    %36 = vector.broadcast %35 : vector<1x384xf32> to vector<128x384xf32>
    %37 = arith.addf %33, %36 : vector<128x384xf32>
    %38 = vector.extract_strided_slice %37 {offsets = [0, 0], sizes = [128, 32], strides = [1, 1]} : vector<128x384xf32> to vector<128x32xf32>
    %39 = vector.shape_cast %38 : vector<128x32xf32> to vector<8x16x32xf32>
    %40 = vector.extract_strided_slice %37 {offsets = [0, 128], sizes = [128, 32], strides = [1, 1]} : vector<128x384xf32> to vector<128x32xf32>
    %41 = vector.shape_cast %40 : vector<128x32xf32> to vector<8x16x32xf32>
    %42 = vector.extract_strided_slice %37 {offsets = [0, 256], sizes = [128, 32], strides = [1, 1]} : vector<128x384xf32> to vector<128x32xf32>
    %43 = vector.shape_cast %42 : vector<128x32xf32> to vector<8x16x32xf32>
    %cst_23 = arith.constant 0.176776692 : f32
    %44 = vector.broadcast %cst_23 : f32 to vector<8x16x32xf32>
    %45 = arith.mulf %39, %44 : vector<8x16x32xf32>
    %46 = arith.truncf %45 : vector<8x16x32xf32> to vector<8x16x32xbf16>
    %47 = arith.truncf %41 : vector<8x16x32xf32> to vector<8x16x32xbf16>
    "tpu.trace_start"() <{level = 10 : i32, message = "bqd,bkd->bqk"}> : () -> ()
    %cst_24 = arith.constant dense<0.000000e+00> : vector<8x16x16xf32>
    %48 = tpu.matmul %46, %47, %cst_24 {dimension_numbers = #tpu.dot_dimension_numbers<[2], [2], [1], [1], [0, 0, 0, 1, 1, 1], [0], [0]>} : vector<8x16x32xbf16>, vector<8x16x32xbf16>, vector<8x16x16xf32> -> vector<8x16x16xf32>
    "tpu.trace_stop"() : () -> ()
    %49 = arith.addf %48, %5 : vector<8x16x16xf32>
    %cst_25 = arith.constant dense<0xFF800000> : vector<8x16xf32>
    %50 = vector.multi_reduction <maximumf>, %49, %cst_25 [2] : vector<8x16x16xf32> to vector<8x16xf32>
    %51 = vector.shape_cast %50 : vector<8x16xf32> to vector<8x16x1xf32>
    %52 = vector.broadcast %51 : vector<8x16x1xf32> to vector<8x16x16xf32>
    %53 = arith.subf %49, %52 : vector<8x16x16xf32>
    %54 = math.exp %53 : vector<8x16x16xf32>
    %cst_26 = arith.constant dense<0.000000e+00> : vector<8x16xf32>
    %55 = vector.multi_reduction <add>, %54, %cst_26 [2] : vector<8x16x16xf32> to vector<8x16xf32>
    %56 = vector.shape_cast %55 : vector<8x16xf32> to vector<8x16x1xf32>
    %57 = tpu.reciprocal %56 {approx = true} : vector<8x16x1xf32> -> vector<8x16x1xf32>
    %58 = vector.broadcast %57 : vector<8x16x1xf32> to vector<8x16x16xf32>
    %59 = arith.mulf %54, %58 : vector<8x16x16xf32>
    %60 = arith.truncf %59 : vector<8x16x16xf32> to vector<8x16x16xbf16>
    %61 = arith.truncf %43 : vector<8x16x32xf32> to vector<8x16x32xbf16>
    "tpu.trace_start"() <{level = 10 : i32, message = "bqk,bkd->bqd"}> : () -> ()
    %cst_27 = arith.constant dense<0.000000e+00> : vector<8x16x32xf32>
    %62 = tpu.matmul %60, %61, %cst_27 {dimension_numbers = #tpu.dot_dimension_numbers<[2], [1], [1], [2], [0, 0, 0, 1, 1, 2], [0], [0]>} : vector<8x16x16xbf16>, vector<8x16x32xbf16>, vector<8x16x32xf32> -> vector<8x16x32xf32>
    "tpu.trace_stop"() : () -> ()
    %63 = vector.shape_cast %62 : vector<8x16x32xf32> to vector<128x32xf32>
    %64 = vector.extract_strided_slice %37 {offsets = [0, 32], sizes = [128, 32], strides = [1, 1]} : vector<128x384xf32> to vector<128x32xf32>
    %65 = vector.shape_cast %64 : vector<128x32xf32> to vector<8x16x32xf32>
    %66 = vector.extract_strided_slice %37 {offsets = [0, 160], sizes = [128, 32], strides = [1, 1]} : vector<128x384xf32> to vector<128x32xf32>
    %67 = vector.shape_cast %66 : vector<128x32xf32> to vector<8x16x32xf32>
    %68 = vector.extract_strided_slice %37 {offsets = [0, 288], sizes = [128, 32], strides = [1, 1]} : vector<128x384xf32> to vector<128x32xf32>
    %69 = vector.shape_cast %68 : vector<128x32xf32> to vector<8x16x32xf32>
    %cst_28 = arith.constant 0.176776692 : f32
    %70 = vector.broadcast %cst_28 : f32 to vector<8x16x32xf32>
    %71 = arith.mulf %65, %70 : vector<8x16x32xf32>
    %72 = arith.truncf %71 : vector<8x16x32xf32> to vector<8x16x32xbf16>
    %73 = arith.truncf %67 : vector<8x16x32xf32> to vector<8x16x32xbf16>
    "tpu.trace_start"() <{level = 10 : i32, message = "bqd,bkd->bqk"}> : () -> ()
    %cst_29 = arith.constant dense<0.000000e+00> : vector<8x16x16xf32>
    %74 = tpu.matmul %72, %73, %cst_29 {dimension_numbers = #tpu.dot_dimension_numbers<[2], [2], [1], [1], [0, 0, 0, 1, 1, 1], [0], [0]>} : vector<8x16x32xbf16>, vector<8x16x32xbf16>, vector<8x16x16xf32> -> vector<8x16x16xf32>
    "tpu.trace_stop"() : () -> ()
    %75 = arith.addf %74, %5 : vector<8x16x16xf32>
    %cst_30 = arith.constant dense<0xFF800000> : vector<8x16xf32>
    %76 = vector.multi_reduction <maximumf>, %75, %cst_30 [2] : vector<8x16x16xf32> to vector<8x16xf32>
    %77 = vector.shape_cast %76 : vector<8x16xf32> to vector<8x16x1xf32>
    %78 = vector.broadcast %77 : vector<8x16x1xf32> to vector<8x16x16xf32>
    %79 = arith.subf %75, %78 : vector<8x16x16xf32>
    %80 = math.exp %79 : vector<8x16x16xf32>
    %cst_31 = arith.constant dense<0.000000e+00> : vector<8x16xf32>
    %81 = vector.multi_reduction <add>, %80, %cst_31 [2] : vector<8x16x16xf32> to vector<8x16xf32>
    %82 = vector.shape_cast %81 : vector<8x16xf32> to vector<8x16x1xf32>
    %83 = tpu.reciprocal %82 {approx = true} : vector<8x16x1xf32> -> vector<8x16x1xf32>
    %84 = vector.broadcast %83 : vector<8x16x1xf32> to vector<8x16x16xf32>
    %85 = arith.mulf %80, %84 : vector<8x16x16xf32>
    %86 = arith.truncf %85 : vector<8x16x16xf32> to vector<8x16x16xbf16>
    %87 = arith.truncf %69 : vector<8x16x32xf32> to vector<8x16x32xbf16>
    "tpu.trace_start"() <{level = 10 : i32, message = "bqk,bkd->bqd"}> : () -> ()
    %cst_32 = arith.constant dense<0.000000e+00> : vector<8x16x32xf32>
    %88 = tpu.matmul %86, %87, %cst_32 {dimension_numbers = #tpu.dot_dimension_numbers<[2], [1], [1], [2], [0, 0, 0, 1, 1, 2], [0], [0]>} : vector<8x16x16xbf16>, vector<8x16x32xbf16>, vector<8x16x32xf32> -> vector<8x16x32xf32>
    "tpu.trace_stop"() : () -> ()
    %89 = vector.shape_cast %88 : vector<8x16x32xf32> to vector<128x32xf32>
    %90 = vector.extract_strided_slice %37 {offsets = [0, 64], sizes = [128, 32], strides = [1, 1]} : vector<128x384xf32> to vector<128x32xf32>
    %91 = vector.shape_cast %90 : vector<128x32xf32> to vector<8x16x32xf32>
    %92 = vector.extract_strided_slice %37 {offsets = [0, 192], sizes = [128, 32], strides = [1, 1]} : vector<128x384xf32> to vector<128x32xf32>
    %93 = vector.shape_cast %92 : vector<128x32xf32> to vector<8x16x32xf32>
    %94 = vector.extract_strided_slice %37 {offsets = [0, 320], sizes = [128, 32], strides = [1, 1]} : vector<128x384xf32> to vector<128x32xf32>
    %95 = vector.shape_cast %94 : vector<128x32xf32> to vector<8x16x32xf32>
    %cst_33 = arith.constant 0.176776692 : f32
    %96 = vector.broadcast %cst_33 : f32 to vector<8x16x32xf32>
    %97 = arith.mulf %91, %96 : vector<8x16x32xf32>
    %98 = arith.truncf %97 : vector<8x16x32xf32> to vector<8x16x32xbf16>
    %99 = arith.truncf %93 : vector<8x16x32xf32> to vector<8x16x32xbf16>
    "tpu.trace_start"() <{level = 10 : i32, message = "bqd,bkd->bqk"}> : () -> ()
    %cst_34 = arith.constant dense<0.000000e+00> : vector<8x16x16xf32>
    %100 = tpu.matmul %98, %99, %cst_34 {dimension_numbers = #tpu.dot_dimension_numbers<[2], [2], [1], [1], [0, 0, 0, 1, 1, 1], [0], [0]>} : vector<8x16x32xbf16>, vector<8x16x32xbf16>, vector<8x16x16xf32> -> vector<8x16x16xf32>
    "tpu.trace_stop"() : () -> ()
    %101 = arith.addf %100, %5 : vector<8x16x16xf32>
    %cst_35 = arith.constant dense<0xFF800000> : vector<8x16xf32>
    %102 = vector.multi_reduction <maximumf>, %101, %cst_35 [2] : vector<8x16x16xf32> to vector<8x16xf32>
    %103 = vector.shape_cast %102 : vector<8x16xf32> to vector<8x16x1xf32>
    %104 = vector.broadcast %103 : vector<8x16x1xf32> to vector<8x16x16xf32>
    %105 = arith.subf %101, %104 : vector<8x16x16xf32>
    %106 = math.exp %105 : vector<8x16x16xf32>
    %cst_36 = arith.constant dense<0.000000e+00> : vector<8x16xf32>
    %107 = vector.multi_reduction <add>, %106, %cst_36 [2] : vector<8x16x16xf32> to vector<8x16xf32>
    %108 = vector.shape_cast %107 : vector<8x16xf32> to vector<8x16x1xf32>
    %109 = tpu.reciprocal %108 {approx = true} : vector<8x16x1xf32> -> vector<8x16x1xf32>
    %110 = vector.broadcast %109 : vector<8x16x1xf32> to vector<8x16x16xf32>
    %111 = arith.mulf %106, %110 : vector<8x16x16xf32>
    %112 = arith.truncf %111 : vector<8x16x16xf32> to vector<8x16x16xbf16>
    %113 = arith.truncf %95 : vector<8x16x32xf32> to vector<8x16x32xbf16>
    "tpu.trace_start"() <{level = 10 : i32, message = "bqk,bkd->bqd"}> : () -> ()
    %cst_37 = arith.constant dense<0.000000e+00> : vector<8x16x32xf32>
    %114 = tpu.matmul %112, %113, %cst_37 {dimension_numbers = #tpu.dot_dimension_numbers<[2], [1], [1], [2], [0, 0, 0, 1, 1, 2], [0], [0]>} : vector<8x16x16xbf16>, vector<8x16x32xbf16>, vector<8x16x32xf32> -> vector<8x16x32xf32>
    "tpu.trace_stop"() : () -> ()
    %115 = vector.shape_cast %114 : vector<8x16x32xf32> to vector<128x32xf32>
    %116 = vector.extract_strided_slice %37 {offsets = [0, 96], sizes = [128, 32], strides = [1, 1]} : vector<128x384xf32> to vector<128x32xf32>
    %117 = vector.shape_cast %116 : vector<128x32xf32> to vector<8x16x32xf32>
    %118 = vector.extract_strided_slice %37 {offsets = [0, 224], sizes = [128, 32], strides = [1, 1]} : vector<128x384xf32> to vector<128x32xf32>
    %119 = vector.shape_cast %118 : vector<128x32xf32> to vector<8x16x32xf32>
    %120 = vector.extract_strided_slice %37 {offsets = [0, 352], sizes = [128, 32], strides = [1, 1]} : vector<128x384xf32> to vector<128x32xf32>
    %121 = vector.shape_cast %120 : vector<128x32xf32> to vector<8x16x32xf32>
    %cst_38 = arith.constant 0.176776692 : f32
    %122 = vector.broadcast %cst_38 : f32 to vector<8x16x32xf32>
    %123 = arith.mulf %117, %122 : vector<8x16x32xf32>
    %124 = arith.truncf %123 : vector<8x16x32xf32> to vector<8x16x32xbf16>
    %125 = arith.truncf %119 : vector<8x16x32xf32> to vector<8x16x32xbf16>
    "tpu.trace_start"() <{level = 10 : i32, message = "bqd,bkd->bqk"}> : () -> ()
    %cst_39 = arith.constant dense<0.000000e+00> : vector<8x16x16xf32>
    %126 = tpu.matmul %124, %125, %cst_39 {dimension_numbers = #tpu.dot_dimension_numbers<[2], [2], [1], [1], [0, 0, 0, 1, 1, 1], [0], [0]>} : vector<8x16x32xbf16>, vector<8x16x32xbf16>, vector<8x16x16xf32> -> vector<8x16x16xf32>
    "tpu.trace_stop"() : () -> ()
    %127 = arith.addf %126, %5 : vector<8x16x16xf32>
    %cst_40 = arith.constant dense<0xFF800000> : vector<8x16xf32>
    %128 = vector.multi_reduction <maximumf>, %127, %cst_40 [2] : vector<8x16x16xf32> to vector<8x16xf32>
    %129 = vector.shape_cast %128 : vector<8x16xf32> to vector<8x16x1xf32>
    %130 = vector.broadcast %129 : vector<8x16x1xf32> to vector<8x16x16xf32>
    %131 = arith.subf %127, %130 : vector<8x16x16xf32>
    %132 = math.exp %131 : vector<8x16x16xf32>
    %cst_41 = arith.constant dense<0.000000e+00> : vector<8x16xf32>
    %133 = vector.multi_reduction <add>, %132, %cst_41 [2] : vector<8x16x16xf32> to vector<8x16xf32>
    %134 = vector.shape_cast %133 : vector<8x16xf32> to vector<8x16x1xf32>
    %135 = tpu.reciprocal %134 {approx = true} : vector<8x16x1xf32> -> vector<8x16x1xf32>
    %136 = vector.broadcast %135 : vector<8x16x1xf32> to vector<8x16x16xf32>
    %137 = arith.mulf %132, %136 : vector<8x16x16xf32>
    %138 = arith.truncf %137 : vector<8x16x16xf32> to vector<8x16x16xbf16>
    %139 = arith.truncf %121 : vector<8x16x32xf32> to vector<8x16x32xbf16>
    "tpu.trace_start"() <{level = 10 : i32, message = "bqk,bkd->bqd"}> : () -> ()
    %cst_42 = arith.constant dense<0.000000e+00> : vector<8x16x32xf32>
    %140 = tpu.matmul %138, %139, %cst_42 {dimension_numbers = #tpu.dot_dimension_numbers<[2], [1], [1], [2], [0, 0, 0, 1, 1, 2], [0], [0]>} : vector<8x16x16xbf16>, vector<8x16x32xbf16>, vector<8x16x32xf32> -> vector<8x16x32xf32>
    "tpu.trace_stop"() : () -> ()
    %141 = vector.shape_cast %140 : vector<8x16x32xf32> to vector<128x32xf32>
    %142 = tpu.concatenate %63, %89, %115, %141 in 1 : vector<128x32xf32>, vector<128x32xf32>, vector<128x32xf32>, vector<128x32xf32> -> vector<128x128xf32>
    %143 = arith.truncf %142 : vector<128x128xf32> to vector<128x128xbf16>
    %c0_43 = arith.constant 0 : index
    %c0_44 = arith.constant 0 : index
    %c0_45 = arith.constant 0 : index
    %144 = vector.load %arg9[%c0_43, %c0_44, %c0_45] : memref<1x128x128xbf16, #tpu.memory_space<vmem>>, vector<1x128x128xbf16>
    %145 = vector.shape_cast %144 : vector<1x128x128xbf16> to vector<128x128xbf16>
    %cst_46 = arith.constant dense<0.000000e+00> : vector<128x128xf32>
    %146 = tpu.matmul %143, %145, %cst_46 {dimension_numbers = #tpu.dot_dimension_numbers<[1], [0], [0], [1], [0, 0, 1, 1], [], []>} : vector<128x128xbf16>, vector<128x128xbf16>, vector<128x128xf32> -> vector<128x128xf32>
    %147 = arith.addf %4, %146 : vector<128x128xf32>
    %c0_47 = arith.constant 0 : index
    %c0_48 = arith.constant 0 : index
    %c0_49 = arith.constant 0 : index
    %148 = vector.load %arg10[%c0_47, %c0_48, %c0_49] : memref<1x1x128xf32, #tpu.memory_space<vmem>>, vector<1x1x128xf32>
    %149 = vector.shape_cast %148 : vector<1x1x128xf32> to vector<1x128xf32>
    %150 = vector.broadcast %149 : vector<1x128xf32> to vector<128x128xf32>
    %151 = arith.addf %147, %150 : vector<128x128xf32>
    %c0_50 = arith.constant 0 : index
    %c0_51 = arith.constant 0 : index
    %c0_52 = arith.constant 0 : index
    %152 = vector.load %arg11[%c0_50, %c0_51, %c0_52] : memref<1x1x128xf32, #tpu.memory_space<vmem>>, vector<1x1x128xf32>
    %153 = vector.shape_cast %152 : vector<1x1x128xf32> to vector<1x128xf32>
    %c0_53 = arith.constant 0 : index
    %c0_54 = arith.constant 0 : index
    %c0_55 = arith.constant 0 : index
    %154 = vector.load %arg12[%c0_53, %c0_54, %c0_55] : memref<1x1x128xf32, #tpu.memory_space<vmem>>, vector<1x1x128xf32>
    %155 = vector.shape_cast %154 : vector<1x1x128xf32> to vector<1x128xf32>
    %cst_56 = arith.constant dense<0.000000e+00> : vector<128xf32>
    %156 = vector.multi_reduction <add>, %151, %cst_56 [1] : vector<128x128xf32> to vector<128xf32>
    %157 = vector.shape_cast %156 : vector<128xf32> to vector<128x1xf32>
    %cst_57 = arith.constant 1.280000e+02 : f32
    %158 = vector.broadcast %cst_57 : f32 to vector<128x1xf32>
    %159 = arith.divf %157, %158 : vector<128x1xf32>
    %160 = vector.broadcast %159 : vector<128x1xf32> to vector<128x128xf32>
    %161 = arith.subf %151, %160 : vector<128x128xf32>
    %162 = arith.mulf %161, %161 : vector<128x128xf32>
    %cst_58 = arith.constant dense<0.000000e+00> : vector<128xf32>
    %163 = vector.multi_reduction <add>, %162, %cst_58 [1] : vector<128x128xf32> to vector<128xf32>
    %164 = vector.shape_cast %163 : vector<128xf32> to vector<128x1xf32>
    %cst_59 = arith.constant 1.280000e+02 : f32
    %165 = vector.broadcast %cst_59 : f32 to vector<128x1xf32>
    %166 = arith.divf %164, %165 : vector<128x1xf32>
    %cst_60 = arith.constant 9.99999974E-6 : f32
    %167 = vector.broadcast %cst_60 : f32 to vector<128x1xf32>
    %168 = arith.addf %166, %167 : vector<128x1xf32>
    %169 = math.rsqrt %168 : vector<128x1xf32>
    %170 = vector.broadcast %169 : vector<128x1xf32> to vector<128x128xf32>
    %171 = arith.mulf %161, %170 : vector<128x128xf32>
    %172 = vector.broadcast %153 : vector<1x128xf32> to vector<128x128xf32>
    %173 = arith.mulf %171, %172 : vector<128x128xf32>
    %174 = vector.broadcast %155 : vector<1x128xf32> to vector<128x128xf32>
    %175 = arith.addf %173, %174 : vector<128x128xf32>
    %176 = arith.truncf %175 : vector<128x128xf32> to vector<128x128xbf16>
    %c0_61 = arith.constant 0 : index
    %c0_62 = arith.constant 0 : index
    %c0_63 = arith.constant 0 : index
    %177 = vector.load %arg13[%c0_61, %c0_62, %c0_63] : memref<1x128x256xbf16, #tpu.memory_space<vmem>>, vector<1x128x256xbf16>
    %178 = vector.shape_cast %177 : vector<1x128x256xbf16> to vector<128x256xbf16>
    %cst_64 = arith.constant dense<0.000000e+00> : vector<128x256xf32>
    %179 = tpu.matmul %176, %178, %cst_64 {dimension_numbers = #tpu.dot_dimension_numbers<[1], [0], [0], [1], [0, 0, 1, 1], [], []>} : vector<128x128xbf16>, vector<128x256xbf16>, vector<128x256xf32> -> vector<128x256xf32>
    %c0_65 = arith.constant 0 : index
    %c0_66 = arith.constant 0 : index
    %c0_67 = arith.constant 0 : index
    %180 = vector.load %arg14[%c0_65, %c0_66, %c0_67] : memref<1x1x256xf32, #tpu.memory_space<vmem>>, vector<1x1x256xf32>
    %181 = vector.shape_cast %180 : vector<1x1x256xf32> to vector<1x256xf32>
    %182 = vector.broadcast %181 : vector<1x256xf32> to vector<128x256xf32>
    %183 = arith.addf %179, %182 : vector<128x256xf32>
    %cst_68 = arith.constant 1.702000e+00 : f32
    %184 = vector.broadcast %cst_68 : f32 to vector<128x256xf32>
    %185 = arith.mulf %184, %183 : vector<128x256xf32>
    %186 = arith.negf %185 : vector<128x256xf32>
    %187 = math.exp %186 : vector<128x256xf32>
    %cst_69 = arith.constant 1.000000e+00 : f32
    %188 = vector.broadcast %cst_69 : f32 to vector<128x256xf32>
    %189 = arith.addf %188, %187 : vector<128x256xf32>
    %190 = arith.divf %188, %189 : vector<128x256xf32>
    %191 = arith.mulf %183, %190 : vector<128x256xf32>
    %192 = arith.truncf %191 : vector<128x256xf32> to vector<128x256xbf16>
    %c0_70 = arith.constant 0 : index
    %c0_71 = arith.constant 0 : index
    %c0_72 = arith.constant 0 : index
    %193 = vector.load %arg15[%c0_70, %c0_71, %c0_72] : memref<1x256x128xbf16, #tpu.memory_space<vmem>>, vector<1x256x128xbf16>
    %194 = vector.shape_cast %193 : vector<1x256x128xbf16> to vector<256x128xbf16>
    %cst_73 = arith.constant dense<0.000000e+00> : vector<128x128xf32>
    %195 = tpu.matmul %192, %194, %cst_73 {dimension_numbers = #tpu.dot_dimension_numbers<[1], [0], [0], [1], [0, 0, 1, 1], [], []>} : vector<128x256xbf16>, vector<256x128xbf16>, vector<128x128xf32> -> vector<128x128xf32>
    %c0_74 = arith.constant 0 : index
    %c0_75 = arith.constant 0 : index
    %c0_76 = arith.constant 0 : index
    %196 = vector.load %arg16[%c0_74, %c0_75, %c0_76] : memref<1x1x128xf32, #tpu.memory_space<vmem>>, vector<1x1x128xf32>
    %197 = vector.shape_cast %196 : vector<1x1x128xf32> to vector<1x128xf32>
    %198 = vector.broadcast %197 : vector<1x128xf32> to vector<128x128xf32>
    %199 = arith.addf %195, %198 : vector<128x128xf32>
    %200 = arith.addf %151, %199 : vector<128x128xf32>
    %201 = vector.shape_cast %200 : vector<128x128xf32> to vector<8x16x128xf32>
    %c0_77 = arith.constant 0 : index
    %c0_78 = arith.constant 0 : index
    %c0_79 = arith.constant 0 : index
    %202 = vector.load %arg21[%c0_77, %c0_78, %c0_79] : memref<8x16x128xf32, #tpu.memory_space<vmem>>, vector<8x16x128xf32>
    tpu.vector_store %arg21[%c0_77, %c0_78, %c0_79], %201 {strides = array<i32>} : memref<8x16x128xf32, #tpu.memory_space<vmem>>, vector<8x16x128xf32>,
    %c1_i32 = arith.constant 1 : i32
    %203 = arith.cmpi eq, %arg1, %c1_i32 : i32
    %204 = arith.extui %203 : i1 to i32
    %c0_i32_80 = arith.constant 0 : i32
    %205 = arith.cmpi ne, %204, %c0_i32_80 : i32
    scf.if %205 {
      %c0_81 = arith.constant 0 : index
      %c0_82 = arith.constant 0 : index
      %206 = vector.load %arg17[%c0_81, %c0_82] : memref<1x128xf32, #tpu.memory_space<vmem>>, vector<1x128xf32>
      %c0_83 = arith.constant 0 : index
      %c0_84 = arith.constant 0 : index
      %207 = vector.load %arg18[%c0_83, %c0_84] : memref<1x128xf32, #tpu.memory_space<vmem>>, vector<1x128xf32>
      %cst_85 = arith.constant dense<0.000000e+00> : vector<128xf32>
      %208 = vector.multi_reduction <add>, %200, %cst_85 [1] : vector<128x128xf32> to vector<128xf32>
      %209 = vector.shape_cast %208 : vector<128xf32> to vector<128x1xf32>
      %cst_86 = arith.constant 1.280000e+02 : f32
      %210 = vector.broadcast %cst_86 : f32 to vector<128x1xf32>
      %211 = arith.divf %209, %210 : vector<128x1xf32>
      %212 = vector.broadcast %211 : vector<128x1xf32> to vector<128x128xf32>
      %213 = arith.subf %200, %212 : vector<128x128xf32>
      %214 = arith.mulf %213, %213 : vector<128x128xf32>
      %cst_87 = arith.constant dense<0.000000e+00> : vector<128xf32>
      %215 = vector.multi_reduction <add>, %214, %cst_87 [1] : vector<128x128xf32> to vector<128xf32>
      %216 = vector.shape_cast %215 : vector<128xf32> to vector<128x1xf32>
      %cst_88 = arith.constant 1.280000e+02 : f32
      %217 = vector.broadcast %cst_88 : f32 to vector<128x1xf32>
      %218 = arith.divf %216, %217 : vector<128x1xf32>
      %cst_89 = arith.constant 9.99999974E-6 : f32
      %219 = vector.broadcast %cst_89 : f32 to vector<128x1xf32>
      %220 = arith.addf %218, %219 : vector<128x1xf32>
      %221 = math.rsqrt %220 : vector<128x1xf32>
      %222 = vector.broadcast %221 : vector<128x1xf32> to vector<128x128xf32>
      %223 = arith.mulf %213, %222 : vector<128x128xf32>
      %224 = vector.broadcast %206 : vector<1x128xf32> to vector<128x128xf32>
      %225 = arith.mulf %223, %224 : vector<128x128xf32>
      %226 = vector.broadcast %207 : vector<1x128xf32> to vector<128x128xf32>
      %227 = arith.addf %225, %226 : vector<128x128xf32>
      %228 = vector.shape_cast %227 : vector<128x128xf32> to vector<8x16x128xf32>
      %c0_90 = arith.constant 0 : index
      %c0_91 = arith.constant 0 : index
      %229 = vector.load %arg4[%c0_90, %c0_91] : memref<8x16xf32, #tpu.memory_space<vmem>>, vector<8x16xf32>
      %230 = vector.shape_cast %229 : vector<8x16xf32> to vector<8x16x1xf32>
      %231 = vector.broadcast %230 : vector<8x16x1xf32> to vector<8x16x128xf32>
      %232 = arith.mulf %228, %231 : vector<8x16x128xf32>
      %cst_92 = arith.constant dense<0.000000e+00> : vector<8x128xf32>
      %233 = vector.multi_reduction <add>, %232, %cst_92 [1] : vector<8x16x128xf32> to vector<8x128xf32>
      %234 = arith.truncf %233 : vector<8x128xf32> to vector<8x128xbf16>
      %c0_93 = arith.constant 0 : index
      %c0_94 = arith.constant 0 : index
      %235 = vector.load %arg19[%c0_93, %c0_94] : memref<128x128xbf16, #tpu.memory_space<vmem>>, vector<128x128xbf16>
      %cst_95 = arith.constant dense<0.000000e+00> : vector<8x128xf32>
      %236 = tpu.matmul %234, %235, %cst_95 {dimension_numbers = #tpu.dot_dimension_numbers<[1], [0], [0], [1], [0, 0, 1, 1], [], []>} : vector<8x128xbf16>, vector<128x128xbf16>, vector<8x128xf32> -> vector<8x128xf32>
      %c0_96 = arith.constant 0 : index
      %c0_97 = arith.constant 0 : index
      %237 = vector.load %arg20[%c0_96, %c0_97] : memref<8x128xf32, #tpu.memory_space<vmem>>, vector<8x128xf32>
      tpu.vector_store %arg20[%c0_96, %c0_97], %236 {strides = array<i32>} : memref<8x128xf32, #tpu.memory_space<vmem>>, vector<8x128xf32>,
    } else {
    }
    return
  }
  func.func @transform_0(%arg0: i32, %arg1: i32) -> (i32, i32, i32) {
    %c0_i32 = arith.constant 0 : i32
    %c0_i32_0 = arith.constant 0 : i32
    %c0_i32_1 = arith.constant 0 : i32
    return %arg0, %c0_i32, %c0_i32_0 : i32, i32, i32
  }
  func.func @transform_1(%arg0: i32, %arg1: i32) -> (i32, i32) {
    %c0_i32 = arith.constant 0 : i32
    %c0_i32_0 = arith.constant 0 : i32
    return %arg0, %c0_i32 : i32, i32
  }
  func.func @transform_2(%arg0: i32, %arg1: i32) -> (i32, i32) {
    %c0_i32 = arith.constant 0 : i32
    %c0_i32_0 = arith.constant 0 : i32
    return %arg0, %c0_i32 : i32, i32
  }
  func.func @transform_3(%arg0: i32, %arg1: i32) -> (i32, i32, i32) {
    %c0_i32 = arith.constant 0 : i32
    %c0_i32_0 = arith.constant 0 : i32
    %c0_i32_1 = arith.constant 0 : i32
    return %arg1, %c0_i32, %c0_i32_0 : i32, i32, i32
  }
  func.func @transform_4(%arg0: i32, %arg1: i32) -> (i32, i32, i32) {
    %c0_i32 = arith.constant 0 : i32
    %c0_i32_0 = arith.constant 0 : i32
    %c0_i32_1 = arith.constant 0 : i32
    return %arg1, %c0_i32, %c0_i32_0 : i32, i32, i32
  }
  func.func @transform_5(%arg0: i32, %arg1: i32) -> (i32, i32, i32) {
    %c0_i32 = arith.constant 0 : i32
    %c0_i32_0 = arith.constant 0 : i32
    %c0_i32_1 = arith.constant 0 : i32
    return %arg1, %c0_i32, %c0_i32_0 : i32, i32, i32
  }
  func.func @transform_6(%arg0: i32, %arg1: i32) -> (i32, i32, i32) {
    %c0_i32 = arith.constant 0 : i32
    %c0_i32_0 = arith.constant 0 : i32
    %c0_i32_1 = arith.constant 0 : i32
    return %arg1, %c0_i32, %c0_i32_0 : i32, i32, i32
  }
  func.func @transform_7(%arg0: i32, %arg1: i32) -> (i32, i32, i32) {
    %c0_i32 = arith.constant 0 : i32
    %c0_i32_0 = arith.constant 0 : i32
    %c0_i32_1 = arith.constant 0 : i32
    return %arg1, %c0_i32, %c0_i32_0 : i32, i32, i32
  }
  func.func @transform_8(%arg0: i32, %arg1: i32) -> (i32, i32, i32) {
    %c0_i32 = arith.constant 0 : i32
    %c0_i32_0 = arith.constant 0 : i32
    %c0_i32_1 = arith.constant 0 : i32
    return %arg1, %c0_i32, %c0_i32_0 : i32, i32, i32
  }
  func.func @transform_9(%arg0: i32, %arg1: i32) -> (i32, i32, i32) {
    %c0_i32 = arith.constant 0 : i32
    %c0_i32_0 = arith.constant 0 : i32
    %c0_i32_1 = arith.constant 0 : i32
    return %arg1, %c0_i32, %c0_i32_0 : i32, i32, i32
  }
  func.func @transform_10(%arg0: i32, %arg1: i32) -> (i32, i32, i32) {
    %c0_i32 = arith.constant 0 : i32
    %c0_i32_0 = arith.constant 0 : i32
    %c0_i32_1 = arith.constant 0 : i32
    return %arg1, %c0_i32, %c0_i32_0 : i32, i32, i32
  }
  func.func @transform_11(%arg0: i32, %arg1: i32) -> (i32, i32, i32) {
    %c0_i32 = arith.constant 0 : i32
    %c0_i32_0 = arith.constant 0 : i32
    %c0_i32_1 = arith.constant 0 : i32
    return %arg1, %c0_i32, %c0_i32_0 : i32, i32, i32
  }
  func.func @transform_12(%arg0: i32, %arg1: i32) -> (i32, i32, i32) {
    %c0_i32 = arith.constant 0 : i32
    %c0_i32_0 = arith.constant 0 : i32
    %c0_i32_1 = arith.constant 0 : i32
    return %arg1, %c0_i32, %c0_i32_0 : i32, i32, i32
  }
  func.func @transform_13(%arg0: i32, %arg1: i32) -> (i32, i32, i32) {
    %c0_i32 = arith.constant 0 : i32
    %c0_i32_0 = arith.constant 0 : i32
    %c0_i32_1 = arith.constant 0 : i32
    return %arg1, %c0_i32, %c0_i32_0 : i32, i32, i32
  }
  func.func @transform_14(%arg0: i32, %arg1: i32) -> (i32, i32, i32) {
    %c0_i32 = arith.constant 0 : i32
    %c0_i32_0 = arith.constant 0 : i32
    %c0_i32_1 = arith.constant 0 : i32
    return %arg1, %c0_i32, %c0_i32_0 : i32, i32, i32
  }
  func.func @transform_15(%arg0: i32, %arg1: i32) -> (i32, i32) {
    %c0_i32 = arith.constant 0 : i32
    %c0_i32_0 = arith.constant 0 : i32
    %c0_i32_1 = arith.constant 0 : i32
    return %c0_i32, %c0_i32_0 : i32, i32
  }
  func.func @transform_16(%arg0: i32, %arg1: i32) -> (i32, i32) {
    %c0_i32 = arith.constant 0 : i32
    %c0_i32_0 = arith.constant 0 : i32
    %c0_i32_1 = arith.constant 0 : i32
    return %c0_i32, %c0_i32_0 : i32, i32
  }
  func.func @transform_17(%arg0: i32, %arg1: i32) -> (i32, i32) {
    %c0_i32 = arith.constant 0 : i32
    %c0_i32_0 = arith.constant 0 : i32
    %c0_i32_1 = arith.constant 0 : i32
    return %c0_i32, %c0_i32_0 : i32, i32
  }
  func.func @transform_18(%arg0: i32, %arg1: i32) -> (i32, i32) {
    %c0_i32 = arith.constant 0 : i32
    %c0_i32_0 = arith.constant 0 : i32
    return %arg0, %c0_i32 : i32, i32
  }
}

</mosaic_0001>

<bundles_post_ra>
// kernel: tpu_custom_call.1
= control target key start
LH: loop header
LB: loop body
LE: loop exit
PB: predicated region body
PF: predicated region fallthrough
CT: control target
= control target key end

     0   :  { %s13091_s0 = inlined_call_operand.hbm [shape: f32[16,16,128], index: 0, kind: input, shape index: {}]   ;;  %s13092_s1 = inlined_call_operand.hbm [shape: f32[16,16], index: 1, kind: input, shape index: {}]   ;;  %s13093_s2 = inlined_call_operand.hbm [shape: f32[16,16], index: 2, kind: input, shape index: {}]   ;;  %s13094_s3 = inlined_call_operand.vmem [shape: f32[2,1,128], index: 3, kind: input, shape index: {}]   ;;  %s13095_s4 = inlined_call_operand.hbm [shape: f32[2,1,128], index: 4, kind: input, shape index: {}]   ;;  %s13096_s5 = inlined_call_operand.hbm [shape: bf16[2,128,384], index: 5, kind: input, shape index: {}]   ;;  %s13097_s6 = inlined_call_operand.hbm [shape: f32[2,1,384], index: 6, kind: input, shape index: {}]   ;;  %s13098_s7 = inlined_call_operand.hbm [shape: bf16[2,128,128], index: 7, kind: input, shape index: {}]   ;;  %s13099_s8 = inlined_call_operand.hbm [shape: f32[2,1,128], index: 8, kind: input, shape index: {}]   ;;  %s13100_s9 = inlined_call_operand.vmem [shape: f32[2,1,128], index: 9, kind: input, shape index: {}]   ;;  %s13101_s10 = inlined_call_operand.hbm [shape: f32[2,1,128], index: 10, kind: input, shape index: {}]   ;;  %s13102_s11 = inlined_call_operand.hbm [shape: bf16[2,128,256], index: 11, kind: input, shape index: {}]   ;;  %s13103_s12 = inlined_call_operand.vmem [shape: f32[2,1,256], index: 12, kind: input, shape index: {}]   ;;  %s13104_s13 = inlined_call_operand.hbm [shape: bf16[2,256,128], index: 13, kind: input, shape index: {}]   ;;  %s13105_s14 = inlined_call_operand.vmem [shape: f32[2,1,128], index: 14, kind: input, shape index: {}]   ;;  %s13106_s15 = inlined_call_operand.vmem [shape: f32[1,128], index: 15, kind: input, shape index: {}]   ;;  %s13107_s16 = inlined_call_operand.vmem [shape: f32[1,128], index: 16, kind: input, shape index: {}]   ;;  %s13108_s17 = inlined_call_operand.hbm [shape: bf16[128,128], index: 17, kind: input, shape index: {}]   ;;  %s13109_s18 = inlined_call_operand.hbm [shape: f32[16,128], index: 18, kind: output, shape index: {}]  }
   0x1   :  { %13176 = sst [smem:[#allocation90_spill]] %s13091_s0 }
   0x2   :  { %13177 = sst [smem:[#allocation91_spill]] %s13092_s1 }
   0x3   :  { %13178 = sst [smem:[#allocation92_spill]] %s13093_s2 }
   0x4   :  { %13179 = sst [smem:[#allocation93_spill]] %s13094_s3 }
   0x5   :  { %13180 = sst [smem:[#allocation94_spill]] %s13095_s4 }
   0x6   :  { %13181 = sst [smem:[#allocation95_spill]] %s13096_s5 }
   0x7   :  { %13182 = sst [smem:[#allocation96_spill]] %s13097_s6 }
   0x8   :  { %13183 = sst [smem:[#allocation97_spill]] %s13098_s7 }
   0x9   :  { %13184 = sst [smem:[#allocation98_spill]] %s13099_s8 }
   0xa   :  { %13185 = sst [smem:[#allocation99_spill]] %s13100_s9 }
   0xb   :  { %13186 = sst [smem:[#allocation100_spill]] %s13101_s10 }
   0xc   :  { %13187 = sst [smem:[#allocation101_spill]] %s13102_s11 }
   0xd   :  { %13188 = sst [smem:[#allocation102_spill]] %s13103_s12 }
   0xe   :  { %13189 = sst [smem:[#allocation103_spill]] %s13104_s13 }
   0xf   :  { %13190 = sst [smem:[#allocation104_spill]] %s13105_s14 }
  0x10   :  { %13191 = sst [smem:[#allocation105_spill]] %s13106_s15 }
  0x11   :  { %13192 = sst [smem:[#allocation106_spill]] %s13107_s16 }
  0x12   :  { %13193 = sst [smem:[#allocation107_spill]] %s13108_s17 }
  0x13   :  { %13194 = sst [smem:[#allocation108_spill]] %s13109_s18 }
  0x14   :  { %23 = vsyncpa [#allocation5], 0 }
  0x15   :  { %25 = vsyncpa [#allocation5 + $0x1], 0 }
  0x16   :  { %26 = vsyncpa [#allocation8], 0 }
  0x17   :  { %28 = vsyncpa [#allocation8 + $0x1], 0 }
  0x18   :  { %29 = vsyncpa [#allocation11], 0 }
  0x19   :  { %31 = vsyncpa [#allocation11 + $0x1], 0 }
  0x1a   :  { %32 = vsyncpa [#allocation14], 0 }
  0x1b   :  { %34 = vsyncpa [#allocation14 + $0x1], 0 }
  0x1c   :  { %35 = vsyncpa [#allocation17], 0 }
  0x1d   :  { %37 = vsyncpa [#allocation17 + $0x1], 0 }
  0x1e   :  { %38 = vsyncpa [#allocation20], 0 }
  0x1f   :  { %40 = vsyncpa [#allocation20 + $0x1], 0 }
  0x20   :  { %41 = vsyncpa [#allocation23], 0 }
  0x21   :  { %42 = vsyncpa [#allocation6], 0 }
  0x22   :  { %44 = vsyncpa [#allocation6 + $0x1], 0  ;;  %s9252_s27 = smov 0   ;;  %s9254_s28 = smov 0  }
  0x23   :  { %s9256_s29 = smov 0   ;;  %s9258_s30 = smov 0  }
  0x24   :  { %s9260_s0 = smov 0   ;;  %s9262_s19 = smov 0  }
  0x25   :  { %s9264_s1 = smov 0   ;;  %s9266_s20 = smov 0  }
  0x26   :  { %s9268_s21 = smov 0   ;;  %s9270_s22 = smov 0  }
  0x27   :  { %s9272_s2 = smov 0  }
  0x28 LB: > { %13195 = sst [smem:[#allocation33_spill]] %s9107_s28  ;;  %s9308_s23 = sadd.s32 4294967295, %s9143_s2   ;;  %s9143_s2 = sphi %s9272_s2, %s50_s2   ;;  %s9139_s22 = sphi %s9270_s22, %s13492_s22   ;;  %s9135_s21 = sphi %s9268_s21, %s13496_s21   ;;  %s9131_s20 = sphi %s9266_s20, %s13490_s20   ;;  %s9127_s1 = sphi %s9264_s1, %s13495_s1   ;;  %s9123_s19 = sphi %s9262_s19, %s13489_s19   ;;  %s9119_s0 = sphi %s9260_s0, %s13488_s0   ;;  %s9115_s30 = sphi %s9258_s30, %s13487_s30   ;;  %s9111_s29 = sphi %s9256_s29, %s13494_s29   ;;  %s9107_s28 = sphi %s9254_s28, %s13493_s28   ;;  %s9103_s27 = sphi %s9252_s27, %s13485_s27  }
  0x29   : > { %13196 = sst [smem:[#allocation34_spill]] %s9115_s30  ;;  %s7287_s24 = sadd.s32 4294967294, %s9143_s2  }
  0x2a   : > { %13197 = sst [smem:[#allocation35_spill]] %s9119_s0  ;;  %s59_s25 = sadd.s32 1, %s9135_s21 }
  0x2b   : > { %13198 = sst [smem:[#allocation36_spill]] %s9123_s19  ;;  %s62_s26 = sadd.s32 1, %s9139_s22 }
  0x2c   : > { %13199 = sst [smem:[#allocation37_spill]] %s9127_s1  ;;  %p60_p0 = scmp.ge.s32.totalorder %s59_s25, 2 }
  0x2d   : > { %13200 = sst [smem:[#allocation38_spill]] %s9131_s20  ;;  %s69_s18 = sadd.s32 1, %s9123_s19 }
  0x2e   : > { %13201 = sst [smem:[#allocation39_spill]] %s9139_s22  ;;  %p76_p1 = scmp.ne.s32.totalorder %s9123_s19, %s9119_s0 }
  0x2f   : > { %p77_p2 = scmp.eq.s32.totalorder %s9143_s2, 0  ;;  %s13498_s25 = smov (%p60_p0, %s59_s25), 0 }
  0x30   : > { %13202 = sst [smem:[#allocation40_spill]] %s13498_s25  ;;  %s13500_s26 = smov (!%p60_p0, %s62_s26), %s9139_s22 }
  0x31   : > { %p9325_p3 = por %p77_p2, %p76_p1  ;;  %p13113_p4 = scmp.ne.s32.totalorder %s9119_s0, %s9115_s30 }
  0x32   : > { %p64_p5 = scmp.ge.s32.totalorder %s13500_s26, 2  ;;  %p83_p6 = scmp.eq.s32.totalorder %s9308_s23, 0 }
  0x33   : > { %s170_s16 = ssub.s32 %s9135_s21, %s13498_s25  ;;  %s173_s15 = sadd.s32 1, %s9111_s29 }
  0x34   : > { %s13502_s26 = smov (%p64_p5, %s13500_s26), 0  ;;  %p9342_p7 = por %p83_p6, %p13113_p4 }
  0x35   : > { %13204 = sst [smem:[#allocation41_spill]] %s13502_s26  ;;  %p171_p8 = scmp.eq.s32.totalorder %s170_s16, 0 }
  0x36   : > { %s13205_s12 = scalar_select %p9342_p7, 1, 0 }
  0x37   : > { %s66_s14 = ssub.s32 %s9139_s22, %s13502_s26  ;;  %p180_p9 = scmp.ne.s32.totalorder %s9111_s29, %s9107_s28 }
  0x38   : > { %13206 = sst [smem:[#allocation42_spill]] %s13205_s12  ;;  %p67_p10 = scmp.eq.s32.totalorder %s66_s14, 0 }
  0x39   : > { %p186_p11 = scmp.ne.s32.totalorder %s9107_s28, %s9103_s27  ;;  %p9360_p12 = por %p180_p9, %p77_p2 }
  0x3a   : > { %s9353_s25 = scalar_select %p171_p8, %s9111_s29, %s173_s15  }
  0x3b   : > { %s9356_s9 = scalar_select %p67_p10, %s9123_s19, %s69_s18  }
  0x3c   : > { %13207 = sst [smem:[#allocation43_spill]] %s9353_s25  ;;  %p9366_p13 = por %p186_p11, %p83_p6 }
  0x3d   : > { %13208 = sst [smem:[#allocation44_spill]] %s9356_s9  ;;  %p533_p0 = scmp.eq.s32.totalorder %s9308_s23, 3 }
  0x3e   : > { %s13210_s1 = scalar_select %p9366_p13, 1, 0 }
  0x3f   : > { %p539_p5 = scmp.eq.s32.totalorder %s7287_s24, 3  ;;  %p9374_p4 = por %p533_p0, %p76_p1 }
  0x40   : > { %13211 = sst [smem:[#allocation45_spill]] %s13210_s1  ;;  %p13214_p8 = scmp.ne.s32.totalorder %s9119_s0, %s9115_s30 }
  0x41   : > { %s13212_s14 = scalar_select %p9374_p4, 1, 0 }
  0x42   : > { %p9381_p10 = por %p539_p5, %p13214_p8  ;;  %p7879_p2 = scmp.lt.s32.totalorder %s9143_s2, 4 }
  0x43   : > { %13213 = sst [smem:[#allocation46_spill]] %s13212_s14  ;;  %s9387_s16 = sand.u32 1, %s9123_s19  }
  0x44   : > { %s13215_s15 = scalar_select %p9381_p10, 1, 0 }
  0x45   : > { %s9390_s18 = sand.u32 1, %s9143_s2   ;;  %s13127_s27 = sshll.u32 %s9387_s16, 3 }
  0x46   : > { %13216 = sst [smem:[#allocation47_spill]] %s13215_s15  ;;  %p9397_p1 = pnand %p7879_p2, %p9325_p3 }
  0x47   : > { %s7296_s26 = sshll.u32 %s9139_s22, 3  ;;  %s13218_s19 = sld [smem:[#allocation91_spill]] }
  0x48   : > { %s606_s14 = scalar_lea.vmem [#allocation7], %s13127_s27  ;;  %s13126_s20 = scalar_lea.sflag [#allocation8], %s9390_s18 }
  0x49   : > { %s614_s1 = sshll.u32 %s606_s14, 4  ;;  %s13219_s0 = sld [smem:[#allocation92_spill]]  ;;  %s615_s1 = int_to_ptr.vmem [resolvable:$true] %s614_s1 }
  0x4a   : > { %p9421_p3 = pnand %p7879_p2, %p9360_p12  ;;  %s13221_s4 = sld [smem:[#allocation94_spill]] }
  0x4b   : > { %s13128_s28 = scalar_lea.sflag [#allocation11], %s9390_s18  ;;  %s13222_s6 = sld [smem:[#allocation96_spill]] }
  0x4c   : > { %s13223_s8 = sld [smem:[#allocation98_spill]]  ;;  %p7288_p9 = scmp.ge.s32.totalorder %s9143_s2, 1 }
  0x4d   : > { %s610_s15 = scalar_lea.hbm %s13218_s19, %s7296_s26  ;;  %s9426_s19 = sand.u32 1, %s9111_s29  }
  0x4e   : > { %s612_s30 = sshll.u32 %s610_s15, 4  ;;  %s649_s12 = scalar_lea.vmem [#allocation10], %s9426_s19  ;;  %s613_s30 = int_to_ptr.hbm [resolvable:$true] %s612_s30 }
  0x4f   : > { %7846 = dma.hbm_to_vmem [thread:$0]  (!%p9397_p1), %s613_s30, 128, %s615_s1, %s13126_s20  }
  0x50   : > { %s9415_s10 = scalar_lea.hbm %s13219_s0, %s7296_s26  ;;  %s652_s30 = scalar_lea.hbm %s13221_s4, %s9135_s21 }
  0x51   : > { %s654_s1 = sshll.u32 %s652_s30, 4  ;;  %s656_s3 = sshll.u32 %s649_s12, 4  ;;  %s655_s1 = int_to_ptr.hbm [resolvable:$true] %s654_s1  ;;  %s657_s3 = int_to_ptr.vmem [resolvable:$true] %s656_s3 }
  0x52   : > { %7852 = dma.hbm_to_vmem [thread:$0]  (!%p9421_p3), %s655_s1, 16, %s657_s3, %s13128_s28  }
  0x53   : > { %s7804_s0 = smul.u32 3, %s9426_s19  ;;  %s732_s1 = scalar_lea.hbm %s13223_s8, %s9135_s21 }
  0x54   : > { %s7805_s26 = smul.u32 3, %s9135_s21  ;;  %s13129_s3 = scalar_lea.sflag [#allocation14], %s9390_s18 }
  0x55   : > { %s689_s30 = scalar_lea.vmem [#allocation13], %s7804_s0  ;;  %s734_s15 = sshll.u32 %s732_s1, 4  ;;  %s735_s15 = int_to_ptr.hbm [resolvable:$true] %s734_s15 }
  0x56   : > { %s693_s14 = scalar_lea.hbm %s13222_s6, %s7805_s26  ;;  %s697_s12 = sshll.u32 %s689_s30, 4  ;;  %s698_s12 = int_to_ptr.vmem [resolvable:$true] %s697_s12 }
  0x57   : > { %s695_s20 = sshll.u32 %s693_s14, 4  ;;  %s729_s25 = scalar_lea.vmem [#allocation16], %s9426_s19  ;;  %s696_s20 = int_to_ptr.hbm [resolvable:$true] %s695_s20 }
  0x58   : > { %7858 = dma.hbm_to_vmem [thread:$0]  (!%p9421_p3), %s696_s20, 48, %s698_s12, %s13129_s3  }
  0x59   : > { %s736_s28 = sshll.u32 %s729_s25, 4  ;;  %s13130_s0 = scalar_lea.sflag [#allocation17], %s9390_s18  ;;  %s737_s28 = int_to_ptr.vmem [resolvable:$true] %s736_s28 }
  0x5a   : > { %7864 = dma.hbm_to_vmem [thread:$0]  (!%p9421_p3), %s735_s15, 16, %s737_s28, %s13130_s0  }
  0x5b   : > { %s7303_s26 = sshll.u32 %s9426_s19, 7  ;;  %s7712_s14 = sshll.u32 %s9135_s21, 7 }
  0x5c   : > { %s13224_s11 = sld [smem:[#allocation101_spill]]  ;;  %s770_s20 = scalar_lea.vmem [#allocation19], %s7303_s26 }
  0x5d   : > { %s778_s12 = sshll.u32 %s770_s20, 4  ;;  %s13131_s25 = scalar_lea.sflag [#allocation20], %s9390_s18  ;;  %s779_s12 = int_to_ptr.vmem [resolvable:$true] %s778_s12 }
  0x5e   : > { %s13132_s3 = smov 128   ;;  %s13133_s6 = smov 8  }
  0x5f   : > { %s13225_s13 = sld [smem:[#allocation103_spill]]  ;;  %s799_s27 = scalar_lea.vmem [#allocation21], %s7303_s26 }
  0x60   : > { %p546_p11 = scmp.lt.s32.totalorder %s9143_s2, 5  ;;  %s13226_s17 = sld [smem:[#allocation107_spill]] }
  0x61   : > { %s9147_s26 = smov [#allocation22]   ;;  %s7291_s28 = sshll.u32 %s9387_s16, 7 }
  0x62   : > { %s775_s30 = scalar_lea.hbm %s13224_s11, %s7712_s14  ;;  %p9483_p12 = pnand %p7288_p9, %p546_p11 }
  0x63   : > { %s776_s1 = sshll.u32 %s775_s30, 4  ;;  %s807_s30 = sshll.u32 %s799_s27, 4  ;;  %s777_s1 = int_to_ptr.hbm [resolvable:$true] %s776_s1  ;;  %s9474_s30 = int_to_ptr.vmem [resolvable:$true] %s807_s30 }
  0x64   : > { %7870 = dma.hbm_to_vmem [thread:$0]  (!%p9421_p3), %s777_s1, 2048, %s779_s12, %s13131_s25, %s13132_s3, %s13132_s3, %s13133_s6  }
  0x65   : > { %s804_s4 = scalar_lea.hbm %s13225_s13, %s7712_s14  ;;  %s565_s14 = sshll.u32 %s9147_s26, 4  ;;  %s566_s14 = int_to_ptr.vmem [resolvable:$true] %s565_s14 }
  0x66   : > { %s805_s20 = sshll.u32 %s804_s4, 4  ;;  %s563_s12 = sshll.u32 %s13226_s17, 4  ;;  %s9476_s20 = int_to_ptr.hbm [resolvable:$true] %s805_s20  ;;  %s564_s12 = int_to_ptr.hbm [resolvable:$true] %s563_s12 }
  0x67   : > { %p7836_p0 = pneg %p9483_p12  ;;  %s7710_s8 = sshll.u32 %s9139_s22, 7 }
  0x68   : > { %s583_s0 = scalar_lea.vmem [#allocation4], %s7291_s28  ;;  %s13228_s25 = sld [smem:[#allocation90_spill]] }
  0x69   : > { %p7837_p5 = pnand %p7836_p0, %p83_p6  ;;  %s592_s15 = sshll.u32 %s583_s0, 4  ;;  %s593_s15 = int_to_ptr.vmem [resolvable:$true] %s592_s15 }
  0x6a   : > { %s13134_s26 = smov 64   ;;  %s13136_s6 = smov 4  }
  0x6b   : > { %7839 = dma.hbm_to_vmem [thread:$0]  (!%p7837_p5), %s564_s12, 1024, %s566_s14, [#allocation23], %s13134_s26, %s13134_s26, %s13136_s6  }
  0x6c   : > { %s631_s13 = sshll.u32 %s9415_s10, 4  ;;  %s580_s28 = scalar_lea.sflag [#allocation5], %s9387_s16  ;;  %s632_s13 = int_to_ptr.hbm [resolvable:$true] %s631_s13 }
  0x6d   : > { %s13229_s0 = smov 8   ;;  %s13230_s17 = smov 128  }
  0x6e   : > { %s589_s3 = scalar_lea.hbm %s13228_s25, %s7710_s8  ;;  %s13231_s25 = sshll.u32 %s9387_s16, 3 }
  0x6f   : > { %s590_s11 = sshll.u32 %s589_s3, 4  ;;  %s625_s8 = scalar_lea.vmem [#allocation9], %s13231_s25  ;;  %s591_s11 = int_to_ptr.hbm [resolvable:$true] %s590_s11 }
  0x70   : > { %7843 = dma.hbm_to_vmem [thread:$0]  (!%p9397_p1), %s591_s11, 2048, %s593_s15, %s580_s28, %s13230_s17, %s13230_s17, %s13229_s0  }
  0x71   : > { %s633_s4 = sshll.u32 %s625_s8, 4  ;;  %s7802_s12 = smul.u32 192, %s9426_s19  ;;  %s634_s4 = int_to_ptr.vmem [resolvable:$true] %s633_s4 }
  0x72   : > { %s13232_s3 = scalar_lea.sflag [#allocation8], %s9390_s18  ;;  %s7803_s10 = smul.u32 192, %s9135_s21 }
  0x73   : > { %7849 = dma.hbm_to_vmem [thread:$0]  (!%p9397_p1), %s632_s13, 128, %s634_s4, %s13232_s3  }
  0x74   : > { %s667_s14 = scalar_lea.vmem [#allocation12], %s7802_s12  ;;  %s13233_s5 = sld [smem:[#allocation95_spill]] }
  0x75   : > { %s675_s27 = sshll.u32 %s667_s14, 4  ;;  %s7300_s16 = sshll.u32 %s9426_s19, 6  ;;  %s676_s27 = int_to_ptr.vmem [resolvable:$true] %s675_s27 }
  0x76   : > { %s9150_s15 = smov 192   ;;  %s9151_s28 = smov 12  }
  0x77   : > { %s13234_s24 = scalar_lea.sflag [#allocation11], %s9390_s18  ;;  %s7711_s6 = sshll.u32 %s9135_s21, 6 }
  0x78   : > { %s13235_s7 = sld [smem:[#allocation97_spill]]  ;;  %s708_s25 = scalar_lea.vmem [#allocation15], %s7300_s16 }
  0x79   : > { %s716_s8 = sshll.u32 %s708_s25, 4  ;;  %s13236_s12 = smov 4   ;;  %s717_s8 = int_to_ptr.vmem [resolvable:$true] %s716_s8 }
  0x7a   : > { %s672_s11 = scalar_lea.hbm %s13233_s5, %s7803_s10  ;;  %s13237_s3 = smov 64  }
  0x7b   : > { %s673_s17 = sshll.u32 %s672_s11, 4  ;;  %s13238_s10 = scalar_lea.sflag [#allocation14], %s9390_s18  ;;  %s674_s17 = int_to_ptr.hbm [resolvable:$true] %s673_s17 }
  0x7c   : > { %7855 = dma.hbm_to_vmem [thread:$0]  (!%p9421_p3), %s674_s17, 3072, %s676_s27, %s13234_s24, %s9150_s15, %s9150_s15, %s9151_s28  }
  0x7d   : > { %s13239_s11 = sld [smem:[#allocation100_spill]]  ;;  %s752_s15 = scalar_lea.vmem [#allocation18], %s9426_s19 }
  0x7e   : > { %s713_s0 = scalar_lea.hbm %s13235_s7, %s7711_s6  ;;  %s759_s28 = sshll.u32 %s752_s15, 4  ;;  %s760_s28 = int_to_ptr.vmem [resolvable:$true] %s759_s28 }
  0x7f   : > { %s714_s4 = sshll.u32 %s713_s0, 4  ;;  %s13240_s16 = scalar_lea.sflag [#allocation17], %s9390_s18  ;;  %s715_s4 = int_to_ptr.hbm [resolvable:$true] %s714_s4 }
  0x80   : > { %7861 = dma.hbm_to_vmem [thread:$0]  (!%p9421_p3), %s715_s4, 1024, %s717_s8, %s13238_s10, %s13237_s3, %s13237_s3, %s13236_s12  }
  0x81   : > { %s13241_s6 = scalar_lea.sflag [#allocation20], %s9390_s18  ;;  %825 = sbr.rel (%p9483_p12) target bundleno = 4486 (0x1186), region = 92 }
  0x82   : > { %7873 = dma.hbm_to_vmem [thread:$0]  (!%p9421_p3), %s9476_s20, 2048, %s9474_s30, %s13241_s6, %s13237_s3, %s13237_s3, %s13236_s12  }
  0x83   : > { %s755_s17 = scalar_lea.hbm %s13239_s11, %s9135_s21 }
  0x84   : > { %s757_s24 = sshll.u32 %s755_s17, 4  ;;  %s758_s24 = int_to_ptr.hbm [resolvable:$true] %s757_s24 }
  0x85   : > { %7867 = dma.hbm_to_vmem [thread:$0]  (!%p9421_p3), %s758_s24, 16, %s760_s28, %s13240_s16  }
  0x86   : > { %s13242_s13 = sld [smem:[#allocation35_spill]] }
  0x8c   : > { %s9554_s0 = sand.u32 1, %s13242_s13  }
  0x8d   : > { %s7310_s19 = sshll.u32 %s9554_s0, 7  ;;  %s828_s25 = scalar_lea.sflag [#allocation5], %s9554_s0 }
  0x8e   : > { %s9558_s8 = scalar_lea.vmem [#allocation4], %s7310_s19 }
  0x8f   : > { %9070 = dma.done.wait (%p9342_p7), %s828_s25, 2048  }
  0x90   : > { %9072 = vsyncadd (%p9342_p7), %s828_s25, 4294965248  ;;  %s9565_s18 = sand.u32 1, %s9308_s23   ;;  %s9568_s9 = sshll.u32 %s9554_s0, 3 }
  0x91   : > { %s838_s30 = scalar_lea.sflag [#allocation8], %s9565_s18 }
  0x92   : > { %9074 = dma.done.wait (%p9342_p7), %s838_s30, 256  }
  0x93   : > { %9076 = vsyncadd (%p9342_p7), %s838_s30, 4294967040  ;;  %s13244_s1 = sld [smem:[#allocation33_spill]]  ;;  %s858_s10 = scalar_lea.sflag [#allocation11], %s9565_s18 }
  0x99   : > { %s9577_s12 = sand.u32 1, %s13244_s1  }
  0x9a   : > { %9078 = dma.done.wait (%p9366_p13), %s858_s10, 3088  }
  0x9b   : > { %9080 = vsyncadd (%p9366_p13), %s858_s10, 4294964208  ;;  %s7806_s27 = smul.u32 192, %s9577_s12  ;;  %s877_s15 = scalar_lea.sflag [#allocation14], %s9565_s18 }
  0x9c   : > { %s7807_s11 = smul.u32 3, %s9577_s12 }
  0x9d   : > { %s9588_s17 = scalar_lea.vmem [#allocation12], %s7806_s27 }
  0x9e   : > { %s9591_s28 = scalar_lea.vmem [#allocation13], %s7807_s11 }
  0x9f   : > { %9082 = dma.done.wait (%p9366_p13), %s877_s15, 1072  }
  0xa0   : > { %9084 = vsyncadd (%p9366_p13), %s877_s15, 4294966224  ;;  %s7313_s24 = sshll.u32 %s9577_s12, 6  ;;  %s897_s6 = scalar_lea.sflag [#allocation17], %s9565_s18 }
  0xa1   : > { %s9598_s16 = scalar_lea.vmem [#allocation15], %s7313_s24 }
  0xa2   : > { %9086 = dma.done.wait (%p9366_p13), %s897_s6, 32  }
  0xa3   : > { %9088 = vsyncadd (%p9366_p13), %s897_s6, 4294967264  ;;  %s7314_s26 = sshll.u32 %s9577_s12, 7  ;;  %s915_s25 = scalar_lea.sflag [#allocation20], %s9565_s18 }
  0xa4   : > { %s9609_s30 = scalar_lea.vmem [#allocation19], %s7314_s26 }
  0xa5   : > { %9090 = dma.done.wait (%p9366_p13), %s915_s25, 4096  }
  0xa6   : > { %9092 = vsyncadd (%p9366_p13), %s915_s25, 4294963200  ;;  %s9615_s1 = scalar_lea.vmem [#allocation21], %s7314_s26 }
  0xa7   : > { %9094 = dma.done.wait (%p83_p6), [#allocation23], 1024  }
  0xa8   : > { %9096 = vsyncadd (%p83_p6), [#allocation23], 4294966272  ;;  %s13246_s10 = sld [smem:[#allocation37_spill]]  ;;  %s1046_s27 = scalar_lea.vmem [#allocation24], %s9568_s9 }
  0xa9   : > { %s13247_s15 = sld [smem:[#allocation93_spill]] }
  0xaa   : > { %s13248_s26 = sld [smem:[#allocation99_spill]] }
  0xab   : > { %s13249_s13 = sld [smem:[#allocation104_spill]] }
  0xac   : > { %s13250_s7 = sld [smem:[#allocation102_spill]] }
  0xae   : > { %p1048_p7 = scmp.lt.s32.totalorder %s13246_s10, 1  ;;  %p7319_p6 = scmp.ne.s32.totalorder %s13246_s10, 0 }
  0xaf   : > { %s13251_s5 = scalar_lea.vmem (!%p7319_p6), [#allocation7], %s9568_s9 }
  0xb0   : > { %s9623_s18 = scalar_select %p1048_p7, %s13246_s10, 1 }
  0xb1   : > { %1065 = sbr.rel (%p7319_p6) target bundleno = 215 (0xd7), region = 144 }
  0xb2   : > { %s1050_s4 = scalar_lea.vmem %s13247_s15, %s9623_s18  ;;  %s9633_s25 = scalar_lea.vmem %s13248_s26, %s9623_s18 }
  0xb3   : > { %s7318_s23 = sshll.u32 %s9623_s18, 1  ;;  %s1060_s14 = scalar_lea.vmem %s13249_s13, %s9623_s18 }
  0xb4   : > { %s9643_s22 = scalar_lea.vmem %s13250_s7, %s7318_s23 }
  0xb6   : > { %v1066_v0 = vld [vmem:[%s9558_s8] sm:$0xff]  ;;  %v1067_v1 = vld [vmem:[%s9558_s8 + $0x8] sm:$0xff]  ;;  %v1068_v2 = vld [vmem:[%s9558_s8 + $0x10] sm:$0xff]  ;;  %v1098_v3 = vlaneseq  ;;  %v9152_v21 = vmov 0.0   ;;  %vm1148_vm2 = vcmask 130048  }
  0xb7   : > { %1082 = vst [vmem:[#allocation2 + $0x30] sm:$0xff] %v1066_v0  ;;  %v1069_v4 = vld [vmem:[%s9558_s8 + $0x18] sm:$0xff]  ;;  %v1070_v5 = vld [vmem:[%s9558_s8 + $0x20] sm:$0xff]  ;;  %v1071_v7 = vld [vmem:[%s9558_s8 + $0x28] sm:$0xff] }
  0xb8   : > { %1083 = vst [vmem:[#allocation2] sm:$0xff] %v1067_v1  ;;  %v1099_v6 = vshrl.u32 %v1098_v3, 7  ;;  %v1102_v8 = vand.u32 127, %v1098_v3  ;;  %v1072_v9 = vld [vmem:[%s9558_s8 + $0x30] sm:$0xff]  ;;  %v1073_v11 = vld [vmem:[%s9558_s8 + $0x38] sm:$0xff]  ;;  %v1107_v12 = vld [vmem:[%s13251_s5] sm:$0xff] }
  0xb9   : > { %1084 = vst [vmem:[#allocation2 + $0x58] sm:$0xff] %v1068_v2  ;;  %v1074_v13 = vld [vmem:[%s9558_s8 + $0x40] sm:$0xff]  ;;  %v1075_v14 = vld [vmem:[%s9558_s8 + $0x48] sm:$0xff]  ;;  %v1109_v15 = vrot.slane %v1107_v12, 1  ;;  %v1076_v16 = vld [vmem:[%s9558_s8 + $0x50] sm:$0xff]  ;;  %v1116_v18 = vperm.slane %v1107_v12, 0 }
  0xba   : > { %1085 = vst [vmem:[#allocation2 + $0x18] sm:$0xff] %v1069_v4  ;;  %v1100_v10 = vadd.s32 8, %v1099_v6  ;;  %vm1103_vm0 = vcmp.gt.s32.totalorder %v1102_v8, %v1099_v6  ;;  %v1077_v17 = vld [vmem:[%s9558_s8 + $0x58] sm:$0xff]  ;;  %v1110_v19 = vrot.slane %v1107_v12, 2  ;;  %v1078_v20 = vld [vmem:[%s9558_s8 + $0x60] sm:$0xff]  ;;  %v1079_v23 = vld [vmem:[%s9558_s8 + $0x68] sm:$0xff] }
  0xbb   : > { %1086 = vst [vmem:[#allocation2 + $0x50] sm:$0xff] %v1070_v5  ;;  %v1105_v22 = vsel %vm1103_vm0, -1e+09, %v9152_v21  ;;  %v1117_v25 = vperm.slane %v1109_v15, 0  ;;  %v1111_v26 = vrot.slane %v1107_v12, 3  ;;  %v1080_v27 = vld [vmem:[%s9558_s8 + $0x70] sm:$0xff] }
  0xbc   : > { %1087 = vst [vmem:[#allocation2 + $0x68] sm:$0xff] %v1071_v7  ;;  %vm1104_vm1 = vcmp.gt.s32.totalorder %v1102_v8, %v1100_v10  ;;  %v1081_v28 = vld [vmem:[%s9558_s8 + $0x78] sm:$0xff]  ;;  %v1132_v29 = vadd.f32 %v1116_v18, %v1105_v22  ;;  %v1118_v30 = vperm.slane %v1110_v19, 0  ;;  %v1112_v31 = vrot.slane %v1107_v12, 4 }
  0xbd   : > { %1088 = vst [vmem:[#allocation2 + $0x8] sm:$0xff] %v1072_v9  ;;  %v1106_v24 = vsel %vm1104_vm1, -1e+09, %v9152_v21  ;;  %v1134_v33 = vadd.f32 %v1117_v25, %v1105_v22  ;;  %v1119_v34 = vperm.slane %v1111_v26, 0  ;;  %v1113_v35 = vrot.slane %v1107_v12, 5 }
  0xbe   : > { %1089 = vst [vmem:[#allocation2 + $0x48] sm:$0xff] %v1073_v11  ;;  %v1133_v32 = vadd.f32 %v1116_v18, %v1106_v24  ;;  %v1135_v36 = vadd.f32 %v1117_v25, %v1106_v24  ;;  %v1136_v37 = vadd.f32 %v1118_v30, %v1105_v22  ;;  %v1120_v38 = vperm.slane %v1112_v31, 0 }
  0xbf   : > { %1090 = vst [vmem:[#allocation2 + $0x40] sm:$0xff] %v1074_v13  ;;  %v1114_v39 = vrot.slane %v1107_v12, 6  ;;  %v1137_v40 = vadd.f32 %v1118_v30, %v1106_v24  ;;  %v1138_v41 = vadd.f32 %v1119_v34, %v1105_v22  ;;  %v1121_v42 = vperm.slane %v1113_v35, 0 }
  0xc0   : > { %1091 = vst [vmem:[#allocation2 + $0x20] sm:$0xff] %v1075_v14  ;;  %v1115_v43 = vrot.slane %v1107_v12, 7  ;;  %v1139_v44 = vadd.f32 %v1119_v34, %v1106_v24  ;;  %v1140_v45 = vadd.f32 %v1120_v38, %v1105_v22  ;;  %v1141_v47 = vadd.f32 %v1120_v38, %v1106_v24 }
  0xc1   : > { %1092 = vst [vmem:[#allocation2 + $0x10] sm:$0xff] %v1076_v16  ;;  %v1122_v46 = vperm.slane %v1114_v39, 0  ;;  %v1142_v48 = vadd.f32 %v1121_v42, %v1105_v22  ;;  %v1143_v50 = vadd.f32 %v1121_v42, %v1106_v24 }
  0xc2   : > { %1093 = vst [vmem:[#allocation2 + $0x38] sm:$0xff] %v1077_v17  ;;  %v1123_v49 = vperm.slane %v1115_v43, 0 }
  0xc3   : > { %1094 = vst [vmem:[#allocation2 + $0x60] sm:$0xff] %v1078_v20  ;;  %v1144_v51 = vadd.f32 %v1122_v46, %v1105_v22  ;;  %v1145_v52 = vadd.f32 %v1122_v46, %v1106_v24 }
  0xc4   : > { %1095 = vst [vmem:[#allocation2 + $0x70] sm:$0xff] %v1079_v23  ;;  %v1146_v53 = vadd.f32 %v1123_v49, %v1105_v22  ;;  %v1147_v54 = vadd.f32 %v1123_v49, %v1106_v24 }
  0xc5   : > { %1096 = vst [vmem:[#allocation2 + $0x78] sm:$0xff] %v1080_v27 }
  0xc6   : > { %1097 = vst [vmem:[#allocation2 + $0x28] sm:$0xff] %v1081_v28 }
  0xc7   : > { %1149 = vst.msk [vmem:[#allocation3] sm:$0xff] %vm1148_vm2, %v1132_v29 }
  0xc8   : > { %1150 = vst.msk [vmem:[#allocation3 + $0x8] sm:$0xff] %vm1148_vm2, %v1133_v32 }
  0xc9   : > { %1151 = vst.msk [vmem:[#allocation3 + $0x10] sm:$0xff] %vm1148_vm2, %v1134_v33 }
  0xca   : > { %1152 = vst.msk [vmem:[#allocation3 + $0x18] sm:$0xff] %vm1148_vm2, %v1135_v36 }
  0xcb   : > { %1153 = vst.msk [vmem:[#allocation3 + $0x20] sm:$0xff] %vm1148_vm2, %v1136_v37 }
  0xcc   : > { %1154 = vst.msk [vmem:[#allocation3 + $0x28] sm:$0xff] %vm1148_vm2, %v1137_v40 }
  0xcd   : > { %1155 = vst.msk [vmem:[#allocation3 + $0x30] sm:$0xff] %vm1148_vm2, %v1138_v41 }
  0xce   : > { %1156 = vst.msk [vmem:[#allocation3 + $0x38] sm:$0xff] %vm1148_vm2, %v1139_v44 }
  0xcf   : > { %1157 = vst.msk [vmem:[#allocation3 + $0x40] sm:$0xff] %vm1148_vm2, %v1140_v45 }
  0xd0   : > { %1158 = vst.msk [vmem:[#allocation3 + $0x48] sm:$0xff] %vm1148_vm2, %v1141_v47 }
  0xd1   : > { %1159 = vst.msk [vmem:[#allocation3 + $0x50] sm:$0xff] %vm1148_vm2, %v1142_v48 }
  0xd2   : > { %1160 = vst.msk [vmem:[#allocation3 + $0x58] sm:$0xff] %vm1148_vm2, %v1143_v50 }
  0xd3   : > { %1161 = vst.msk [vmem:[#allocation3 + $0x60] sm:$0xff] %vm1148_vm2, %v1144_v51 }
  0xd4   : > { %1162 = vst.msk [vmem:[#allocation3 + $0x68] sm:$0xff] %vm1148_vm2, %v1145_v52 }
  0xd5   : > { %1163 = vst.msk [vmem:[#allocation3 + $0x70] sm:$0xff] %vm1148_vm2, %v1146_v53 }
  0xd6   : > { %1164 = vst.msk [vmem:[#allocation3 + $0x78] sm:$0xff] %vm1148_vm2, %v1147_v54 }
  0xd7 PF: > { %v1167_v55 = vld [vmem:[#allocation2 + $0x58] sm:$0xff]  ;;  %v1165_v56 = vld [vmem:[#allocation2 + $0x30] sm:$0xff]  ;;  %v1166_v59 = vld [vmem:[#allocation2] sm:$0xff]  ;;  %v9153_v62 = vmov 128.0   ;;  %s13256_s3 = scalar_lea.vmem [#allocation10], %s9577_s12  ;;  %s9156_s13 = smov 32  }
  0xd8   : > { %1203 = vadd.xlane.f32.xlu1 %v1167_v55  ;;  %1199 = vadd.xlane.f32.xlu0 %v1165_v56  ;;  %v1169_v57 = vld [vmem:[#allocation2 + $0x50] sm:$0xff]  ;;  %v1168_v58 = vld [vmem:[#allocation2 + $0x18] sm:$0xff]  ;;  %v1170_v60 = vld [vmem:[#allocation2 + $0x68] sm:$0xff]  ;;  %8108 = vrcp.f32 %v9153_v62  ;;  %s13386_s19 = scalar_lea.vmem [#allocation18], %s9577_s12 }
  0xd9   : > { %1207 = vadd.xlane.f32.xlu2 %v1169_v57  ;;  %v1171_v61 = vld [vmem:[#allocation2 + $0x8] sm:$0xff]  ;;  %v9710_v27 = vld [vmem:[#allocation2 + $0x40] sm:$0xff]  ;;  %v9720_v33 = vld [vmem:[#allocation2 + $0x38] sm:$0xff] }
  0xda   : > { %v9696_v19 = vld [vmem:[#allocation2 + $0x48] sm:$0xff]  ;;  %v9722_v34 = vld [vmem:[#allocation2 + $0x20] sm:$0xff]  ;;  %v9730_v37 = vld [vmem:[#allocation2 + $0x10] sm:$0xff] }
  0xdb   : > { %v7406_v38 = vld [vmem:[%s9588_s17 + $0xa8] sm:$0xf]  ;;  %v7736_v39 = vld [vmem:[%s9588_s17 + $0xb0] sm:$0xf0]  ;;  %v7735_v40 = vld [vmem:[%s9588_s17 + $0xac] sm:$0xf] }
  0xdc   : > { %v7407_v41 = vor.u32 %v7736_v39, %v7406_v38  ;;  %v7408_v42 = vld [vmem:[%s9588_s17 + $0xb4] sm:$0xf0]  ;;  %v7414_v43 = vld [vmem:[%s9588_s17 + $0xb0] sm:$0xf]  ;;  %v7737_v44 = vld [vmem:[%s9588_s17 + $0xb8] sm:$0xf0] }
  0xdd   : > { %v7411_v45 = vor.u32 %v7735_v40, %v7408_v42  ;;  %v7415_v46 = vor.u32 %v7737_v44, %v7414_v43  ;;  %v7394_v47 = vld [vmem:[%s9588_s17 + $0x90] sm:$0xf]  ;;  %v7733_v48 = vld [vmem:[%s9588_s17 + $0x98] sm:$0xf0]  ;;  %v7732_v49 = vld [vmem:[%s9588_s17 + $0x94] sm:$0xf] }
  0xde   : > { %v8109_v63 = vpop.eup %8108  ;;  %1740 = vmatpush.bf16.msra.mxu0 %v7407_v41  ;;  %v7395_v50 = vor.u32 %v7733_v48, %v7394_v47  ;;  %v7396_v51 = vld [vmem:[%s9588_s17 + $0x9c] sm:$0xf0]  ;;  %v7402_v52 = vld [vmem:[%s9588_s17 + $0x98] sm:$0xf]  ;;  %v7734_v53 = vld [vmem:[%s9588_s17 + $0xa0] sm:$0xf0] }
  0xdf   : > { %v1232_v0 = vmul.f32 128.0, %v8109_v63  ;;  %vm1236_vm3 = vweird.f32 %v8109_v63  ;;  %1789 = vmatpush.bf16.msra.mxu1 %v7411_v45  ;;  %1838 = vmatpush.bf16.msra.mxu2 %v7415_v46  ;;  %v7399_v54 = vor.u32 %v7732_v49, %v7396_v51  ;;  %v7731_v62 = vld [vmem:[%s9588_s17 + $0x88] sm:$0xf0]  ;;  %v7722_v38 = vld [vmem:[%s9588_s17 + $0x40] sm:$0xf0] }
  0xe0   : > { %1205 = vadd.xlane.f32.xlu1 %v1168_v58  ;;  %1201 = vadd.xlane.f32.xlu0 %v1166_v59  ;;  %v7334_v41 = vld [vmem:[%s9588_s17 + $0x18] sm:$0xf]  ;;  %v7718_v42 = vld [vmem:[%s9588_s17 + $0x20] sm:$0xf0]  ;;  %v7717_v43 = vld [vmem:[%s9588_s17 + $0x1c] sm:$0xf] }
  0xe1   : > { %1209 = vadd.xlane.f32.xlu2 %v1170_v60  ;;  %v1233_v1 = vsub.f32 1.0, %v1232_v0  ;;  %v7335_v45 = vor.u32 %v7718_v42, %v7334_v41  ;;  %v7336_v46 = vld [vmem:[%s9588_s17 + $0x24] sm:$0xf0]  ;;  %v7342_v47 = vld [vmem:[%s9588_s17 + $0x20] sm:$0xf] }
  0xe2   : > { %1741 = vmatpush.bf16.msra.mxu0 %v7395_v50  ;;  %v7339_v49 = vor.u32 %v7717_v43, %v7336_v46  ;;  %v7719_v50 = vld [vmem:[%s9588_s17 + $0x28] sm:$0xf0] }
  0xe3   : > { %v1234_v2 = vmul.f32 %v8109_v63, %v1233_v1  ;;  %1790 = vmatpush.bf16.msra.mxu1 %v7399_v54  ;;  %v7370_v1 = vld [vmem:[%s9588_s17 + $0x60] sm:$0xf]  ;;  %v7343_v51 = vor.u32 %v7719_v50, %v7342_v47  ;;  %v7715_v54 = vld [vmem:[%s9588_s17 + $0x8] sm:$0xf0] }
  0xe5   : > { %v1235_v3 = vadd.f32 %v8109_v63, %v1234_v2  ;;  %v7727_v2 = vld [vmem:[%s9588_s17 + $0x68] sm:$0xf0] }
  0xe7   : > { %v9681_v4 = vsel %vm1236_vm3, %v8109_v63, %v1235_v3  ;;  %v7726_v3 = vld [vmem:[%s9588_s17 + $0x64] sm:$0xf] }
  0xe8   : > { %13252 = vst [vmem:[#allocation48_spill] sm:$0xff] %v9681_v4 }
  0xe9   : > { %1211 = vadd.xlane.f32.xlu2 %v1171_v61 }
 0x14b   : > { %v1204_v5 = vpop.xlane.xlu1 %1203  ;;  %v1200_v6 = vpop.xlane.xlu0 %1199 }
 0x14c   : > { %v1238_v7 = vmul.f32 %v9681_v4, %v1200_v6  ;;  %v1208_v10 = vpop.xlane.xlu2 %1207  ;;  %v1240_v18 = vmul.f32 %v9681_v4, %v1204_v5  ;;  %v7371_v5 = vor.u32 %v7727_v2, %v7370_v1  ;;  %v7372_v6 = vld [vmem:[%s9588_s17 + $0x6c] sm:$0xf0] }
 0x14d   : > { %v1242_v17 = vmul.f32 %v9681_v4, %v1208_v10  ;;  %v7375_v10 = vor.u32 %v7726_v3, %v7372_v6 }
 0x14e   : > { %v9684_v8 = vsub.f32 %v1165_v56, %v1238_v7  ;;  %v9705_v23 = vsub.f32 %v1167_v55, %v1240_v18  ;;  %v7403_v55 = vor.u32 %v7734_v53, %v7402_v52  ;;  %v7382_v56 = vld [vmem:[%s9588_s17 + $0x78] sm:$0xf]  ;;  %v7378_v7 = vld [vmem:[%s9588_s17 + $0x68] sm:$0xf]  ;;  %v7322_v53 = vld [vmem:[%s9588_s17] sm:$0xf] }
 0x14f   : > { %v9703_v22 = vsub.f32 %v1169_v57, %v1242_v17  ;;  %v7730_v57 = vld [vmem:[%s9588_s17 + $0x80] sm:$0xf0]  ;;  %v7723_v17 = vld [vmem:[%s9588_s17 + $0x4c] sm:$0xf]  ;;  %v7360_v18 = vld [vmem:[%s9588_s17 + $0x54] sm:$0xf0] }
 0x150   : > { %v1270_v9 = vmul.f32 %v9684_v8, %v9684_v8  ;;  %v1272_v28 = vmul.f32 %v9705_v23, %v9705_v23  ;;  %1839 = vmatpush.bf16.msra.mxu2 %v7403_v55  ;;  %v7323_v55 = vor.u32 %v7715_v54, %v7322_v53 }
 0x151   : > { %v1274_v25 = vmul.f32 %v9703_v22, %v9703_v22 }
 0x152   : > { %1286 = vadd.xlane.f32.xlu0 %v1270_v9  ;;  %v7728_v9 = vld [vmem:[%s9588_s17 + $0x70] sm:$0xf0] }
 0x153   : > { %v1206_v11 = vpop.xlane.xlu1 %1205  ;;  %v1202_v12 = vpop.xlane.xlu0 %1201 }
 0x154   : > { %v1241_v13 = vmul.f32 %v9681_v4, %v1206_v11  ;;  %v1239_v14 = vmul.f32 %v9681_v4, %v1202_v12  ;;  %v1210_v24 = vpop.xlane.xlu2 %1209  ;;  %v7379_v11 = vor.u32 %v7728_v9, %v7378_v7  ;;  %v7358_v12 = vld [vmem:[%s9588_s17 + $0x48] sm:$0xf] }
 0x155   : > { %v1243_v26 = vmul.f32 %v9681_v4, %v1210_v24  ;;  %v7725_v24 = vld [vmem:[%s9588_s17 + $0x58] sm:$0xf0] }
 0x156   : > { %v9690_v15 = vsub.f32 %v1168_v58, %v1241_v13  ;;  %v9692_v16 = vsub.f32 %v1166_v59, %v1239_v14  ;;  %v7729_v58 = vld [vmem:[%s9588_s17 + $0x7c] sm:$0xf]  ;;  %v7383_v59 = vor.u32 %v7730_v57, %v7382_v56  ;;  %v7724_v13 = vld [vmem:[%s9588_s17 + $0x50] sm:$0xf0]  ;;  %v7714_v56 = vld [vmem:[%s9588_s17 + $0x4] sm:$0xf] }
 0x157   : > { %v9715_v29 = vsub.f32 %v1170_v60, %v1243_v26  ;;  %v7384_v60 = vld [vmem:[%s9588_s17 + $0x84] sm:$0xf0]  ;;  %v7359_v14 = vor.u32 %v7724_v13, %v7358_v12  ;;  %v7346_v26 = vld [vmem:[%s9588_s17 + $0x30] sm:$0xf] }
 0x158   : > { %v1273_v20 = vmul.f32 %v9690_v15, %v9690_v15  ;;  %v1271_v21 = vmul.f32 %v9692_v16, %v9692_v16  ;;  %v7387_v63 = vor.u32 %v7729_v58, %v7384_v60  ;;  %1742 = vmatpush.bf16.msra.mxu0 %v7383_v59  ;;  %v7324_v57 = vld [vmem:[%s9588_s17 + $0xc] sm:$0xf0]  ;;  %v7330_v58 = vld [vmem:[%s9588_s17 + $0x8] sm:$0xf]  ;;  %v7716_v60 = vld [vmem:[%s9588_s17 + $0x10] sm:$0xf0] }
 0x159   : > { %v1275_v31 = vmul.f32 %v9715_v29, %v9715_v29  ;;  %v7327_v59 = vor.u32 %v7714_v56, %v7324_v57 }
 0x15a   : > { %1292 = vadd.xlane.f32.xlu2 %v1273_v20  ;;  %1213 = vadd.xlane.f32.xlu0 %v9696_v19  ;;  %v7366_v20 = vld [vmem:[%s9588_s17 + $0x50] sm:$0xf] }
 0x15b   : > { %1288 = vadd.xlane.f32.xlu1 %v1271_v21  ;;  %1791 = vmatpush.bf16.msra.mxu1 %v7387_v63  ;;  %v7363_v21 = vor.u32 %v7723_v17, %v7360_v18 }
 0x15c   : > { %v1212_v30 = vpop.xlane.xlu2 %1211  ;;  %1743 = vmatpush.bf16.msra.mxu0 %v7371_v5 }
 0x15d   : > { %v1244_v32 = vmul.f32 %v9681_v4, %v1212_v30  ;;  %v7720_v30 = vld [vmem:[%s9588_s17 + $0x34] sm:$0xf] }
 0x15f   : > { %v9725_v35 = vsub.f32 %v1171_v61, %v1244_v32  ;;  %v7390_v61 = vld [vmem:[%s9588_s17 + $0x80] sm:$0xf]  ;;  %1792 = vmatpush.bf16.msra.mxu1 %v7375_v10 }
 0x160   : > { %v7391_v0 = vor.u32 %v7731_v62, %v7390_v61  ;;  %1744 = vmatpush.bf16.msra.mxu0 %v7359_v14  ;;  %v7348_v32 = vld [vmem:[%s9588_s17 + $0x3c] sm:$0xf0]  ;;  %v7331_v61 = vor.u32 %v7716_v60, %v7330_v58 }
 0x161   : > { %v1276_v36 = vmul.f32 %v9725_v35, %v9725_v35  ;;  %v7351_v39 = vor.u32 %v7720_v30, %v7348_v32 }
 0x162   : > { %1294 = vadd.xlane.f32.xlu2 %v1274_v25  ;;  %1215 = vadd.xlane.f32.xlu0 %v9710_v27  ;;  %v7367_v25 = vor.u32 %v7725_v24, %v7366_v20 }
 0x163   : > { %1290 = vadd.xlane.f32.xlu1 %v1272_v28  ;;  %1840 = vmatpush.bf16.msra.mxu2 %v7391_v0  ;;  %v7721_v28 = vld [vmem:[%s9588_s17 + $0x38] sm:$0xf0] }
 0x164   : > { %1793 = vmatpush.bf16.msra.mxu1 %v7363_v21 }
 0x167   : > { %1841 = vmatpush.bf16.msra.mxu2 %v7379_v11 }
 0x168   : > { %1794 = vmatpush.bf16.msra.mxu1 %v7351_v39 }
 0x16a   : > { %1221 = vadd.xlane.f32.xlu2 %v9720_v33  ;;  %1296 = vadd.xlane.f32.xlu0 %v1275_v31  ;;  %v7347_v31 = vor.u32 %v7721_v28, %v7346_v26 }
 0x16b   : > { %1217 = vadd.xlane.f32.xlu1 %v9722_v34  ;;  %1842 = vmatpush.bf16.msra.mxu2 %v7367_v25 }
 0x16c   : > { %1745 = vmatpush.bf16.msra.mxu0 %v7347_v31  ;;  %1795 = vmatpush.bf16.msra.mxu1 %v7339_v49  ;;  %v9803_v31 = vld [vmem:[#allocation2 + $0x60] sm:$0xff] }
 0x170   : > { %1746 = vmatpush.bf16.msra.mxu0 %v7335_v45  ;;  %1796 = vmatpush.bf16.msra.mxu1 %v7327_v59 }
 0x172   : > { %1298 = vadd.xlane.f32.xlu0 %v1276_v36  ;;  %v7354_v36 = vld [vmem:[%s9588_s17 + $0x38] sm:$0xf]  ;;  %s9154_s17 = smov 96  }
 0x173   : > { %1219 = vadd.xlane.f32.xlu1 %v9730_v37  ;;  %v7355_v40 = vor.u32 %v7722_v38, %v7354_v36 }
 0x174   : > { %1747 = vmatpush.bf16.msra.mxu0 %v7323_v55 }
 0x175   : > { %1843 = vmatpush.bf16.msra.mxu2 %v7355_v40 }
 0x179   : > { %1844 = vmatpush.bf16.msra.mxu2 %v7343_v51 }
 0x17d   : > { %1845 = vmatpush.bf16.msra.mxu2 %v7331_v61 }
 0x1c5   : > { %v1287_v44 = vpop.xlane.xlu0 %1286 }
 0x1c6   : > { %v1318_v48 = vmul.f32 %v1287_v44, %v9681_v4 }
 0x1c8   : > { %v1334_v52 = vadd.f32 1e-05, %v1318_v48 }
 0x1ca   : > { %8110 = vrsqrt.f32 %v1334_v52  ;;  %vm1356_vm5 = vweird.f32 %v1334_v52 }
 0x1cd   : > { %v1293_v62 = vpop.xlane.xlu2 %1292  ;;  %v1214_v63 = vpop.xlane.xlu0 %1213 }
 0x1ce   : > { %v1321_v0 = vmul.f32 %v1293_v62, %v9681_v4  ;;  %v1289_v1 = vpop.xlane.xlu1 %1288  ;;  %v1245_v2 = vmul.f32 %v9681_v4, %v1214_v63 }
 0x1cf   : > { %v1319_v3 = vmul.f32 %v1289_v1, %v9681_v4 }
 0x1d0   : > { %v8111_v5 = vpop.eup %8110  ;;  %v9785_v6 = vadd.f32 1e-05, %v1321_v0  ;;  %v9788_v7 = vsub.f32 %v9696_v19, %v1245_v2 }
 0x1d1   : > { %v1351_v9 = vmul.f32 %v8111_v5, %v1334_v52  ;;  %v1335_v10 = vadd.f32 1e-05, %v1319_v3  ;;  %vm1357_vm4 = vweird.f32 %v8111_v5  ;;  %v9855_v3 = vld [vmem:[%s13256_s3] ss:$0 sm:$0xff] }
 0x1d2   : > { %8112 = vrsqrt.f32 %v9785_v6  ;;  %v1277_v11 = vmul.f32 %v9788_v7, %v9788_v7  ;;  %vm9813_vm7 = vmor %vm1356_vm5, %vm1357_vm4  ;;  %vm1386_vm12 = vweird.f32 %v9785_v6 }
 0x1d3   : > { %v1352_v12 = vmul.f32 %v8111_v5, %v1351_v9  ;;  %8114 = vrsqrt.f32 %v1335_v10  ;;  %vm1366_vm6 = vweird.f32 %v1335_v10 }
 0x1d4   : > { %1300 = vadd.xlane.f32.xlu1 %v1277_v11 }
 0x1d5   : > { %v1353_v13 = vmul.f32 0.5, %v1352_v12  ;;  %v1295_v14 = vpop.xlane.xlu2 %1294  ;;  %v1216_v17 = vpop.xlane.xlu0 %1215 }
 0x1d6   : > { %v1291_v18 = vpop.xlane.xlu1 %1290  ;;  %v1246_v20 = vmul.f32 %v9681_v4, %v1216_v17  ;;  %v1322_v28 = vmul.f32 %v1295_v14, %v9681_v4 }
 0x1d7   : > { %v1354_v21 = vsub.f32 1.5, %v1353_v13  ;;  %v1320_v19 = vmul.f32 %v1291_v18, %v9681_v4 }
 0x1d8   : > { %v9795_v24 = vpop.eup %8112  ;;  %v9798_v25 = vsub.f32 %v9710_v27, %v1246_v20  ;;  %v9811_v40 = vadd.f32 1e-05, %v1322_v28  ;;  %v9877_v28 = vld [vmem:[#allocation2 + $0x78] sm:$0xff] }
 0x1d9   : > { %v8115_v26 = vpop.eup %8114  ;;  %v9801_v30 = vadd.f32 1e-05, %v1320_v19  ;;  %v1355_v36 = vmul.f32 %v8111_v5, %v1354_v21  ;;  %v1381_v38 = vmul.f32 %v9795_v24, %v9785_v6  ;;  %vm1387_vm13 = vweird.f32 %v9795_v24 }
 0x1da   : > { %v1361_v32 = vmul.f32 %v8115_v26, %v1335_v10  ;;  %v1278_v27 = vmul.f32 %v9798_v25, %v9798_v25  ;;  %vm1367_vm8 = vweird.f32 %v8115_v26  ;;  %vm1388_vm15 = vmor %vm1386_vm12, %vm1387_vm13  ;;  %vm1396_vm2 = vweird.f32 %v9811_v40 }
 0x1db   : > { %8116 = vrsqrt.f32 %v9801_v30  ;;  %v1359_v48 = vsel %vm9813_vm7, %v8111_v5, %v1355_v36  ;;  %v1382_v49 = vmul.f32 %v9795_v24, %v1381_v38  ;;  %vm1368_vm9 = vmor %vm1366_vm6, %vm1367_vm8  ;;  %vm1376_vm10 = vweird.f32 %v9801_v30 }
 0x1dc   : > { %v1362_v39 = vmul.f32 %v8115_v26, %v1361_v32  ;;  %1223 = vadd.xlane.f32.xlu1 %v9803_v31  ;;  %1302 = vadd.xlane.f32.xlu2 %v1278_v27  ;;  %8118 = vrsqrt.f32 %v9811_v40  ;;  %v1510_v58 = vmul.f32 %v1359_v48, %v9684_v8 }
 0x1dd   : > { %v1222_v41 = vpop.xlane.xlu2 %1221  ;;  %v1297_v42 = vpop.xlane.xlu0 %1296  ;;  %v1383_v59 = vmul.f32 0.5, %v1382_v49 }
 0x1de   : > { %v1363_v44 = vmul.f32 0.5, %v1362_v39  ;;  %v1249_v45 = vmul.f32 %v9681_v4, %v1222_v41  ;;  %v1218_v46 = vpop.xlane.xlu1 %1217  ;;  %v1323_v47 = vmul.f32 %v1297_v42, %v9681_v4  ;;  %v9884_v41 = vld [vmem:[#allocation2 + $0x28] sm:$0xff] }
 0x1df   : > { %v1247_v50 = vmul.f32 %v9681_v4, %v1218_v46  ;;  %v1384_v9 = vsub.f32 1.5, %v1383_v59 }
 0x1e0   : > { %v1364_v51 = vsub.f32 1.5, %v1363_v44  ;;  %v9823_v52 = vadd.f32 1e-05, %v1323_v47  ;;  %v9826_v53 = vsub.f32 %v9720_v33, %v1249_v45  ;;  %v9841_v33 = vld [vmem:[%s1050_s4] ss:$0 sm:$0xff] }
 0x1e1   : > { %v8117_v54 = vpop.eup %8116  ;;  %v9831_v55 = vsub.f32 %v9722_v34, %v1247_v50  ;;  %v9845_v34 = vld [vmem:[#allocation2 + $0x70] sm:$0xff]  ;;  %v1529_v2 = vmul.f32 %v9841_v33, %v1510_v58  ;;  %v1385_v6 = vmul.f32 %v9795_v24, %v1384_v9 }
 0x1e2   : > { %v1365_v56 = vmul.f32 %v8115_v26, %v1364_v51  ;;  %v1371_v57 = vmul.f32 %v8117_v54, %v9801_v30  ;;  %8120 = vrsqrt.f32 %v9823_v52  ;;  %v1281_v63 = vmul.f32 %v9826_v53, %v9826_v53  ;;  %v8119_v5 = vpop.eup %8118 }
 0x1e3   : > { %v1279_v60 = vmul.f32 %v9831_v55, %v9831_v55  ;;  %vm1377_vm11 = vweird.f32 %v8117_v54  ;;  %v1548_v20 = vadd.f32 %v9855_v3, %v1529_v2  ;;  %v1391_v19 = vmul.f32 %v8119_v5, %v9811_v40 }
 0x1e4   : > { %v1369_v61 = vsel %vm1368_vm9, %v8115_v26, %v1365_v56  ;;  %v1372_v62 = vmul.f32 %v8117_v54, %v1371_v57  ;;  %1308 = vadd.xlane.f32.xlu1 %v1281_v63  ;;  %1225 = vadd.xlane.f32.xlu2 %v9845_v34  ;;  %vm9867_vm14 = vmor %vm1376_vm10, %vm1377_vm11  ;;  %v1389_v36 = vsel %vm1388_vm15, %v9795_v24, %v1385_v6  ;;  %vm1406_vm0 = vweird.f32 %v9823_v52 }
 0x1e5   : > { %1304 = vadd.xlane.f32.xlu0 %v1279_v60  ;;  %v1511_v8 = vmul.f32 %v1369_v61, %v9692_v16  ;;  %v1392_v38 = vmul.f32 %v8119_v5, %v1391_v19  ;;  %v1513_v42 = vmul.f32 %v1389_v36, %v9690_v15  ;;  %vm1397_vm3 = vweird.f32 %v8119_v5  ;;  %v1299_v60 = vpop.xlane.xlu0 %1298 }
 0x1e6   : > { %v1373_v0 = vmul.f32 0.5, %v1372_v62  ;;  %v1220_v1 = vpop.xlane.xlu1 %1219  ;;  %vm1398_vm5 = vmor %vm1396_vm2, %vm1397_vm3  ;;  %v1324_v61 = vmul.f32 %v1299_v60, %v9681_v4 }
 0x1e7   : > { %v1248_v10 = vmul.f32 %v9681_v4, %v1220_v1  ;;  %v1530_v11 = vmul.f32 %v9841_v33, %v1511_v8  ;;  %v1393_v43 = vmul.f32 0.5, %v1392_v38  ;;  %v1532_v46 = vmul.f32 %v9841_v33, %v1513_v42 }
 0x1e8   : > { %v8121_v16 = vpop.eup %8120  ;;  %v1374_v12 = vsub.f32 1.5, %v1373_v0  ;;  %v1340_v62 = vadd.f32 1e-05, %v1324_v61 }
 0x1e9   : > { %v1401_v13 = vmul.f32 %v8121_v16, %v9823_v52  ;;  %v9863_v14 = vsub.f32 %v9730_v37, %v1248_v10  ;;  %v1549_v21 = vadd.f32 %v9855_v3, %v1530_v11  ;;  %v1394_v24 = vsub.f32 1.5, %v1393_v43 }
 0x1ea   : > { %v1375_v17 = vmul.f32 %v8117_v54, %v1374_v12  ;;  %vm1407_vm1 = vweird.f32 %v8121_v16  ;;  %v1551_v15 = vadd.f32 %v9855_v3, %v1532_v46  ;;  %8122 = vrsqrt.f32 %v1340_v62 }
 0x1eb   : > { %v1280_v26 = vmul.f32 %v9863_v14, %v9863_v14  ;;  %v1564_v37 = vpack.c.bf16 %v1549_v21, %v1548_v20  ;;  %v1402_v32 = vmul.f32 %v8121_v16, %v1401_v13  ;;  %vm1408_vm4 = vmor %vm1406_vm0, %vm1407_vm1  ;;  %v1395_v48 = vmul.f32 %v8119_v5, %v1394_v24 }
 0x1ec   : > { %v1379_v30 = vsel %vm9867_vm14, %v8117_v54, %v1375_v17  ;;  %1227 = vadd.xlane.f32.xlu2 %v9877_v28  ;;  %vm1416_vm6 = vweird.f32 %v1340_v62 }
 0x1ed   : > { %1306 = vadd.xlane.f32.xlu0 %v1280_v26  ;;  %1748 = vmatmul.bf16.vlgmr.msra.gmra.mxu0 %v1564_v37  ;;  %v1512_v39 = vmul.f32 %v1379_v30, %v9705_v23  ;;  %v1403_v27 = vmul.f32 0.5, %v1402_v32  ;;  %v1399_v51 = vsel %vm1398_vm5, %v8119_v5, %v1395_v48 }
 0x1ee   : > { %1797 = vmatmul.bf16.vlgmr.msra.gmra.mxu1 %v1564_v37  ;;  %1846 = vmatmul.bf16.vlgmr.msra.gmra.mxu2 %v1564_v37  ;;  %v1514_v54 = vmul.f32 %v1399_v51, %v9703_v22 }
 0x1ef   : > { %v1531_v44 = vmul.f32 %v9841_v33, %v1512_v39  ;;  %v1404_v45 = vsub.f32 1.5, %v1403_v27 }
 0x1f0   : > { %v1533_v40 = vmul.f32 %v9841_v33, %v1514_v54 }
 0x1f1   : > { %v1550_v47 = vadd.f32 %v9855_v3, %v1531_v44  ;;  %v1405_v23 = vmul.f32 %v8121_v16, %v1404_v45 }
 0x1f2   : > { %v1552_v58 = vadd.f32 %v9855_v3, %v1533_v40 }
 0x1f3   : > { %v1565_v49 = vpack.c.bf16 %v1551_v15, %v1550_v47  ;;  %v1409_v50 = vsel %vm1408_vm4, %v8121_v16, %v1405_v23 }
 0x1f4   : > { %v1515_v52 = vmul.f32 %v1409_v50, %v9715_v29  ;;  %v8123_v29 = vpop.eup %8122 }
 0x1f5   : > { %1229 = vadd.xlane.f32.xlu0 %v9884_v41  ;;  %v1411_v63 = vmul.f32 %v8123_v29, %v1340_v62  ;;  %vm1417_vm7 = vweird.f32 %v8123_v29 }
 0x1f6   : > { %v1534_v56 = vmul.f32 %v9841_v33, %v1515_v52  ;;  %vm9909_vm8 = vmor %vm1416_vm6, %vm1417_vm7 }
 0x1f7   : > { %v1412_v0 = vmul.f32 %v8123_v29, %v1411_v63 }
 0x1f8   : > { %v1553_v57 = vadd.f32 %v9855_v3, %v1534_v56 }
 0x1f9   : > { %v1413_v2 = vmul.f32 0.5, %v1412_v0 }
 0x1fa   : > { %v1566_v59 = vpack.c.bf16 %v1553_v57, %v1552_v58 }
 0x1fb   : > { %v1414_v10 = vsub.f32 1.5, %v1413_v2 }
 0x1fd   : > { %1753 = vmatmul.bf16.gmra.mxu0 %v1565_v49  ;;  %v1415_v21 = vmul.f32 %v8123_v29, %v1414_v10 }
 0x1fe   : > { %1802 = vmatmul.bf16.gmra.mxu1 %v1565_v49  ;;  %1851 = vmatmul.bf16.gmra.mxu2 %v1565_v49 }
 0x20d   : > { %1758 = vmatmul.bf16.gmra.mxu0 %v1566_v59 }
 0x20e   : > { %1807 = vmatmul.bf16.gmra.mxu1 %v1566_v59  ;;  %1856 = vmatmul.bf16.gmra.mxu2 %v1566_v59 }
 0x247   : > { %v1301_v22 = vpop.xlane.xlu1 %1300 }
 0x248   : > { %v1325_v8 = vmul.f32 %v1301_v22, %v9681_v4 }
 0x24a   : > { %v1341_v1 = vadd.f32 1e-05, %v1325_v8 }
 0x24c   : > { %8124 = vrsqrt.f32 %v1341_v1  ;;  %vm1426_vm10 = vweird.f32 %v1341_v1 }
 0x24f   : > { %v1224_v5 = vpop.xlane.xlu1 %1223  ;;  %v1303_v11 = vpop.xlane.xlu2 %1302 }
 0x250   : > { %v1250_v9 = vmul.f32 %v9681_v4, %v1224_v5  ;;  %v1326_v12 = vmul.f32 %v1303_v11, %v9681_v4 }
 0x252   : > { %v8125_v16 = vpop.eup %8124  ;;  %v9905_v13 = vsub.f32 %v9803_v31, %v1250_v9  ;;  %v1342_v18 = vadd.f32 1e-05, %v1326_v12  ;;  %v1419_v31 = vsel %vm9909_vm8, %v8123_v29, %v1415_v21  ;;  %vm1945_vm8 = vcmask 261120  }
 0x253   : > { %v1421_v17 = vmul.f32 %v8125_v16, %v1341_v1  ;;  %vm1427_vm9 = vweird.f32 %v8125_v16  ;;  %v1516_v24 = vmul.f32 %v1419_v31, %v9725_v35  ;;  %v9946_v1 = vld [vmem:[%s9591_s28] sm:$0x7]  ;;  %s9155_s28 = smov 64  }
 0x254   : > { %v1282_v20 = vmul.f32 %v9905_v13, %v9905_v13  ;;  %8126 = vrsqrt.f32 %v1342_v18  ;;  %vm1428_vm11 = vmor %vm1426_vm10, %vm1427_vm9  ;;  %vm1436_vm13 = vweird.f32 %v1342_v18  ;;  %v9955_v12 = vperm.slane %v9946_v1, 0 }
 0x255   : > { %v1422_v6 = vmul.f32 %v8125_v16, %v1421_v17  ;;  %v1535_v51 = vmul.f32 %v9841_v33, %v1516_v24 }
 0x256   : > { %1310 = vadd.xlane.f32.xlu1 %v1282_v20 }
 0x257   : > { %v1423_v26 = vmul.f32 0.5, %v1422_v6  ;;  %v1309_v32 = vpop.xlane.xlu1 %1308  ;;  %v1226_v36 = vpop.xlane.xlu2 %1225  ;;  %v1554_v61 = vadd.f32 %v9855_v3, %v1535_v51 }
 0x258   : > { %v1305_v37 = vpop.xlane.xlu0 %1304  ;;  %v1329_v39 = vmul.f32 %v1309_v32, %v9681_v4  ;;  %v1251_v27 = vmul.f32 %v9681_v4, %v1226_v36 }
 0x259   : > { %v1424_v30 = vsub.f32 1.5, %v1423_v26  ;;  %v1327_v38 = vmul.f32 %v1305_v37, %v9681_v4  ;;  %v9963_v37 = vperm.slane %v9946_v1, 1 }
 0x25a   : > { %v8127_v44 = vpop.eup %8126  ;;  %v9918_v45 = vadd.f32 1e-05, %v1329_v39  ;;  %v9921_v46 = vsub.f32 %v9845_v34, %v1251_v27 }
 0x25b   : > { %v1425_v42 = vmul.f32 %v8125_v16, %v1424_v30  ;;  %v1343_v43 = vadd.f32 1e-05, %v1327_v38  ;;  %v1431_v23 = vmul.f32 %v8127_v44, %v1342_v18  ;;  %vm1437_vm12 = vweird.f32 %v8127_v44 }
 0x25c   : > { %v1283_v15 = vmul.f32 %v9921_v46, %v9921_v46  ;;  %vm9941_vm14 = vmor %vm1436_vm13, %vm1437_vm12  ;;  %vm1466_vm4 = vweird.f32 %v9918_v45 }
 0x25d   : > { %v1429_v47 = vsel %vm1428_vm11, %v8125_v16, %v1425_v42  ;;  %8128 = vrsqrt.f32 %v1343_v43  ;;  %v1432_v48 = vmul.f32 %v8127_v44, %v1431_v23  ;;  %vm1446_vm15 = vweird.f32 %v1343_v43 }
 0x25e   : > { %8130 = vrsqrt.f32 %v9918_v45  ;;  %v1517_v49 = vmul.f32 %v1429_v47, %v9788_v7  ;;  %1312 = vadd.xlane.f32.xlu2 %v1283_v15 }
 0x25f   : > { %v1433_v52 = vmul.f32 0.5, %v1432_v48  ;;  %v1228_v54 = vpop.xlane.xlu2 %1227 }
 0x260   : > { %v1307_v50 = vpop.xlane.xlu0 %1306  ;;  %v1536_v35 = vmul.f32 %v9841_v33, %v1517_v49  ;;  %v1252_v57 = vmul.f32 %v9681_v4, %v1228_v54 }
 0x261   : > { %v1328_v34 = vmul.f32 %v1307_v50, %v9681_v4  ;;  %v1434_v40 = vsub.f32 1.5, %v1433_v52 }
 0x262   : > { %v1555_v59 = vadd.f32 %v9855_v3, %v1536_v35  ;;  %v9939_v22 = vsub.f32 %v9877_v28, %v1252_v57 }
 0x263   : > { %v8129_v56 = vpop.eup %8128  ;;  %v1344_v58 = vadd.f32 1e-05, %v1328_v34  ;;  %v1435_v62 = vmul.f32 %v8127_v44, %v1434_v40 }
 0x264   : > { %v9933_v60 = vpop.eup %8130  ;;  %v1441_v7 = vmul.f32 %v8129_v56, %v1343_v43  ;;  %v1567_v8 = vpack.c.bf16 %v1555_v59, %v1554_v61  ;;  %vm1447_vm0 = vweird.f32 %v8129_v56  ;;  %v1284_v9 = vmul.f32 %v9939_v22, %v9939_v22 }
 0x265   : > { %v1461_v29 = vmul.f32 %v9933_v60, %v9918_v45  ;;  %8132 = vrsqrt.f32 %v1344_v58  ;;  %v1439_v2 = vsel %vm9941_vm14, %v8127_v44, %v1435_v62  ;;  %vm1448_vm1 = vmor %vm1446_vm15, %vm1447_vm0  ;;  %vm1456_vm2 = vweird.f32 %v1344_v58 }
 0x266   : > { %v1442_v63 = vmul.f32 %v8129_v56, %v1441_v7  ;;  %1763 = vmatmul.bf16.gmra.mxu0 %v1567_v8  ;;  %1812 = vmatmul.bf16.gmra.mxu1 %v1567_v8  ;;  %v1518_v6 = vmul.f32 %v1439_v2, %v9798_v25  ;;  %vm1467_vm5 = vweird.f32 %v9933_v60 }
 0x267   : > { %v1462_v10 = vmul.f32 %v9933_v60, %v1461_v29  ;;  %1861 = vmatmul.bf16.gmra.mxu2 %v1567_v8  ;;  %1314 = vadd.xlane.f32.xlu0 %v1284_v9  ;;  %vm9985_vm7 = vmor %vm1466_vm4, %vm1467_vm5  ;;  %vm2176_vm5 = vcmask 130048  }
 0x268   : > { %v1443_v5 = vmul.f32 0.5, %v1442_v63  ;;  %v1230_v28 = vpop.xlane.xlu0 %1229 }
 0x269   : > { %v1253_v11 = vmul.f32 %v9681_v4, %v1230_v28  ;;  %v1463_v31 = vmul.f32 0.5, %v1462_v10 }
 0x26a   : > { %v1444_v16 = vsub.f32 1.5, %v1443_v5  ;;  %v1749_v18 = vpop.f32.mrf.mxu0 }
 0x26b   : > { %v8133_v17 = vpop.eup %8132  ;;  %v1798_v20 = vpop.f32.mrf.mxu1  ;;  %v9959_v21 = vsub.f32 %v9884_v41, %v1253_v11  ;;  %v1750_v38 = vadd.f32 %v1749_v18, %v9955_v12  ;;  %v1537_v41 = vmul.f32 %v9841_v33, %v1518_v6  ;;  %v1464_v42 = vsub.f32 1.5, %v1463_v31 }
 0x26c   : > { %v1445_v19 = vmul.f32 %v8129_v56, %v1444_v16  ;;  %v1451_v26 = vmul.f32 %v8133_v17, %v1344_v58  ;;  %v1799_v25 = vadd.f32 %v1798_v20, %v9963_v37  ;;  %vm1457_vm3 = vweird.f32 %v8133_v17 }
 0x26d   : > { %v1285_v30 = vmul.f32 %v9959_v21, %v9959_v21  ;;  %v1887_v24 = vmul.f32 0.17677669, %v1750_v38  ;;  %v1556_v15 = vadd.f32 %v9855_v3, %v1537_v41  ;;  %vm9978_vm6 = vmor %vm1456_vm2, %vm1457_vm3  ;;  %v1465_v45 = vmul.f32 %v9933_v60, %v1464_v42 }
 0x26e   : > { %v1449_v32 = vsel %vm1448_vm1, %v8129_v56, %v1445_v19  ;;  %v1452_v36 = vmul.f32 %v8133_v17, %v1451_v26  ;;  %v1919_v51 = vpack.c.bf16 %v1799_v25, %v1799_v25 }
 0x26f   : > { %1316 = vadd.xlane.f32.xlu1 %v1285_v30  ;;  %v1519_v39 = vmul.f32 %v1449_v32, %v9831_v55  ;;  %v1903_v56 = vpack.c.bf16 %v1887_v24, %v1887_v24  ;;  %v1469_v62 = vsel %vm9985_vm7, %v9933_v60, %v1465_v45  ;;  %vm4586_vm7 = vcmask 785408  }
 0x270   : > { %v1453_v27 = vmul.f32 0.5, %v1452_v36  ;;  %v1942_v59 = vunpack.c.l.b16 %v1919_v51  ;;  %v1521_v10 = vmul.f32 %v1469_v62, %v9826_v53 }
 0x271   : > { %v1538_v43 = vmul.f32 %v9841_v33, %v1519_v39  ;;  %v9972_v47 = vpop.f32.mrf.mxu2  ;;  %v1937_v29 = vunpack.c.l.b16 %v1903_v56 }
 0x272   : > { %v1454_v44 = vsub.f32 1.5, %v1453_v27  ;;  %v1751_v23 = vpop.f32.mrf.mxu0 }
 0x273   : > { %v1800_v55 = vpop.f32.mrf.mxu1  ;;  %v1557_v48 = vadd.f32 %v9855_v3, %v1538_v43  ;;  %v1752_v52 = vadd.f32 %v1751_v23, %v9955_v12 }
 0x274   : > { %v1455_v49 = vmul.f32 %v8133_v17, %v1454_v44  ;;  %v1801_v34 = vadd.f32 %v1800_v55, %v9963_v37 }
 0x275   : > { %v1568_v35 = vpack.c.bf16 %v1557_v48, %v1556_v15  ;;  %v1888_v40 = vmul.f32 0.17677669, %v1752_v52 }
 0x276   : > { %v1920_v57 = vpack.c.bf16 %v1801_v34, %v1801_v34  ;;  %v1459_v58 = vsel %vm9978_vm6, %v8133_v17, %v1455_v49  ;;  %v1540_v17 = vmul.f32 %v9841_v33, %v1521_v10  ;;  %vm4569_vm6 = vcmask 523264  }
 0x277   : > { %v1904_v7 = vpack.c.bf16 %v1888_v40, %v1888_v40  ;;  %1768 = vmatmul.bf16.gmra.mxu0 %v1568_v35  ;;  %1817 = vmatmul.bf16.gmra.mxu1 %v1568_v35  ;;  %v1520_v2 = vmul.f32 %v1459_v58, %v9863_v14  ;;  %v10037_v40 = vperm.slane %v9946_v1, 2 }
 0x278   : > { %v1943_v61 = vunpack.c.l.b16 %v1920_v57  ;;  %1866 = vmatmul.bf16.gmra.mxu2 %v1568_v35  ;;  %v1559_v32 = vadd.f32 %v9855_v3, %v1540_v17 }
 0x279   : > { %v1938_v63 = vunpack.c.l.b16 %v1904_v7  ;;  %v9996_v0 = vpop.f32.mrf.mxu2  ;;  %v1539_v14 = vmul.f32 %v9841_v33, %v1520_v2 }
 0x27a   : > { %v9994_v8 = vpack.c.b16 %v1943_v61, %v1942_v59  ;;  %v1754_v5 = vpop.f32.mrf.mxu0 }
 0x27b   : > { %v1803_v9 = vpop.f32.mrf.mxu1  ;;  %v9999_v28 = vpack.c.b16 %v1938_v63, %v1937_v29  ;;  %v1755_v11 = vadd.f32 %v1754_v5, %v9955_v12  ;;  %v1558_v6 = vadd.f32 %v9855_v3, %v1539_v14 }
 0x27c   : > { %2611 = vrot.lane.b32.xlu2 %v9994_v8, %s9154_s17  ;;  %v1950_v60 = vsel %vm1945_vm8, %v9994_v8, 0  ;;  %v1804_v16 = vadd.f32 %v1803_v9, %v9963_v37 }
 0x27d   : > { %1959 = vmatpush.bf16.xpose.msrb.mxu1 %v1950_v60  ;;  %2609 = vrot.lane.b32.xlu0 %v9999_v28, %s9154_s17  ;;  %v1889_v18 = vmul.f32 0.17677669, %v1755_v11  ;;  %v1569_v41 = vpack.c.bf16 %v1559_v32, %v1558_v6 }
 0x27e   : > { %v1921_v53 = vpack.c.bf16 %v1804_v16, %v1804_v16 }
 0x27f   : > { %v1905_v36 = vpack.c.bf16 %v1889_v18, %v1889_v18 }
 0x280   : > { %v1973_v27 = vunpack.c.l.b16 %v1921_v53 }
 0x281   : > { %v10012_v20 = vpop.f32.mrf.mxu2  ;;  %v1968_v43 = vunpack.c.l.b16 %v1905_v36 }
 0x282   : > { %v1756_v19 = vpop.f32.mrf.mxu0 }
 0x283   : > { %v1805_v26 = vpop.f32.mrf.mxu1  ;;  %v1757_v31 = vadd.f32 %v1756_v19, %v9955_v12 }
 0x284   : > { %v1806_v30 = vadd.f32 %v1805_v26, %v9963_v37 }
 0x285   : > { %v1890_v38 = vmul.f32 0.17677669, %v1757_v31 }
 0x286   : > { %v1922_v39 = vpack.c.bf16 %v1806_v30, %v1806_v30 }
 0x287   : > { %v1906_v25 = vpack.c.bf16 %v1890_v38, %v1890_v38  ;;  %1773 = vmatmul.bf16.gmra.mxu0 %v1569_v41  ;;  %1822 = vmatmul.bf16.gmra.mxu1 %v1569_v41 }
 0x288   : > { %v1974_v42 = vunpack.c.l.b16 %v1922_v39  ;;  %1871 = vmatmul.bf16.gmra.mxu2 %v1569_v41 }
 0x289   : > { %v1969_v44 = vunpack.c.l.b16 %v1906_v25  ;;  %v10020_v23 = vpop.f32.mrf.mxu2 }
 0x28a   : > { %v10018_v24 = vpack.c.b16 %v1974_v42, %v1973_v27  ;;  %v1759_v55 = vpop.f32.mrf.mxu0 }
 0x28b   : > { %v1808_v15 = vpop.f32.mrf.mxu1  ;;  %v10022_v48 = vpack.c.b16 %v1969_v44, %v1968_v43  ;;  %v1760_v45 = vadd.f32 %v1759_v55, %v9955_v12 }
 0x28c   : > { %2635 = vrot.lane.b32.xlu1 %v10018_v24, %s9154_s17  ;;  %v1980_v49 = vsel %vm1945_vm8, %v10018_v24, 0  ;;  %v1809_v50 = vadd.f32 %v1808_v15, %v9963_v37 }
 0x28d   : > { %1989 = vmatpush.bf16.xpose.msra.mxu3 %v1980_v49  ;;  %2633 = vrot.lane.b32.xlu0 %v10022_v48, %s9154_s17  ;;  %v1891_v7 = vmul.f32 0.17677669, %v1760_v45 }
 0x28e   : > { %v1923_v35 = vpack.c.bf16 %v1809_v50, %v1809_v50 }
 0x28f   : > { %v1907_v60 = vpack.c.bf16 %v1891_v7, %v1891_v7 }
 0x290   : > { %v2003_v61 = vunpack.c.l.b16 %v1923_v35 }
 0x291   : > { %v1857_v51 = vpop.f32.mrf.mxu2  ;;  %v1998_v17 = vunpack.c.l.b16 %v1907_v60 }
 0x292   : > { %v1761_v52 = vpop.f32.mrf.mxu0  ;;  %v1858_v59 = vadd.f32 %v1857_v51, %v10037_v40 }
 0x293   : > { %v1810_v34 = vpop.f32.mrf.mxu1  ;;  %v1762_v54 = vadd.f32 %v1761_v52, %v9955_v12 }
 0x294   : > { %v1811_v56 = vadd.f32 %v1810_v34, %v9963_v37  ;;  %7417 = vmatmul.msk.bf16.vlgmr.msra.gmra.mxu3 %vm1945_vm8, %v10022_v48  ;;  %v2373_v5 = vpack.c.bf16 %v1858_v59, %v1858_v59 }
 0x295   : > { %v1892_v57 = vmul.f32 0.17677669, %v1762_v54 }
 0x296   : > { %v1924_v58 = vpack.c.bf16 %v1811_v56, %v1811_v56  ;;  %v2448_v14 = vunpack.c.l.b16 %v2373_v5 }
 0x297   : > { %v1908_v29 = vpack.c.bf16 %v1892_v57, %v1892_v57 }
 0x298   : > { %v2004_v62 = vunpack.c.l.b16 %v1924_v58 }
 0x299   : > { %v1859_v2 = vpop.f32.mrf.mxu2  ;;  %v1999_v11 = vunpack.c.l.b16 %v1908_v29 }
 0x29a   : > { %v10040_v63 = vpack.c.b16 %v2004_v62, %v2003_v61  ;;  %v1860_v9 = vadd.f32 %v1859_v2, %v10037_v40 }
 0x29b   : > { %v10047_v6 = vpack.c.b16 %v1999_v11, %v1998_v17 }
 0x29c   : > { %13267 = vst [vmem:[#allocation49_spill] sm:$0xff] %v10040_v63  ;;  %v2010_v10 = vsel %vm1945_vm8, %v10040_v63, 0  ;;  %v2374_v1 = vpack.c.bf16 %v1860_v9, %v1860_v9 }
 0x29d   : > { %2019 = vmatpush.bf16.xpose.msrb.mxu3 %v2010_v10 }
 0x29e   : > { %v2449_v16 = vunpack.c.l.b16 %v2374_v1 }
 0x2a0   : > { %v10045_v18 = vpack.c.b16 %v2449_v16, %v2448_v14 }
 0x2a2   : > { %13268 = vst [vmem:[#allocation50_spill] sm:$0xff] %v10045_v18  ;;  %2462 = vmatpush.bf16.msrb.mxu0 %v10045_v18 }
 0x2a4   : > { %7418 = vmatmul.msk.bf16.vlgmr.msrb.gmra.mxu3 %vm1945_vm8, %v10047_v6 }
 0x2c9   : > { %v1311_v19 = vpop.xlane.xlu1 %1310 }
 0x2ca   : > { %v1330_v26 = vmul.f32 %v1311_v19, %v9681_v4 }
 0x2cc   : > { %v1346_v53 = vadd.f32 1e-05, %v1330_v26 }
 0x2ce   : > { %8134 = vrsqrt.f32 %v1346_v53  ;;  %vm1476_vm9 = vweird.f32 %v1346_v53 }
 0x2d1   : > { %v1313_v31 = vpop.xlane.xlu2 %1312 }
 0x2d2   : > { %v1331_v32 = vmul.f32 %v1313_v31, %v9681_v4 }
 0x2d4   : > { %v8135_v30 = vpop.eup %8134  ;;  %v1347_v38 = vadd.f32 1e-05, %v1331_v32 }
 0x2d5   : > { %v1471_v36 = vmul.f32 %v8135_v30, %v1346_v53  ;;  %vm1477_vm10 = vweird.f32 %v8135_v30 }
 0x2d6   : > { %8136 = vrsqrt.f32 %v1347_v38  ;;  %vm1478_vm11 = vmor %vm1476_vm9, %vm1477_vm10  ;;  %vm1486_vm13 = vweird.f32 %v1347_v38 }
 0x2d7   : > { %v1472_v39 = vmul.f32 %v8135_v30, %v1471_v36 }
 0x2d9   : > { %v1473_v41 = vmul.f32 0.5, %v1472_v39 }
 0x2da   : > { %v1315_v25 = vpop.xlane.xlu0 %1314 }
 0x2db   : > { %v1474_v27 = vsub.f32 1.5, %v1473_v41  ;;  %v1332_v43 = vmul.f32 %v1315_v25, %v9681_v4 }
 0x2dc   : > { %v8137_v42 = vpop.eup %8136 }
 0x2dd   : > { %v1481_v44 = vmul.f32 %v8137_v42, %v1347_v38  ;;  %v1475_v55 = vmul.f32 %v8135_v30, %v1474_v27  ;;  %v1348_v15 = vadd.f32 1e-05, %v1332_v43  ;;  %vm1487_vm12 = vweird.f32 %v8137_v42 }
 0x2de   : > { %vm1488_vm14 = vmor %vm1486_vm13, %vm1487_vm12 }
 0x2df   : > { %v1482_v49 = vmul.f32 %v8137_v42, %v1481_v44  ;;  %8138 = vrsqrt.f32 %v1348_v15  ;;  %v1479_v34 = vsel %vm1478_vm11, %v8135_v30, %v1475_v55  ;;  %vm1496_vm15 = vweird.f32 %v1348_v15 }
 0x2e0   : > { %v1522_v58 = vmul.f32 %v1479_v34, %v9905_v13 }
 0x2e1   : > { %v1483_v51 = vmul.f32 0.5, %v1482_v49 }
 0x2e2   : > { %v1317_v50 = vpop.xlane.xlu1 %1316  ;;  %v1541_v5 = vmul.f32 %v9841_v33, %v1522_v58 }
 0x2e3   : > { %v1333_v52 = vmul.f32 %v1317_v50, %v9681_v4  ;;  %v1484_v45 = vsub.f32 1.5, %v1483_v51  ;;  %v1764_v54 = vpop.f32.mrf.mxu0  ;;  %v1813_v56 = vpop.f32.mrf.mxu1 }
 0x2e4   : > { %v1814_v62 = vadd.f32 %v1813_v56, %v9963_v37  ;;  %v1560_v53 = vadd.f32 %v9855_v3, %v1541_v5 }
 0x2e5   : > { %v1349_v35 = vadd.f32 1e-05, %v1333_v52  ;;  %v1485_v57 = vmul.f32 %v8137_v42, %v1484_v45  ;;  %v8139_v59 = vpop.eup %8138 }
 0x2e6   : > { %v1491_v61 = vmul.f32 %v8139_v59, %v1348_v15  ;;  %vm1497_vm0 = vweird.f32 %v8139_v59  ;;  %v1925_v16 = vpack.c.bf16 %v1814_v62, %v1814_v62 }
 0x2e7   : > { %8140 = vrsqrt.f32 %v1349_v35  ;;  %v1489_v7 = vsel %vm1488_vm14, %v8137_v42, %v1485_v57  ;;  %vm10066_vm1 = vmor %vm1496_vm15, %vm1497_vm0  ;;  %vm1506_vm2 = vweird.f32 %v1349_v35 }
 0x2e8   : > { %v1523_v29 = vmul.f32 %v1489_v7, %v9921_v46  ;;  %v1492_v2 = vmul.f32 %v8139_v59, %v1491_v61  ;;  %v1765_v46 = vadd.f32 %v1764_v54, %v9955_v12  ;;  %v2033_v42 = vunpack.c.l.b16 %v1925_v16 }
 0x2ea   : > { %v1862_v9 = vpop.f32.mrf.mxu2  ;;  %v1542_v60 = vmul.f32 %v9841_v33, %v1523_v29  ;;  %v1493_v1 = vmul.f32 0.5, %v1492_v2  ;;  %v1893_v55 = vmul.f32 0.17677669, %v1765_v46 }
 0x2eb   : > { %v1766_v11 = vpop.f32.mrf.mxu0  ;;  %v1815_v13 = vpop.f32.mrf.mxu1  ;;  %v1863_v36 = vadd.f32 %v1862_v9, %v10037_v40 }
 0x2ec   : > { %v1767_v17 = vadd.f32 %v1766_v11, %v9955_v12  ;;  %v1816_v19 = vadd.f32 %v1815_v13, %v9963_v37  ;;  %v1494_v26 = vsub.f32 1.5, %v1493_v1  ;;  %v1561_v31 = vadd.f32 %v9855_v3, %v1542_v60 }
 0x2ed   : > { %v8141_v10 = vpop.eup %8140  ;;  %v2375_v49 = vpack.c.bf16 %v1863_v36, %v1863_v36  ;;  %v1909_v58 = vpack.c.bf16 %v1893_v55, %v1893_v55 }
 0x2ee   : > { %v1501_v14 = vmul.f32 %v8141_v10, %v1349_v35  ;;  %v1926_v38 = vpack.c.bf16 %v1816_v19, %v1816_v19  ;;  %v1495_v39 = vmul.f32 %v8139_v59, %v1494_v26  ;;  %v1894_v41 = vmul.f32 0.17677669, %v1767_v17 }
 0x2ef   : > { %v1570_v27 = vpack.c.bf16 %v1561_v31, %v1560_v53  ;;  %vm1507_vm3 = vweird.f32 %v8141_v10  ;;  %v2476_v62 = vunpack.c.l.b16 %v2375_v49  ;;  %v2028_v60 = vunpack.c.l.b16 %v1909_v58 }
 0x2f0   : > { %v1502_v32 = vmul.f32 %v8141_v10, %v1501_v14  ;;  %v2034_v43 = vunpack.c.l.b16 %v1926_v38  ;;  %v1499_v44 = vsel %vm10066_vm1, %v8139_v59, %v1495_v39  ;;  %vm1508_vm4 = vmor %vm1506_vm2, %vm1507_vm3  ;;  %v1910_v52 = vpack.c.bf16 %v1894_v41, %v1894_v41 }
 0x2f1   : > { %1778 = vmatmul.bf16.gmra.mxu0 %v1570_v27  ;;  %1827 = vmatmul.bf16.gmra.mxu1 %v1570_v27  ;;  %v1524_v56 = vmul.f32 %v1499_v44, %v9939_v22 }
 0x2f2   : > { %v1503_v25 = vmul.f32 0.5, %v1502_v32  ;;  %v10073_v50 = vpack.c.b16 %v2034_v43, %v2033_v42  ;;  %1876 = vmatmul.bf16.gmra.mxu2 %v1570_v27  ;;  %v1864_v51 = vpop.f32.mrf.mxu2  ;;  %v2029_v29 = vunpack.c.l.b16 %v1910_v52 }
 0x2f3   : > { %v1865_v34 = vadd.f32 %v1864_v51, %v10037_v40  ;;  %v1543_v5 = vmul.f32 %v9841_v33, %v1524_v56 }
 0x2f4   : > { %v1504_v15 = vsub.f32 1.5, %v1503_v25  ;;  %v1769_v45 = vpop.f32.mrf.mxu0  ;;  %v1818_v54 = vpop.f32.mrf.mxu1  ;;  %v2040_v7 = vsel %vm1945_vm8, %v10073_v50, 0  ;;  %v10086_v13 = vpack.c.b16 %v2029_v29, %v2028_v60 }
 0x2f5   : > { %v2376_v59 = vpack.c.bf16 %v1865_v34, %v1865_v34  ;;  %2049 = vmatpush.bf16.xpose.msra.mxu3 %v2040_v7  ;;  %v1819_v9 = vadd.f32 %v1818_v54, %v9963_v37  ;;  %v1562_v16 = vadd.f32 %v9855_v3, %v1543_v5  ;;  %v1770_v46 = vadd.f32 %v1769_v45, %v9955_v12  ;;  %v2612_v34 = vpop.permute.xlu2 %2611 }
 0x2f6   : > { %v1505_v57 = vmul.f32 %v8141_v10, %v1504_v15 }
 0x2f7   : > { %v2477_v2 = vunpack.c.l.b16 %v2376_v59  ;;  %v1927_v17 = vpack.c.bf16 %v1819_v9, %v1819_v9  ;;  %v1895_v38 = vmul.f32 0.17677669, %v1770_v46 }
 0x2f8   : > { %v1509_v61 = vsel %vm1508_vm4, %v8141_v10, %v1505_v57  ;;  %v2617_v57 = vsel %vm1945_vm8, %v2612_v34, 0 }
 0x2f9   : > { %v1525_v35 = vmul.f32 %v1509_v61, %v9959_v21  ;;  %v10083_v1 = vpack.c.b16 %v2477_v2, %v2476_v62  ;;  %v2063_v32 = vunpack.c.l.b16 %v1927_v17  ;;  %v1911_v55 = vpack.c.bf16 %v1895_v38, %v1895_v38 }
 0x2fb   : > { %13271 = vst [vmem:[#allocation51_spill] sm:$0xff] %v10083_v1  ;;  %v1544_v22 = vmul.f32 %v9841_v33, %v1525_v35  ;;  %v1867_v11 = vpop.f32.mrf.mxu2  ;;  %2490 = vmatpush.bf16.msra.mxu1 %v10083_v1  ;;  %v2058_v54 = vunpack.c.l.b16 %v1911_v55 }
 0x2fc   : > { %v1771_v10 = vpop.f32.mrf.mxu0  ;;  %v1820_v14 = vpop.f32.mrf.mxu1  ;;  %7419 = vmatmul.msk.bf16.vlgmr.msra.gmra.mxu3 %vm1945_vm8, %v10086_v13  ;;  %v1868_v31 = vadd.f32 %v1867_v11, %v10037_v40 }
 0x2fd   : > { %v1563_v21 = vadd.f32 %v9855_v3, %v1544_v22  ;;  %v1772_v19 = vadd.f32 %v1771_v10, %v9955_v12  ;;  %v1821_v26 = vadd.f32 %v1820_v14, %v9963_v37  ;;  %v10120_v14 = vld [vmem:[#allocation3 + $0x10] sm:$0xff] }
 0x2fe   : > { %v2377_v41 = vpack.c.bf16 %v1868_v31, %v1868_v31 }
 0x2ff   : > { %v1571_v33 = vpack.c.bf16 %v1563_v21, %v1562_v16  ;;  %v1928_v53 = vpack.c.bf16 %v1821_v26, %v1821_v26  ;;  %v1896_v30 = vmul.f32 0.17677669, %v1772_v19 }
 0x300   : > { %v2504_v49 = vunpack.c.l.b16 %v2377_v41 }
 0x301   : > { %v2064_v36 = vunpack.c.l.b16 %v1928_v53  ;;  %1783 = vmatmul.bf16.gmra.mxu0 %v1571_v33  ;;  %1832 = vmatmul.bf16.gmra.mxu1 %v1571_v33  ;;  %v1912_v27 = vpack.c.bf16 %v1896_v30, %v1896_v30  ;;  %v10135_v30 = vld [vmem:[#allocation3 + $0x20] sm:$0xff] }
 0x302   : > { %1881 = vmatmul.bf16.gmra.mxu2 %v1571_v33  ;;  %13274 = vst [vmem:[#allocation54_spill] sm:$0xff] %v10135_v30 }
 0x303   : > { %v10097_v3 = vpack.c.b16 %v2064_v36, %v2063_v32  ;;  %v1869_v39 = vpop.f32.mrf.mxu2  ;;  %v2059_v51 = vunpack.c.l.b16 %v1912_v27 }
 0x304   : > { %v1870_v25 = vadd.f32 %v1869_v39, %v10037_v40  ;;  %v1774_v42 = vpop.f32.mrf.mxu0  ;;  %v1823_v43 = vpop.f32.mrf.mxu1 }
 0x305   : > { %2707 = vrot.lane.b32.xlu2 %v10097_v3, %s9154_s17  ;;  %v2070_v44 = vsel %vm1945_vm8, %v10097_v3, 0  ;;  %v1824_v45 = vadd.f32 %v1823_v43, %v9963_v37  ;;  %v10108_v58 = vpack.c.b16 %v2059_v51, %v2058_v54  ;;  %v1775_v2 = vadd.f32 %v1774_v42, %v9955_v12 }
 0x306   : > { %v2378_v15 = vpack.c.bf16 %v1870_v25, %v1870_v25  ;;  %2079 = vmatpush.bf16.xpose.msrb.mxu3 %v2070_v44 }
 0x307   : > { %v1929_v61 = vpack.c.bf16 %v1824_v45, %v1824_v45  ;;  %v1897_v22 = vmul.f32 0.17677669, %v1775_v2 }
 0x308   : > { %v2505_v52 = vunpack.c.l.b16 %v2378_v15 }
 0x309   : > { %v2093_v9 = vunpack.c.l.b16 %v1929_v61  ;;  %v1913_v21 = vpack.c.bf16 %v1897_v22, %v1897_v22 }
 0x30a   : > { %v10105_v56 = vpack.c.b16 %v2505_v52, %v2504_v49 }
 0x30b   : > { %v2088_v33 = vunpack.c.l.b16 %v1913_v21  ;;  %v10142_v39 = vpop.f32.mrf.mxu2 }
 0x30c   : > { %13272 = vst [vmem:[#allocation52_spill] sm:$0xff] %v10105_v56  ;;  %2518 = vmatpush.bf16.msrb.mxu2 %v10105_v56  ;;  %v1776_v59 = vpop.f32.mrf.mxu0  ;;  %v1825_v7 = vpop.f32.mrf.mxu1 }
 0x30d   : > { %v1777_v62 = vadd.f32 %v1776_v59, %v9955_v12  ;;  %v1826_v29 = vadd.f32 %v1825_v7, %v9963_v37  ;;  %7420 = vmatmul.msk.bf16.vlgmr.msrb.gmra.mxu3 %vm1945_vm8, %v10108_v58 }
 0x30f   : > { %v1930_v35 = vpack.c.bf16 %v1826_v29, %v1826_v29  ;;  %v1898_v5 = vmul.f32 0.17677669, %v1777_v62 }
 0x310   : > { %2626 = vmatpush.bf16.xpose.msra.mxu2 %v2617_v57 }
 0x311   : > { %v2094_v60 = vunpack.c.l.b16 %v1930_v35  ;;  %7416 = vmatmul.msk.bf16.vlgmr.msrb.gmra.mxu1 %vm1945_vm8, %v9999_v28  ;;  %v1914_v10 = vpack.c.bf16 %v1898_v5, %v1898_v5 }
 0x313   : > { %v10118_v11 = vpack.c.b16 %v2094_v60, %v2093_v9  ;;  %v2089_v26 = vunpack.c.l.b16 %v1914_v10  ;;  %v10144_v41 = vpop.f32.mrf.mxu2 }
 0x315   : > { %v2100_v16 = vsel %vm1945_vm8, %v10118_v11, 0  ;;  %v10129_v53 = vpack.c.b16 %v2089_v26, %v2088_v33  ;;  %v1850_v26 = vadd.f32 %v9996_v0, %v10037_v40 }
 0x316   : > { %2109 = vmatpush.bf16.xpose.msra.mxu3 %v2100_v16 }
 0x317   : > { %v1991_v17 = vpop.f32.mrf.mxu3  ;;  %13273 = vst [vmem:[#allocation53_spill] sm:$0xff] %v10129_v53 }
 0x318   : > { %v10125_v19 = vadd.f32 %v1991_v17, %v10120_v14 }
 0x31a   : > { %v2183_v46 = vsel %vm2176_vm5, %v10125_v19, -inf }
 0x31b   : > { %2184 = vmax.xlane.f32.xlu1 %v2183_v46 }
 0x31d   : > { %7421 = vmatmul.msk.bf16.vlgmr.msra.gmra.mxu3 %vm1945_vm8, %v10129_v53 }
 0x31f   : > { %v10133_v31 = vpop.f32.mrf.mxu3 }
 0x327   : > { %v2021_v32 = vpop.f32.mrf.mxu3 }
 0x328   : > { %v10138_v36 = vadd.f32 %v2021_v32, %v10135_v30 }
 0x32a   : > { %v2189_v38 = vsel %vm2176_vm5, %v10138_v36, -inf }
 0x32b   : > { %2190 = vmax.xlane.f32.xlu1 %v2189_v38 }
 0x32f   : > { %v10150_v34 = vpop.f32.mrf.mxu3 }
 0x36e   : > { %v1779_v27 = vpop.f32.mrf.mxu0  ;;  %v1828_v25 = vpop.f32.mrf.mxu1 }
 0x36f   : > { %v1829_v42 = vadd.f32 %v1828_v25, %v9963_v37  ;;  %v1780_v15 = vadd.f32 %v1779_v27, %v9955_v12  ;;  %v1848_v25 = vadd.f32 %v9972_v47, %v10037_v40 }
 0x371   : > { %v1931_v49 = vpack.c.bf16 %v1829_v42, %v1829_v42  ;;  %v1899_v59 = vmul.f32 0.17677669, %v1780_v15  ;;  %v2369_v47 = vpack.c.bf16 %v1848_v25, %v1848_v25 }
 0x373   : > { %v2123_v7 = vunpack.c.l.b16 %v1931_v49  ;;  %v1915_v22 = vpack.c.bf16 %v1899_v59, %v1899_v59  ;;  %v1855_v59 = vadd.f32 %v10020_v23, %v10037_v40 }
 0x375   : > { %v1877_v43 = vpop.f32.mrf.mxu2  ;;  %v2118_v32 = vunpack.c.l.b16 %v1915_v22 }
 0x376   : > { %v1781_v44 = vpop.f32.mrf.mxu0  ;;  %v1830_v55 = vpop.f32.mrf.mxu1  ;;  %v1878_v57 = vadd.f32 %v1877_v43, %v10037_v40 }
 0x377   : > { %v1782_v51 = vadd.f32 %v1781_v44, %v9955_v12  ;;  %v1831_v52 = vadd.f32 %v1830_v55, %v9963_v37  ;;  %v2370_v44 = vpack.c.bf16 %v1850_v26, %v1850_v26 }
 0x378   : > { %v2381_v35 = vpack.c.bf16 %v1878_v57, %v1878_v57 }
 0x379   : > { %v1900_v45 = vmul.f32 0.17677669, %v1782_v51  ;;  %v1932_v54 = vpack.c.bf16 %v1831_v52, %v1831_v52 }
 0x37a   : > { %v2560_v46 = vunpack.c.l.b16 %v2381_v35 }
 0x37b   : > { %v2124_v61 = vunpack.c.l.b16 %v1932_v54  ;;  %v1916_v62 = vpack.c.bf16 %v1900_v45, %v1900_v45 }
 0x37d   : > { %v10153_v29 = vpack.c.b16 %v2124_v61, %v2123_v7  ;;  %v1879_v2 = vpop.f32.mrf.mxu2  ;;  %v2119_v17 = vunpack.c.l.b16 %v1916_v62  ;;  %v2393_v61 = vunpack.c.l.b16 %v2370_v44 }
 0x37e   : > { %v1880_v5 = vadd.f32 %v1879_v2, %v10037_v40  ;;  %v1784_v9 = vpop.f32.mrf.mxu0  ;;  %v1833_v60 = vpop.f32.mrf.mxu1 }
 0x37f   : > { %13275 = vst [vmem:[#allocation55_spill] sm:$0xff] %v10153_v29  ;;  %v2130_v10 = vsel %vm1945_vm8, %v10153_v29, 0  ;;  %v10158_v21 = vpop.f32.mrf.mxu3  ;;  %v1834_v38 = vadd.f32 %v1833_v60, %v9963_v37  ;;  %v10167_v42 = vpack.c.b16 %v2119_v17, %v2118_v32  ;;  %v1785_v0 = vadd.f32 %v1784_v9, %v9955_v12 }
 0x380   : > { %v2382_v16 = vpack.c.bf16 %v1880_v5, %v1880_v5  ;;  %2139 = vmatpush.bf16.xpose.msrb.mxu3 %v2130_v10  ;;  %v2392_v5 = vunpack.c.l.b16 %v2369_v47  ;;  %v2372_v10 = vpack.c.bf16 %v1855_v59, %v1855_v59 }
 0x381   : > { %v1933_v49 = vpack.c.bf16 %v1834_v38, %v1834_v38  ;;  %v1901_v62 = vmul.f32 0.17677669, %v1785_v0 }
 0x382   : > { %v2561_v33 = vunpack.c.l.b16 %v2382_v16  ;;  %v10185_v26 = vpack.c.b16 %v2393_v61, %v2392_v5 }
 0x383   : > { %v2153_v2 = vunpack.c.l.b16 %v1933_v49 }
 0x384   : > { %v10163_v27 = vpack.c.b16 %v2561_v33, %v2560_v46  ;;  %v1917_v46 = vpack.c.bf16 %v1901_v62, %v1901_v62  ;;  %v10210_v62 = vld [vmem:[#allocation3 + $0x48] sm:$0xff] }
 0x385   : > { %v1882_v43 = vpop.f32.mrf.mxu2 }
 0x386   : > { %13276 = vst [vmem:[#allocation56_spill] sm:$0xff] %v10163_v27  ;;  %2574 = vmatpush.bf16.msra.mxu0 %v10163_v27  ;;  %v1786_v55 = vpop.f32.mrf.mxu0  ;;  %v1835_v15 = vpop.f32.mrf.mxu1  ;;  %v1883_v7 = vadd.f32 %v1882_v43, %v10037_v40 }
 0x387   : > { %v1787_v51 = vadd.f32 %v1786_v55, %v9955_v12  ;;  %v1836_v52 = vadd.f32 %v1835_v15, %v9963_v37  ;;  %7422 = vmatmul.msk.bf16.vlgmr.msrb.gmra.mxu3 %vm1945_vm8, %v10167_v42  ;;  %v2053_v45 = vpop.f32.mrf.mxu3  ;;  %v1853_v12 = vadd.f32 %v10012_v20, %v10037_v40  ;;  %v10180_v37 = vld [vmem:[#allocation3] sm:$0xff]  ;;  %v2421_v55 = vunpack.c.l.b16 %v2372_v10  ;;  %v10195_v15 = vld [vmem:[#allocation3 + $0x18] sm:$0xff] }
 0x388   : > { %v2383_v16 = vpack.c.bf16 %v1883_v7, %v1883_v7 }
 0x389   : > { %v1902_v54 = vmul.f32 0.17677669, %v1787_v51  ;;  %v1934_v57 = vpack.c.bf16 %v1836_v52, %v1836_v52  ;;  %v2371_v32 = vpack.c.bf16 %v1853_v12, %v1853_v12  ;;  %v2148_v51 = vunpack.c.l.b16 %v1917_v46 }
 0x38a   : > { %v2588_v0 = vunpack.c.l.b16 %v2383_v16 }
 0x38b   : > { %v2154_v35 = vunpack.c.l.b16 %v1934_v57  ;;  %v1918_v9 = vpack.c.bf16 %v1902_v54, %v1902_v54  ;;  %v2420_v52 = vunpack.c.l.b16 %v2371_v32  ;;  %v10199_v54 = vld [vmem:[#allocation3 + $0x8] sm:$0xff]  ;;  %v10203_v57 = vadd.f32 %v10133_v31, %v10195_v15  ;;  %v10242_v32 = vld [vmem:[#allocation3 + $0x30] sm:$0xff] }
 0x38c   : > { %13281 = vst [vmem:[#allocation61_spill] sm:$0xff] %v10242_v32 }
 0x38d   : > { %v10182_v60 = vpack.c.b16 %v2154_v35, %v2153_v2  ;;  %v1884_v22 = vpop.f32.mrf.mxu2  ;;  %v2149_v43 = vunpack.c.l.b16 %v1918_v9  ;;  %v10207_v7 = vpack.c.b16 %v2421_v55, %v2420_v52  ;;  %v2186_v5 = vsel %vm2176_vm5, %v10203_v57, -inf  ;;  %v10225_v9 = vld [vmem:[#allocation3 + $0x28] sm:$0xff]  ;;  %v10257_v55 = vld [vmem:[#allocation3 + $0x50] sm:$0xff] }
 0x38e   : > { %v1885_v23 = vadd.f32 %v1884_v22, %v10037_v40  ;;  %v1961_v17 = vpop.f32.mrf.mxu1  ;;  %13279 = vst [vmem:[#allocation59_spill] sm:$0xff] %v10225_v9  ;;  %v10227_v22 = vld [vmem:[#allocation3 + $0x38] sm:$0xff]  ;;  %v10233_v16 = vadd.f32 %v10150_v34, %v10225_v9  ;;  %v10248_v34 = vadd.f32 %v10158_v21, %v10242_v32  ;;  %v10304_v32 = vld [vmem:[#allocation3 + $0x70] sm:$0xff] }
 0x38f   : > { %v10188_v33 = vadd.f32 %v1961_v17, %v10180_v37  ;;  %v2160_v20 = vsel %vm1945_vm8, %v10182_v60, 0  ;;  %v10205_v59 = vpack.c.b16 %v2149_v43, %v2148_v51  ;;  %13278 = vst [vmem:[#allocation58_spill] sm:$0xff] %v10207_v7 }
 0x390   : > { %v2384_v38 = vpack.c.bf16 %v1885_v23, %v1885_v23  ;;  %v2081_v25 = vpop.f32.mrf.mxu3  ;;  %2169 = vmatpush.bf16.xpose.msra.mxu3 %v2160_v20  ;;  %13280 = vst [vmem:[#allocation60_spill] sm:$0xff] %v10227_v22  ;;  %v10236_v23 = vadd.f32 %v2053_v45, %v10227_v22  ;;  %v2192_v20 = vsel %vm2176_vm5, %v10233_v16, -inf }
 0x391   : > { %v2177_v44 = vsel %vm2176_vm5, %v10188_v33, -inf  ;;  %13282 = vst [vmem:[#allocation62_spill] sm:$0xff] %v10257_v55 }
 0x392   : > { %v2589_v49 = vunpack.c.l.b16 %v2384_v38  ;;  %2178 = vmax.xlane.f32.xlu2 %v2177_v44  ;;  %v2198_v46 = vsel %vm2176_vm5, %v10236_v23, -inf  ;;  %v10244_v38 = vld [vmem:[#allocation3 + $0x40] sm:$0xff]  ;;  %v2195_v44 = vsel %vm2176_vm5, %v10248_v34, -inf  ;;  %13286 = vst [vmem:[#allocation66_spill] sm:$0xff] %v10304_v32 }
 0x393   : > { %v10251_v45 = vadd.f32 %v2081_v25, %v10244_v38 }
 0x394   : > { %v10197_v47 = vpack.c.b16 %v2589_v49, %v2588_v0  ;;  %v10259_v0 = vld [vmem:[#allocation3 + $0x58] sm:$0xff] }
 0x395   : > { %v2201_v43 = vsel %vm2176_vm5, %v10251_v45, -inf  ;;  %13283 = vst [vmem:[#allocation63_spill] sm:$0xff] %v10259_v0 }
 0x396   : > { %13277 = vst [vmem:[#allocation57_spill] sm:$0xff] %v10197_v47  ;;  %2602 = vmatpush.bf16.msrb.mxu1 %v10197_v47  ;;  %v1963_v61 = vpop.f32.mrf.mxu1 }
 0x397   : > { %v10213_v2 = vadd.f32 %v1963_v61, %v10199_v54  ;;  %7423 = vmatmul.msk.bf16.vlgmr.msra.gmra.mxu3 %vm1945_vm8, %v10205_v59  ;;  %v10271_v61 = vpop.permute.xlu0 %2609 }
 0x398   : > { %2406 = vmatpush.bf16.msrb.mxu3 %v10185_v26  ;;  %v2083_v35 = vpop.f32.mrf.mxu3 }
 0x399   : > { %v10219_v31 = vadd.f32 %v2083_v35, %v10210_v62  ;;  %v2180_v12 = vsel %vm2176_vm5, %v10213_v2, -inf  ;;  %v10273_v35 = vpop.permute.xlu1 %2635 }
 0x39a   : > { %2181 = vmax.xlane.f32.xlu0 %v2180_v12  ;;  %2187 = vmax.xlane.f32.xlu2 %v2186_v5  ;;  %v10275_v12 = vpop.permute.xlu2 %2707 }
 0x39b   : > { %v2204_v10 = vsel %vm2176_vm5, %v10219_v31, -inf }
 0x39c   : > { %2434 = vmatpush.bf16.msra.mxu3 %v10207_v7  ;;  %2205 = vmax.xlane.f32.xlu1 %v2204_v10 }
 0x39f   : > { %v10277_v5 = vpop.permute.xlu0 %2633 }
 0x3a0   : > { %v2111_v17 = vpop.f32.mrf.mxu3 }
 0x3a1   : > { %v10262_v51 = vadd.f32 %v2111_v17, %v10257_v55  ;;  %v2185_v10 = vpop.xlane.xlu1 %2184 }
 0x3a2   : > { %2199 = vmax.xlane.f32.xlu0 %v2198_v46  ;;  %2193 = vmax.xlane.f32.xlu2 %v2192_v20  ;;  %v2227_v20 = vsub.f32 %v10125_v19, %v2185_v10 }
 0x3a3   : > { %v2207_v52 = vsel %vm2176_vm5, %v10262_v51, -inf }
 0x3a8   : > { %v2113_v49 = vpop.f32.mrf.mxu3 }
 0x3a9   : > { %v10265_v21 = vadd.f32 %v2113_v49, %v10259_v0 }
 0x3aa   : > { %2202 = vmax.xlane.f32.xlu0 %v2201_v43  ;;  %2196 = vmax.xlane.f32.xlu2 %v2195_v44  ;;  %v10281_v44 = vld [vmem:[#allocation3 + $0x60] sm:$0xff] }
 0x3ab   : > { %v2210_v25 = vsel %vm2176_vm5, %v10265_v21, -inf  ;;  %13284 = vst [vmem:[#allocation64_spill] sm:$0xff] %v10281_v44 }
 0x3b2   : > { %2211 = vmax.xlane.f32.xlu0 %v2210_v25  ;;  %2208 = vmax.xlane.f32.xlu2 %v2207_v52  ;;  %v2245_v52 = vmul.f32 1.442695, %v2227_v20 }
 0x405   : > { %v2179_v17 = vpop.xlane.xlu2 %2178 }
 0x406   : > { %v2225_v46 = vsub.f32 %v10188_v33, %v2179_v17  ;;  %v10290_v33 = vld [vmem:[#allocation3 + $0x68] sm:$0xff] }
 0x407   : > { %13285 = vst [vmem:[#allocation65_spill] sm:$0xff] %v10290_v33 }
 0x408   : > { %v2241_v43 = vmul.f32 1.442695, %v2225_v46  ;;  %v2191_v46 = vpop.xlane.xlu1 %2190 }
 0x40a   : > { %8142 = vpow2.f32 %v2241_v43  ;;  %v2141_v49 = vpop.f32.mrf.mxu3 }
 0x40b   : > { %v10284_v25 = vadd.f32 %v2141_v49, %v10281_v44  ;;  %8144 = vpow2.f32 %v2245_v52 }
 0x40d   : > { %v2188_v4 = vpop.xlane.xlu2 %2187  ;;  %v2182_v1 = vpop.xlane.xlu0 %2181  ;;  %v2213_v27 = vsel %vm2176_vm5, %v10284_v25, -inf }
 0x40e   : > { %2214 = vmax.xlane.f32.xlu1 %v2213_v27  ;;  %v2226_v20 = vsub.f32 %v10213_v2, %v2182_v1 }
 0x410   : > { %v10288_v47 = vpop.eup %8142  ;;  %v2243_v22 = vmul.f32 1.442695, %v2226_v20  ;;  %v2206_v2 = vpop.xlane.xlu1 %2205 }
 0x411   : > { %v2273_v19 = vsel %vm2176_vm5, %v10288_v47, 0.0  ;;  %v10302_v52 = vpop.eup %8144 }
 0x412   : > { %v2143_v10 = vpop.f32.mrf.mxu3  ;;  %2274 = vadd.xlane.f32.xlu0 %v2273_v19  ;;  %v2279_v19 = vsel %vm2176_vm5, %v10302_v52, 0.0  ;;  %8146 = vpow2.f32 %v2243_v22 }
 0x413   : > { %v10295_v17 = vadd.f32 %v2143_v10, %v10290_v33  ;;  %v2228_v33 = vsub.f32 %v10203_v57, %v2188_v4  ;;  %v10317_v57 = vld [vmem:[#allocation3 + $0x78] sm:$0xff] }
 0x415   : > { %v2194_v43 = vpop.xlane.xlu2 %2193  ;;  %v10298_v49 = vpop.xlane.xlu0 %2199  ;;  %v2216_v27 = vsel %vm2176_vm5, %v10295_v17, -inf  ;;  %v2247_v0 = vmul.f32 1.442695, %v2228_v33 }
 0x416   : > { %2217 = vmax.xlane.f32.xlu2 %v2216_v27 }
 0x41a   : > { %2280 = vadd.xlane.f32.xlu0 %v2279_v19  ;;  %v2171_v10 = vpop.f32.mrf.mxu3  ;;  %v2234_v19 = vsub.f32 %v10219_v31, %v2206_v2  ;;  %v2230_v2 = vsub.f32 %v10233_v16, %v2194_v43 }
 0x41b   : > { %v10310_v1 = vadd.f32 %v2171_v10, %v10304_v32  ;;  %v10319_v10 = vpop.eup %8146 }
 0x41d   : > { %v2197_v44 = vpop.xlane.xlu2 %2196  ;;  %v2203_v9 = vpop.xlane.xlu0 %2202  ;;  %v2219_v27 = vsel %vm2176_vm5, %v10310_v1, -inf }
 0x41e   : > { %v2231_v20 = vsub.f32 %v10248_v34, %v2197_v44  ;;  %v2233_v30 = vsub.f32 %v10251_v45, %v2203_v9  ;;  %2220 = vmax.xlane.f32.xlu1 %v2219_v27  ;;  %v2229_v34 = vsub.f32 %v10138_v36, %v2191_v46  ;;  %v2259_v44 = vmul.f32 1.442695, %v2234_v19 }
 0x420   : > { %v2253_v55 = vmul.f32 1.442695, %v2231_v20  ;;  %v2257_v4 = vmul.f32 1.442695, %v2233_v30  ;;  %v2276_v30 = vsel %vm2176_vm5, %v10319_v10, 0.0 }
 0x422   : > { %8148 = vpow2.f32 %v2253_v55  ;;  %v2173_v22 = vpop.f32.mrf.mxu3  ;;  %v2249_v55 = vmul.f32 1.442695, %v2229_v34 }
 0x423   : > { %8150 = vpow2.f32 %v2247_v0  ;;  %v10322_v32 = vadd.f32 %v2173_v22, %v10317_v57 }
 0x424   : > { %8152 = vpow2.f32 %v2257_v4 }
 0x425   : > { %v2209_v9 = vpop.xlane.xlu2 %2208  ;;  %v2222_v31 = vsel %vm2176_vm5, %v10322_v32, -inf  ;;  %8154 = vpow2.f32 %v2259_v44  ;;  %v2212_v22 = vpop.xlane.xlu0 %2211 }
 0x426   : > { %2223 = vmax.xlane.f32.xlu2 %v2222_v31  ;;  %2277 = vadd.xlane.f32.xlu1 %v2276_v30  ;;  %v2235_v0 = vsub.f32 %v10262_v51, %v2209_v9  ;;  %8156 = vpow2.f32 %v2249_v55  ;;  %v2251_v51 = vmul.f32 1.442695, %v2230_v2  ;;  %v2236_v16 = vsub.f32 %v10265_v21, %v2212_v22 }
 0x427   : > { %v2232_v2 = vsub.f32 %v10236_v23, %v10298_v49 }
 0x428   : > { %v10329_v45 = vpop.eup %8148  ;;  %v2261_v27 = vmul.f32 1.442695, %v2235_v0  ;;  %v2263_v31 = vmul.f32 1.442695, %v2236_v16 }
 0x429   : > { %v10332_v33 = vpop.eup %8150  ;;  %v2291_v36 = vsel %vm2176_vm5, %v10329_v45, 0.0 }
 0x42a   : > { %v10336_v46 = vpop.eup %8152  ;;  %2292 = vadd.xlane.f32.xlu0 %v2291_v36  ;;  %v2282_v20 = vsel %vm2176_vm5, %v10332_v33, 0.0  ;;  %8158 = vpow2.f32 %v2261_v27  ;;  %v2255_v27 = vmul.f32 1.442695, %v2232_v2 }
 0x42b   : > { %v2297_v19 = vsel %vm2176_vm5, %v10336_v46, 0.0  ;;  %v10343_v4 = vpop.eup %8154  ;;  %8160 = vpow2.f32 %v2251_v51 }
 0x42c   : > { %v2300_v34 = vsel %vm2176_vm5, %v10343_v4, 0.0  ;;  %v10347_v44 = vpop.eup %8156  ;;  %8162 = vpow2.f32 %v2263_v31 }
 0x42d   : > { %v2285_v43 = vsel %vm2176_vm5, %v10347_v44, 0.0  ;;  %8164 = vpow2.f32 %v2255_v27 }
 0x42e   : > { %2283 = vadd.xlane.f32.xlu1 %v2282_v20  ;;  %2298 = vadd.xlane.f32.xlu2 %v2297_v19 }
 0x430   : > { %v10352_v9 = vpop.eup %8158 }
 0x431   : > { %v2303_v30 = vsel %vm2176_vm5, %v10352_v9, 0.0  ;;  %v10356_v55 = vpop.eup %8160 }
 0x432   : > { %2301 = vadd.xlane.f32.xlu0 %v2300_v34  ;;  %v2288_v0 = vsel %vm2176_vm5, %v10356_v55, 0.0  ;;  %v10360_v36 = vpop.eup %8162 }
 0x433   : > { %v2306_v21 = vsel %vm2176_vm5, %v10360_v36, 0.0  ;;  %v10370_v20 = vpop.eup %8164 }
 0x434   : > { %v2294_v19 = vsel %vm2176_vm5, %v10370_v20, 0.0 }
 0x436   : > { %2286 = vadd.xlane.f32.xlu1 %v2285_v43 }
 0x43a   : > { %2304 = vadd.xlane.f32.xlu0 %v2303_v30 }
 0x43e   : > { %2289 = vadd.xlane.f32.xlu1 %v2288_v0 }
 0x446   : > { %2705 = vrot.lane.b32.xlu2 %v10108_v58, %s9154_s17  ;;  %2307 = vadd.xlane.f32.xlu1 %v2306_v21 }
 0x44e   : > { %2729 = vrot.lane.b32.xlu0 %v10129_v53, %s9154_s17 }
 0x46f   : > { %2295 = vadd.xlane.f32.xlu2 %v2294_v19 }
 0x481   : > { %v2215_v51 = vpop.xlane.xlu1 %2214 }
 0x482   : > { %v2237_v22 = vsub.f32 %v10284_v25, %v2215_v51  ;;  %v1875_v51 = vadd.f32 %v10144_v41, %v10037_v40 }
 0x484   : > { %v2265_v34 = vmul.f32 1.442695, %v2237_v22 }
 0x485   : > { %v2275_v23 = vpop.xlane.xlu0 %2274 }
 0x486   : > { %8166 = vpow2.f32 %v2265_v34 }
 0x487   : > { %2731 = vrot.lane.b32.xlu2 %v10118_v11, %s9154_s17 }
 0x489   : > { %v2218_v16 = vpop.xlane.xlu2 %2217 }
 0x48a   : > { %v2238_v43 = vsub.f32 %v10295_v17, %v2218_v16  ;;  %v1873_v16 = vadd.f32 %v10142_v39, %v10037_v40 }
 0x48c   : > { %v10378_v49 = vpop.eup %8166  ;;  %v2267_v31 = vmul.f32 1.442695, %v2238_v43 }
 0x48d   : > { %v2309_v30 = vsel %vm2176_vm5, %v10378_v49, 0.0  ;;  %v2281_v21 = vpop.xlane.xlu0 %2280 }
 0x48e   : > { %8168 = vpow2.f32 %v2267_v31  ;;  %2310 = vadd.xlane.f32.xlu1 %v2309_v30 }
 0x48f   : > { %2659 = vrot.lane.b32.xlu2 %v10040_v63, %s9154_s17  ;;  %8170 = vrcp.f32 %v2275_v23  ;;  %v2380_v23 = vpack.c.bf16 %v1875_v51, %v1875_v51 }
 0x491   : > { %v10384_v25 = vpop.xlane.xlu1 %2220 }
 0x494   : > { %v10386_v0 = vpop.eup %8168 }
 0x495   : > { %v2312_v17 = vsel %vm2176_vm5, %v10386_v0, 0.0  ;;  %v8171_v19 = vpop.eup %8170 }
 0x496   : > { %2313 = vadd.xlane.f32.xlu0 %v2312_v17  ;;  %v2337_v22 = vmul.f32 %v8171_v19, %v10288_v47  ;;  %v2533_v47 = vunpack.c.l.b16 %v2380_v23 }
 0x497   : > { %2755 = vrot.lane.b32.xlu2 %v10153_v29, %s9154_s17  ;;  %v2379_v29 = vpack.c.bf16 %v1873_v16, %v1873_v16 }
 0x498   : > { %v2353_v31 = vpack.c.bf16 %v2337_v22, %v2337_v22 }
 0x499   : > { %v10392_v2 = vpop.xlane.xlu2 %2223  ;;  %v2278_v27 = vpop.xlane.xlu1 %2277  ;;  %v2532_v40 = vunpack.c.l.b16 %v2379_v29 }
 0x49a   : > { %8172 = vrcp.f32 %v2278_v27  ;;  %v2387_v19 = vunpack.c.l.b16 %v2353_v31 }
 0x49b   : > { %v10408_v51 = vpack.c.b16 %v2533_v47, %v2532_v40  ;;  %v2713_v40 = vsel %vm1945_vm8, %v10275_v12, 0 }
 0x49d   : > { %v10397_v34 = vpop.xlane.xlu0 %2292  ;;  %13287 = vst [vmem:[#allocation67_spill] sm:$0xff] %v10408_v51 }
 0x49f   : > { %2753 = vrot.lane.b32.xlu2 %v10167_v42, %s9154_s17 }
 0x4a0   : > { %v8173_v43 = vpop.eup %8172 }
 0x4a1   : > { %v2338_v30 = vmul.f32 %v8173_v43, %v10319_v10  ;;  %v2284_v17 = vpop.xlane.xlu1 %2283  ;;  %v2299_v27 = vpop.xlane.xlu2 %2298 }
 0x4a2   : > { %8174 = vrcp.f32 %v2284_v17 }
 0x4a3   : > { %v2354_v41 = vpack.c.bf16 %v2338_v30, %v2338_v30  ;;  %8176 = vrcp.f32 %v2299_v27 }
 0x4a4   : > { %8178 = vrcp.f32 %v2281_v21 }
 0x4a5   : > { %v2388_v63 = vunpack.c.l.b16 %v2354_v41  ;;  %v2302_v53 = vpop.xlane.xlu0 %2301 }
 0x4a6   : > { %8180 = vrcp.f32 %v2302_v53 }
 0x4a7   : > { %v2389_v39 = vpack.c.b16 %v2388_v63, %v2387_v19  ;;  %2777 = vrot.lane.b32.xlu2 %v10205_v59, %s9154_s17  ;;  %2683 = vrot.lane.b32.xlu1 %v10073_v50, %s9154_s17 }
 0x4a8   : > { %v8175_v10 = vpop.eup %8174 }
 0x4a9   : > { %v8177_v22 = vpop.eup %8176  ;;  %v2287_v16 = vpop.xlane.xlu1 %2286  ;;  %7424 = vmatmul.msk.bf16.vlgmr.msrb.gmra.mxu3 %vm2176_vm5, %v2389_v39  ;;  %v2340_v63 = vmul.f32 %v8175_v10, %v10332_v33 }
 0x4aa   : > { %v8179_v21 = vpop.eup %8178  ;;  %v2345_v43 = vmul.f32 %v8177_v22, %v10336_v46  ;;  %2546 = vmatpush.bf16.msrb.mxu3 %v10408_v51  ;;  %2657 = vrot.lane.b32.xlu0 %v10047_v6, %s9154_s17  ;;  %8182 = vrcp.f32 %v2287_v16 }
 0x4ab   : > { %v2339_v29 = vmul.f32 %v8179_v21, %v10302_v52  ;;  %v2356_v30 = vpack.c.bf16 %v2340_v63, %v2340_v63  ;;  %v2641_v21 = vsel %vm1945_vm8, %v10273_v35, 0 }
 0x4ac   : > { %v8181_v53 = vpop.eup %8180  ;;  %v2361_v23 = vpack.c.bf16 %v2345_v43, %v2345_v43 }
 0x4ad   : > { %v2346_v31 = vmul.f32 %v8181_v53, %v10343_v4  ;;  %v2355_v46 = vpack.c.bf16 %v2339_v29, %v2339_v29  ;;  %v2305_v27 = vpop.xlane.xlu0 %2304  ;;  %v2416_v52 = vunpack.c.l.b16 %v2356_v30 }
 0x4ae   : > { %v2499_v47 = vunpack.c.l.b16 %v2361_v23 }
 0x4af   : > { %v2362_v17 = vpack.c.bf16 %v2346_v31, %v2346_v31  ;;  %3098 = vrot.lane.b32.xlu2 %v10105_v56, %s9154_s17  ;;  %2998 = vrot.lane.b32.xlu1 %v10185_v26, %s9154_s17  ;;  %v2415_v39 = vunpack.c.l.b16 %v2355_v46 }
 0x4b0   : > { %v8183_v19 = vpop.eup %8182 }
 0x4b1   : > { %v2290_v41 = vpop.xlane.xlu1 %2289  ;;  %v2500_v33 = vunpack.c.l.b16 %v2362_v17  ;;  %v2341_v10 = vmul.f32 %v8183_v19, %v10347_v44  ;;  %v2417_v22 = vpack.c.b16 %v2416_v52, %v2415_v39  ;;  %v2239_v19 = vsub.f32 %v10310_v1, %v10384_v25 }
 0x4b2   : > { %8184 = vrcp.f32 %v2290_v41  ;;  %2681 = vrot.lane.b32.xlu0 %v10086_v13, %s9154_s17 }
 0x4b3   : > { %v2501_v4 = vpack.c.b16 %v2500_v33, %v2499_v47  ;;  %8186 = vrcp.f32 %v2305_v27  ;;  %v2357_v43 = vpack.c.bf16 %v2341_v10, %v2341_v10  ;;  %v2269_v10 = vmul.f32 1.442695, %v2239_v19 }
 0x4b5   : > { %7428 = vmatmul.msk.bf16.vlgmr.msrb.gmra.mxu2 %vm2176_vm5, %v2501_v4  ;;  %v2443_v23 = vunpack.c.l.b16 %v2357_v43 }
 0x4b6   : > { %2722 = vmatpush.bf16.xpose.msrb.mxu2 %v2713_v40 }
 0x4b7   : > { %3193 = vrot.lane.b32.xlu2 %v9999_v28, %s9155_s28  ;;  %3023 = vrot.lane.b32.xlu1 %v10207_v7, %s9154_s17 }
 0x4b8   : > { %v8185_v16 = vpop.eup %8184 }
 0x4b9   : > { %v2342_v12 = vmul.f32 %v8185_v16, %v10356_v55  ;;  %v2308_v63 = vpop.xlane.xlu1 %2307  ;;  %7425 = vmatmul.msk.bf16.vlgmr.msra.gmra.mxu3 %vm2176_vm5, %v2417_v22  ;;  %v8187_v44 = vpop.eup %8186 }
 0x4ba   : > { %8188 = vrcp.f32 %v2308_v63  ;;  %2650 = vmatpush.bf16.xpose.msra.mxu3 %v2641_v21  ;;  %2779 = vrot.lane.b32.xlu0 %v10182_v60, %s9154_s17  ;;  %v2347_v29 = vmul.f32 %v8187_v44, %v10352_v9  ;;  %v2240_v21 = vsub.f32 %v10322_v32, %v10392_v2 }
 0x4bb   : > { %v2358_v53 = vpack.c.bf16 %v2342_v12, %v2342_v12  ;;  %8190 = vrcp.f32 %v10397_v34 }
 0x4bc   : > { %v2363_v30 = vpack.c.bf16 %v2347_v29, %v2347_v29  ;;  %v2271_v1 = vmul.f32 1.442695, %v2240_v21 }
 0x4bd   : > { %v2444_v31 = vunpack.c.l.b16 %v2358_v53 }
 0x4be   : > { %v2527_v9 = vunpack.c.l.b16 %v2363_v30 }
 0x4bf   : > { %3217 = vrot.lane.b32.xlu2 %v10022_v48, %s9155_s28  ;;  %3123 = vrot.lane.b32.xlu1 %v10408_v51, %s9154_s17  ;;  %v2445_v35 = vpack.c.b16 %v2444_v31, %v2443_v23 }
 0x4c0   : > { %v8189_v55 = vpop.eup %8188  ;;  %v2730_v43 = vpop.permute.xlu0 %2729 }
 0x4c1   : > { %v2348_v17 = vmul.f32 %v8189_v55, %v10360_v36  ;;  %7426 = vmatmul.msk.bf16.vlgmr.msrb.gmra.mxu0 %vm2176_vm5, %v2445_v35  ;;  %v2706_v36 = vpop.permute.xlu2 %2705  ;;  %v8191_v47 = vpop.eup %8190 }
 0x4c2   : > { %3195 = vrot.lane.b32.xlu0 %v9994_v8, %s9155_s28  ;;  %v2343_v33 = vmul.f32 %v8191_v47, %v10329_v45 }
 0x4c3   : > { %v2364_v46 = vpack.c.bf16 %v2348_v17, %v2348_v17 }
 0x4c4   : > { %v2359_v4 = vpack.c.bf16 %v2343_v33, %v2343_v33 }
 0x4c5   : > { %v2528_v27 = vunpack.c.l.b16 %v2364_v46  ;;  %7432 = vmatmul.msk.bf16.vlgmr.msra.gmra.mxu2 %vm1945_vm8, %v10271_v61 }
 0x4c7   : > { %v2529_v41 = vpack.c.b16 %v2528_v27, %v2527_v9  ;;  %3291 = vrot.lane.b32.xlu1 %v10097_v3, %s9155_s28 }
 0x4c9   : > { %7429 = vmatmul.msk.bf16.vlgmr.msrb.gmra.mxu3 %vm2176_vm5, %v2529_v41 }
 0x4ca   : > { %3219 = vrot.lane.b32.xlu0 %v10018_v24, %s9155_s28 }
 0x4cf   : > { %3048 = vrot.lane.b32.xlu1 %v10045_v18, %s9154_s17 }
 0x4d2   : > { %3289 = vrot.lane.b32.xlu0 %v10108_v58, %s9155_s28 }
 0x4d5   : > { %7436 = vmatmul.msk.bf16.vlgmr.msrb.gmra.mxu2 %vm1945_vm8, %v2706_v36 }
 0x4d9   : > { %7433 = vmatmul.msk.bf16.vlgmr.msra.gmra.mxu3 %vm1945_vm8, %v10277_v5  ;;  %v2471_v5 = vunpack.c.l.b16 %v2359_v4 }
 0x4e2   : > { %v2296_v61 = vpop.xlane.xlu2 %2295 }
 0x4e3   : > { %8192 = vrcp.f32 %v2296_v61 }
 0x4e4   : > { %8194 = vpow2.f32 %v2269_v10 }
 0x4e5   : > { %8196 = vpow2.f32 %v2271_v1 }
 0x4e9   : > { %v8193_v52 = vpop.eup %8192 }
 0x4ea   : > { %v2344_v40 = vmul.f32 %v8193_v52, %v10370_v20  ;;  %v2732_v39 = vpop.permute.xlu2 %2731  ;;  %v10472_v25 = vpop.eup %8194 }
 0x4eb   : > { %v2737_v22 = vsel %vm1945_vm8, %v2732_v39, 0  ;;  %v2315_v63 = vsel %vm2176_vm5, %v10472_v25, 0.0  ;;  %v10476_v44 = vpop.eup %8196 }
 0x4ec   : > { %v2360_v16 = vpack.c.bf16 %v2344_v40, %v2344_v40  ;;  %2746 = vmatpush.bf16.xpose.msrb.mxu3 %v2737_v22  ;;  %v2318_v32 = vsel %vm2176_vm5, %v10476_v44, 0.0 }
 0x4ee   : > { %v2472_v34 = vunpack.c.l.b16 %v2360_v16 }
 0x4f0   : > { %v2473_v45 = vpack.c.b16 %v2472_v34, %v2471_v5 }
 0x4f2   : > { %v2660_v12 = vpop.permute.xlu2 %2659  ;;  %7427 = vmatmul.msk.bf16.vlgmr.msra.gmra.mxu1 %vm2176_vm5, %v2473_v45 }
 0x4f3   : > { %v2665_v20 = vsel %vm1945_vm8, %v2660_v12, 0  ;;  %7437 = vmatmul.msk.bf16.vlgmr.msrb.gmra.mxu3 %vm1945_vm8, %v2730_v43 }
 0x4f4   : > { %2674 = vmatpush.bf16.xpose.msrb.mxu0 %v2665_v20 }
 0x4f9   : > { %2316 = vadd.xlane.f32.xlu1 %v2315_v63 }
 0x4fa   : > { %v2756_v53 = vpop.permute.xlu2 %2755 }
 0x4fb   : > { %v2761_v61 = vsel %vm1945_vm8, %v2756_v53, 0 }
 0x501   : > { %2319 = vadd.xlane.f32.xlu1 %v2318_v32  ;;  %v2311_v2 = vpop.xlane.xlu1 %2310 }
 0x502   : > { %8198 = vrcp.f32 %v2311_v2  ;;  %v2754_v35 = vpop.permute.xlu2 %2753 }
 0x508   : > { %v8199_v23 = vpop.eup %8198 }
 0x509   : > { %v2314_v29 = vpop.xlane.xlu0 %2313  ;;  %v2349_v31 = vmul.f32 %v8199_v23, %v10378_v49 }
 0x50a   : > { %8200 = vrcp.f32 %v2314_v29  ;;  %v10482_v36 = vpop.permute.xlu2 %2777 }
 0x50b   : > { %v2365_v30 = vpack.c.bf16 %v2349_v31, %v2349_v31 }
 0x50d   : > { %v2555_v9 = vunpack.c.l.b16 %v2365_v30 }
 0x510   : > { %v8201_v55 = vpop.eup %8200 }
 0x511   : > { %v2350_v17 = vmul.f32 %v8201_v55, %v10386_v0 }
 0x512   : > { %v3099_v0 = vpop.permute.xlu2 %3098 }
 0x513   : > { %v2366_v46 = vpack.c.bf16 %v2350_v17, %v2350_v17 }
 0x515   : > { %v2556_v27 = vunpack.c.l.b16 %v2366_v46 }
 0x517   : > { %v2557_v41 = vpack.c.b16 %v2556_v27, %v2555_v9 }
 0x519   : > { %v2684_v47 = vpop.permute.xlu1 %2683  ;;  %7430 = vmatmul.msk.bf16.vlgmr.msra.gmra.mxu0 %vm2176_vm5, %v2557_v41 }
 0x51a   : > { %v2689_v33 = vsel %vm1945_vm8, %v2684_v47, 0  ;;  %2770 = vmatpush.bf16.xpose.msra.mxu0 %v2761_v61  ;;  %3315 = vrot.lane.b32.xlu1 %v10118_v11, %s9155_s28  ;;  %v13296_v61 = vld [vmem:[#allocation62_spill] sm:$0xff] }
 0x51b   : > { %2698 = vmatpush.bf16.xpose.msra.mxu1 %v2689_v33 }
 0x51c   : > { %v2658_v19 = vpop.permute.xlu0 %2657 }
 0x521   : > { %v2999_v49 = vpop.permute.xlu1 %2998 }
 0x522   : > { %3011 = vmatpush.bf16.msra.mxu2 %v2999_v49 }
 0x526   : > { %3111 = vmatpush.bf16.msrb.mxu2 %v3099_v0 }
 0x529   : > { %v3024_v52 = vpop.permute.xlu1 %3023  ;;  %7434 = vmatmul.msk.bf16.vlgmr.msrb.gmra.mxu0 %vm1945_vm8, %v2658_v19 }
 0x52a   : > { %3036 = vmatpush.bf16.msra.mxu3 %v3024_v52 }
 0x52c   : > { %v10490_v4 = vpop.f32.mrf.mxu3 }
 0x52d   : > { %13288 = vst [vmem:[#allocation68_spill] sm:$0xff] %v10490_v4 }
 0x531   : > { %v3124_v40 = vpop.permute.xlu1 %3123 }
 0x532   : > { %3136 = vmatpush.bf16.msrb.mxu3 %v3124_v40 }
 0x534   : > { %v10492_v39 = vpop.f32.mrf.mxu3 }
 0x535   : > { %13289 = vst [vmem:[#allocation69_spill] sm:$0xff] %v10492_v39 }
 0x538   : > { %v10494_v10 = vpop.f32.mrf.mxu2 }
 0x539   : > { %13290 = vst [vmem:[#allocation70_spill] sm:$0xff] %v10494_v10  ;;  %v10496_v22 = vpop.permute.xlu1 %3291  ;;  %7438 = vmatmul.msk.bf16.vlgmr.msra.gmra.mxu0 %vm1945_vm8, %v2754_v35 }
 0x53c   : > { %v10499_v16 = vpop.f32.mrf.mxu3 }
 0x53d   : > { %13291 = vst [vmem:[#allocation71_spill] sm:$0xff] %v10499_v16 }
 0x540   : > { %v10501_v5 = vpop.f32.mrf.mxu2 }
 0x541   : > { %13292 = vst [vmem:[#allocation72_spill] sm:$0xff] %v10501_v5  ;;  %v3049_v34 = vpop.permute.xlu1 %3048 }
 0x542   : > { %3061 = vmatpush.bf16.msrb.mxu0 %v3049_v34  ;;  %v13297_v34 = vld [vmem:[#allocation63_spill] sm:$0xff] }
 0x544   : > { %v10503_v21 = vpop.f32.mrf.mxu3 }
 0x545   : > { %13293 = vst [vmem:[#allocation73_spill] sm:$0xff] %v10503_v21 }
 0x548   : > { %v2628_v45 = vpop.f32.mrf.mxu2 }
 0x549   : > { %v10506_v43 = vadd.f32 %v2628_v45, %v10180_v37 }
 0x54b   : > { %v2801_v12 = vsel %vm2176_vm5, %v10506_v43, -inf }
 0x54c   : > { %2802 = vmax.xlane.f32.xlu0 %v2801_v12  ;;  %v10510_v1 = vpop.f32.mrf.mxu3 }
 0x54d   : > { %13294 = vst [vmem:[#allocation74_spill] sm:$0xff] %v10510_v1 }
 0x550   : > { %v2630_v20 = vpop.f32.mrf.mxu2 }
 0x551   : > { %v10513_v63 = vadd.f32 %v2630_v20, %v10199_v54 }
 0x553   : > { %v2804_v32 = vsel %vm2176_vm5, %v10513_v63, -inf }
 0x554   : > { %2805 = vmax.xlane.f32.xlu1 %v2804_v32  ;;  %v10517_v2 = vpop.f32.mrf.mxu3 }
 0x555   : > { %13295 = vst [vmem:[#allocation75_spill] sm:$0xff] %v10517_v2 }
 0x558   : > { %v2724_v53 = vpop.f32.mrf.mxu2 }
 0x559   : > { %v10520_v37 = vadd.f32 %v2724_v53, %v10244_v38 }
 0x55b   : > { %v2825_v29 = vsel %vm2176_vm5, %v10520_v37, -inf }
 0x55c   : > { %2826 = vmax.xlane.f32.xlu1 %v2825_v29  ;;  %v2652_v23 = vpop.f32.mrf.mxu3 }
 0x55d   : > { %v10525_v31 = vadd.f32 %v2652_v23, %v10120_v14  ;;  %v10552_v23 = vpop.f32.mrf.mxu0 }
 0x55e   : > { %13298 = vst [vmem:[#allocation62_spill] sm:$0xff] %v10552_v23 }
 0x55f   : > { %v2807_v54 = vsel %vm2176_vm5, %v10525_v31, -inf }
 0x560   : > { %v2726_v35 = vpop.f32.mrf.mxu2  ;;  %2808 = vmax.xlane.f32.xlu2 %v2807_v54 }
 0x561   : > { %v10530_v55 = vadd.f32 %v2726_v35, %v10210_v62  ;;  %v2682_v62 = vpop.permute.xlu0 %2681 }
 0x563   : > { %v2828_v46 = vsel %vm2176_vm5, %v10530_v55, -inf }
 0x564   : > { %v2654_v30 = vpop.f32.mrf.mxu3 }
 0x565   : > { %v10533_v38 = vadd.f32 %v2654_v30, %v10195_v15 }
 0x567   : > { %v2810_v17 = vsel %vm2176_vm5, %v10533_v38, -inf }
 0x568   : > { %2811 = vmax.xlane.f32.xlu0 %v2810_v17  ;;  %2829 = vmax.xlane.f32.xlu2 %v2828_v46  ;;  %v13302_v17 = vld [vmem:[#allocation54_spill] sm:$0xff] }
 0x569   : > { %v2780_v32 = vpop.permute.xlu0 %2779 }
 0x56a   : > { %v2785_v29 = vsel %vm1945_vm8, %v2780_v32, 0 }
 0x56c   : > { %v2317_v14 = vpop.xlane.xlu1 %2316 }
 0x56d   : > { %8202 = vrcp.f32 %v2317_v14 }
 0x573   : > { %v8203_v27 = vpop.eup %8202 }
 0x574   : > { %v2320_v9 = vpop.xlane.xlu1 %2319  ;;  %v2351_v15 = vmul.f32 %v8203_v27, %v10472_v25  ;;  %v13303_v27 = vld [vmem:[#allocation59_spill] sm:$0xff] }
 0x575   : > { %8204 = vrcp.f32 %v2320_v9 }
 0x576   : > { %v2748_v41 = vpop.f32.mrf.mxu3  ;;  %v2367_v0 = vpack.c.bf16 %v2351_v15, %v2351_v15  ;;  %v13304_v15 = vld [vmem:[#allocation64_spill] sm:$0xff] }
 0x577   : > { %v10540_v47 = vadd.f32 %v2748_v41, %v13296_v61 }
 0x578   : > { %v2583_v12 = vunpack.c.l.b16 %v2367_v0  ;;  %v10581_v0 = vpop.permute.xlu0 %3195 }
 0x579   : > { %v2831_v33 = vsel %vm2176_vm5, %v10540_v47, -inf }
 0x57a   : > { %2832 = vmax.xlane.f32.xlu0 %v2831_v33 }
 0x57b   : > { %v8205_v49 = vpop.eup %8204 }
 0x57c   : > { %v2352_v19 = vmul.f32 %v8205_v49, %v10476_v44  ;;  %v10555_v44 = vpop.f32.mrf.mxu0  ;;  %v10579_v49 = vpop.f32.mrf.mxu1 }
 0x57d   : > { %13299 = vst [vmem:[#allocation63_spill] sm:$0xff] %v10555_v44 }
 0x57e   : > { %v2368_v52 = vpack.c.bf16 %v2352_v19, %v2352_v19  ;;  %v2750_v40 = vpop.f32.mrf.mxu3  ;;  %13305 = vst [vmem:[#allocation54_spill] sm:$0xff] %v10579_v49 }
 0x57f   : > { %v10547_v45 = vadd.f32 %v2750_v40, %v13297_v34 }
 0x580   : > { %v2584_v20 = vunpack.c.l.b16 %v2368_v52  ;;  %v10585_v52 = vpop.permute.xlu0 %3219 }
 0x581   : > { %v2834_v53 = vsel %vm2176_vm5, %v10547_v45, -inf }
 0x582   : > { %v2585_v25 = vpack.c.b16 %v2584_v20, %v2583_v12  ;;  %2835 = vmax.xlane.f32.xlu1 %v2834_v53  ;;  %v10593_v20 = vpop.permute.xlu2 %3193 }
 0x584   : > { %7431 = vmatmul.msk.bf16.vlgmr.msrb.gmra.mxu1 %vm2176_vm5, %v2585_v25  ;;  %v10583_v19 = vpop.f32.mrf.mxu1 }
 0x585   : > { %2794 = vmatpush.bf16.xpose.msrb.mxu1 %v2785_v29  ;;  %13306 = vst [vmem:[#allocation59_spill] sm:$0xff] %v10583_v19  ;;  %v13309_v29 = vld [vmem:[#allocation61_spill] sm:$0xff] }
 0x588   : > { %v10589_v34 = vpop.permute.xlu0 %3289 }
 0x58c   : > { %v10595_v32 = vpop.permute.xlu1 %3315 }
 0x594   : > { %7435 = vmatmul.msk.bf16.vlgmr.msra.gmra.mxu1 %vm1945_vm8, %v2682_v62 }
 0x596   : > { %v10558_v54 = vpop.f32.mrf.mxu0 }
 0x597   : > { %13300 = vst [vmem:[#allocation76_spill] sm:$0xff] %v10558_v54 }
 0x59e   : > { %v10560_v35 = vpop.f32.mrf.mxu0 }
 0x59f   : > { %13301 = vst [vmem:[#allocation77_spill] sm:$0xff] %v10560_v35 }
 0x5a4   : > { %7439 = vmatmul.msk.bf16.vlgmr.msrb.gmra.mxu1 %vm1945_vm8, %v10482_v36 }
 0x5a6   : > { %v2676_v30 = vpop.f32.mrf.mxu0 }
 0x5a7   : > { %v10565_v46 = vadd.f32 %v2676_v30, %v13302_v17 }
 0x5a9   : > { %v2813_v14 = vsel %vm2176_vm5, %v10565_v46, -inf }
 0x5aa   : > { %2814 = vmax.xlane.f32.xlu2 %v2813_v14 }
 0x5ae   : > { %v2678_v9 = vpop.f32.mrf.mxu0 }
 0x5af   : > { %v10570_v41 = vadd.f32 %v2678_v9, %v13303_v27  ;;  %v10603_v27 = vpop.permute.xlu2 %3217 }
 0x5b1   : > { %v2816_v62 = vsel %vm2176_vm5, %v10570_v41, -inf }
 0x5b2   : > { %2817 = vmax.xlane.f32.xlu0 %v2816_v62 }
 0x5b6   : > { %v2772_v61 = vpop.f32.mrf.mxu0 }
 0x5b7   : > { %v10575_v33 = vadd.f32 %v2772_v61, %v13304_v15  ;;  %v13310_v61 = vld [vmem:[#allocation65_spill] sm:$0xff] }
 0x5b9   : > { %v2837_v36 = vsel %vm2176_vm5, %v10575_v33, -inf }
 0x5ba   : > { %2838 = vmax.xlane.f32.xlu2 %v2837_v36 }
 0x5be   : > { %v2774_v9 = vpop.f32.mrf.mxu0 }
 0x5bf   : > { %v2803_v53 = vpop.xlane.xlu0 %2802  ;;  %v10606_v15 = vadd.f32 %v2774_v9, %v13310_v61 }
 0x5c0   : > { %v2849_v17 = vsub.f32 %v10506_v43, %v2803_v53 }
 0x5c1   : > { %v2840_v53 = vsel %vm2176_vm5, %v10606_v15, -inf }
 0x5c2   : > { %v2865_v62 = vmul.f32 1.442695, %v2849_v17 }
 0x5c4   : > { %8206 = vpow2.f32 %v2865_v62 }
 0x5c7   : > { %v2806_v36 = vpop.xlane.xlu1 %2805 }
 0x5ca   : > { %v10616_v9 = vpop.eup %8206 }
 0x601   : > { %v10587_v40 = vpop.f32.mrf.mxu1 }
 0x602   : > { %13307 = vst [vmem:[#allocation64_spill] sm:$0xff] %v10587_v40 }
 0x609   : > { %v10591_v12 = vpop.f32.mrf.mxu1 }
 0x60a   : > { %13308 = vst [vmem:[#allocation78_spill] sm:$0xff] %v10591_v12  ;;  %v13311_v12 = vld [vmem:[#allocation60_spill] sm:$0xff] }
 0x611   : > { %v2700_v25 = vpop.f32.mrf.mxu1 }
 0x612   : > { %v10598_v30 = vadd.f32 %v2700_v25, %v13309_v29  ;;  %v2850_v25 = vsub.f32 %v10513_v63, %v2806_v36  ;;  %v2809_v29 = vpop.xlane.xlu2 %2808 }
 0x614   : > { %v2819_v14 = vsel %vm2176_vm5, %v10598_v30, -inf  ;;  %v2867_v17 = vmul.f32 1.442695, %v2850_v25 }
 0x615   : > { %2820 = vmax.xlane.f32.xlu0 %v2819_v14  ;;  %v2812_v14 = vpop.xlane.xlu0 %2811 }
 0x616   : > { %8208 = vpow2.f32 %v2867_v17  ;;  %v2852_v63 = vsub.f32 %v10533_v38, %v2812_v14 }
 0x618   : > { %v2871_v35 = vmul.f32 1.442695, %v2852_v63 }
 0x619   : > { %v2702_v40 = vpop.f32.mrf.mxu1 }
 0x61a   : > { %v10609_v54 = vadd.f32 %v2702_v40, %v13311_v12  ;;  %v2851_v40 = vsub.f32 %v10525_v31, %v2809_v29  ;;  %v13312_v12 = vld [vmem:[#allocation66_spill] sm:$0xff]  ;;  %v2830_v1 = vpop.xlane.xlu2 %2829 }
 0x61b   : > { %v2858_v17 = vsub.f32 %v10530_v55, %v2830_v1 }
 0x61c   : > { %v2822_v43 = vsel %vm2176_vm5, %v10609_v54, -inf  ;;  %v2869_v25 = vmul.f32 1.442695, %v2851_v40  ;;  %v10627_v2 = vpop.eup %8208 }
 0x61d   : > { %2823 = vmax.xlane.f32.xlu1 %v2822_v43  ;;  %2841 = vmax.xlane.f32.xlu0 %v2840_v53  ;;  %v2897_v43 = vsel %vm2176_vm5, %v10616_v9, 0.0  ;;  %v2827_v53 = vpop.xlane.xlu1 %2826  ;;  %v2833_v63 = vpop.xlane.xlu0 %2832 }
 0x61e   : > { %v2857_v29 = vsub.f32 %v10520_v37, %v2827_v53  ;;  %8210 = vpow2.f32 %v2869_v25 }
 0x61f   : > { %8212 = vpow2.f32 %v2871_v35 }
 0x620   : > { %v2881_v40 = vmul.f32 1.442695, %v2857_v29 }
 0x621   : > { %v2796_v61 = vpop.f32.mrf.mxu1 }
 0x622   : > { %v10620_v62 = vadd.f32 %v2796_v61, %v13312_v12  ;;  %v2900_v61 = vsel %vm2176_vm5, %v10627_v2, 0.0  ;;  %v2883_v12 = vmul.f32 1.442695, %v2858_v17  ;;  %v2815_v37 = vpop.xlane.xlu2 %2814  ;;  %8214 = vpow2.f32 %v2881_v40 }
 0x623   : > { %v2853_v1 = vsub.f32 %v10565_v46, %v2815_v37 }
 0x624   : > { %v2843_v36 = vsel %vm2176_vm5, %v10620_v62, -inf  ;;  %8216 = vpow2.f32 %v2883_v12 }
 0x625   : > { %2844 = vmax.xlane.f32.xlu2 %v2843_v36  ;;  %2898 = vadd.xlane.f32.xlu1 %v2897_v43  ;;  %v10638_v36 = vpop.eup %8210  ;;  %v2873_v53 = vmul.f32 1.442695, %v2853_v1  ;;  %v2818_v29 = vpop.xlane.xlu0 %2817 }
 0x626   : > { %v10640_v43 = vpop.eup %8212  ;;  %v2903_v55 = vsel %vm2176_vm5, %v10638_v36, 0.0 }
 0x627   : > { %v2906_v35 = vsel %vm2176_vm5, %v10640_v43, 0.0 }
 0x629   : > { %v2798_v31 = vpop.f32.mrf.mxu1 }
 0x62a   : > { %v10631_v38 = vadd.f32 %v2798_v31, %v10317_v57  ;;  %v2859_v57 = vsub.f32 %v10540_v47, %v2833_v63  ;;  %v10648_v31 = vpop.eup %8214  ;;  %v2854_v47 = vsub.f32 %v10570_v41, %v2818_v29  ;;  %v2836_v29 = vpop.xlane.xlu1 %2835 }
 0x62b   : > { %v10650_v17 = vpop.eup %8216  ;;  %v2921_v46 = vsel %vm2176_vm5, %v10648_v31, 0.0 }
 0x62c   : > { %v2846_v14 = vsel %vm2176_vm5, %v10631_v38, -inf  ;;  %v2885_v25 = vmul.f32 1.442695, %v2859_v57  ;;  %v2875_v40 = vmul.f32 1.442695, %v2854_v47  ;;  %v13314_v57 = vld [vmem:[#allocation49_spill] sm:$0xff]  ;;  %v2860_v47 = vsub.f32 %v10547_v45, %v2836_v29 }
 0x62d   : > { %2847 = vmax.xlane.f32.xlu0 %v2846_v14  ;;  %2901 = vadd.xlane.f32.xlu2 %v2900_v61  ;;  %v2924_v14 = vsel %vm2176_vm5, %v10650_v17, 0.0  ;;  %v13313_v61 = vld [vmem:[#allocation53_spill] sm:$0xff] }
 0x62e   : > { %8218 = vpow2.f32 %v2885_v25  ;;  %v13316_v25 = vld [vmem:[#allocation56_spill] sm:$0xff] }
 0x62f   : > { %8220 = vpow2.f32 %v2873_v53  ;;  %v13317_v53 = vld [vmem:[#allocation51_spill] sm:$0xff] }
 0x630   : > { %8222 = vpow2.f32 %v2875_v40 }
 0x634   : > { %v10659_v12 = vpop.eup %8218 }
 0x635   : > { %2904 = vadd.xlane.f32.xlu2 %v2903_v55  ;;  %2907 = vadd.xlane.f32.xlu0 %v2906_v35  ;;  %v10661_v63 = vpop.eup %8220  ;;  %v2927_v37 = vsel %vm2176_vm5, %v10659_v12, 0.0  ;;  %v13315_v35 = vld [vmem:[#allocation57_spill] sm:$0xff] }
 0x636   : > { %v2909_v41 = vsel %vm2176_vm5, %v10661_v63, 0.0  ;;  %v10669_v1 = vpop.eup %8222 }
 0x637   : > { %v2912_v55 = vsel %vm2176_vm5, %v10669_v1, 0.0 }
 0x63d   : > { %2922 = vadd.xlane.f32.xlu2 %v2921_v46  ;;  %2925 = vadd.xlane.f32.xlu0 %v2924_v14  ;;  %v2887_v46 = vmul.f32 1.442695, %v2860_v47  ;;  %v2839_v14 = vpop.xlane.xlu2 %2838 }
 0x63e   : > { %3313 = vrot.lane.b32.xlu1 %v13313_v61, %s9155_s28  ;;  %v2861_v40 = vsub.f32 %v10575_v33, %v2839_v14 }
 0x63f   : > { %8224 = vpow2.f32 %v2887_v46 }
 0x645   : > { %2910 = vadd.xlane.f32.xlu2 %v2909_v41  ;;  %2928 = vadd.xlane.f32.xlu0 %v2927_v37  ;;  %v10683_v41 = vpop.eup %8224  ;;  %v2889_v37 = vmul.f32 1.442695, %v2861_v40 }
 0x646   : > { %3243 = vrot.lane.b32.xlu1 %v13314_v57, %s9155_s28 }
 0x647   : > { %8226 = vpow2.f32 %v2889_v37 }
 0x64d   : > { %2913 = vadd.xlane.f32.xlu0 %v2912_v55  ;;  %v2930_v55 = vsel %vm2176_vm5, %v10683_v41, 0.0  ;;  %v10687_v10 = vpop.eup %8226 }
 0x64e   : > { %3173 = vrot.lane.b32.xlu1 %v13315_v35, %s9154_s17  ;;  %v2933_v5 = vsel %vm2176_vm5, %v10687_v10, 0.0 }
 0x656   : > { %3241 = vrot.lane.b32.xlu1 %v10047_v6, %s9155_s28 }
 0x65d   : > { %3148 = vrot.lane.b32.xlu2 %v13316_v25, %s9154_s17 }
 0x661   : > { %3073 = vrot.lane.b32.xlu0 %v13317_v53, %s9154_s17 }
 0x680   : > { %2931 = vadd.xlane.f32.xlu1 %v2930_v55 }
 0x688   : > { %v2821_v45 = vpop.xlane.xlu0 %2820 }
 0x68b   : > { %2934 = vadd.xlane.f32.xlu0 %v2933_v5 }
 0x690   : > { %v2824_v29 = vpop.xlane.xlu1 %2823  ;;  %v10692_v33 = vpop.xlane.xlu0 %2841 }
 0x691   : > { %v2856_v47 = vsub.f32 %v10609_v54, %v2824_v29 }
 0x693   : > { %v2879_v46 = vmul.f32 1.442695, %v2856_v47 }
 0x695   : > { %8228 = vpow2.f32 %v2879_v46 }
 0x698   : > { %v2845_v14 = vpop.xlane.xlu2 %2844  ;;  %v2899_v40 = vpop.xlane.xlu1 %2898 }
 0x699   : > { %v2863_v49 = vsub.f32 %v10620_v62, %v2845_v14  ;;  %3267 = vrot.lane.b32.xlu1 %v10073_v50, %s9155_s28  ;;  %8230 = vrcp.f32 %v2899_v40 }
 0x69b   : > { %v10697_v37 = vpop.eup %8228  ;;  %v2893_v55 = vmul.f32 1.442695, %v2863_v49 }
 0x69c   : > { %v2918_v5 = vsel %vm2176_vm5, %v10697_v37, 0.0 }
 0x69d   : > { %8232 = vpow2.f32 %v2893_v55  ;;  %2919 = vadd.xlane.f32.xlu2 %v2918_v5 }
 0x69f   : > { %v8231_v47 = vpop.eup %8230 }
 0x6a0   : > { %v2902_v54 = vpop.xlane.xlu2 %2901  ;;  %v2848_v29 = vpop.xlane.xlu0 %2847  ;;  %v2961_v14 = vmul.f32 %v8231_v47, %v10616_v9 }
 0x6a1   : > { %8234 = vrcp.f32 %v2902_v54  ;;  %v2864_v46 = vsub.f32 %v10631_v38, %v2848_v29 }
 0x6a2   : > { %v2977_v23 = vpack.c.bf16 %v2961_v14, %v2961_v14  ;;  %v3201_v14 = vsel %vm1945_vm8, %v10581_v0, 0 }
 0x6a3   : > { %v10702_v19 = vpop.eup %8232  ;;  %v2895_v62 = vmul.f32 1.442695, %v2864_v46 }
 0x6a4   : > { %v2939_v49 = vsel %vm2176_vm5, %v10702_v19, 0.0  ;;  %v2995_v29 = vunpack.c.l.b16 %v2977_v23 }
 0x6a5   : > { %8236 = vpow2.f32 %v2895_v62  ;;  %2940 = vadd.xlane.f32.xlu0 %v2939_v49 }
 0x6a7   : > { %v8235_v40 = vpop.eup %8234 }
 0x6a8   : > { %v2962_v55 = vmul.f32 %v8235_v40, %v10627_v2  ;;  %v2905_v5 = vpop.xlane.xlu2 %2904  ;;  %v2908_v44 = vpop.xlane.xlu0 %2907 }
 0x6a9   : > { %8238 = vrcp.f32 %v2905_v5 }
 0x6aa   : > { %v2978_v54 = vpack.c.bf16 %v2962_v55, %v2962_v55  ;;  %8240 = vrcp.f32 %v2908_v44  ;;  %v2855_v44 = vsub.f32 %v10598_v30, %v2821_v45  ;;  %v3225_v30 = vsel %vm1945_vm8, %v10585_v52, 0 }
 0x6ab   : > { %v10708_v38 = vpop.eup %8236 }
 0x6ac   : > { %v2996_v46 = vunpack.c.l.b16 %v2978_v54  ;;  %v2942_v9 = vsel %vm2176_vm5, %v10708_v38, 0.0 }
 0x6ad   : > { %2943 = vadd.xlane.f32.xlu2 %v2942_v9 }
 0x6ae   : > { %v2997_v47 = vpack.c.b16 %v2996_v46, %v2995_v29  ;;  %v2877_v46 = vmul.f32 1.442695, %v2855_v44 }
 0x6af   : > { %v8239_v62 = vpop.eup %8238 }
 0x6b0   : > { %v8241_v49 = vpop.eup %8240  ;;  %v2963_v2 = vmul.f32 %v8239_v62, %v10638_v36  ;;  %v2923_v40 = vpop.xlane.xlu2 %2922  ;;  %7440 = vmatmul.msk.bf16.vlgmr.msra.gmra.mxu2 %vm2176_vm5, %v2997_v47 }
 0x6b1   : > { %v2964_v23 = vmul.f32 %v8241_v49, %v10640_v43  ;;  %8242 = vrcp.f32 %v2923_v40  ;;  %3210 = vmatpush.bf16.xpose.msra.mxu2 %v3201_v14  ;;  %v2926_v55 = vpop.xlane.xlu0 %2925  ;;  %v2862_v43 = vsub.f32 %v10606_v15, %v10692_v33  ;;  %v10729_v44 = vpop.permute.xlu1 %3313 }
 0x6b2   : > { %v2979_v5 = vpack.c.bf16 %v2963_v2, %v2963_v2  ;;  %8244 = vrcp.f32 %v2926_v55 }
 0x6b3   : > { %v2980_v54 = vpack.c.bf16 %v2964_v23, %v2964_v23  ;;  %8246 = vpow2.f32 %v2877_v46 }
 0x6b4   : > { %v3020_v29 = vunpack.c.l.b16 %v2979_v5 }
 0x6b5   : > { %v3021_v9 = vunpack.c.l.b16 %v2980_v54 }
 0x6b7   : > { %v8243_v16 = vpop.eup %8242  ;;  %v3022_v0 = vpack.c.b16 %v3021_v9, %v3020_v29 }
 0x6b8   : > { %v8245_v21 = vpop.eup %8244  ;;  %v2969_v36 = vmul.f32 %v8243_v16, %v10648_v31  ;;  %v2911_v62 = vpop.xlane.xlu2 %2910  ;;  %v2891_v31 = vmul.f32 1.442695, %v2862_v43 }
 0x6b9   : > { %v2970_v45 = vmul.f32 %v8245_v21, %v10650_v17  ;;  %7441 = vmatmul.msk.bf16.vlgmr.msra.gmra.mxu3 %vm2176_vm5, %v3022_v0  ;;  %v2929_v47 = vpop.xlane.xlu0 %2928  ;;  %3337 = vrot.lane.b32.xlu0 %v10167_v42, %s9155_s28  ;;  %8248 = vrcp.f32 %v2911_v62  ;;  %v10727_v52 = vpop.eup %8246  ;;  %v3297_v21 = vsel %vm1945_vm8, %v10496_v22, 0 }
 0x6ba   : > { %v2985_v49 = vpack.c.bf16 %v2969_v36, %v2969_v36  ;;  %3234 = vmatpush.bf16.xpose.msra.mxu3 %v3225_v30  ;;  %8250 = vpow2.f32 %v2891_v31  ;;  %v2915_v23 = vsel %vm2176_vm5, %v10727_v52, 0.0  ;;  %v3244_v46 = vpop.permute.xlu1 %3243 }
 0x6bb   : > { %v2986_v14 = vpack.c.bf16 %v2970_v45, %v2970_v45  ;;  %v3249_v30 = vsel %vm1945_vm8, %v3244_v46, 0  ;;  %v13318_v45 = vld [vmem:[#allocation55_spill] sm:$0xff] }
 0x6bc   : > { %v3095_v16 = vunpack.c.l.b16 %v2985_v49 }
 0x6bd   : > { %v3096_v2 = vunpack.c.l.b16 %v2986_v14 }
 0x6bf   : > { %v3097_v40 = vpack.c.b16 %v3096_v2, %v3095_v16  ;;  %v8249_v33 = vpop.eup %8248 }
 0x6c0   : > { %v3149_v15 = vpop.permute.xlu2 %3148  ;;  %v2965_v55 = vmul.f32 %v8249_v33, %v10661_v63  ;;  %v10741_v22 = vpop.eup %8250 }
 0x6c1   : > { %7444 = vmatmul.msk.bf16.vlgmr.msrb.gmra.mxu2 %vm2176_vm5, %v3097_v40  ;;  %v2914_v17 = vpop.xlane.xlu0 %2913  ;;  %3161 = vmatpush.bf16.msra.mxu0 %v3149_v15  ;;  %v2936_v9 = vsel %vm2176_vm5, %v10741_v22, 0.0 }
 0x6c2   : > { %3306 = vmatpush.bf16.xpose.msrb.mxu2 %v3297_v21  ;;  %8252 = vrcp.f32 %v2914_v17  ;;  %3707 = vrot.lane.b32.xlu0 %v10408_v51, %s9155_s28  ;;  %v2981_v54 = vpack.c.bf16 %v2965_v55, %v2965_v55  ;;  %v3174_v43 = vpop.permute.xlu1 %3173 }
 0x6c3   : > { %2916 = vadd.xlane.f32.xlu1 %v2915_v23  ;;  %8254 = vrcp.f32 %v2929_v47  ;;  %v3321_v47 = vsel %vm1945_vm8, %v10595_v32, 0 }
 0x6c4   : > { %v3045_v36 = vunpack.c.l.b16 %v2981_v54 }
 0x6c5   : > { %3265 = vrot.lane.b32.xlu2 %v10086_v13, %s9155_s28 }
 0x6c8   : > { %v8253_v5 = vpop.eup %8252 }
 0x6c9   : > { %v2966_v29 = vmul.f32 %v8253_v5, %v10669_v1  ;;  %v8255_v14 = vpop.eup %8254 }
 0x6ca   : > { %v10758_v49 = vpop.permute.xlu1 %3241  ;;  %v2971_v16 = vmul.f32 %v8255_v14, %v10659_v12 }
 0x6cb   : > { %v2982_v0 = vpack.c.bf16 %v2966_v29, %v2966_v29  ;;  %2937 = vadd.xlane.f32.xlu1 %v2936_v9 }
 0x6cc   : > { %v2987_v2 = vpack.c.bf16 %v2971_v16, %v2971_v16 }
 0x6cd   : > { %v3046_v62 = vunpack.c.l.b16 %v2982_v0  ;;  %3582 = vrot.lane.b32.xlu2 %v10185_v26, %s9155_s28 }
 0x6ce   : > { %v3120_v15 = vunpack.c.l.b16 %v2987_v2 }
 0x6cf   : > { %v3047_v63 = vpack.c.b16 %v3046_v62, %v3045_v36 }
 0x6d1   : > { %7442 = vmatmul.msk.bf16.vlgmr.msrb.gmra.mxu0 %vm2176_vm5, %v3047_v63  ;;  %7448 = vmatmul.msk.bf16.vlgmr.msra.gmra.mxu2 %vm1945_vm8, %v10593_v20 }
 0x6d2   : > { %3258 = vmatpush.bf16.xpose.msrb.mxu0 %v3249_v30 }
 0x6d3   : > { %v3074_v1 = vpop.permute.xlu0 %3073 }
 0x6d4   : > { %3086 = vmatpush.bf16.msra.mxu1 %v3074_v1 }
 0x6d5   : > { %3607 = vrot.lane.b32.xlu2 %v10207_v7, %s9155_s28 }
 0x6d8   : > { %3186 = vmatpush.bf16.msrb.mxu1 %v3174_v43 }
 0x6e1   : > { %7452 = vmatmul.msk.bf16.vlgmr.msrb.gmra.mxu2 %vm1945_vm8, %v10589_v34 }
 0x6e4   : > { %3339 = vrot.lane.b32.xlu1 %v13318_v45, %s9155_s28 }
 0x6ec   : > { %3363 = vrot.lane.b32.xlu1 %v10182_v60, %s9155_s28 }
 0x6f3   : > { %v2932_v20 = vpop.xlane.xlu1 %2931 }
 0x6f4   : > { %8256 = vrcp.f32 %v2932_v20  ;;  %3361 = vrot.lane.b32.xlu1 %v10205_v59, %s9155_s28 }
 0x6fa   : > { %v8257_v31 = vpop.eup %8256 }
 0x6fb   : > { %v2972_v34 = vmul.f32 %v8257_v31, %v10683_v41 }
 0x6fc   : > { %3682 = vrot.lane.b32.xlu1 %v10105_v56, %s9155_s28 }
 0x6fd   : > { %v2988_v40 = vpack.c.bf16 %v2972_v34, %v2972_v34 }
 0x6fe   : > { %v2935_v41 = vpop.xlane.xlu0 %2934 }
 0x6ff   : > { %v3121_v21 = vunpack.c.l.b16 %v2988_v40 }
 0x701   : > { %v3122_v17 = vpack.c.b16 %v3121_v21, %v3120_v15 }
 0x703   : > { %7445 = vmatmul.msk.bf16.vlgmr.msrb.gmra.mxu3 %vm2176_vm5, %v3122_v17 }
 0x704   : > { %3330 = vmatpush.bf16.xpose.msrb.mxu3 %v3321_v47  ;;  %3779 = vrot.lane.b32.xlu1 %v9994_v8, %s9156_s13 }
 0x70b   : > { %v3268_v55 = vpop.permute.xlu1 %3267 }
 0x70c   : > { %3777 = vrot.lane.b32.xlu1 %v9999_v28, %s9156_s13  ;;  %v3273_v40 = vsel %vm1945_vm8, %v3268_v55, 0 }
 0x710   : > { %v2920_v12 = vpop.xlane.xlu2 %2919 }
 0x711   : > { %8258 = vrcp.f32 %v2920_v12 }
 0x713   : > { %7449 = vmatmul.msk.bf16.vlgmr.msra.gmra.mxu3 %vm1945_vm8, %v10603_v27 }
 0x717   : > { %v8259_v29 = vpop.eup %8258 }
 0x718   : > { %v2941_v32 = vpop.xlane.xlu0 %2940 }
 0x720   : > { %v2944_v33 = vpop.xlane.xlu2 %2943 }
 0x723   : > { %7453 = vmatmul.msk.bf16.vlgmr.msrb.gmra.mxu3 %vm1945_vm8, %v10729_v44  ;;  %v2968_v44 = vmul.f32 %v8259_v29, %v10697_v37 }
 0x725   : > { %v2984_v36 = vpack.c.bf16 %v2968_v44, %v2968_v44 }
 0x727   : > { %v3071_v20 = vunpack.c.l.b16 %v2984_v36  ;;  %v10809_v36 = vld [vmem:[#allocation3 + $0x8] sm:$0xff] }
 0x728   : > { %v10779_v23 = vpop.permute.xlu2 %3265 }
 0x72b   : > { %v10781_v5 = vpop.permute.xlu0 %3337 }
 0x730   : > { %v3583_v54 = vpop.permute.xlu2 %3582 }
 0x731   : > { %3595 = vmatpush.bf16.msra.mxu2 %v3583_v54 }
 0x733   : > { %v10783_v8 = vpop.f32.mrf.mxu2 }
 0x734   : > { %13319 = vst [vmem:[#allocation61_spill] sm:$0xff] %v10783_v8  ;;  %v3708_v46 = vpop.permute.xlu0 %3707 }
 0x736   : > { %v2917_v28 = vpop.xlane.xlu1 %2916 }
 0x737   : > { %8260 = vrcp.f32 %v2917_v28 }
 0x738   : > { %v3608_v27 = vpop.permute.xlu2 %3607  ;;  %8262 = vrcp.f32 %v2935_v41 }
 0x739   : > { %3620 = vmatpush.bf16.msra.mxu3 %v3608_v27  ;;  %8264 = vrcp.f32 %v2944_v33  ;;  %v10800_v27 = vld [vmem:[#allocation3] sm:$0xff] }
 0x73b   : > { %v10786_v9 = vpop.f32.mrf.mxu2 }
 0x73c   : > { %13320 = vst [vmem:[#allocation65_spill] sm:$0xff] %v10786_v9 }
 0x73d   : > { %3720 = vmatpush.bf16.msrb.mxu3 %v3708_v46  ;;  %v8261_v0 = vpop.eup %8260 }
 0x73e   : > { %v2967_v62 = vmul.f32 %v8261_v0, %v10727_v52  ;;  %v2938_v63 = vpop.xlane.xlu1 %2937  ;;  %v8263_v30 = vpop.eup %8262 }
 0x73f   : > { %8266 = vrcp.f32 %v2938_v63  ;;  %v2973_v43 = vmul.f32 %v8263_v30, %v10687_v10  ;;  %v8265_v16 = vpop.eup %8264 }
 0x740   : > { %v2983_v1 = vpack.c.bf16 %v2967_v62, %v2967_v62  ;;  %8268 = vrcp.f32 %v2941_v32  ;;  %v2976_v21 = vmul.f32 %v8265_v16, %v10708_v38 }
 0x741   : > { %v2989_v34 = vpack.c.bf16 %v2973_v43, %v2973_v43 }
 0x742   : > { %v3070_v14 = vunpack.c.l.b16 %v2983_v1  ;;  %v2992_v41 = vpack.c.bf16 %v2976_v21, %v2976_v21 }
 0x743   : > { %v3145_v10 = vunpack.c.l.b16 %v2989_v34  ;;  %v10832_v34 = vld [vmem:[#allocation3 + $0x10] sm:$0xff] }
 0x744   : > { %v3072_v31 = vpack.c.b16 %v3071_v20, %v3070_v14  ;;  %v10790_v37 = vpop.f32.mrf.mxu2  ;;  %v3171_v55 = vunpack.c.l.b16 %v2992_v41  ;;  %v10823_v14 = vpop.f32.mrf.mxu3 }
 0x745   : > { %13321 = vst [vmem:[#allocation60_spill] sm:$0xff] %v10790_v37  ;;  %v8267_v2 = vpop.eup %8266  ;;  %v10945_v37 = vld [vmem:[#allocation3 + $0x60] sm:$0xff] }
 0x746   : > { %v2974_v15 = vmul.f32 %v8267_v2, %v10741_v22  ;;  %7443 = vmatmul.msk.bf16.vlgmr.msra.gmra.mxu1 %vm2176_vm5, %v3072_v31  ;;  %v8269_v52 = vpop.eup %8268  ;;  %13323 = vst [vmem:[#allocation53_spill] sm:$0xff] %v10823_v14 }
 0x747   : > { %3282 = vmatpush.bf16.xpose.msra.mxu1 %v3273_v40  ;;  %v2975_v47 = vmul.f32 %v8269_v52, %v10702_v19 }
 0x748   : > { %v2990_v17 = vpack.c.bf16 %v2974_v15, %v2974_v15  ;;  %v10839_v15 = vld [vmem:[#allocation3 + $0x40] sm:$0xff] }
 0x749   : > { %v2991_v54 = vpack.c.bf16 %v2975_v47, %v2975_v47 }
 0x74a   : > { %v3146_v12 = vunpack.c.l.b16 %v2990_v17  ;;  %v10844_v17 = vld [vmem:[#allocation3 + $0x18] sm:$0xff] }
 0x74b   : > { %v3170_v22 = vunpack.c.l.b16 %v2991_v54 }
 0x74c   : > { %v3147_v33 = vpack.c.b16 %v3146_v12, %v3145_v10  ;;  %v10797_v32 = vpop.f32.mrf.mxu2 }
 0x74d   : > { %13322 = vst [vmem:[#allocation66_spill] sm:$0xff] %v10797_v32  ;;  %v3172_v28 = vpack.c.b16 %v3171_v55, %v3170_v22 }
 0x74e   : > { %7446 = vmatmul.msk.bf16.vlgmr.msra.gmra.mxu0 %vm2176_vm5, %v3147_v33  ;;  %v10853_v41 = vpop.f32.mrf.mxu0 }
 0x74f   : > { %13327 = vst [vmem:[#allocation55_spill] sm:$0xff] %v10853_v41  ;;  %v10953_v41 = vld [vmem:[#allocation3 + $0x70] sm:$0xff] }
 0x750   : > { %13338 = vst [vmem:[#allocation89_spill] sm:$0xff] %v10953_v41 }
 0x754   : > { %v3212_v29 = vpop.f32.mrf.mxu2 }
 0x755   : > { %v10803_v38 = vadd.f32 %v10800_v27, %v3212_v29 }
 0x756   : > { %v3340_v46 = vpop.permute.xlu1 %3339  ;;  %7447 = vmatmul.msk.bf16.vlgmr.msrb.gmra.mxu1 %vm2176_vm5, %v3172_v28  ;;  %v10859_v54 = vpop.f32.mrf.mxu0 }
 0x757   : > { %v3345_v19 = vsel %vm1945_vm8, %v3340_v46, 0  ;;  %v3385_v44 = vsel %vm2176_vm5, %v10803_v38, -inf  ;;  %13329 = vst [vmem:[#allocation80_spill] sm:$0xff] %v10859_v54 }
 0x758   : > { %3386 = vmax.xlane.f32.xlu0 %v3385_v44  ;;  %3354 = vmatpush.bf16.xpose.msra.mxu0 %v3345_v19 }
 0x75c   : > { %v3214_v0 = vpop.f32.mrf.mxu2 }
 0x75d   : > { %v10812_v62 = vadd.f32 %v10809_v36, %v3214_v0 }
 0x75e   : > { %v3364_v63 = vpop.permute.xlu1 %3363  ;;  %7450 = vmatmul.msk.bf16.vlgmr.msrb.gmra.mxu0 %vm1945_vm8, %v10758_v49  ;;  %v10826_v49 = vpop.f32.mrf.mxu3 }
 0x75f   : > { %v3369_v30 = vsel %vm1945_vm8, %v3364_v63, 0  ;;  %v3388_v1 = vsel %vm2176_vm5, %v10812_v62, -inf  ;;  %13324 = vst [vmem:[#allocation49_spill] sm:$0xff] %v10826_v49  ;;  %v10871_v63 = vld [vmem:[#allocation3 + $0x20] sm:$0xff]  ;;  %v10900_v49 = vld [vmem:[#allocation3 + $0x50] sm:$0xff] }
 0x760   : > { %3389 = vmax.xlane.f32.xlu1 %v3388_v1  ;;  %3378 = vmatpush.bf16.xpose.msrb.mxu1 %v3369_v30  ;;  %v10876_v30 = vld [vmem:[#allocation3 + $0x58] sm:$0xff] }
 0x761   : > { %13335 = vst [vmem:[#allocation86_spill] sm:$0xff] %v10876_v30 }
 0x764   : > { %v3308_v40 = vpop.f32.mrf.mxu2 }
 0x765   : > { %v10842_v52 = vadd.f32 %v10839_v15, %v3308_v40  ;;  %v10885_v40 = vld [vmem:[#allocation3 + $0x48] sm:$0xff] }
 0x766   : > { %v3362_v43 = vpop.permute.xlu1 %3361  ;;  %7451 = vmatmul.msk.bf16.vlgmr.msra.gmra.mxu1 %vm1945_vm8, %v10779_v23 }
 0x767   : > { %v3409_v12 = vsel %vm2176_vm5, %v10842_v52, -inf }
 0x76e   : > { %v3683_v20 = vpop.permute.xlu1 %3682  ;;  %7454 = vmatmul.msk.bf16.vlgmr.msra.gmra.mxu0 %vm1945_vm8, %v10781_v5 }
 0x76f   : > { %3695 = vmatpush.bf16.msrb.mxu2 %v3683_v20  ;;  %v3310_v20 = vpop.f32.mrf.mxu2 }
 0x776   : > { %7455 = vmatmul.msk.bf16.vlgmr.msrb.gmra.mxu1 %vm1945_vm8, %v3362_v43 }
 0x786   : > { %v10828_v16 = vpop.f32.mrf.mxu3 }
 0x787   : > { %13325 = vst [vmem:[#allocation57_spill] sm:$0xff] %v10828_v16 }
 0x78e   : > { %v10830_v31 = vpop.f32.mrf.mxu3 }
 0x78f   : > { %13326 = vst [vmem:[#allocation56_spill] sm:$0xff] %v10830_v31  ;;  %v10934_v31 = vld [vmem:[#allocation3 + $0x78] sm:$0xff] }
 0x790   : > { %13337 = vst [vmem:[#allocation88_spill] sm:$0xff] %v10934_v31 }
 0x796   : > { %v3236_v2 = vpop.f32.mrf.mxu3 }
 0x797   : > { %v10835_v23 = vadd.f32 %v10832_v34, %v3236_v2 }
 0x799   : > { %v3391_v5 = vsel %vm2176_vm5, %v10835_v23, -inf }
 0x79a   : > { %3392 = vmax.xlane.f32.xlu2 %v3391_v5 }
 0x79e   : > { %v3238_v21 = vpop.f32.mrf.mxu3 }
 0x79f   : > { %v10847_v10 = vadd.f32 %v10844_v17, %v3238_v21  ;;  %v10888_v21 = vadd.f32 %v10885_v40, %v3310_v20 }
 0x7a1   : > { %v3394_v47 = vsel %vm2176_vm5, %v10847_v10, -inf  ;;  %v3412_v39 = vsel %vm2176_vm5, %v10888_v21, -inf }
 0x7a2   : > { %3395 = vmax.xlane.f32.xlu0 %v3394_v47  ;;  %3410 = vmax.xlane.f32.xlu2 %v3409_v12 }
 0x7a6   : > { %v3332_v28 = vpop.f32.mrf.mxu3 }
 0x7ae   : > { %v3334_v19 = vpop.f32.mrf.mxu3 }
 0x7af   : > { %v10879_v1 = vadd.f32 %v10876_v30, %v3334_v19 }
 0x7b1   : > { %v3418_v5 = vsel %vm2176_vm5, %v10879_v1, -inf }
 0x7ba   : > { %3803 = vrot.lane.b32.xlu2 %v10018_v24, %s9156_s13 }
 0x7c3   : > { %v10857_v33 = vpop.f32.mrf.mxu1 }
 0x7c4   : > { %13328 = vst [vmem:[#allocation79_spill] sm:$0xff] %v10857_v33 }
 0x7cb   : > { %v10861_v55 = vpop.f32.mrf.mxu1  ;;  %v10863_v22 = vpop.f32.mrf.mxu0 }
 0x7cc   : > { %13330 = vst [vmem:[#allocation81_spill] sm:$0xff] %v10861_v55  ;;  %v3387_v2 = vpop.xlane.xlu0 %3386 }
 0x7cd   : > { %13331 = vst [vmem:[#allocation82_spill] sm:$0xff] %v10863_v22  ;;  %v3433_v19 = vsub.f32 %v10803_v38, %v3387_v2  ;;  %v10905_v2 = vld [vmem:[#allocation3 + $0x38] sm:$0xff]  ;;  %v10925_v22 = vld [vmem:[#allocation3 + $0x68] sm:$0xff] }
 0x7ce   : > { %13336 = vst [vmem:[#allocation87_spill] sm:$0xff] %v10925_v22 }
 0x7cf   : > { %v3449_v20 = vmul.f32 1.442695, %v3433_v19 }
 0x7d1   : > { %8270 = vpow2.f32 %v3449_v20 }
 0x7d3   : > { %v10865_v29 = vpop.f32.mrf.mxu1  ;;  %v10867_v46 = vpop.f32.mrf.mxu0 }
 0x7d4   : > { %13332 = vst [vmem:[#allocation83_spill] sm:$0xff] %v10865_v29 }
 0x7d5   : > { %13333 = vst [vmem:[#allocation84_spill] sm:$0xff] %v10867_v46 }
 0x7d7   : > { %v10914_v19 = vpop.eup %8270 }
 0x7d8   : > { %v3481_v20 = vsel %vm2176_vm5, %v10914_v19, 0.0 }
 0x7db   : > { %v10869_v44 = vpop.f32.mrf.mxu1  ;;  %v3260_v0 = vpop.f32.mrf.mxu0 }
 0x7dc   : > { %13334 = vst [vmem:[#allocation85_spill] sm:$0xff] %v10869_v44  ;;  %v10874_v24 = vadd.f32 %v10871_v63, %v3260_v0  ;;  %v10891_v0 = vld [vmem:[#allocation3 + $0x28] sm:$0xff] }
 0x7de   : > { %v3397_v43 = vsel %vm2176_vm5, %v10874_v24, -inf }
 0x7df   : > { %3398 = vmax.xlane.f32.xlu1 %v3397_v43 }
 0x7e3   : > { %3419 = vmax.xlane.f32.xlu2 %v3418_v5  ;;  %v3284_v47 = vpop.f32.mrf.mxu1  ;;  %v3262_v12 = vpop.f32.mrf.mxu0  ;;  %v10903_v5 = vadd.f32 %v10900_v49, %v3332_v28  ;;  %v10916_v28 = vld [vmem:[#allocation3 + $0x30] sm:$0xff] }
 0x7e4   : > { %v10894_v4 = vadd.f32 %v10891_v0, %v3262_v12 }
 0x7e6   : > { %v3400_v43 = vsel %vm2176_vm5, %v10894_v4, -inf }
 0x7e7   : > { %3401 = vmax.xlane.f32.xlu0 %v3400_v43  ;;  %3413 = vmax.xlane.f32.xlu1 %v3412_v39  ;;  %v3415_v39 = vsel %vm2176_vm5, %v10903_v5, -inf  ;;  %v10919_v43 = vadd.f32 %v10916_v28, %v3284_v47 }
 0x7eb   : > { %v3286_v38 = vpop.f32.mrf.mxu1  ;;  %v3356_v14 = vpop.f32.mrf.mxu0 }
 0x7ec   : > { %v10908_v12 = vadd.f32 %v10905_v2, %v3286_v38  ;;  %v3403_v38 = vsel %vm2176_vm5, %v10919_v43, -inf }
 0x7ee   : > { %v3406_v44 = vsel %vm2176_vm5, %v10908_v12, -inf }
 0x7ef   : > { %3407 = vmax.xlane.f32.xlu2 %v3406_v44  ;;  %3416 = vmax.xlane.f32.xlu0 %v3415_v39 }
 0x7f3   : > { %v3380_v29 = vpop.f32.mrf.mxu1  ;;  %v3358_v46 = vpop.f32.mrf.mxu0 }
 0x7f4   : > { %v10928_v44 = vadd.f32 %v10925_v22, %v3358_v46 }
 0x7f6   : > { %v3424_v39 = vsel %vm2176_vm5, %v10928_v44, -inf }
 0x7f7   : > { %3482 = vadd.xlane.f32.xlu2 %v3481_v20  ;;  %3404 = vmax.xlane.f32.xlu0 %v3403_v38  ;;  %v10941_v38 = vpop.permute.xlu1 %3779 }
 0x7fb   : > { %v3382_v47 = vpop.f32.mrf.mxu1 }
 0x7fc   : > { %v10937_v16 = vadd.f32 %v10934_v31, %v3382_v47 }
 0x7fe   : > { %v3430_v20 = vsel %vm2176_vm5, %v10937_v16, -inf }
 0x7ff   : > { %3425 = vmax.xlane.f32.xlu0 %v3424_v39  ;;  %v10943_v46 = vpop.permute.xlu1 %3777  ;;  %v10948_v39 = vadd.f32 %v10945_v37, %v3356_v14 }
 0x800   : > { %3632 = vrot.lane.b32.xlu1 %v10045_v18, %s9155_s28 }
 0x801   : > { %v3421_v47 = vsel %vm2176_vm5, %v10948_v39, -inf }
 0x807   : > { %3431 = vmax.xlane.f32.xlu0 %v3430_v20  ;;  %v3390_v32 = vpop.xlane.xlu1 %3389  ;;  %v10956_v20 = vadd.f32 %v10953_v41, %v3380_v29 }
 0x808   : > { %v3434_v55 = vsub.f32 %v10812_v62, %v3390_v32 }
 0x809   : > { %v3427_v14 = vsel %vm2176_vm5, %v10956_v20, -inf }
 0x80a   : > { %v3451_v54 = vmul.f32 1.442695, %v3434_v55 }
 0x80c   : > { %8272 = vpow2.f32 %v3451_v54 }
 0x80d   : > { %v3393_v33 = vpop.xlane.xlu2 %3392 }
 0x80e   : > { %v3435_v9 = vsub.f32 %v10835_v23, %v3393_v33 }
 0x810   : > { %v3453_v8 = vmul.f32 1.442695, %v3435_v9 }
 0x812   : > { %v10961_v62 = vpop.eup %8272  ;;  %8274 = vpow2.f32 %v3453_v8 }
 0x813   : > { %v3484_v55 = vsel %vm2176_vm5, %v10961_v62, 0.0 }
 0x815   : > { %v3411_v32 = vpop.xlane.xlu2 %3410  ;;  %v3396_v8 = vpop.xlane.xlu0 %3395 }
 0x818   : > { %v10966_v51 = vpop.eup %8274 }
 0x819   : > { %v3487_v23 = vsel %vm2176_vm5, %v10966_v51, 0.0 }
 0x82a   : > { %3422 = vmax.xlane.f32.xlu1 %v3421_v47  ;;  %v3441_v47 = vsub.f32 %v10842_v52, %v3411_v32 }
 0x82c   : > { %v3465_v29 = vmul.f32 1.442695, %v3441_v47 }
 0x82e   : > { %8276 = vpow2.f32 %v3465_v29 }
 0x832   : > { %3428 = vmax.xlane.f32.xlu1 %v3427_v14  ;;  %v3436_v14 = vsub.f32 %v10847_v10, %v3396_v8 }
 0x834   : > { %v10970_v33 = vpop.eup %8276  ;;  %v3455_v47 = vmul.f32 1.442695, %v3436_v14 }
 0x835   : > { %v3505_v9 = vsel %vm2176_vm5, %v10970_v33, 0.0 }
 0x83a   : > { %3485 = vadd.xlane.f32.xlu1 %v3484_v55 }
 0x842   : > { %3488 = vadd.xlane.f32.xlu1 %v3487_v23 }
 0x84a   : > { %3506 = vadd.xlane.f32.xlu1 %v3505_v9  ;;  %v10981_v9 = vpop.permute.xlu2 %3803 }
 0x852   : > { %v3399_v52 = vpop.xlane.xlu1 %3398 }
 0x853   : > { %v3437_v54 = vsub.f32 %v10874_v24, %v3399_v52 }
 0x855   : > { %v3457_v32 = vmul.f32 1.442695, %v3437_v54 }
 0x856   : > { %v3420_v54 = vpop.xlane.xlu2 %3419 }
 0x857   : > { %8278 = vpow2.f32 %v3457_v32 }
 0x858   : > { %8280 = vpow2.f32 %v3455_v47  ;;  %v3444_v47 = vsub.f32 %v10879_v1, %v3420_v54 }
 0x85a   : > { %v3414_v55 = vpop.xlane.xlu1 %3413  ;;  %v3402_v29 = vpop.xlane.xlu0 %3401 }
 0x85b   : > { %v3442_v23 = vsub.f32 %v10888_v21, %v3414_v55  ;;  %v3438_v10 = vsub.f32 %v10894_v4, %v3402_v29 }
 0x85d   : > { %v10976_v56 = vpop.eup %8278  ;;  %v3467_v30 = vmul.f32 1.442695, %v3442_v23  ;;  %v3459_v14 = vmul.f32 1.442695, %v3438_v10 }
 0x85e   : > { %v3493_v31 = vsel %vm2176_vm5, %v10976_v56, 0.0  ;;  %v10983_v52 = vpop.eup %8280 }
 0x85f   : > { %3494 = vadd.xlane.f32.xlu0 %v3493_v31  ;;  %8282 = vpow2.f32 %v3467_v30  ;;  %v3490_v8 = vsel %vm2176_vm5, %v10983_v52, 0.0  ;;  %v3471_v30 = vmul.f32 1.442695, %v3444_v47 }
 0x860   : > { %8284 = vpow2.f32 %v3459_v14 }
 0x862   : > { %v3417_v24 = vpop.xlane.xlu0 %3416 }
 0x863   : > { %v3443_v55 = vsub.f32 %v10903_v5, %v3417_v24 }
 0x865   : > { %v10988_v32 = vpop.eup %8282  ;;  %v3469_v29 = vmul.f32 1.442695, %v3443_v55 }
 0x866   : > { %v3508_v4 = vsel %vm2176_vm5, %v10988_v32, 0.0  ;;  %v10995_v22 = vpop.eup %8284 }
 0x867   : > { %3491 = vadd.xlane.f32.xlu0 %v3490_v8  ;;  %v3408_v8 = vpop.xlane.xlu2 %3407  ;;  %v3496_v5 = vsel %vm2176_vm5, %v10995_v22, 0.0 }
 0x868   : > { %v3440_v1 = vsub.f32 %v10908_v12, %v3408_v8 }
 0x86a   : > { %v3405_v21 = vpop.xlane.xlu0 %3404  ;;  %v3463_v54 = vmul.f32 1.442695, %v3440_v1 }
 0x86b   : > { %v3439_v31 = vsub.f32 %v10919_v43, %v3405_v21 }
 0x86d   : > { %v3461_v23 = vmul.f32 1.442695, %v3439_v31 }
 0x86f   : > { %8286 = vpow2.f32 %v3461_v23  ;;  %3509 = vadd.xlane.f32.xlu0 %v3508_v4 }
 0x870   : > { %8288 = vpow2.f32 %v3471_v30 }
 0x871   : > { %8290 = vpow2.f32 %v3469_v29  ;;  %v3483_v29 = vpop.xlane.xlu2 %3482 }
 0x872   : > { %v3633_v10 = vpop.permute.xlu1 %3632  ;;  %8292 = vpow2.f32 %v3463_v54 }
 0x873   : > { %3645 = vmatpush.bf16.msrb.mxu0 %v3633_v10  ;;  %v3426_v10 = vpop.xlane.xlu0 %3425 }
 0x874   : > { %v3446_v54 = vsub.f32 %v10928_v44, %v3426_v10 }
 0x875   : > { %v10997_v43 = vpop.eup %8286 }
 0x876   : > { %v3499_v24 = vsel %vm2176_vm5, %v10997_v43, 0.0  ;;  %v11004_v14 = vpop.eup %8288 }
 0x877   : > { %3497 = vadd.xlane.f32.xlu0 %v3496_v5  ;;  %3500 = vadd.xlane.f32.xlu2 %v3499_v24  ;;  %v11006_v21 = vpop.eup %8290  ;;  %v3514_v12 = vsel %vm2176_vm5, %v11004_v14, 0.0 }
 0x878   : > { %v3511_v31 = vsel %vm2176_vm5, %v11006_v21, 0.0  ;;  %v11012_v47 = vpop.eup %8292 }
 0x879   : > { %v3502_v55 = vsel %vm2176_vm5, %v11012_v47, 0.0 }
 0x87f   : > { %3512 = vadd.xlane.f32.xlu0 %v3511_v31  ;;  %3515 = vadd.xlane.f32.xlu2 %v3514_v12  ;;  %v3432_v31 = vpop.xlane.xlu0 %3431  ;;  %v3475_v12 = vmul.f32 1.442695, %v3446_v54 }
 0x887   : > { %3503 = vadd.xlane.f32.xlu0 %v3502_v55  ;;  %v3448_v55 = vsub.f32 %v10937_v16, %v3432_v31 }
 0x897   : > { %3801 = vrot.lane.b32.xlu2 %v10022_v48, %s9156_s13 }
 0x89b   : > { %3657 = vrot.lane.b32.xlu0 %v13317_v53, %s9155_s28  ;;  %v3479_v53 = vmul.f32 1.442695, %v3448_v55 }
 0x89d   : > { %v3423_v23 = vpop.xlane.xlu1 %3422 }
 0x89e   : > { %v3445_v4 = vsub.f32 %v10948_v39, %v3423_v23 }
 0x8a0   : > { %v3473_v30 = vmul.f32 1.442695, %v3445_v4 }
 0x8a2   : > { %8294 = vpow2.f32 %v3473_v30 }
 0x8a3   : > { %8296 = vrcp.f32 %v3483_v29 }
 0x8a5   : > { %v3429_v8 = vpop.xlane.xlu1 %3428 }
 0x8a6   : > { %v3447_v29 = vsub.f32 %v10956_v20, %v3429_v8 }
 0x8a8   : > { %v11021_v1 = vpop.eup %8294  ;;  %v3477_v41 = vmul.f32 1.442695, %v3447_v29 }
 0x8a9   : > { %v3517_v5 = vsel %vm2176_vm5, %v11021_v1, 0.0  ;;  %v8297_v48 = vpop.eup %8296 }
 0x8aa   : > { %3518 = vadd.xlane.f32.xlu1 %v3517_v5  ;;  %v3545_v39 = vmul.f32 %v8297_v48, %v10914_v19  ;;  %v3785_v19 = vsel %vm1945_vm8, %v10941_v38, 0 }
 0x8ac   : > { %v3561_v4 = vpack.c.bf16 %v3545_v39, %v3545_v39 }
 0x8ad   : > { %v3486_v24 = vpop.xlane.xlu1 %3485 }
 0x8ae   : > { %8298 = vrcp.f32 %v3486_v24  ;;  %v3579_v7 = vunpack.c.l.b16 %v3561_v4 }
 0x8af   : > { %8300 = vpow2.f32 %v3475_v12 }
 0x8b0   : > { %8302 = vpow2.f32 %v3479_v53 }
 0x8b1   : > { %8304 = vpow2.f32 %v3477_v41 }
 0x8b4   : > { %v8299_v23 = vpop.eup %8298 }
 0x8b5   : > { %v3546_v30 = vmul.f32 %v8299_v23, %v10961_v62  ;;  %v11030_v10 = vpop.eup %8300  ;;  %v3489_v41 = vpop.xlane.xlu1 %3488 }
 0x8b6   : > { %v3520_v16 = vsel %vm2176_vm5, %v11030_v10, 0.0  ;;  %v11037_v20 = vpop.eup %8302  ;;  %8306 = vrcp.f32 %v3489_v41 }
 0x8b7   : > { %v3562_v5 = vpack.c.bf16 %v3546_v30, %v3546_v30  ;;  %v11041_v53 = vpop.eup %8304 }
 0x8b9   : > { %v3580_v18 = vunpack.c.l.b16 %v3562_v5 }
 0x8bb   : > { %v3581_v44 = vpack.c.b16 %v3580_v18, %v3579_v7  ;;  %v3526_v18 = vsel %vm2176_vm5, %v11037_v20, 0.0  ;;  %v3523_v7 = vsel %vm2176_vm5, %v11041_v53, 0.0 }
 0x8bc   : > { %v8307_v24 = vpop.eup %8306 }
 0x8bd   : > { %7456 = vmatmul.msk.bf16.vlgmr.msra.gmra.mxu2 %vm2176_vm5, %v3581_v44  ;;  %v3507_v62 = vpop.xlane.xlu1 %3506  ;;  %v3547_v48 = vmul.f32 %v8307_v24, %v10966_v51 }
 0x8be   : > { %3794 = vmatpush.bf16.xpose.msra.mxu2 %v3785_v19 }
 0x8bf   : > { %v3563_v54 = vpack.c.bf16 %v3547_v48, %v3547_v48 }
 0x8c0   : > { %3521 = vadd.xlane.f32.xlu2 %v3520_v16 }
 0x8c1   : > { %v3604_v12 = vunpack.c.l.b16 %v3563_v54 }
 0x8c3   : > { %3732 = vrot.lane.b32.xlu1 %v13316_v25, %s9155_s28 }
 0x8c5   : > { %3527 = vadd.xlane.f32.xlu0 %v3526_v18 }
 0x8c8   : > { %3524 = vadd.xlane.f32.xlu2 %v3523_v7 }
 0x8cb   : > { %3827 = vrot.lane.b32.xlu1 %v13314_v57, %s9156_s13 }
 0x8d2   : > { %v3495_v38 = vpop.xlane.xlu0 %3494 }
 0x8d3   : > { %3757 = vrot.lane.b32.xlu1 %v13315_v35, %s9155_s28 }
 0x8d9   : > { %3873 = vrot.lane.b32.xlu0 %v10108_v58, %s9156_s13 }
 0x8da   : > { %v3492_v8 = vpop.xlane.xlu0 %3491 }
 0x8db   : > { %8308 = vrcp.f32 %v3492_v8  ;;  %3825 = vrot.lane.b32.xlu1 %v10047_v6, %s9156_s13 }
 0x8dc   : > { %8310 = vrcp.f32 %v3507_v62 }
 0x8e0   : > { %3851 = vrot.lane.b32.xlu2 %v10073_v50, %s9156_s13 }
 0x8e1   : > { %v8309_v57 = vpop.eup %8308  ;;  %3945 = vrot.lane.b32.xlu0 %v10205_v59, %s9156_s13 }
 0x8e2   : > { %v3548_v58 = vmul.f32 %v8309_v57, %v10983_v52  ;;  %v3510_v31 = vpop.xlane.xlu0 %3509  ;;  %v8311_v39 = vpop.eup %8310  ;;  %v3809_v52 = vsel %vm1945_vm8, %v10981_v9, 0 }
 0x8e3   : > { %8312 = vrcp.f32 %v3510_v31  ;;  %3875 = vrot.lane.b32.xlu1 %v10097_v3, %s9156_s13  ;;  %v3553_v51 = vmul.f32 %v8311_v39, %v10970_v33 }
 0x8e4   : > { %v3564_v6 = vpack.c.bf16 %v3548_v58, %v3548_v58  ;;  %8314 = vrcp.f32 %v3495_v38 }
 0x8e5   : > { %v3569_v23 = vpack.c.bf16 %v3553_v51, %v3553_v51 }
 0x8e6   : > { %v3605_v55 = vunpack.c.l.b16 %v3564_v6 }
 0x8e7   : > { %v3679_v5 = vunpack.c.l.b16 %v3569_v23 }
 0x8e8   : > { %v3606_v50 = vpack.c.b16 %v3605_v55, %v3604_v12  ;;  %3897 = vrot.lane.b32.xlu2 %v13313_v61, %s9156_s13 }
 0x8e9   : > { %v8313_v59 = vpop.eup %8312 }
 0x8ea   : > { %v3554_v4 = vmul.f32 %v8313_v59, %v10988_v32  ;;  %v3501_v30 = vpop.xlane.xlu2 %3500  ;;  %7457 = vmatmul.msk.bf16.vlgmr.msra.gmra.mxu3 %vm2176_vm5, %v3606_v50  ;;  %v3498_v3 = vpop.xlane.xlu0 %3497 }
 0x8eb   : > { %3818 = vmatpush.bf16.xpose.msra.mxu3 %v3809_v52  ;;  %3849 = vrot.lane.b32.xlu1 %v10086_v13, %s9156_s13  ;;  %v8315_v33 = vpop.eup %8314  ;;  %8316 = vrcp.f32 %v3498_v3 }
 0x8ec   : > { %v3570_v29 = vpack.c.bf16 %v3554_v4, %v3554_v4  ;;  %v3549_v44 = vmul.f32 %v8315_v33, %v10976_v56 }
 0x8ee   : > { %v3680_v61 = vunpack.c.l.b16 %v3570_v29  ;;  %v3565_v18 = vpack.c.bf16 %v3549_v44, %v3549_v44 }
 0x8f0   : > { %v3681_v19 = vpack.c.b16 %v3680_v61, %v3679_v5  ;;  %3921 = vrot.lane.b32.xlu2 %v10167_v42, %s9156_s13  ;;  %v3629_v41 = vunpack.c.l.b16 %v3565_v18 }
 0x8f1   : > { %v8317_v9 = vpop.eup %8316 }
 0x8f2   : > { %v3516_v32 = vpop.xlane.xlu2 %3515  ;;  %7460 = vmatmul.msk.bf16.vlgmr.msrb.gmra.mxu2 %vm2176_vm5, %v3681_v19  ;;  %v3513_v16 = vpop.xlane.xlu0 %3512  ;;  %v3550_v7 = vmul.f32 %v8317_v9, %v10995_v22 }
 0x8f3   : > { %8318 = vrcp.f32 %v3516_v32  ;;  %3899 = vrot.lane.b32.xlu1 %v10118_v11, %s9156_s13 }
 0x8f4   : > { %8320 = vrcp.f32 %v3513_v16  ;;  %v3566_v13 = vpack.c.bf16 %v3550_v7, %v3550_v7 }
 0x8f6   : > { %v3630_v56 = vunpack.c.l.b16 %v3566_v13 }
 0x8f8   : > { %4166 = vrot.lane.b32.xlu2 %v10185_v26, %s9156_s13  ;;  %v3631_v38 = vpack.c.b16 %v3630_v56, %v3629_v41 }
 0x8f9   : > { %v8319_v42 = vpop.eup %8318 }
 0x8fa   : > { %v8321_v62 = vpop.eup %8320  ;;  %v3556_v8 = vmul.f32 %v8319_v42, %v11004_v14  ;;  %v3504_v24 = vpop.xlane.xlu0 %3503  ;;  %7458 = vmatmul.msk.bf16.vlgmr.msrb.gmra.mxu0 %vm2176_vm5, %v3631_v38 }
 0x8fb   : > { %v3555_v48 = vmul.f32 %v8321_v62, %v11006_v21  ;;  %8322 = vrcp.f32 %v3504_v24  ;;  %3923 = vrot.lane.b32.xlu1 %v13318_v45, %s9156_s13  ;;  %v3802_v50 = vpop.permute.xlu2 %3801 }
 0x8fc   : > { %8324 = vrcp.f32 %v3501_v30  ;;  %v3572_v11 = vpack.c.bf16 %v3556_v8, %v3556_v8 }
 0x8fd   : > { %v3571_v22 = vpack.c.bf16 %v3555_v48, %v3555_v48 }
 0x8fe   : > { %v3705_v57 = vunpack.c.l.b16 %v3572_v11 }
 0x8ff   : > { %v3704_v54 = vunpack.c.l.b16 %v3571_v22 }
 0x901   : > { %v8323_v26 = vpop.eup %8322  ;;  %v3706_v58 = vpack.c.b16 %v3705_v57, %v3704_v54 }
 0x902   : > { %v8325_v31 = vpop.eup %8324  ;;  %7464 = vmatmul.msk.bf16.vlgmr.msra.gmra.mxu2 %vm1945_vm8, %v10943_v46  ;;  %v3552_v14 = vmul.f32 %v8323_v26, %v11012_v47 }
 0x903   : > { %7461 = vmatmul.msk.bf16.vlgmr.msrb.gmra.mxu3 %vm2176_vm5, %v3706_v58  ;;  %3947 = vrot.lane.b32.xlu1 %v10182_v60, %s9156_s13  ;;  %v3551_v45 = vmul.f32 %v8325_v31, %v10997_v43 }
 0x904   : > { %v3568_v21 = vpack.c.bf16 %v3552_v14, %v3552_v14 }
 0x905   : > { %v3567_v39 = vpack.c.bf16 %v3551_v45, %v3551_v45 }
 0x906   : > { %v3655_v6 = vunpack.c.l.b16 %v3568_v21 }
 0x907   : > { %v3654_v12 = vunpack.c.l.b16 %v3567_v39 }
 0x909   : > { %v3656_v55 = vpack.c.b16 %v3655_v6, %v3654_v12 }
 0x90d   : > { %v3658_v51 = vpop.permute.xlu0 %3657 }
 0x90e   : > { %3670 = vmatpush.bf16.msra.mxu1 %v3658_v51 }
 0x911   : > { %7459 = vmatmul.msk.bf16.vlgmr.msra.gmra.mxu1 %vm2176_vm5, %v3656_v55 }
 0x913   : > { %7465 = vmatmul.msk.bf16.vlgmr.msra.gmra.mxu3 %vm1945_vm8, %v3802_v50 }
 0x91d   : > { %v3519_v46 = vpop.xlane.xlu1 %3518 }
 0x91e   : > { %8326 = vrcp.f32 %v3519_v46 }
 0x924   : > { %v8327_v59 = vpop.eup %8326 }
 0x925   : > { %v3557_v43 = vmul.f32 %v8327_v59, %v11021_v1 }
 0x927   : > { %v3573_v4 = vpack.c.bf16 %v3557_v43, %v3557_v43 }
 0x929   : > { %v3729_v44 = vunpack.c.l.b16 %v3573_v4 }
 0x933   : > { %v3522_v47 = vpop.xlane.xlu2 %3521 }
 0x934   : > { %8328 = vrcp.f32 %v3522_v47 }
 0x935   : > { %v3733_v60 = vpop.permute.xlu1 %3732 }
 0x936   : > { %3745 = vmatpush.bf16.msra.mxu0 %v3733_v60 }
 0x938   : > { %v3528_v52 = vpop.xlane.xlu0 %3527 }
 0x939   : > { %8330 = vrcp.f32 %v3528_v52 }
 0x93a   : > { %v8329_v23 = vpop.eup %8328 }
 0x93b   : > { %v3558_v30 = vmul.f32 %v8329_v23, %v11030_v10  ;;  %v3525_v3 = vpop.xlane.xlu2 %3524 }
 0x93c   : > { %8332 = vrcp.f32 %v3525_v3 }
 0x93d   : > { %v3574_v33 = vpack.c.bf16 %v3558_v30, %v3558_v30  ;;  %v3828_v29 = vpop.permute.xlu1 %3827 }
 0x93e   : > { %v3833_v5 = vsel %vm1945_vm8, %v3828_v29, 0 }
 0x93f   : > { %v8331_v61 = vpop.eup %8330  ;;  %v3730_v19 = vunpack.c.l.b16 %v3574_v33  ;;  %3842 = vmatpush.bf16.xpose.msrb.mxu0 %v3833_v5 }
 0x940   : > { %v3560_v9 = vmul.f32 %v8331_v61, %v11037_v20  ;;  %v11107_v57 = vpop.f32.mrf.mxu2 }
 0x941   : > { %v3731_v32 = vpack.c.b16 %v3730_v19, %v3729_v44 }
 0x942   : > { %v8333_v1 = vpop.eup %8332  ;;  %v3576_v16 = vpack.c.bf16 %v3560_v9, %v3560_v9 }
 0x943   : > { %v3559_v18 = vmul.f32 %v8333_v1, %v11041_v53  ;;  %v3852_v7 = vpop.permute.xlu2 %3851  ;;  %7462 = vmatmul.msk.bf16.vlgmr.msra.gmra.mxu0 %vm2176_vm5, %v3731_v32 }
 0x944   : > { %v3857_v41 = vsel %vm1945_vm8, %v3852_v7, 0  ;;  %v3755_v56 = vunpack.c.l.b16 %v3576_v16 }
 0x945   : > { %v3575_v10 = vpack.c.bf16 %v3559_v18, %v3559_v18  ;;  %v3758_v13 = vpop.permute.xlu1 %3757 }
 0x946   : > { %3770 = vmatpush.bf16.msrb.mxu1 %v3758_v13 }
 0x947   : > { %v3754_v42 = vunpack.c.l.b16 %v3575_v10 }
 0x948   : > { %v11110_v31 = vpop.f32.mrf.mxu2 }
 0x949   : > { %v3756_v38 = vpack.c.b16 %v3755_v56, %v3754_v42 }
 0x94a   : > { %3866 = vmatpush.bf16.xpose.msra.mxu1 %v3857_v41 }
 0x94b   : > { %v3898_v62 = vpop.permute.xlu2 %3897  ;;  %7463 = vmatmul.msk.bf16.vlgmr.msrb.gmra.mxu1 %vm2176_vm5, %v3756_v38  ;;  %v3874_v11 = vpop.permute.xlu0 %3873 }
 0x94d   : > { %v3826_v20 = vpop.permute.xlu1 %3825 }
 0x953   : > { %v3922_v8 = vpop.permute.xlu2 %3921  ;;  %7466 = vmatmul.msk.bf16.vlgmr.msrb.gmra.mxu0 %vm1945_vm8, %v3826_v20  ;;  %v3946_v12 = vpop.permute.xlu0 %3945 }
 0x955   : > { %v3876_v53 = vpop.permute.xlu1 %3875 }
 0x956   : > { %v3881_v24 = vsel %vm1945_vm8, %v3876_v53, 0 }
 0x957   : > { %3890 = vmatpush.bf16.xpose.msrb.mxu2 %v3881_v24 }
 0x95b   : > { %v4167_v48 = vpop.permute.xlu2 %4166 }
 0x95d   : > { %v3850_v22 = vpop.permute.xlu1 %3849 }
 0x95e   : > { %7467 = vmatmul.msk.bf16.vlgmr.msra.gmra.mxu1 %vm1945_vm8, %v3850_v22  ;;  %7468 = vmatmul.msk.bf16.vlgmr.msrb.gmra.mxu2 %vm1945_vm8, %v3874_v11 }
 0x95f   : > { %4179 = vmatpush.bf16.msra.mxu2 %v4167_v48 }
 0x965   : > { %v3900_v54 = vpop.permute.xlu1 %3899 }
 0x966   : > { %v3905_v26 = vsel %vm1945_vm8, %v3900_v54, 0  ;;  %v13339_v54 = vld [vmem:[#allocation89_spill] sm:$0xff] }
 0x967   : > { %3914 = vmatpush.bf16.xpose.msrb.mxu3 %v3905_v26 }
 0x96d   : > { %v3924_v58 = vpop.permute.xlu1 %3923  ;;  %v11114_v45 = vpop.f32.mrf.mxu3 }
 0x96e   : > { %v3929_v14 = vsel %vm1945_vm8, %v3924_v58, 0  ;;  %7469 = vmatmul.msk.bf16.vlgmr.msrb.gmra.mxu3 %vm1945_vm8, %v3898_v62 }
 0x96f   : > { %3938 = vmatpush.bf16.xpose.msra.mxu0 %v3929_v14 }
 0x975   : > { %v3948_v21 = vpop.permute.xlu1 %3947  ;;  %v11117_v6 = vpop.f32.mrf.mxu2 }
 0x976   : > { %v3953_v39 = vsel %vm1945_vm8, %v3948_v21, 0  ;;  %7470 = vmatmul.msk.bf16.vlgmr.msra.gmra.mxu0 %vm1945_vm8, %v3922_v8  ;;  %v11120_v51 = vpop.f32.mrf.mxu3 }
 0x977   : > { %3962 = vmatpush.bf16.xpose.msrb.mxu1 %v3953_v39  ;;  %v13340_v39 = vld [vmem:[#allocation50_spill] sm:$0xff] }
 0x97d   : > { %v11122_v55 = vpop.f32.mrf.mxu2 }
 0x97e   : > { %7471 = vmatmul.msk.bf16.vlgmr.msrb.gmra.mxu1 %vm1945_vm8, %v3946_v12 }
 0x985   : > { %v3796_v46 = vpop.f32.mrf.mxu2 }
 0x986   : > { %v11125_v50 = vpop.f32.mrf.mxu3  ;;  %v11128_v47 = vadd.f32 %v10800_v27, %v3796_v46  ;;  %v13341_v46 = vld [vmem:[#allocation58_spill] sm:$0xff] }
 0x988   : > { %v3969_v59 = vsel %vm2176_vm5, %v11128_v47, -inf }
 0x989   : > { %3970 = vmax.xlane.f32.xlu2 %v3969_v59 }
 0x98d   : > { %v3798_v43 = vpop.f32.mrf.mxu2 }
 0x98e   : > { %v11132_v60 = vpop.f32.mrf.mxu3  ;;  %v3799_v52 = vadd.f32 %v10809_v36, %v3798_v43  ;;  %v11146_v36 = vpop.f32.mrf.mxu0 }
 0x98f   : > { %v11148_v5 = vpop.f32.mrf.mxu1 }
 0x990   : > { %v3972_v23 = vsel %vm2176_vm5, %v3799_v52, -inf }
 0x991   : > { %3973 = vmax.xlane.f32.xlu1 %v3972_v23 }
 0x996   : > { %v3820_v4 = vpop.f32.mrf.mxu3  ;;  %v11150_v61 = vpop.f32.mrf.mxu0 }
 0x997   : > { %v11137_v30 = vadd.f32 %v10832_v34, %v3820_v4  ;;  %v11154_v44 = vpop.f32.mrf.mxu1  ;;  %v13342_v4 = vld [vmem:[#allocation87_spill] sm:$0xff] }
 0x999   : > { %v3975_v27 = vsel %vm2176_vm5, %v11137_v30, -inf }
 0x99a   : > { %3976 = vmax.xlane.f32.xlu0 %v3975_v27 }
 0x99e   : > { %v3822_v3 = vpop.f32.mrf.mxu3 }
 0x99f   : > { %v11142_v33 = vadd.f32 %v10844_v17, %v3822_v3 }
 0x9a1   : > { %v3978_v29 = vsel %vm2176_vm5, %v11142_v33, -inf }
 0x9a2   : > { %3979 = vmax.xlane.f32.xlu2 %v3978_v29 }
 0x9c0   : > { %v11152_v34 = vpop.f32.mrf.mxu0 }
 0x9c8   : > { %v11156_v19 = vpop.f32.mrf.mxu0  ;;  %v11158_v9 = vpop.f32.mrf.mxu1 }
 0x9d0   : > { %v3844_v17 = vpop.f32.mrf.mxu0  ;;  %v11163_v1 = vpop.f32.mrf.mxu1 }
 0x9d1   : > { %v11161_v32 = vadd.f32 %v10871_v63, %v3844_v17 }
 0x9d3   : > { %v3981_v16 = vsel %vm2176_vm5, %v11161_v32, -inf }
 0x9d4   : > { %3982 = vmax.xlane.f32.xlu1 %v3981_v16 }
 0x9d8   : > { %v3846_v18 = vpop.f32.mrf.mxu0 }
 0x9d9   : > { %v11168_v7 = vadd.f32 %v10891_v0, %v3846_v18 }
 0x9db   : > { %v3868_v10 = vpop.f32.mrf.mxu1  ;;  %v3984_v13 = vsel %vm2176_vm5, %v11168_v7, -inf }
 0x9dc   : > { %v11173_v41 = vadd.f32 %v10916_v28, %v3868_v10  ;;  %3985 = vmax.xlane.f32.xlu0 %v3984_v13  ;;  %v13343_v10 = vld [vmem:[#allocation86_spill] sm:$0xff] }
 0x9de   : > { %v3987_v63 = vsel %vm2176_vm5, %v11173_v41, -inf }
 0x9df   : > { %3988 = vmax.xlane.f32.xlu2 %v3987_v63 }
 0x9e1   : > { %v3892_v56 = vpop.f32.mrf.mxu2 }
 0x9e2   : > { %v11178_v42 = vadd.f32 %v10839_v15, %v3892_v56 }
 0x9e3   : > { %v3870_v53 = vpop.f32.mrf.mxu1 }
 0x9e4   : > { %v3993_v0 = vsel %vm2176_vm5, %v11178_v42, -inf  ;;  %v11198_v11 = vadd.f32 %v10905_v2, %v3870_v53 }
 0x9e5   : > { %3994 = vmax.xlane.f32.xlu1 %v3993_v0 }
 0x9e6   : > { %v3990_v26 = vsel %vm2176_vm5, %v11198_v11, -inf }
 0x9e9   : > { %v3894_v38 = vpop.f32.mrf.mxu2 }
 0x9ea   : > { %v11183_v62 = vadd.f32 %v10885_v40, %v3894_v38  ;;  %v13344_v38 = vld [vmem:[#allocation88_spill] sm:$0xff] }
 0x9ec   : > { %v3996_v28 = vsel %vm2176_vm5, %v11183_v62, -inf }
 0x9ed   : > { %3997 = vmax.xlane.f32.xlu0 %v3996_v28 }
 0x9f1   : > { %v3916_v20 = vpop.f32.mrf.mxu3 }
 0x9f2   : > { %v11188_v8 = vadd.f32 %v10900_v49, %v3916_v20 }
 0x9f3   : > { %v3940_v24 = vpop.f32.mrf.mxu0 }
 0x9f4   : > { %v11191_v15 = vadd.f32 %v10945_v37, %v3940_v24  ;;  %v3999_v48 = vsel %vm2176_vm5, %v11188_v8, -inf }
 0x9f5   : > { %4000 = vmax.xlane.f32.xlu1 %v3999_v48 }
 0x9f6   : > { %v4005_v40 = vsel %vm2176_vm5, %v11191_v15, -inf }
 0x9f7   : > { %4006 = vmax.xlane.f32.xlu0 %v4005_v40 }
 0x9f9   : > { %v3918_v16 = vpop.f32.mrf.mxu3 }
 0x9fa   : > { %v11223_v13 = vadd.f32 %v13343_v10, %v3918_v16 }
 0x9fb   : > { %v3964_v22 = vpop.f32.mrf.mxu1  ;;  %v3942_v43 = vpop.f32.mrf.mxu0 }
 0x9fc   : > { %v11201_v49 = vadd.f32 %v13339_v54, %v3964_v22  ;;  %v3971_v27 = vpop.xlane.xlu2 %3970 }
 0x9fd   : > { %3991 = vmax.xlane.f32.xlu1 %v3990_v26  ;;  %v4017_v29 = vsub.f32 %v11128_v47, %v3971_v27 }
 0x9fe   : > { %v4011_v37 = vsel %vm2176_vm5, %v11201_v49, -inf }
 0x9ff   : > { %4012 = vmax.xlane.f32.xlu2 %v4011_v37  ;;  %v4033_v18 = vmul.f32 1.442695, %v4017_v29 }
 0xa03   : > { %v3966_v56 = vpop.f32.mrf.mxu1 }
 0xa04   : > { %v3974_v58 = vpop.xlane.xlu1 %3973  ;;  %v11234_v28 = vadd.f32 %v13344_v38, %v3966_v56 }
 0xa05   : > { %v4018_v14 = vsub.f32 %v3799_v52, %v3974_v58  ;;  %v11217_v52 = vadd.f32 %v13342_v4, %v3942_v43 }
 0xa06   : > { %v4014_v48 = vsel %vm2176_vm5, %v11234_v28, -inf }
 0xa07   : > { %v4035_v21 = vmul.f32 1.442695, %v4018_v14  ;;  %v4008_v17 = vsel %vm2176_vm5, %v11217_v52, -inf }
 0xa09   : > { %8334 = vpow2.f32 %v4035_v21 }
 0xa0b   : > { %4216 = vrot.lane.b32.xlu0 %v13340_v39, %s9156_s13 }
 0xa0d   : > { %v3977_v59 = vpop.xlane.xlu0 %3976 }
 0xa0e   : > { %v4019_v23 = vsub.f32 %v11137_v30, %v3977_v59  ;;  %v4002_v30 = vsel %vm2176_vm5, %v11223_v13, -inf }
 0xa0f   : > { %v11209_v2 = vpop.eup %8334 }
 0xa10   : > { %v4068_v12 = vsel %vm2176_vm5, %v11209_v2, 0.0  ;;  %v4037_v3 = vmul.f32 1.442695, %v4019_v23 }
 0xa11   : > { %4069 = vadd.xlane.f32.xlu2 %v4068_v12 }
 0xa12   : > { %8336 = vpow2.f32 %v4037_v3 }
 0xa13   : > { %8338 = vpow2.f32 %v4033_v18 }
 0xa15   : > { %v3980_v53 = vpop.xlane.xlu2 %3979 }
 0xa16   : > { %4191 = vrot.lane.b32.xlu1 %v13341_v46, %s9156_s13  ;;  %v4020_v22 = vsub.f32 %v11142_v33, %v3980_v53 }
 0xa18   : > { %v11225_v63 = vpop.eup %8336  ;;  %v4039_v26 = vmul.f32 1.442695, %v4020_v22 }
 0xa19   : > { %v4071_v47 = vsel %vm2176_vm5, %v11225_v63, 0.0  ;;  %v11231_v0 = vpop.eup %8338 }
 0xa1a   : > { %v4065_v20 = vsel %vm2176_vm5, %v11231_v0, 0.0 }
 0xa35   : > { %4009 = vmax.xlane.f32.xlu0 %v4008_v17 }
 0xa3d   : > { %4003 = vmax.xlane.f32.xlu0 %v4002_v30 }
 0xa40   : > { %4072 = vadd.xlane.f32.xlu1 %v4071_v47 }
 0xa45   : > { %4066 = vadd.xlane.f32.xlu0 %v4065_v20 }
 0xa47   : > { %v3983_v24 = vpop.xlane.xlu1 %3982 }
 0xa48   : > { %v4021_v40 = vsub.f32 %v11161_v32, %v3983_v24  ;;  %4015 = vmax.xlane.f32.xlu1 %v4014_v48 }
 0xa4a   : > { %v4041_v54 = vmul.f32 1.442695, %v4021_v40  ;;  %v13345_v40 = vld [vmem:[#allocation52_spill] sm:$0xff] }
 0xa4c   : > { %8340 = vpow2.f32 %v4041_v54 }
 0xa4d   : > { %8342 = vpow2.f32 %v4039_v26 }
 0xa4f   : > { %v3986_v32 = vpop.xlane.xlu0 %3985 }
 0xa50   : > { %v4022_v59 = vsub.f32 %v11168_v7, %v3986_v32 }
 0xa52   : > { %v11242_v37 = vpop.eup %8340  ;;  %v3989_v58 = vpop.xlane.xlu2 %3988  ;;  %v4043_v27 = vmul.f32 1.442695, %v4022_v59 }
 0xa53   : > { %v4023_v14 = vsub.f32 %v11173_v41, %v3989_v58  ;;  %v4077_v21 = vsel %vm2176_vm5, %v11242_v37, 0.0  ;;  %v11247_v12 = vpop.eup %8342  ;;  %v13346_v58 = vld [vmem:[#allocation51_spill] sm:$0xff] }
 0xa54   : > { %4078 = vadd.xlane.f32.xlu0 %v4077_v21  ;;  %v4074_v23 = vsel %vm2176_vm5, %v11247_v12, 0.0  ;;  %v13347_v21 = vld [vmem:[#allocation67_spill] sm:$0xff] }
 0xa55   : > { %v4045_v39 = vmul.f32 1.442695, %v4023_v14 }
 0xa57   : > { %8344 = vpow2.f32 %v4045_v39 }
 0xa58   : > { %v3995_v46 = vpop.xlane.xlu1 %3994 }
 0xa59   : > { %v4025_v33 = vsub.f32 %v11178_v42, %v3995_v46 }
 0xa5b   : > { %v4049_v43 = vmul.f32 1.442695, %v4025_v33 }
 0xa5c   : > { %4075 = vadd.xlane.f32.xlu0 %v4074_v23 }
 0xa5d   : > { %v11253_v41 = vpop.eup %8344  ;;  %8346 = vpow2.f32 %v4049_v43 }
 0xa5e   : > { %v4083_v4 = vsel %vm2176_vm5, %v11253_v41, 0.0  ;;  %8348 = vpow2.f32 %v4043_v27 }
 0xa5f   : > { %4084 = vadd.xlane.f32.xlu1 %v4083_v4 }
 0xa60   : > { %v3998_v3 = vpop.xlane.xlu0 %3997 }
 0xa61   : > { %v4026_v42 = vsub.f32 %v11183_v62, %v3998_v3 }
 0xa63   : > { %v11257_v29 = vpop.eup %8346  ;;  %v4051_v17 = vmul.f32 1.442695, %v4026_v42 }
 0xa64   : > { %v4089_v7 = vsel %vm2176_vm5, %v11257_v29, 0.0  ;;  %v11262_v18 = vpop.eup %8348 }
 0xa65   : > { %4090 = vadd.xlane.f32.xlu2 %v4089_v7  ;;  %8350 = vpow2.f32 %v4051_v17  ;;  %v4080_v47 = vsel %vm2176_vm5, %v11262_v18, 0.0 }
 0xa68   : > { %v4001_v16 = vpop.xlane.xlu1 %4000 }
 0xa69   : > { %v4027_v10 = vsub.f32 %v11188_v8, %v4001_v16 }
 0xa6a   : > { %v4007_v48 = vpop.xlane.xlu0 %4006 }
 0xa6b   : > { %v4053_v30 = vmul.f32 1.442695, %v4027_v10  ;;  %v11267_v38 = vpop.eup %8350  ;;  %v4029_v14 = vsub.f32 %v11191_v15, %v4007_v48 }
 0xa6c   : > { %v4092_v8 = vsel %vm2176_vm5, %v11267_v38, 0.0 }
 0xa6d   : > { %8352 = vpow2.f32 %v4053_v30  ;;  %4081 = vadd.xlane.f32.xlu2 %v4080_v47  ;;  %v4057_v39 = vmul.f32 1.442695, %v4029_v14 }
 0xa70   : > { %v3992_v56 = vpop.xlane.xlu1 %3991 }
 0xa71   : > { %v4024_v62 = vsub.f32 %v11198_v11, %v3992_v56 }
 0xa72   : > { %v4013_v32 = vpop.xlane.xlu2 %4012 }
 0xa73   : > { %v11270_v20 = vpop.eup %8352  ;;  %v4047_v53 = vmul.f32 1.442695, %v4024_v62  ;;  %v4031_v46 = vsub.f32 %v11201_v49, %v4013_v32 }
 0xa74   : > { %v4095_v24 = vsel %vm2176_vm5, %v11270_v20, 0.0 }
 0xa75   : > { %8354 = vpow2.f32 %v4047_v53  ;;  %4096 = vadd.xlane.f32.xlu0 %v4095_v24  ;;  %4093 = vadd.xlane.f32.xlu2 %v4092_v8  ;;  %v4061_v33 = vmul.f32 1.442695, %v4031_v46  ;;  %v8002_v46 = vpack.i.bf16 %v11120_v51, %v11114_v45  ;;  %v8017_v45 = vpack.i.bf16 %v11150_v61, %v11146_v36 }
 0xa76   : > { %8356 = vpow2.f32 %v4057_v39  ;;  %v8032_v36 = vpack.i.bf16 %v11154_v44, %v11148_v5 }
 0xa77   : > { %8358 = vpow2.f32 %v4061_v33 }
 0xa78   : > { %4266 = vrot.lane.b32.xlu1 %v13345_v40, %s9156_s13 }
 0xa7b   : > { %v11278_v22 = vpop.eup %8354 }
 0xa7c   : > { %v4086_v11 = vsel %vm2176_vm5, %v11278_v22, 0.0  ;;  %v11288_v59 = vpop.eup %8356 }
 0xa7d   : > { %4087 = vadd.xlane.f32.xlu0 %v4086_v11  ;;  %v4217_v54 = vpop.permute.xlu0 %4216  ;;  %v4101_v43 = vsel %vm2176_vm5, %v11288_v59, 0.0  ;;  %v11292_v23 = vpop.eup %8358 }
 0xa7e   : > { %4229 = vmatpush.bf16.msrb.mxu0 %v4217_v54  ;;  %v4107_v27 = vsel %vm2176_vm5, %v11292_v23, 0.0 }
 0xa84   : > { %v4070_v42 = vpop.xlane.xlu2 %4069 }
 0xa88   : > { %v4192_v26 = vpop.permute.xlu1 %4191 }
 0xa89   : > { %4204 = vmatpush.bf16.msra.mxu3 %v4192_v26 }
 0xa8d   : > { %4241 = vrot.lane.b32.xlu2 %v13346_v58, %s9156_s13 }
 0xa91   : > { %4291 = vrot.lane.b32.xlu0 %v13347_v21, %s9156_s13 }
 0xaa2   : > { %4102 = vadd.xlane.f32.xlu1 %v4101_v43 }
 0xaa8   : > { %v4010_v4 = vpop.xlane.xlu0 %4009 }
 0xaa9   : > { %v4030_v15 = vsub.f32 %v11217_v52, %v4010_v4 }
 0xaaa   : > { %4108 = vadd.xlane.f32.xlu1 %v4107_v27 }
 0xaab   : > { %v4059_v3 = vmul.f32 1.442695, %v4030_v15 }
 0xaad   : > { %8360 = vpow2.f32 %v4059_v3 }
 0xaae   : > { %8362 = vrcp.f32 %v4070_v42  ;;  %v13349_v42 = vld [vmem:[#allocation65_spill] sm:$0xff] }
 0xab0   : > { %v4004_v49 = vpop.xlane.xlu0 %4003 }
 0xab1   : > { %v4028_v7 = vsub.f32 %v11223_v13, %v4004_v49 }
 0xab3   : > { %v4055_v17 = vmul.f32 1.442695, %v4028_v7  ;;  %v4073_v16 = vpop.xlane.xlu1 %4072  ;;  %v11298_v10 = vpop.eup %8360 }
 0xab4   : > { %v8363_v47 = vpop.eup %8362  ;;  %v4104_v52 = vsel %vm2176_vm5, %v11298_v10, 0.0 }
 0xab5   : > { %8364 = vpow2.f32 %v4055_v17  ;;  %v4130_v53 = vmul.f32 %v8363_v47, %v11209_v2  ;;  %v13350_v17 = vld [vmem:[#allocation55_spill] sm:$0xff] }
 0xab7   : > { %v4146_v40 = vpack.c.bf16 %v4130_v53, %v4130_v53 }
 0xab8   : > { %v4067_v30 = vpop.xlane.xlu0 %4066 }
 0xab9   : > { %8366 = vrcp.f32 %v4067_v30  ;;  %v4164_v26 = vunpack.c.l.b16 %v4146_v40 }
 0xabb   : > { %v11302_v56 = vpop.eup %8364  ;;  %v4016_v62 = vpop.xlane.xlu1 %4015  ;;  %4105 = vadd.xlane.f32.xlu0 %v4104_v52 }
 0xabc   : > { %v4032_v13 = vsub.f32 %v11234_v28, %v4016_v62  ;;  %v4098_v24 = vsel %vm2176_vm5, %v11302_v56, 0.0 }
 0xabd   : > { %4099 = vadd.xlane.f32.xlu2 %v4098_v24 }
 0xabe   : > { %v4063_v8 = vmul.f32 1.442695, %v4032_v13 }
 0xabf   : > { %v8367_v48 = vpop.eup %8366 }
 0xac0   : > { %v4129_v11 = vmul.f32 %v8367_v48, %v11231_v0  ;;  %8368 = vpow2.f32 %v4063_v8  ;;  %v8047_v48 = vpack.i.bf16 %v11122_v55, %v11117_v6 }
 0xac1   : > { %8370 = vrcp.f32 %v4073_v16  ;;  %v13351_v16 = vld [vmem:[#allocation80_spill] sm:$0xff] }
 0xac2   : > { %v4145_v54 = vpack.c.bf16 %v4129_v11, %v4129_v11  ;;  %v8012_v30 = vpack.i.bf16 %v13351_v16, %v13350_v17 }
 0xac4   : > { %v4163_v58 = vunpack.c.l.b16 %v4145_v54  ;;  %v13353_v54 = vld [vmem:[#allocation81_spill] sm:$0xff] }
 0xac6   : > { %v11309_v14 = vpop.eup %8368  ;;  %v4165_v21 = vpack.c.b16 %v4164_v26, %v4163_v58 }
 0xac7   : > { %v4079_v39 = vpop.xlane.xlu0 %4078  ;;  %v4110_v2 = vsel %vm2176_vm5, %v11309_v14, 0.0  ;;  %v8371_v0 = vpop.eup %8370 }
 0xac8   : > { %4111 = vadd.xlane.f32.xlu1 %v4110_v2  ;;  %7472 = vmatmul.msk.bf16.vlgmr.msra.gmra.mxu2 %vm2176_vm5, %v4165_v21  ;;  %v4131_v32 = vmul.f32 %v8371_v0, %v11225_v63 }
 0xaca   : > { %v4147_v43 = vpack.c.bf16 %v4131_v32, %v4131_v32  ;;  %v8062_v32 = vpack.i.bf16 %v11132_v60, %v11125_v50  ;;  %v8077_v50 = vpack.i.bf16 %v11156_v19, %v11152_v34  ;;  %v13360_v34 = vld [vmem:[#allocation83_spill] sm:$0xff]  ;;  %v13361_v19 = vld [vmem:[#allocation85_spill] sm:$0xff] }
 0xacc   : > { %v4188_v3 = vunpack.c.l.b16 %v4147_v43  ;;  %v13355_v43 = vld [vmem:[#allocation66_spill] sm:$0xff] }
 0xacf   : > { %4341 = vrot.lane.b32.xlu0 %v13315_v35, %s9156_s13  ;;  %v4076_v28 = vpop.xlane.xlu0 %4075  ;;  %v7987_v35 = vpack.i.bf16 %v11110_v31, %v11107_v57 }
 0xad0   : > { %8372 = vrcp.f32 %v4076_v28 }
 0xad1   : > { %8374 = vrcp.f32 %v4079_v39 }
 0xad2   : > { %v4085_v57 = vpop.xlane.xlu1 %4084 }
 0xad5   : > { %4316 = vrot.lane.b32.xlu2 %v13316_v25, %s9156_s13  ;;  %v13348_v25 = vld [vmem:[#allocation61_spill] sm:$0xff] }
 0xad6   : > { %v8373_v33 = vpop.eup %8372  ;;  %v7982_v49 = vpack.i.bf16 %v13349_v42, %v13348_v25  ;;  %v8092_v25 = vpack.i.bf16 %v11163_v1, %v11158_v9  ;;  %v13358_v42 = vld [vmem:[#allocation82_spill] sm:$0xff] }
 0xad7   : > { %v4132_v4 = vmul.f32 %v8373_v33, %v11247_v12  ;;  %8003 = vrot.lane.b32.xlu0 %v8002_v46, %s9155_s28  ;;  %v8375_v7 = vpop.eup %8374 }
 0xad8   : > { %v4091_v15 = vpop.xlane.xlu2 %4090  ;;  %v4133_v31 = vmul.f32 %v8375_v7, %v11242_v37  ;;  %v8087_v7 = vpack.i.bf16 %v13361_v19, %v13360_v34 }
 0xad9   : > { %v4148_v27 = vpack.c.bf16 %v4132_v4, %v4132_v4 }
 0xada   : > { %v4149_v47 = vpack.c.bf16 %v4133_v31, %v4133_v31 }
 0xadb   : > { %v4189_v63 = vunpack.c.l.b16 %v4148_v27 }
 0xadc   : > { %v4213_v5 = vunpack.c.l.b16 %v4149_v47 }
 0xadd   : > { %v4190_v51 = vpack.c.b16 %v4189_v63, %v4188_v3  ;;  %7988 = vrot.lane.b32.xlu2 %v7987_v35, %s9155_s28  ;;  %v13356_v63 = vld [vmem:[#allocation57_spill] sm:$0xff] }
 0xadf   : > { %8018 = vrot.lane.b32.xlu0 %v8017_v45, %s9155_s28  ;;  %7473 = vmatmul.msk.bf16.vlgmr.msra.gmra.mxu3 %vm2176_vm5, %v4190_v51  ;;  %v13357_v45 = vld [vmem:[#allocation56_spill] sm:$0xff] }
 0xae0   : > { %v4082_v12 = vpop.xlane.xlu2 %4081  ;;  %v8057_v51 = vpack.i.bf16 %v13357_v45, %v13356_v63  ;;  %v7740_v63 = vld [vmem:[%s9598_s16 + $0x10] sm:$0xff] }
 0xae1   : > { %8376 = vrcp.f32 %v4082_v12  ;;  %7983 = vrot.lane.b32.xlu1 %v7982_v49, %s9156_s13  ;;  %v13359_v49 = vld [vmem:[#allocation84_spill] sm:$0xff] }
 0xae2   : > { %8378 = vrcp.f32 %v4091_v15  ;;  %v8072_v12 = vpack.i.bf16 %v13359_v49, %v13358_v42  ;;  %v7738_v49 = vld [vmem:[%s9598_s16] sm:$0xff] }
 0xae7   : > { %v8377_v61 = vpop.eup %8376  ;;  %8033 = vrot.lane.b32.xlu0 %v8032_v36, %s9155_s28 }
 0xae8   : > { %v4134_v52 = vmul.f32 %v8377_v61, %v11262_v18  ;;  %v4094_v62 = vpop.xlane.xlu2 %4093  ;;  %v4097_v53 = vpop.xlane.xlu0 %4096  ;;  %v13352_v18 = vld [vmem:[#allocation79_spill] sm:$0xff] }
 0xae9   : > { %v8379_v13 = vpop.eup %8378  ;;  %8380 = vrcp.f32 %v4094_v62  ;;  %8013 = vrot.lane.b32.xlu1 %v8012_v30, %s9156_s13  ;;  %v8027_v26 = vpack.i.bf16 %v13353_v54, %v13352_v18 }
 0xaea   : > { %v4150_v24 = vpack.c.bf16 %v4134_v52, %v4134_v52  ;;  %v4267_v37 = vpop.permute.xlu1 %4266  ;;  %8382 = vrcp.f32 %v4085_v57  ;;  %v4137_v44 = vmul.f32 %v8379_v13, %v11257_v29 }
 0xaeb   : > { %4279 = vmatpush.bf16.msrb.mxu2 %v4267_v37 }
 0xaec   : > { %v4214_v8 = vunpack.c.l.b16 %v4150_v24  ;;  %v4153_v58 = vpack.c.bf16 %v4137_v44, %v4137_v44 }
 0xaee   : > { %v4215_v40 = vpack.c.b16 %v4214_v8, %v4213_v5  ;;  %v4263_v29 = vunpack.c.l.b16 %v4153_v58 }
 0xaef   : > { %v8381_v11 = vpop.eup %8380  ;;  %8048 = vrot.lane.b32.xlu0 %v8047_v48, %s9155_s28 }
 0xaf0   : > { %v4138_v21 = vmul.f32 %v8381_v11, %v11267_v38  ;;  %v4242_v39 = vpop.permute.xlu2 %4241  ;;  %7474 = vmatmul.msk.bf16.vlgmr.msrb.gmra.mxu0 %vm2176_vm5, %v4215_v40  ;;  %v4088_v2 = vpop.xlane.xlu0 %4087  ;;  %v13354_v38 = vld [vmem:[#allocation60_spill] sm:$0xff] }
 0xaf1   : > { %v8383_v28 = vpop.eup %8382  ;;  %8384 = vrcp.f32 %v4088_v2  ;;  %4254 = vmatpush.bf16.msra.mxu1 %v4242_v39  ;;  %8028 = vrot.lane.b32.xlu1 %v8027_v26, %s9156_s13  ;;  %v8042_v4 = vpack.i.bf16 %v13355_v43, %v13354_v38  ;;  %v7745_v43 = vld [vmem:[%s9598_s16 + $0x38] sm:$0xff] }
 0xaf2   : > { %v4154_v6 = vpack.c.bf16 %v4138_v21, %v4138_v21  ;;  %v4135_v55 = vmul.f32 %v8383_v28, %v11253_v41  ;;  %7786 = vmatpush.bf16.msra.mxu2 %v7745_v43 }
 0xaf4   : > { %v4264_v0 = vunpack.c.l.b16 %v4154_v6  ;;  %v4151_v15 = vpack.c.bf16 %v4135_v55, %v4135_v55 }
 0xaf6   : > { %v4265_v46 = vpack.c.b16 %v4264_v0, %v4263_v29  ;;  %v4238_v35 = vunpack.c.l.b16 %v4151_v15  ;;  %v13363_v0 = vld [vmem:[#allocation49_spill] sm:$0xff] }
 0xaf7   : > { %v8385_v33 = vpop.eup %8384  ;;  %8063 = vrot.lane.b32.xlu0 %v8062_v32, %s9155_s28 }
 0xaf8   : > { %v4136_v27 = vmul.f32 %v8385_v33, %v11278_v22  ;;  %7476 = vmatmul.msk.bf16.vlgmr.msrb.gmra.mxu2 %vm2176_vm5, %v4265_v46 }
 0xaf9   : > { %8043 = vrot.lane.b32.xlu1 %v8042_v4, %s9156_s13  ;;  %v7744_v4 = vld [vmem:[%s9598_s16 + $0x30] sm:$0xff] }
 0xafa   : > { %v4152_v41 = vpack.c.bf16 %v4136_v27, %v4136_v27  ;;  %7788 = vmatpush.bf16.msra.mxu2 %v7744_v4 }
 0xafc   : > { %v4239_v3 = vunpack.c.l.b16 %v4152_v41  ;;  %v7743_v41 = vld [vmem:[%s9598_s16 + $0x28] sm:$0xff] }
 0xafe   : > { %v4240_v60 = vpack.c.b16 %v4239_v3, %v4238_v35  ;;  %v7742_v35 = vld [vmem:[%s9598_s16 + $0x20] sm:$0xff]  ;;  %7790 = vmatpush.bf16.msra.mxu2 %v7743_v41 }
 0xaff   : > { %8078 = vrot.lane.b32.xlu0 %v8077_v50, %s9155_s28  ;;  %v7741_v50 = vld [vmem:[%s9598_s16 + $0x18] sm:$0xff] }
 0xb00   : > { %7475 = vmatmul.msk.bf16.vlgmr.msra.gmra.mxu1 %vm2176_vm5, %v4240_v60 }
 0xb01   : > { %8058 = vrot.lane.b32.xlu1 %v8057_v51, %s9156_s13 }
 0xb02   : > { %7792 = vmatpush.bf16.msra.mxu2 %v7742_v35 }
 0xb03   : > { %v4292_v22 = vpop.permute.xlu0 %4291 }
 0xb04   : > { %4304 = vmatpush.bf16.msrb.mxu3 %v4292_v22  ;;  %v7739_v22 = vld [vmem:[%s9598_s16 + $0x8] sm:$0xff]  ;;  %s13376_s16 = scalar_lea.vmem [#allocation16], %s9577_s12 }
 0xb06   : > { %7794 = vmatpush.bf16.msra.mxu2 %v7741_v50 }
 0xb07   : > { %8093 = vrot.lane.b32.xlu0 %v8092_v25, %s9155_s28 }
 0xb08   : > { %7787 = vmatpush.bf16.msra.mxu3 %v7745_v43 }
 0xb09   : > { %8073 = vrot.lane.b32.xlu1 %v8072_v12, %s9156_s13 }
 0xb0a   : > { %7796 = vmatpush.bf16.msra.mxu2 %v7740_v63 }
 0xb0c   : > { %7789 = vmatpush.bf16.msra.mxu3 %v7744_v4 }
 0xb0e   : > { %7798 = vmatpush.bf16.msra.mxu2 %v7739_v22 }
 0xb10   : > { %7791 = vmatpush.bf16.msra.mxu3 %v7743_v41 }
 0xb11   : > { %8088 = vrot.lane.b32.xlu1 %v8087_v7, %s9156_s13 }
 0xb12   : > { %7800 = vmatpush.bf16.msra.mxu2 %v7738_v49 }
 0xb14   : > { %7793 = vmatpush.bf16.msra.mxu3 %v7742_v35 }
 0xb15   : > { %v4103_v57 = vpop.xlane.xlu1 %4102 }
 0xb16   : > { %8386 = vrcp.f32 %v4103_v57  ;;  %v13364_v57 = vld [vmem:[#allocation69_spill] sm:$0xff] }
 0xb17   : > { %8388 = vrcp.f32 %v4097_v53 }
 0xb18   : > { %7795 = vmatpush.bf16.msra.mxu3 %v7741_v50 }
 0xb1c   : > { %v8387_v36 = vpop.eup %8386  ;;  %7797 = vmatpush.bf16.msra.mxu3 %v7740_v63 }
 0xb1d   : > { %v8389_v9 = vpop.eup %8388  ;;  %v4141_v1 = vmul.f32 %v8387_v36, %v11288_v59  ;;  %v4109_v17 = vpop.xlane.xlu1 %4108  ;;  %v13365_v36 = vld [vmem:[#allocation68_spill] sm:$0xff] }
 0xb1e   : > { %v4139_v16 = vmul.f32 %v8389_v9, %v11270_v20 }
 0xb1f   : > { %v4157_v47 = vpack.c.bf16 %v4141_v1, %v4141_v1 }
 0xb20   : > { %v4155_v13 = vpack.c.bf16 %v4139_v16, %v4139_v16  ;;  %7799 = vmatpush.bf16.msra.mxu3 %v7739_v22 }
 0xb21   : > { %v4313_v5 = vunpack.c.l.b16 %v4157_v47 }
 0xb22   : > { %v4288_v40 = vunpack.c.l.b16 %v4155_v13 }
 0xb24   : > { %7801 = vmatpush.bf16.msra.mxu3 %v7738_v49 }
 0xb2e   : > { %v4106_v31 = vpop.xlane.xlu0 %4105 }
 0xb2f   : > { %8390 = vrcp.f32 %v4106_v31 }
 0xb30   : > { %v4100_v61 = vpop.xlane.xlu2 %4099 }
 0xb31   : > { %8392 = vrcp.f32 %v4100_v61 }
 0xb32   : > { %8394 = vrcp.f32 %v4109_v17 }
 0xb35   : > { %v8391_v30 = vpop.eup %8390 }
 0xb36   : > { %v4142_v52 = vmul.f32 %v8391_v30, %v11298_v10 }
 0xb37   : > { %v8393_v62 = vpop.eup %8392 }
 0xb38   : > { %v4158_v24 = vpack.c.bf16 %v4142_v52, %v4142_v52  ;;  %v4140_v53 = vmul.f32 %v8393_v62, %v11302_v56  ;;  %v4317_v37 = vpop.permute.xlu2 %4316  ;;  %v8395_v59 = vpop.eup %8394 }
 0xb39   : > { %4329 = vmatpush.bf16.msra.mxu0 %v4317_v37  ;;  %v4143_v10 = vmul.f32 %v8395_v59, %v11292_v23  ;;  %v13362_v23 = vld [vmem:[#allocation53_spill] sm:$0xff] }
 0xb3a   : > { %v4314_v44 = vunpack.c.l.b16 %v4158_v24  ;;  %v4156_v8 = vpack.c.bf16 %v4140_v53, %v4140_v53  ;;  %v7997_v32 = vpack.i.bf16 %v13363_v0, %v13362_v23 }
 0xb3b   : > { %v4112_v48 = vpop.xlane.xlu1 %4111  ;;  %v4159_v26 = vpack.c.bf16 %v4143_v10, %v4143_v10 }
 0xb3c   : > { %v4315_v11 = vpack.c.b16 %v4314_v44, %v4313_v5  ;;  %v4289_v20 = vunpack.c.l.b16 %v4156_v8  ;;  %8396 = vrcp.f32 %v4112_v48  ;;  %v13366_v48 = vld [vmem:[#allocation73_spill] sm:$0xff] }
 0xb3d   : > { %v4338_v39 = vunpack.c.l.b16 %v4159_v26  ;;  %4675 = vmatpush.bf16.msrb.mxu0 %v7745_v43 }
 0xb3e   : > { %v4290_v18 = vpack.c.b16 %v4289_v20, %v4288_v40  ;;  %7478 = vmatmul.msk.bf16.vlgmr.msra.gmra.mxu0 %vm2176_vm5, %v4315_v11  ;;  %v13367_v40 = vld [vmem:[#allocation71_spill] sm:$0xff] }
 0xb40   : > { %7477 = vmatmul.msk.bf16.vlgmr.msrb.gmra.mxu3 %vm2176_vm5, %v4290_v18  ;;  %v7989_v12 = vpop.permute.xlu2 %7988 }
 0xb41   : > { %v4342_v54 = vpop.permute.xlu0 %4341  ;;  %4676 = vmatpush.bf16.msrb.mxu0 %v7744_v4  ;;  %v7991_v9 = vunpack.i.h.bf16 %v7989_v12  ;;  %v7990_v1 = vunpack.i.l.bf16 %v7989_v12 }
 0xb42   : > { %v8397_v56 = vpop.eup %8396  ;;  %4354 = vmatpush.bf16.msrb.mxu1 %v4342_v54 }
 0xb43   : > { %v4144_v58 = vmul.f32 %v8397_v56, %v11309_v14 }
 0xb45   : > { %v4160_v21 = vpack.c.bf16 %v4144_v58, %v4144_v58  ;;  %4677 = vmatpush.bf16.msrb.mxu0 %v7743_v41 }
 0xb47   : > { %v4339_v2 = vunpack.c.l.b16 %v4160_v21 }
 0xb49   : > { %v4340_v28 = vpack.c.b16 %v4339_v2, %v4338_v39  ;;  %4678 = vmatpush.bf16.msrb.mxu0 %v7742_v35  ;;  %v8004_v8 = vpop.permute.xlu0 %8003 }
 0xb4a   : > { %v8006_v20 = vunpack.i.h.bf16 %v8004_v8  ;;  %v8005_v18 = vunpack.i.l.bf16 %v8004_v8  ;;  %v13372_v8 = vld [vmem:[#allocation72_spill] sm:$0xff] }
 0xb4b   : > { %v4181_v6 = vpop.f32.mrf.mxu2  ;;  %7479 = vmatmul.msk.bf16.vlgmr.msrb.gmra.mxu1 %vm2176_vm5, %v4340_v28 }
 0xb4d   : > { %4679 = vmatpush.bf16.msrb.mxu0 %v7741_v50 }
 0xb51   : > { %4680 = vmatpush.bf16.msrb.mxu0 %v7740_v63 }
 0xb53   : > { %v4183_v55 = vpop.f32.mrf.mxu2  ;;  %v7984_v34 = vpop.permute.xlu1 %7983 }
 0xb54   : > { %v7992_v29 = vpack.i.bf16 %v4183_v55, %v4181_v6  ;;  %v7986_v19 = vunpack.i.h.bf16 %v7984_v34  ;;  %v7985_v7 = vunpack.i.l.bf16 %v7984_v34 }
 0xb55   : > { %4681 = vmatpush.bf16.msrb.mxu0 %v7739_v22 }
 0xb56   : > { %7993 = vrot.lane.b32.xlu2 %v7992_v29, %s9154_s17  ;;  %v4554_v31 = vsel %vm1945_vm8, %v13364_v57, %v7986_v19  ;;  %v4553_v61 = vsel %vm1945_vm8, %v13365_v36, %v7985_v7  ;;  %v13370_v7 = vld [vmem:[#allocation59_spill] sm:$0xff] }
 0xb57   : > { %v4570_v47 = vsel %vm4569_vm6, %v4553_v61, %v7990_v1  ;;  %v4571_v52 = vsel %vm4569_vm6, %v4554_v31, %v7991_v9  ;;  %v13371_v31 = vld [vmem:[#allocation54_spill] sm:$0xff] }
 0xb59   : > { %4682 = vmatpush.bf16.msrb.mxu0 %v7738_v49 }
 0xb5b   : > { %v8014_v39 = vpop.permute.xlu1 %8013 }
 0xb5c   : > { %v8016_v23 = vunpack.i.h.bf16 %v8014_v39  ;;  %v8015_v0 = vunpack.i.l.bf16 %v8014_v39 }
 0xb5e   : > { %7998 = vrot.lane.b32.xlu2 %v7997_v32, %s9156_s13  ;;  %v8019_v32 = vpop.permute.xlu0 %8018 }
 0xb62   : > { %v4206_v14 = vpop.f32.mrf.mxu3 }
 0xb66   : > { %v8034_v19 = vpop.permute.xlu0 %8033 }
 0xb67   : > { %v8036_v61 = vunpack.i.h.bf16 %v8034_v19  ;;  %v8035_v9 = vunpack.i.l.bf16 %v8034_v19 }
 0xb6a   : > { %v4208_v46 = vpop.f32.mrf.mxu3 }
 0xb6b   : > { %v8007_v33 = vpack.i.bf16 %v4208_v46, %v4206_v14  ;;  %v13368_v46 = vld [vmem:[#allocation63_spill] sm:$0xff] }
 0xb6d   : > { %v4231_v38 = vpop.f32.mrf.mxu0  ;;  %8008 = vrot.lane.b32.xlu2 %v8007_v33, %s9154_s17  ;;  %v4558_v33 = vsel %vm1945_vm8, %v13368_v46, %v8016_v23  ;;  %v13375_v23 = vld [vmem:[#allocation74_spill] sm:$0xff] }
 0xb75   : > { %v4233_v15 = vpop.f32.mrf.mxu0 }
 0xb76   : > { %v8022_v27 = vpack.i.bf16 %v4233_v15, %v4231_v38  ;;  %v13369_v38 = vld [vmem:[#allocation62_spill] sm:$0xff]  ;;  %v8021_v15 = vunpack.i.h.bf16 %v8019_v32 }
 0xb77   : > { %v4557_v43 = vsel %vm1945_vm8, %v13369_v38, %v8015_v0 }
 0xb78   : > { %8023 = vrot.lane.b32.xlu2 %v8022_v27, %s9154_s17  ;;  %v8020_v27 = vunpack.i.l.bf16 %v8019_v32  ;;  %v4575_v63 = vsel %vm4569_vm6, %v4558_v33, %v8021_v15 }
 0xb7b   : > { %v4281_v60 = vpop.f32.mrf.mxu2 }
 0xb7d   : > { %v4256_v3 = vpop.f32.mrf.mxu1 }
 0xb83   : > { %v4283_v25 = vpop.f32.mrf.mxu2 }
 0xb84   : > { %v8052_v42 = vpack.i.bf16 %v4283_v25, %v4281_v60  ;;  %v4574_v60 = vsel %vm4569_vm6, %v4557_v43, %v8020_v27 }
 0xb85   : > { %v4258_v45 = vpop.f32.mrf.mxu1 }
 0xb86   : > { %v8037_v51 = vpack.i.bf16 %v4258_v45, %v4256_v3 }
 0xb88   : > { %8038 = vrot.lane.b32.xlu2 %v8037_v51, %s9154_s17 }
 0xb90   : > { %8053 = vrot.lane.b32.xlu2 %v8052_v42, %s9154_s17  ;;  %v8029_v42 = vpop.permute.xlu1 %8028 }
 0xb91   : > { %v8031_v12 = vunpack.i.h.bf16 %v8029_v42  ;;  %v8030_v34 = vunpack.i.l.bf16 %v8029_v42  ;;  %v13377_v42 = vld [vmem:[#allocation77_spill] sm:$0xff] }
 0xb93   : > { %v4560_v57 = vsel %vm1945_vm8, %v13370_v7, %v8031_v12  ;;  %v4559_v36 = vsel %vm1945_vm8, %v13371_v31, %v8030_v34  ;;  %v13378_v12 = vld [vmem:[#allocation76_spill] sm:$0xff] }
 0xbb0   : > { %v7994_v17 = vpop.permute.xlu2 %7993 }
 0xbb1   : > { %v7996_v16 = vunpack.i.h.bf16 %v7994_v17  ;;  %v7995_v30 = vunpack.i.l.bf16 %v7994_v17 }
 0xbb3   : > { %v4588_v62 = vsel %vm4586_vm7, %v4571_v52, %v7996_v16  ;;  %v4587_v13 = vsel %vm4586_vm7, %v4570_v47, %v7995_v30  ;;  %v4576_v30 = vsel %vm4569_vm6, %v4559_v36, %v8035_v9  ;;  %v4577_v47 = vsel %vm4569_vm6, %v4560_v57, %v8036_v61 }
 0xbb4   : > { %v4603_v24 = vpack.c.bf16 %v4588_v62, %v4587_v13 }
 0xbb6   : > { %4683 = vmatmul.bf16.vlgmr.msrb.gmra.mxu0 %v4603_v24  ;;  %v8044_v24 = vpop.permute.xlu1 %8043 }
 0xbb8   : > { %v7999_v53 = vpop.permute.xlu2 %7998 }
 0xbb9   : > { %v8001_v37 = vunpack.i.h.bf16 %v7999_v53  ;;  %v8000_v5 = vunpack.i.l.bf16 %v7999_v53  ;;  %v8046_v53 = vunpack.i.h.bf16 %v8044_v24 }
 0xbbb   : > { %v4556_v59 = vsel %vm1945_vm8, %v13366_v48, %v8001_v37  ;;  %v4555_v11 = vsel %vm1945_vm8, %v13367_v40, %v8000_v5  ;;  %v4331_v10 = vpop.f32.mrf.mxu0  ;;  %v8045_v37 = vunpack.i.l.bf16 %v8044_v24  ;;  %v4562_v48 = vsel %vm1945_vm8, %v13372_v8, %v8046_v53 }
 0xbbc   : > { %v4572_v58 = vsel %vm4569_vm6, %v4555_v11, %v8005_v18  ;;  %v4573_v21 = vsel %vm4569_vm6, %v4556_v59, %v8006_v20  ;;  %v13373_v59 = vld [vmem:[#allocation70_spill] sm:$0xff] }
 0xbbd   : > { %v4561_v40 = vsel %vm1945_vm8, %v13373_v59, %v8045_v37 }
 0xbbe   : > { %v8059_v39 = vpop.permute.xlu1 %8058 }
 0xbc3   : > { %v4306_v44 = vpop.f32.mrf.mxu3  ;;  %v4333_v4 = vpop.f32.mrf.mxu0 }
 0xbc4   : > { %v8082_v50 = vpack.i.bf16 %v4333_v4, %v4331_v10 }
 0xbc7   : > { %v8009_v54 = vpop.permute.xlu2 %8008 }
 0xbc8   : > { %v8011_v56 = vunpack.i.h.bf16 %v8009_v54  ;;  %v8010_v26 = vunpack.i.l.bf16 %v8009_v54  ;;  %v4356_v14 = vpop.f32.mrf.mxu1 }
 0xbca   : > { %v4589_v2 = vsel %vm4586_vm7, %v4572_v58, %v8010_v26  ;;  %v4590_v28 = vsel %vm4586_vm7, %v4573_v21, %v8011_v56 }
 0xbcb   : > { %v4308_v6 = vpop.f32.mrf.mxu3  ;;  %v4604_v55 = vpack.c.bf16 %v4590_v28, %v4589_v2  ;;  %v8061_v2 = vunpack.i.h.bf16 %v8059_v39  ;;  %v8060_v28 = vunpack.i.l.bf16 %v8059_v39 }
 0xbcc   : > { %v8067_v29 = vpack.i.bf16 %v4308_v6, %v4306_v44  ;;  %v8049_v44 = vpop.permute.xlu0 %8048 }
 0xbcd   : > { %4688 = vmatmul.bf16.gmra.mxu0 %v4604_v55  ;;  %v8051_v18 = vunpack.i.h.bf16 %v8049_v44  ;;  %v8050_v10 = vunpack.i.l.bf16 %v8049_v44  ;;  %v13374_v55 = vld [vmem:[#allocation75_spill] sm:$0xff]  ;;  %v4563_v0 = vsel %vm1945_vm8, %v13375_v23, %v8060_v28  ;;  %v13379_v44 = vld [vmem:[#allocation78_spill] sm:$0xff] }
 0xbce   : > { %8068 = vrot.lane.b32.xlu2 %v8067_v29, %s9154_s17  ;;  %v4564_v29 = vsel %vm1945_vm8, %v13374_v55, %v8061_v2  ;;  %v8577_v55 = vld [vmem:[#allocation2 + $0x18] sm:$0xff] }
 0xbcf   : > { %v4578_v54 = vsel %vm4569_vm6, %v4561_v40, %v8050_v10  ;;  %v4579_v56 = vsel %vm4569_vm6, %v4562_v48, %v8051_v18  ;;  %v13380_v48 = vld [vmem:[#allocation64_spill] sm:$0xff] }
 0xbd0   : > { %v4358_v25 = vpop.f32.mrf.mxu1 }
 0xbd1   : > { %v8097_v49 = vpack.i.bf16 %v4358_v25, %v4356_v14 }
 0xbd2   : > { %v8024_v41 = vpop.permute.xlu2 %8023 }
 0xbd3   : > { %v8026_v35 = vunpack.i.h.bf16 %v8024_v41  ;;  %v8025_v3 = vunpack.i.l.bf16 %v8024_v41 }
 0xbd4   : > { %v8064_v6 = vpop.permute.xlu0 %8063 }
 0xbd5   : > { %v4591_v45 = vsel %vm4586_vm7, %v4574_v60, %v8025_v3  ;;  %v4592_v51 = vsel %vm4586_vm7, %v4575_v63, %v8026_v35  ;;  %v8066_v32 = vunpack.i.h.bf16 %v8064_v6  ;;  %v8065_v14 = vunpack.i.l.bf16 %v8064_v6  ;;  %v8074_v35 = vpop.permute.xlu1 %8073  ;;  %v11453_v63 = vld [vmem:[%s13376_s16] ss:$0 sm:$0xff] }
 0xbd6   : > { %v4605_v22 = vpack.c.bf16 %v4592_v51, %v4591_v45  ;;  %8083 = vrot.lane.b32.xlu2 %v8082_v50, %s9154_s17  ;;  %v8076_v3 = vunpack.i.h.bf16 %v8074_v35  ;;  %v8075_v50 = vunpack.i.l.bf16 %v8074_v35 }
 0xbd7   : > { %v4580_v43 = vsel %vm4569_vm6, %v4563_v0, %v8065_v14  ;;  %v4581_v4 = vsel %vm4569_vm6, %v4564_v29, %v8066_v32  ;;  %v8578_v32 = vld [vmem:[#allocation2 + $0x50] sm:$0xff] }
 0xbd8   : > { %4693 = vmatmul.bf16.vlgmr.msra.gmra.mxu2 %v4605_v22  ;;  %v8574_v22 = vld [vmem:[#allocation2 + $0x30] sm:$0xff]  ;;  %v4565_v34 = vsel %vm1945_vm8, %v13378_v12, %v8075_v50  ;;  %v13381_v50 = vld [vmem:[#allocation48_spill] sm:$0xff] }
 0xbdc   : > { %v8079_v45 = vpop.permute.xlu0 %8078 }
 0xbdd   : > { %v8081_v57 = vunpack.i.h.bf16 %v8079_v45  ;;  %v8080_v31 = vunpack.i.l.bf16 %v8079_v45 }
 0xbde   : > { %8098 = vrot.lane.b32.xlu2 %v8097_v49, %s9154_s17  ;;  %v4566_v49 = vsel %vm1945_vm8, %v13377_v42, %v8076_v3  ;;  %v8581_v42 = vld [vmem:[#allocation2 + $0x48] sm:$0xff] }
 0xbdf   : > { %v4582_v61 = vsel %vm4569_vm6, %v4565_v34, %v8080_v31  ;;  %v4583_v9 = vsel %vm4569_vm6, %v4566_v49, %v8081_v57  ;;  %v8582_v31 = vld [vmem:[#allocation2 + $0x40] sm:$0xff] }
 0xbe2   : > { %v8039_v1 = vpop.permute.xlu2 %8038 }
 0xbe3   : > { %v8041_v17 = vunpack.i.h.bf16 %v8039_v1  ;;  %v8040_v16 = vunpack.i.l.bf16 %v8039_v1 }
 0xbe5   : > { %v4593_v52 = vsel %vm4586_vm7, %v4576_v30, %v8040_v16  ;;  %v4594_v62 = vsel %vm4586_vm7, %v4577_v47, %v8041_v17  ;;  %v8575_v30 = vld [vmem:[#allocation2] sm:$0xff] }
 0xbe6   : > { %v4606_v13 = vpack.c.bf16 %v4594_v62, %v4593_v52  ;;  %v8089_v62 = vpop.permute.xlu1 %8088 }
 0xbe7   : > { %v8091_v24 = vunpack.i.h.bf16 %v8089_v62  ;;  %v8090_v53 = vunpack.i.l.bf16 %v8089_v62 }
 0xbe8   : > { %4698 = vmatmul.bf16.gmra.mxu2 %v4606_v13 }
 0xbe9   : > { %v4568_v8 = vsel %vm1945_vm8, %v13379_v44, %v8091_v24  ;;  %v4567_v59 = vsel %vm1945_vm8, %v13380_v48, %v8090_v53  ;;  %v8583_v24 = vld [vmem:[#allocation2 + $0x20] sm:$0xff]  ;;  %v8584_v48 = vld [vmem:[#allocation2 + $0x10] sm:$0xff] }
 0xbea   : > { %v8054_v5 = vpop.permute.xlu2 %8053 }
 0xbeb   : > { %v8056_v11 = vunpack.i.h.bf16 %v8054_v5  ;;  %v8055_v20 = vunpack.i.l.bf16 %v8054_v5  ;;  %v8094_v5 = vpop.permute.xlu0 %8093 }
 0xbec   : > { %v8095_v18 = vunpack.i.l.bf16 %v8094_v5 }
 0xbed   : > { %v4595_v26 = vsel %vm4586_vm7, %v4578_v54, %v8055_v20  ;;  %v4596_v58 = vsel %vm4586_vm7, %v4579_v56, %v8056_v11  ;;  %v8096_v20 = vunpack.i.h.bf16 %v8094_v5 }
 0xbee   : > { %v4607_v21 = vpack.c.bf16 %v4596_v58, %v4595_v26  ;;  %v4584_v10 = vsel %vm4569_vm6, %v4567_v59, %v8095_v18 }
 0xbef   : > { %v4585_v54 = vsel %vm4569_vm6, %v4568_v8, %v8096_v20 }
 0xbf8   : > { %4703 = vmatmul.bf16.gmra.mxu2 %v4607_v21  ;;  %v8576_v21 = vld [vmem:[#allocation2 + $0x58] sm:$0xff] }
 0xc28   : > { %v8069_v46 = vpop.permute.xlu2 %8068 }
 0xc29   : > { %v8071_v33 = vunpack.i.h.bf16 %v8069_v46  ;;  %v8070_v38 = vunpack.i.l.bf16 %v8069_v46 }
 0xc2b   : > { %v4597_v15 = vsel %vm4586_vm7, %v4580_v43, %v8070_v38  ;;  %v4598_v27 = vsel %vm4586_vm7, %v4581_v4, %v8071_v33  ;;  %v8579_v38 = vld [vmem:[#allocation2 + $0x68] sm:$0xff] }
 0xc2c   : > { %v4608_v41 = vpack.c.bf16 %v4598_v27, %v4597_v15  ;;  %v8580_v27 = vld [vmem:[#allocation2 + $0x8] sm:$0xff] }
 0xc2e   : > { %4708 = vmatmul.bf16.vlgmr.msra.gmra.mxu3 %v4608_v41 }
 0xc30   : > { %v8084_v60 = vpop.permute.xlu2 %8083 }
 0xc31   : > { %v8086_v19 = vunpack.i.h.bf16 %v8084_v60  ;;  %v8085_v7 = vunpack.i.l.bf16 %v8084_v60 }
 0xc33   : > { %v4684_v51 = vpop.f32.mrf.mxu0  ;;  %v4599_v1 = vsel %vm4586_vm7, %v4582_v61, %v8085_v7  ;;  %v4600_v17 = vsel %vm4586_vm7, %v4583_v9, %v8086_v19 }
 0xc34   : > { %v4724_v25 = vadd.f32 %v8574_v22, %v4684_v51  ;;  %v4609_v52 = vpack.c.bf16 %v4600_v17, %v4599_v1 }
 0xc36   : > { %v11460_v36 = vadd.f32 %v11453_v63, %v4724_v25 }
 0xc38   : > { %4762 = vadd.xlane.f32.xlu1 %v11460_v36  ;;  %v8099_v37 = vpop.permute.xlu2 %8098 }
 0xc39   : > { %v8101_v40 = vunpack.i.h.bf16 %v8099_v37  ;;  %v8100_v11 = vunpack.i.l.bf16 %v8099_v37 }
 0xc3b   : > { %v4686_v16 = vpop.f32.mrf.mxu0  ;;  %v4601_v56 = vsel %vm4586_vm7, %v4584_v10, %v8100_v11  ;;  %v4602_v26 = vsel %vm4586_vm7, %v4585_v54, %v8101_v40 }
 0xc3c   : > { %v4725_v47 = vadd.f32 %v8575_v30, %v4686_v16  ;;  %v4610_v2 = vpack.c.bf16 %v4602_v26, %v4601_v56  ;;  %v8585_v26 = vld [vmem:[#allocation2 + $0x38] sm:$0xff] }
 0xc3e   : > { %v11468_v13 = vadd.f32 %v11453_v63, %v4725_v47  ;;  %4713 = vmatmul.bf16.gmra.mxu3 %v4609_v52 }
 0xc40   : > { %4764 = vadd.xlane.f32.xlu0 %v11468_v13 }
 0xc4a   : > { %v4689_v58 = vpop.f32.mrf.mxu0 }
 0xc4b   : > { %v4726_v39 = vadd.f32 %v8576_v21, %v4689_v58 }
 0xc4d   : > { %v11480_v28 = vadd.f32 %v11453_v63, %v4726_v39 }
 0xc4e   : > { %4718 = vmatmul.bf16.gmra.mxu3 %v4610_v2 }
 0xc4f   : > { %4766 = vadd.xlane.f32.xlu2 %v11480_v28 }
 0xc52   : > { %v4691_v6 = vpop.f32.mrf.mxu0 }
 0xc53   : > { %v4727_v29 = vadd.f32 %v8577_v55, %v4691_v6 }
 0xc55   : > { %v11484_v23 = vadd.f32 %v11453_v63, %v4727_v29 }
 0xc57   : > { %4768 = vadd.xlane.f32.xlu1 %v11484_v23 }
 0xc5b   : > { %v4694_v0 = vpop.f32.mrf.mxu2 }
 0xc5c   : > { %v4728_v14 = vadd.f32 %v8578_v32, %v4694_v0  ;;  %v8586_v0 = vld [vmem:[#allocation2 + $0x60] sm:$0xff] }
 0xc5e   : > { %v11488_v46 = vadd.f32 %v11453_v63, %v4728_v14 }
 0xc60   : > { %4770 = vadd.xlane.f32.xlu0 %v11488_v46 }
 0xc63   : > { %v4696_v33 = vpop.f32.mrf.mxu2 }
 0xc64   : > { %v4729_v43 = vadd.f32 %v8579_v38, %v4696_v33 }
 0xc66   : > { %v11492_v4 = vadd.f32 %v11453_v63, %v4729_v43 }
 0xc68   : > { %4772 = vadd.xlane.f32.xlu2 %v11492_v4 }
 0xc6b   : > { %v4699_v15 = vpop.f32.mrf.mxu2 }
 0xc6c   : > { %v4730_v41 = vadd.f32 %v8580_v27, %v4699_v15  ;;  %v8587_v27 = vld [vmem:[#allocation2 + $0x70] sm:$0xff] }
 0xc6e   : > { %v11496_v35 = vadd.f32 %v11453_v63, %v4730_v41 }
 0xc70   : > { %4774 = vadd.xlane.f32.xlu2 %v11496_v35 }
 0xc73   : > { %v4701_v51 = vpop.f32.mrf.mxu2 }
 0xc74   : > { %v4731_v49 = vadd.f32 %v8581_v42, %v4701_v51  ;;  %v8588_v51 = vld [vmem:[#allocation2 + $0x78] sm:$0xff] }
 0xc75   : > { %v7570_v42 = vld [vmem:[%s9609_s30 + $0x70] sm:$0xf] }
 0xc76   : > { %v11510_v19 = vadd.f32 %v11453_v63, %v4731_v49  ;;  %v7761_v49 = vld [vmem:[%s9609_s30 + $0x74] sm:$0xf0] }
 0xc7b   : > { %v4704_v57 = vpop.f32.mrf.mxu2 }
 0xc7c   : > { %v4732_v61 = vadd.f32 %v8582_v31, %v4704_v57  ;;  %v7572_v57 = vld [vmem:[%s9609_s30 + $0x78] sm:$0xf0] }
 0xc7e   : > { %v11516_v9 = vadd.f32 %v11453_v63, %v4732_v61  ;;  %v7562_v61 = vld [vmem:[%s9609_s30 + $0x60] sm:$0xf] }
 0xc83   : > { %v4706_v47 = vpop.f32.mrf.mxu2 }
 0xc84   : > { %v4733_v53 = vadd.f32 %v8583_v24, %v4706_v47  ;;  %v7564_v47 = vld [vmem:[%s9609_s30 + $0x68] sm:$0xf0]  ;;  %v7757_v24 = vld [vmem:[%s9609_s30 + $0x54] sm:$0xf0] }
 0xc86   : > { %v11530_v44 = vadd.f32 %v11453_v63, %v4733_v53  ;;  %v7756_v53 = vld [vmem:[%s9609_s30 + $0x54] sm:$0xf] }
 0xcab   : > { %v4763_v3 = vpop.xlane.xlu1 %4762 }
 0xcac   : > { %v4794_v60 = vmul.f32 %v4763_v3, %v13381_v50 }
 0xcae   : > { %v11501_v45 = vsub.f32 %v11460_v36, %v4794_v60 }
 0xcb0   : > { %v4826_v22 = vmul.f32 %v11501_v45, %v11501_v45 }
 0xcb1   : > { %v4709_v52 = vpop.f32.mrf.mxu3 }
 0xcb2   : > { %4842 = vadd.xlane.f32.xlu1 %v4826_v22  ;;  %v4734_v59 = vadd.f32 %v8584_v48, %v4709_v52 }
 0xcb3   : > { %v4765_v25 = vpop.xlane.xlu0 %4764 }
 0xcb4   : > { %v4795_v12 = vmul.f32 %v4765_v25, %v13381_v50  ;;  %v11540_v10 = vadd.f32 %v11453_v63, %v4734_v59  ;;  %v7546_v59 = vld [vmem:[%s9609_s30 + $0x40] sm:$0xf] }
 0xcb6   : > { %v11507_v34 = vsub.f32 %v11468_v13, %v4795_v12  ;;  %v7760_v12 = vld [vmem:[%s9609_s30 + $0x74] sm:$0xf] }
 0xcb7   : > { %v7575_v31 = vor.u32 %v7760_v12, %v7572_v57  ;;  %v7514_v57 = vld [vmem:[%s9609_s30] sm:$0xf] }
 0xcb8   : > { %v4827_v7 = vmul.f32 %v11507_v34, %v11507_v34 }
 0xcb9   : > { %v4711_v40 = vpop.f32.mrf.mxu3  ;;  %5279 = vmatpush.bf16.msra.mxu0 %v7575_v31  ;;  %v7747_v31 = vld [vmem:[%s9609_s30 + $0x4] sm:$0xf0] }
 0xcba   : > { %4844 = vadd.xlane.f32.xlu0 %v4827_v7  ;;  %4776 = vadd.xlane.f32.xlu1 %v11510_v19  ;;  %v4735_v58 = vadd.f32 %v8585_v26, %v4711_v40  ;;  %v7571_v7 = vor.u32 %v7761_v49, %v7570_v42  ;;  %v7755_v40 = vld [vmem:[%s9609_s30 + $0x44] sm:$0xf0]  ;;  %v7538_v26 = vld [vmem:[%s9609_s30 + $0x30] sm:$0xf]  ;;  %v7524_v42 = vld [vmem:[%s9609_s30 + $0x18] sm:$0xf0] }
 0xcbc   : > { %v11550_v6 = vadd.f32 %v11453_v63, %v4735_v58  ;;  %5230 = vmatpush.bf16.msrb.mxu3 %v7571_v7  ;;  %v7753_v58 = vld [vmem:[%s9609_s30 + $0x34] sm:$0xf0] }
 0xcc1   : > { %v4714_v39 = vpop.f32.mrf.mxu3 }
 0xcc2   : > { %v4767_v1 = vpop.xlane.xlu2 %4766  ;;  %4778 = vadd.xlane.f32.xlu1 %v11516_v9  ;;  %v4736_v32 = vadd.f32 %v8586_v0, %v4714_v39  ;;  %v7539_v39 = vor.u32 %v7753_v58, %v7538_v26  ;;  %v7530_v0 = vld [vmem:[%s9609_s30 + $0x20] sm:$0xf] }
 0xcc3   : > { %v4796_v17 = vmul.f32 %v4767_v1, %v13381_v50  ;;  %v7759_v1 = vld [vmem:[%s9609_s30 + $0x64] sm:$0xf0] }
 0xcc4   : > { %v11560_v43 = vadd.f32 %v11453_v63, %v4736_v32  ;;  %v7751_v32 = vld [vmem:[%s9609_s30 + $0x24] sm:$0xf0] }
 0xcc5   : > { %v11521_v16 = vsub.f32 %v11480_v28, %v4796_v17  ;;  %v7758_v17 = vld [vmem:[%s9609_s30 + $0x64] sm:$0xf] }
 0xcc6   : > { %13382 = vst [vmem:[#allocation89_spill] sm:$0xff] %v11560_v43  ;;  %v7567_v52 = vor.u32 %v7758_v17, %v7564_v47  ;;  %v7515_v17 = vor.u32 %v7747_v31, %v7514_v57  ;;  %v11629_v31 = vld [vmem:[%s13386_s19] ss:$0 sm:$0xff] }
 0xcc7   : > { %v4828_v30 = vmul.f32 %v11521_v16, %v11521_v16 }
 0xcc8   : > { %5280 = vmatpush.bf16.msra.mxu0 %v7567_v52 }
 0xcc9   : > { %4846 = vadd.xlane.f32.xlu0 %v4828_v30  ;;  %v4716_v38 = vpop.f32.mrf.mxu3  ;;  %v7563_v30 = vor.u32 %v7759_v1, %v7562_v61  ;;  %v7746_v61 = vld [vmem:[%s9609_s30 + $0x4] sm:$0xf] }
 0xcca   : > { %v4769_v62 = vpop.xlane.xlu1 %4768  ;;  %v4737_v41 = vadd.f32 %v8587_v27, %v4716_v38  ;;  %v7531_v38 = vor.u32 %v7751_v32, %v7530_v0 }
 0xccb   : > { %v4797_v37 = vmul.f32 %v4769_v62, %v13381_v50  ;;  %5231 = vmatpush.bf16.msrb.mxu3 %v7563_v30  ;;  %v7554_v62 = vld [vmem:[%s9609_s30 + $0x50] sm:$0xf]  ;;  %v7516_v30 = vld [vmem:[%s9609_s30 + $0x8] sm:$0xf0] }
 0xccc   : > { %v11566_v3 = vadd.f32 %v11453_v63, %v4737_v41  ;;  %v7522_v41 = vld [vmem:[%s9609_s30 + $0x10] sm:$0xf]  ;;  %v7519_v47 = vor.u32 %v7746_v61, %v7516_v30 }
 0xccd   : > { %v11527_v5 = vsub.f32 %v11484_v23, %v4797_v37  ;;  %v7555_v37 = vor.u32 %v7757_v24, %v7554_v62 }
 0xcce   : > { %13383 = vst [vmem:[#allocation50_spill] sm:$0xff] %v11566_v3 }
 0xccf   : > { %v4829_v8 = vmul.f32 %v11527_v5, %v11527_v5  ;;  %5232 = vmatpush.bf16.msrb.mxu3 %v7555_v37 }
 0xcd1   : > { %4780 = vadd.xlane.f32.xlu0 %v11530_v44  ;;  %4848 = vadd.xlane.f32.xlu2 %v4829_v8  ;;  %v4719_v60 = vpop.f32.mrf.mxu3  ;;  %v7556_v8 = vld [vmem:[%s9609_s30 + $0x58] sm:$0xf0] }
 0xcd2   : > { %v4738_v22 = vadd.f32 %v8588_v51, %v4719_v60  ;;  %v7559_v48 = vor.u32 %v7756_v53, %v7556_v8  ;;  %v7749_v60 = vld [vmem:[%s9609_s30 + $0x14] sm:$0xf0]  ;;  %v7748_v51 = vld [vmem:[%s9609_s30 + $0x14] sm:$0xf] }
 0xcd3   : > { %v4771_v11 = vpop.xlane.xlu0 %4770  ;;  %v7527_v12 = vor.u32 %v7748_v51, %v7524_v42  ;;  %v11621_v42 = vld [vmem:[%s9633_s25] ss:$0 sm:$0xff] }
 0xcd4   : > { %v4798_v20 = vmul.f32 %v4771_v11, %v13381_v50  ;;  %v11570_v25 = vadd.f32 %v11453_v63, %v4738_v22  ;;  %5281 = vmatpush.bf16.msra.mxu0 %v7559_v48  ;;  %v7754_v11 = vld [vmem:[%s9609_s30 + $0x44] sm:$0xf]  ;;  %v7523_v22 = vor.u32 %v7749_v60, %v7522_v41  ;;  %v8589_v41 = vld [vmem:[#allocation2 + $0x28] sm:$0xff] }
 0xcd6   : > { %v11537_v18 = vsub.f32 %v11488_v46, %v4798_v20  ;;  %13384 = vst [vmem:[#allocation58_spill] sm:$0xff] %v11570_v25  ;;  %v7547_v20 = vor.u32 %v7755_v40, %v7546_v59 }
 0xcd8   : > { %v4830_v54 = vmul.f32 %v11537_v18, %v11537_v18  ;;  %5233 = vmatpush.bf16.msrb.mxu3 %v7547_v20 }
 0xcd9   : > { %4782 = vadd.xlane.f32.xlu0 %v11540_v10  ;;  %v4721_v0 = vpop.f32.mrf.mxu3 }
 0xcda   : > { %4850 = vadd.xlane.f32.xlu2 %v4830_v54  ;;  %v7548_v54 = vld [vmem:[%s9609_s30 + $0x48] sm:$0xf0]  ;;  %v4739_v60 = vadd.f32 %v8589_v41, %v4721_v0 }
 0xcdb   : > { %v4773_v56 = vpop.xlane.xlu2 %4772 }
 0xcdc   : > { %v4799_v21 = vmul.f32 %v4773_v56, %v13381_v50  ;;  %v7551_v56 = vor.u32 %v7754_v11, %v7548_v54  ;;  %5234 = vmatpush.bf16.msrb.mxu3 %v7539_v39 }
 0xcde   : > { %v11547_v2 = vsub.f32 %v11492_v4, %v4799_v21  ;;  %5282 = vmatpush.bf16.msra.mxu0 %v7551_v56  ;;  %v7752_v21 = vld [vmem:[%s9609_s30 + $0x34] sm:$0xf] }
 0xce0   : > { %v4831_v55 = vmul.f32 %v11547_v2, %v11547_v2  ;;  %5235 = vmatpush.bf16.msrb.mxu3 %v7531_v38 }
 0xce2   : > { %4852 = vadd.xlane.f32.xlu1 %v4831_v55  ;;  %4784 = vadd.xlane.f32.xlu2 %v11550_v6  ;;  %v7540_v55 = vld [vmem:[%s9609_s30 + $0x38] sm:$0xf0] }
 0xce3   : > { %v4775_v29 = vpop.xlane.xlu2 %4774 }
 0xce4   : > { %v4800_v14 = vmul.f32 %v4775_v29, %v13381_v50  ;;  %v7543_v29 = vor.u32 %v7752_v21, %v7540_v55  ;;  %5236 = vmatpush.bf16.msrb.mxu3 %v7523_v22 }
 0xce6   : > { %v11557_v33 = vsub.f32 %v11496_v35, %v4800_v14  ;;  %5283 = vmatpush.bf16.msra.mxu0 %v7543_v29  ;;  %v7750_v14 = vld [vmem:[%s9609_s30 + $0x24] sm:$0xf] }
 0xce8   : > { %v4832_v15 = vmul.f32 %v11557_v33, %v11557_v33  ;;  %5237 = vmatpush.bf16.msrb.mxu3 %v7515_v17 }
 0xcea   : > { %4854 = vadd.xlane.f32.xlu1 %v4832_v15  ;;  %4786 = vadd.xlane.f32.xlu2 %v11560_v43  ;;  %v7532_v15 = vld [vmem:[%s9609_s30 + $0x28] sm:$0xf0] }
 0xceb   : > { %v7535_v27 = vor.u32 %v7750_v14, %v7532_v15 }
 0xced   : > { %5284 = vmatpush.bf16.msra.mxu0 %v7535_v27 }
 0xcf1   : > { %5285 = vmatpush.bf16.msra.mxu0 %v7527_v12 }
 0xcf2   : > { %4788 = vadd.xlane.f32.xlu1 %v11566_v3 }
 0xcf5   : > { %5286 = vmatpush.bf16.msra.mxu0 %v7519_v47 }
 0xcfa   : > { %4790 = vadd.xlane.f32.xlu1 %v11570_v25 }
 0xd25   : > { %v4843_v49 = vpop.xlane.xlu1 %4842 }
 0xd26   : > { %v4874_v7 = vmul.f32 %v4843_v49, %v13381_v50 }
 0xd28   : > { %v4890_v1 = vadd.f32 1e-05, %v4874_v7  ;;  %v11625_v7 = vadd.f32 %v11453_v63, %v4739_v60 }
 0xd2a   : > { %8398 = vrsqrt.f32 %v4890_v1  ;;  %vm4912_vm9 = vweird.f32 %v4890_v1  ;;  %13385 = vst [vmem:[#allocation87_spill] sm:$0xff] %v11625_v7 }
 0xd2d   : > { %v4845_v52 = vpop.xlane.xlu0 %4844  ;;  %v4777_v62 = vpop.xlane.xlu1 %4776 }
 0xd2e   : > { %v4875_v24 = vmul.f32 %v4845_v52, %v13381_v50  ;;  %v4801_v53 = vmul.f32 %v4777_v62, %v13381_v50 }
 0xd30   : > { %v8399_v37 = vpop.eup %8398  ;;  %v4891_v8 = vadd.f32 1e-05, %v4875_v24  ;;  %v11609_v48 = vsub.f32 %v11510_v19, %v4801_v53 }
 0xd31   : > { %v4907_v59 = vmul.f32 %v8399_v37, %v4890_v1  ;;  %vm4913_vm8 = vweird.f32 %v8399_v37 }
 0xd32   : > { %8400 = vrsqrt.f32 %v4891_v8  ;;  %v4833_v40 = vmul.f32 %v11609_v48, %v11609_v48  ;;  %vm4914_vm10 = vmor %vm4912_vm9, %vm4913_vm8  ;;  %vm4922_vm12 = vweird.f32 %v4891_v8 }
 0xd33   : > { %v4908_v11 = vmul.f32 %v8399_v37, %v4907_v59 }
 0xd34   : > { %4856 = vadd.xlane.f32.xlu0 %v4833_v40 }
 0xd35   : > { %v4909_v20 = vmul.f32 0.5, %v4908_v11  ;;  %v4779_v54 = vpop.xlane.xlu1 %4778 }
 0xd36   : > { %v4802_v56 = vmul.f32 %v4779_v54, %v13381_v50 }
 0xd37   : > { %v4910_v26 = vsub.f32 1.5, %v4909_v20 }
 0xd38   : > { %v8401_v58 = vpop.eup %8400  ;;  %v11615_v21 = vsub.f32 %v11516_v9, %v4802_v56 }
 0xd39   : > { %v4911_v39 = vmul.f32 %v8399_v37, %v4910_v26  ;;  %v4917_v55 = vmul.f32 %v8401_v58, %v4891_v8  ;;  %vm4923_vm11 = vweird.f32 %v8401_v58 }
 0xd3a   : > { %v4834_v29 = vmul.f32 %v11615_v21, %v11615_v21  ;;  %vm4924_vm13 = vmor %vm4922_vm12, %vm4923_vm11 }
 0xd3b   : > { %v4918_v32 = vmul.f32 %v8401_v58, %v4917_v55  ;;  %v4915_v38 = vsel %vm4914_vm10, %v8399_v37, %v4911_v39 }
 0xd3c   : > { %v4847_v14 = vpop.xlane.xlu0 %4846  ;;  %4858 = vadd.xlane.f32.xlu0 %v4834_v29  ;;  %v5066_v49 = vmul.f32 %v4915_v38, %v11501_v45 }
 0xd3d   : > { %v4919_v15 = vmul.f32 0.5, %v4918_v32  ;;  %v4876_v27 = vmul.f32 %v4847_v14, %v13381_v50 }
 0xd3e   : > { %v5085_v61 = vmul.f32 %v11621_v42, %v5066_v49 }
 0xd3f   : > { %v4920_v51 = vsub.f32 1.5, %v4919_v15  ;;  %v4892_v22 = vadd.f32 1e-05, %v4876_v27 }
 0xd40   : > { %v5104_v53 = vadd.f32 %v11629_v31, %v5085_v61 }
 0xd41   : > { %v4921_v12 = vmul.f32 %v8401_v58, %v4920_v51  ;;  %8402 = vrsqrt.f32 %v4892_v22  ;;  %vm4932_vm15 = vweird.f32 %v4892_v22 }
 0xd43   : > { %v4925_v57 = vsel %vm4924_vm13, %v8401_v58, %v4921_v12 }
 0xd44   : > { %v5067_v1 = vmul.f32 %v4925_v57, %v11507_v34  ;;  %v4781_v17 = vpop.xlane.xlu0 %4780  ;;  %v4849_v30 = vpop.xlane.xlu2 %4848  ;;  %4792 = vadd.xlane.f32.xlu0 %v11625_v7 }
 0xd45   : > { %v4803_v45 = vmul.f32 %v4781_v17, %v13381_v50  ;;  %v4877_v47 = vmul.f32 %v4849_v30, %v13381_v50 }
 0xd46   : > { %v5086_v63 = vmul.f32 %v11621_v42, %v5067_v1 }
 0xd47   : > { %v8403_v52 = vpop.eup %8402  ;;  %v11638_v62 = vsub.f32 %v11530_v44, %v4803_v45  ;;  %v4893_v24 = vadd.f32 1e-05, %v4877_v47 }
 0xd48   : > { %v5105_v37 = vadd.f32 %v11629_v31, %v5086_v63  ;;  %v4927_v34 = vmul.f32 %v8403_v52, %v4892_v22  ;;  %vm4933_vm14 = vweird.f32 %v8403_v52 }
 0xd49   : > { %8404 = vrsqrt.f32 %v4893_v24  ;;  %v4835_v8 = vmul.f32 %v11638_v62, %v11638_v62  ;;  %vm4934_vm0 = vmor %vm4932_vm15, %vm4933_vm14  ;;  %vm4942_vm2 = vweird.f32 %v4893_v24 }
 0xd4a   : > { %v4928_v59 = vmul.f32 %v8403_v52, %v4927_v34  ;;  %v5120_v40 = vpack.c.bf16 %v5105_v37, %v5104_v53 }
 0xd4b   : > { %4860 = vadd.xlane.f32.xlu2 %v4835_v8 }
 0xd4c   : > { %v4929_v11 = vmul.f32 0.5, %v4928_v59  ;;  %v4783_v20 = vpop.xlane.xlu0 %4782  ;;  %5238 = vmatmul.bf16.vlgmr.msrb.gmra.mxu3 %v5120_v40  ;;  %5287 = vmatmul.bf16.vlgmr.msra.gmra.mxu0 %v5120_v40 }
 0xd4d   : > { %v4804_v54 = vmul.f32 %v4783_v20, %v13381_v50  ;;  %v4851_v56 = vpop.xlane.xlu2 %4850 }
 0xd4e   : > { %v4930_v26 = vsub.f32 1.5, %v4929_v11  ;;  %v4878_v58 = vmul.f32 %v4851_v56, %v13381_v50 }
 0xd4f   : > { %v8405_v39 = vpop.eup %8404  ;;  %v11647_v55 = vsub.f32 %v11540_v10, %v4804_v54 }
 0xd50   : > { %v4931_v29 = vmul.f32 %v8403_v52, %v4930_v26  ;;  %v4937_v0 = vmul.f32 %v8405_v39, %v4893_v24  ;;  %v4894_v32 = vadd.f32 1e-05, %v4878_v58  ;;  %vm4943_vm1 = vweird.f32 %v8405_v39 }
 0xd51   : > { %v4836_v14 = vmul.f32 %v11647_v55, %v11647_v55  ;;  %vm4944_vm3 = vmor %vm4942_vm2, %vm4943_vm1 }
 0xd52   : > { %v4938_v38 = vmul.f32 %v8405_v39, %v4937_v0  ;;  %8406 = vrsqrt.f32 %v4894_v32  ;;  %v4935_v15 = vsel %vm4934_vm0, %v8403_v52, %v4931_v29  ;;  %vm4952_vm5 = vweird.f32 %v4894_v32 }
 0xd53   : > { %4862 = vadd.xlane.f32.xlu2 %v4836_v14  ;;  %v5068_v57 = vmul.f32 %v4935_v15, %v11521_v16 }
 0xd54   : > { %v4939_v27 = vmul.f32 0.5, %v4938_v38 }
 0xd55   : > { %v4785_v41 = vpop.xlane.xlu2 %4784  ;;  %v4853_v60 = vpop.xlane.xlu1 %4852  ;;  %v5087_v53 = vmul.f32 %v11621_v42, %v5068_v57 }
 0xd56   : > { %v4940_v51 = vsub.f32 1.5, %v4939_v27  ;;  %v4805_v49 = vmul.f32 %v4785_v41, %v13381_v50  ;;  %v4879_v12 = vmul.f32 %v4853_v60, %v13381_v50 }
 0xd57   : > { %v5106_v40 = vadd.f32 %v11629_v31, %v5087_v53 }
 0xd58   : > { %v8407_v61 = vpop.eup %8406  ;;  %v4941_v1 = vmul.f32 %v8405_v39, %v4940_v51  ;;  %v11655_v22 = vsub.f32 %v11550_v6, %v4805_v49  ;;  %v4895_v17 = vadd.f32 1e-05, %v4879_v12 }
 0xd59   : > { %v4947_v30 = vmul.f32 %v8407_v61, %v4894_v32  ;;  %vm4953_vm4 = vweird.f32 %v8407_v61 }
 0xd5a   : > { %v4945_v45 = vsel %vm4944_vm3, %v8405_v39, %v4941_v1  ;;  %8408 = vrsqrt.f32 %v4895_v17  ;;  %v4837_v47 = vmul.f32 %v11655_v22, %v11655_v22  ;;  %vm4954_vm6 = vmor %vm4952_vm5, %vm4953_vm4  ;;  %vm4962_vm8 = vweird.f32 %v4895_v17 }
 0xd5b   : > { %v5069_v63 = vmul.f32 %v4945_v45, %v11527_v5  ;;  %v4948_v52 = vmul.f32 %v8407_v61, %v4947_v30 }
 0xd5c   : > { %4864 = vadd.xlane.f32.xlu1 %v4837_v47 }
 0xd5d   : > { %v4949_v16 = vmul.f32 0.5, %v4948_v52  ;;  %v4787_v37 = vpop.xlane.xlu2 %4786  ;;  %v4855_v24 = vpop.xlane.xlu1 %4854  ;;  %v5088_v34 = vmul.f32 %v11621_v42, %v5069_v63 }
 0xd5e   : > { %v4806_v8 = vmul.f32 %v4787_v37, %v13381_v50 }
 0xd5f   : > { %v4950_v59 = vsub.f32 1.5, %v4949_v16  ;;  %v5107_v11 = vadd.f32 %v11629_v31, %v5088_v34 }
 0xd60   : > { %v8409_v20 = vpop.eup %8408  ;;  %v11666_v54 = vsub.f32 %v11560_v43, %v4806_v8 }
 0xd61   : > { %v4951_v5 = vmul.f32 %v8407_v61, %v4950_v59  ;;  %v4957_v56 = vmul.f32 %v8409_v20, %v4895_v17  ;;  %v5121_v26 = vpack.c.bf16 %v5107_v11, %v5106_v40  ;;  %vm4963_vm7 = vweird.f32 %v8409_v20 }
 0xd62   : > { %v4838_v58 = vmul.f32 %v11666_v54, %v11666_v54  ;;  %vm4964_vm9 = vmor %vm4962_vm8, %vm4963_vm7 }
 0xd63   : > { %v4958_v39 = vmul.f32 %v8409_v20, %v4957_v56  ;;  %5243 = vmatmul.bf16.gmra.mxu3 %v5121_v26  ;;  %5292 = vmatmul.bf16.gmra.mxu0 %v5121_v26  ;;  %v4955_v29 = vsel %vm4954_vm6, %v8407_v61, %v4951_v5 }
 0xd64   : > { %4866 = vadd.xlane.f32.xlu0 %v4838_v58  ;;  %v5070_v27 = vmul.f32 %v4955_v29, %v11537_v18 }
 0xd65   : > { %v4959_v0 = vmul.f32 0.5, %v4958_v39  ;;  %v4789_v14 = vpop.xlane.xlu1 %4788 }
 0xd66   : > { %v4807_v38 = vmul.f32 %v4789_v14, %v13381_v50  ;;  %v5089_v12 = vmul.f32 %v11621_v42, %v5070_v27  ;;  %v7777_v14 = vld [vmem:[%s9615_s1 + $0x78] sm:$0xff] }
 0xd67   : > { %v4960_v15 = vsub.f32 1.5, %v4959_v0  ;;  %6197 = vmatpush.bf16.msrb.mxu2 %v7777_v14 }
 0xd68   : > { %v11673_v41 = vsub.f32 %v11566_v3, %v4807_v38  ;;  %v5108_v17 = vadd.f32 %v11629_v31, %v5089_v12 }
 0xd69   : > { %v4961_v60 = vmul.f32 %v8409_v20, %v4960_v15 }
 0xd6a   : > { %v4839_v32 = vmul.f32 %v11673_v41, %v11673_v41 }
 0xd6b   : > { %v4965_v51 = vsel %vm4964_vm9, %v8409_v20, %v4961_v60 }
 0xd6c   : > { %v5071_v49 = vmul.f32 %v4965_v51, %v11547_v2  ;;  %4868 = vadd.xlane.f32.xlu2 %v4839_v32  ;;  %v4880_v2 = vmul.f32 %v4855_v24, %v13381_v50 }
 0xd6d   : > { %v4791_v57 = vpop.xlane.xlu1 %4790 }
 0xd6e   : > { %v4808_v61 = vmul.f32 %v4791_v57, %v13381_v50  ;;  %v5090_v18 = vmul.f32 %v11621_v42, %v5071_v49  ;;  %v4896_v63 = vadd.f32 1e-05, %v4880_v2 }
 0xd70   : > { %v11682_v1 = vsub.f32 %v11570_v25, %v4808_v61  ;;  %v5109_v30 = vadd.f32 %v11629_v31, %v5090_v18  ;;  %8410 = vrsqrt.f32 %v4896_v63  ;;  %vm4972_vm11 = vweird.f32 %v4896_v63  ;;  %v7776_v61 = vld [vmem:[%s9615_s1 + $0x70] sm:$0xff] }
 0xd71   : > { %6198 = vmatpush.bf16.msrb.mxu2 %v7776_v61 }
 0xd72   : > { %v5122_v45 = vpack.c.bf16 %v5109_v30, %v5108_v17  ;;  %v4840_v47 = vmul.f32 %v11682_v1, %v11682_v1 }
 0xd74   : > { %5248 = vmatmul.bf16.gmra.mxu3 %v5122_v45  ;;  %5297 = vmatmul.bf16.gmra.mxu0 %v5122_v45  ;;  %v7769_v45 = vld [vmem:[%s9615_s1 + $0x38] sm:$0xff] }
 0xd75   : > { %4870 = vadd.xlane.f32.xlu1 %v4840_v47  ;;  %6148 = vmatpush.bf16.msra.mxu1 %v7769_v45 }
 0xd76   : > { %v8411_v52 = vpop.eup %8410 }
 0xd77   : > { %v4967_v53 = vmul.f32 %v8411_v52, %v4896_v63  ;;  %vm4973_vm10 = vweird.f32 %v8411_v52 }
 0xd78   : > { %vm4974_vm12 = vmor %vm4972_vm11, %vm4973_vm10 }
 0xd79   : > { %v4968_v16 = vmul.f32 %v8411_v52, %v4967_v53 }
 0xd7b   : > { %v4969_v59 = vmul.f32 0.5, %v4968_v16  ;;  %v5144_v16 = vld [vmem:[%s9643_s22] sm:$0x3]  ;;  %s13411_s22 = smov %s13386_s19 }
 0xd7d   : > { %v4970_v40 = vsub.f32 1.5, %v4969_v59  ;;  %v11717_v59 = vperm.slane %v5144_v16, 1 }
 0xd7f   : > { %v4971_v24 = vmul.f32 %v8411_v52, %v4970_v40  ;;  %v7768_v40 = vld [vmem:[%s9615_s1 + $0x30] sm:$0xff] }
 0xd80   : > { %6149 = vmatpush.bf16.msra.mxu1 %v7768_v40 }
 0xd81   : > { %v4975_v39 = vsel %vm4974_vm12, %v8411_v52, %v4971_v24  ;;  %v7775_v52 = vld [vmem:[%s9615_s1 + $0x68] sm:$0xff] }
 0xd82   : > { %v5072_v60 = vmul.f32 %v4975_v39, %v11557_v33  ;;  %6199 = vmatpush.bf16.msrb.mxu2 %v7775_v52 }
 0xd84   : > { %v5091_v33 = vmul.f32 %v11621_v42, %v5072_v60  ;;  %v7773_v60 = vld [vmem:[%s9615_s1 + $0x58] sm:$0xff] }
 0xd86   : > { %v5110_v53 = vadd.f32 %v11629_v31, %v5091_v33 }
 0xda7   : > { %v4857_v37 = vpop.xlane.xlu0 %4856 }
 0xda8   : > { %v4881_v34 = vmul.f32 %v4857_v37, %v13381_v50 }
 0xdaa   : > { %v4897_v8 = vadd.f32 1e-05, %v4881_v34 }
 0xdac   : > { %8412 = vrsqrt.f32 %v4897_v8  ;;  %vm4982_vm14 = vweird.f32 %v4897_v8 }
 0xdaf   : > { %v4859_v11 = vpop.xlane.xlu0 %4858 }
 0xdb0   : > { %v4882_v20 = vmul.f32 %v4859_v11, %v13381_v50 }
 0xdb2   : > { %v8413_v5 = vpop.eup %8412  ;;  %v11691_v56 = vadd.f32 1e-05, %v4882_v20  ;;  %v7774_v20 = vld [vmem:[%s9615_s1 + $0x60] sm:$0xff] }
 0xdb3   : > { %v4977_v26 = vmul.f32 %v8413_v5, %v4897_v8  ;;  %vm4983_vm13 = vweird.f32 %v8413_v5  ;;  %6200 = vmatpush.bf16.msrb.mxu2 %v7774_v20 }
 0xdb4   : > { %8414 = vrsqrt.f32 %v11691_v56  ;;  %vm4984_vm15 = vmor %vm4982_vm14, %vm4983_vm13  ;;  %vm4992_vm1 = vweird.f32 %v11691_v56 }
 0xdb5   : > { %v4978_v58 = vmul.f32 %v8413_v5, %v4977_v26 }
 0xdb7   : > { %v4979_v29 = vmul.f32 0.5, %v4978_v58  ;;  %v4793_v0 = vpop.xlane.xlu0 %4792  ;;  %6201 = vmatpush.bf16.msrb.mxu2 %v7773_v60 }
 0xdb8   : > { %v4809_v38 = vmul.f32 %v4793_v0, %v13381_v50  ;;  %v7767_v0 = vld [vmem:[%s9615_s1 + $0x28] sm:$0xff] }
 0xdb9   : > { %v4980_v15 = vsub.f32 1.5, %v4979_v29  ;;  %6150 = vmatpush.bf16.msra.mxu1 %v7767_v0 }
 0xdba   : > { %v11696_v27 = vpop.eup %8414  ;;  %v11700_v32 = vsub.f32 %v11625_v7, %v4809_v38 }
 0xdbb   : > { %v4981_v51 = vmul.f32 %v8413_v5, %v4980_v15  ;;  %v4987_v57 = vmul.f32 %v11696_v27, %v11691_v56  ;;  %v11730_v15 = vperm.slane %v5144_v16, 0  ;;  %vm4993_vm0 = vweird.f32 %v11696_v27 }
 0xdbc   : > { %v4841_v49 = vmul.f32 %v11700_v32, %v11700_v32  ;;  %vm11736_vm3 = vmor %vm4992_vm1, %vm4993_vm0 }
 0xdbd   : > { %v4985_v12 = vsel %vm4984_vm15, %v8413_v5, %v4981_v51  ;;  %v4988_v2 = vmul.f32 %v11696_v27, %v4987_v57 }
 0xdbe   : > { %v5073_v18 = vmul.f32 %v4985_v12, %v11609_v48  ;;  %v4861_v17 = vpop.xlane.xlu2 %4860  ;;  %4872 = vadd.xlane.f32.xlu0 %v4841_v49 }
 0xdbf   : > { %v4883_v30 = vmul.f32 %v4861_v17, %v13381_v50  ;;  %v4989_v34 = vmul.f32 0.5, %v4988_v2  ;;  %v7766_v2 = vld [vmem:[%s9615_s1 + $0x20] sm:$0xff] }
 0xdc0   : > { %v5092_v47 = vmul.f32 %v11621_v42, %v5073_v18  ;;  %6151 = vmatpush.bf16.msra.mxu1 %v7766_v2 }
 0xdc1   : > { %v4899_v63 = vadd.f32 1e-05, %v4883_v30  ;;  %v4990_v24 = vsub.f32 1.5, %v4989_v34  ;;  %v7772_v34 = vld [vmem:[%s9615_s1 + $0x50] sm:$0xff] }
 0xdc2   : > { %v5111_v48 = vadd.f32 %v11629_v31, %v5092_v47  ;;  %6202 = vmatpush.bf16.msrb.mxu2 %v7772_v34 }
 0xdc3   : > { %8416 = vrsqrt.f32 %v4899_v63  ;;  %v4991_v51 = vmul.f32 %v11696_v27, %v4990_v24  ;;  %vm5002_vm4 = vweird.f32 %v4899_v63  ;;  %v7765_v24 = vld [vmem:[%s9615_s1 + $0x18] sm:$0xff] }
 0xdc4   : > { %v5123_v37 = vpack.c.bf16 %v5111_v48, %v5110_v53  ;;  %6152 = vmatpush.bf16.msra.mxu1 %v7765_v24 }
 0xdc5   : > { %v4995_v56 = vsel %vm11736_vm3, %v11696_v27, %v4991_v51 }
 0xdc6   : > { %v4863_v8 = vpop.xlane.xlu2 %4862  ;;  %5253 = vmatmul.bf16.gmra.mxu3 %v5123_v37  ;;  %5302 = vmatmul.bf16.gmra.mxu0 %v5123_v37  ;;  %v5074_v27 = vmul.f32 %v4995_v56, %v11615_v21 }
 0xdc7   : > { %v4884_v11 = vmul.f32 %v4863_v8, %v13381_v50 }
 0xdc9   : > { %v8417_v5 = vpop.eup %8416  ;;  %v11722_v26 = vadd.f32 1e-05, %v4884_v11  ;;  %v5288_v58 = vpop.f32.mrf.mxu0 }
 0xdca   : > { %v4997_v39 = vmul.f32 %v8417_v5, %v4899_v63  ;;  %v11725_v29 = vadd.f32 %v5288_v58, %v11717_v59  ;;  %vm5003_vm2 = vweird.f32 %v8417_v5 }
 0xdcb   : > { %8418 = vrsqrt.f32 %v11722_v26  ;;  %vm5004_vm5 = vmor %vm5002_vm4, %vm5003_vm2  ;;  %vm5012_vm7 = vweird.f32 %v11722_v26 }
 0xdcc   : > { %v4998_v14 = vmul.f32 %v8417_v5, %v4997_v39  ;;  %v7577_v38 = vmul.f32 -1.702, %v11725_v29 }
 0xdce   : > { %v4999_v49 = vmul.f32 0.5, %v4998_v14  ;;  %v5394_v12 = vmul.f32 1.442695, %v7577_v38 }
 0xdcf   : > { %v5239_v57 = vpop.f32.mrf.mxu3  ;;  %v4865_v61 = vpop.xlane.xlu1 %4864 }
 0xdd0   : > { %v5000_v17 = vsub.f32 1.5, %v4999_v49  ;;  %8420 = vpow2.f32 %v5394_v12  ;;  %v11741_v33 = vadd.f32 %v5239_v57, %v11730_v15  ;;  %v4885_v30 = vmul.f32 %v4865_v61, %v13381_v50 }
 0xdd1   : > { %v11744_v45 = vpop.eup %8418  ;;  %v5290_v47 = vpop.f32.mrf.mxu0 }
 0xdd2   : > { %v5001_v52 = vmul.f32 %v8417_v5, %v5000_v17  ;;  %v5007_v53 = vmul.f32 %v11744_v45, %v11722_v26  ;;  %v7576_v48 = vmul.f32 -1.702, %v11741_v33  ;;  %v11754_v16 = vadd.f32 1e-05, %v4885_v30  ;;  %v7764_v26 = vld [vmem:[%s9615_s1 + $0x10] sm:$0xff] }
 0xdd3   : > { %v11757_v37 = vadd.f32 %v5290_v47, %v11717_v59  ;;  %vm5013_vm6 = vweird.f32 %v11744_v45  ;;  %6153 = vmatpush.bf16.msra.mxu1 %v7764_v26 }
 0xdd4   : > { %v5005_v8 = vsel %vm5004_vm5, %v8417_v5, %v5001_v52  ;;  %v5008_v63 = vmul.f32 %v11744_v45, %v5007_v53  ;;  %v5392_v40 = vmul.f32 1.442695, %v7576_v48  ;;  %8422 = vrsqrt.f32 %v11754_v16  ;;  %vm11799_vm8 = vmor %vm5012_vm7, %vm5013_vm6 }
 0xdd5   : > { %v5075_v11 = vmul.f32 %v5005_v8, %v11638_v62  ;;  %v7579_v20 = vmul.f32 -1.702, %v11757_v37  ;;  %v5093_v62 = vmul.f32 %v11621_v42, %v5074_v27  ;;  %vm5022_vm9 = vweird.f32 %v11754_v16 }
 0xdd6   : > { %v8421_v58 = vpop.eup %8420  ;;  %8424 = vpow2.f32 %v5392_v40  ;;  %v5009_v39 = vmul.f32 0.5, %v5008_v63 }
 0xdd7   : > { %v11766_v0 = vadd.f32 1.0, %v8421_v58  ;;  %v5398_v14 = vmul.f32 1.442695, %v7579_v20  ;;  %v5241_v38 = vpop.f32.mrf.mxu3  ;;  %v4867_v21 = vpop.xlane.xlu0 %4866  ;;  %v5094_v5 = vmul.f32 %v11621_v42, %v5075_v11  ;;  %v5112_v56 = vadd.f32 %v11629_v31, %v5093_v62  ;;  %v7771_v58 = vld [vmem:[%s9615_s1 + $0x48] sm:$0xff] }
 0xdd8   : > { %v11770_v60 = vadd.f32 %v5241_v38, %v11730_v15  ;;  %v4886_v49 = vmul.f32 %v4867_v21, %v13381_v50  ;;  %v5010_v57 = vsub.f32 1.5, %v5009_v39  ;;  %6203 = vmatpush.bf16.msrb.mxu2 %v7771_v58 }
 0xdd9   : > { %8426 = vrcp.f32 %v11766_v0  ;;  %v5113_v61 = vadd.f32 %v11629_v31, %v5094_v5  ;;  %v5514_v38 = vand.u32 2147483648, %v11766_v0  ;;  %vm5508_vm10 = vweird.f32 %v11766_v0 }
 0xdda   : > { %8428 = vpow2.f32 %v5398_v14  ;;  %v7578_v51 = vmul.f32 -1.702, %v11770_v60  ;;  %v11776_v12 = vpop.eup %8422  ;;  %v11785_v52 = vadd.f32 1e-05, %v4886_v49  ;;  %v5011_v34 = vmul.f32 %v11744_v45, %v5010_v57 }
 0xddb   : > { %v5017_v17 = vmul.f32 %v11776_v12, %v11754_v16  ;;  %v5124_v53 = vpack.c.bf16 %v5113_v61, %v5112_v56  ;;  %vm5023_vm12 = vweird.f32 %v11776_v12 }
 0xddc   : > { %v8425_v18 = vpop.eup %8424  ;;  %v5396_v30 = vmul.f32 1.442695, %v7578_v51  ;;  %v5015_v5 = vsel %vm11799_vm8, %v11744_v45, %v5011_v34  ;;  %v5512_v51 = vand.u32 2147483647, %v11766_v0  ;;  %vm11858_vm0 = vmor %vm5022_vm9, %vm5023_vm12 }
 0xddd   : > { %v11782_v47 = vadd.f32 1.0, %v8425_v18  ;;  %v5018_v2 = vmul.f32 %v11776_v12, %v5017_v17  ;;  %5258 = vmatmul.bf16.gmra.mxu3 %v5124_v53  ;;  %5307 = vmatmul.bf16.gmra.mxu0 %v5124_v53  ;;  %v5076_v56 = vmul.f32 %v5015_v5, %v11647_v55 }
 0xdde   : > { %8430 = vpow2.f32 %v5396_v30  ;;  %v7770_v30 = vld [vmem:[%s9615_s1 + $0x40] sm:$0xff]  ;;  %vm11836_vm13 = vcmp.eq.f32.partialorder %v5512_v51, 8.507059e+37 }
 0xddf   : > { %v11787_v48 = vpop.eup %8426  ;;  %8432 = vrcp.f32 %v11782_v47  ;;  %v4869_v27 = vpop.xlane.xlu2 %4868  ;;  %v5019_v40 = vmul.f32 0.5, %v5018_v2  ;;  %v5499_v49 = vand.u32 2147483648, %v11782_v47  ;;  %v5515_v2 = vor.u32 1.1754944e-38, %v5514_v38  ;;  %6204 = vmatpush.bf16.msrb.mxu2 %v7770_v30 }
 0xde0   : > { %v8429_v8 = vpop.eup %8428  ;;  %v5504_v63 = vmul.f32 %v11787_v48, %v11766_v0  ;;  %v4887_v11 = vmul.f32 %v4869_v27, %v13381_v50  ;;  %v5293_v20 = vpop.f32.mrf.mxu0  ;;  %8434 = vrsqrt.f32 %v11785_v52  ;;  %vm5493_vm11 = vweird.f32 %v11782_v47 }
 0xde1   : > { %v11796_v24 = vadd.f32 1.0, %v8429_v8  ;;  %v5020_v57 = vsub.f32 1.5, %v5019_v40  ;;  %v11822_v45 = vadd.f32 %v5293_v20, %v11717_v59  ;;  %v7763_v8 = vld [vmem:[%s9615_s1 + $0x8] sm:$0xff]  ;;  %vm5509_vm14 = vweird.f32 %v11787_v48 }
 0xde2   : > { %v5505_v14 = vsub.f32 1.0, %v5504_v63  ;;  %v11805_v21 = vadd.f32 1e-05, %v4887_v11  ;;  %v5497_v11 = vand.u32 2147483647, %v11782_v47  ;;  %v5500_v5 = vor.u32 1.1754944e-38, %v5499_v49  ;;  %6154 = vmatpush.bf16.msra.mxu1 %v7763_v8  ;;  %vm11876_vm2 = vmor %vm5508_vm10, %vm5509_vm14 }
 0xde3   : > { %8436 = vrcp.f32 %v11796_v24  ;;  %v5542_v27 = vand.u32 2147483647, %v11796_v24  ;;  %v5021_v20 = vmul.f32 %v11776_v12, %v5020_v57  ;;  %v5544_v58 = vand.u32 2147483648, %v11796_v24 }
 0xde4   : > { %v8431_v62 = vpop.eup %8430  ;;  %v5506_v18 = vmul.f32 %v11787_v48, %v5505_v14  ;;  %8438 = vrsqrt.f32 %v11805_v21  ;;  %v7581_v26 = vmul.f32 -1.702, %v11822_v45  ;;  %vm5538_vm15 = vweird.f32 %v11796_v24 }
 0xde5   : > { %v11815_v61 = vpop.eup %8432  ;;  %v11818_v17 = vadd.f32 1.0, %v8431_v62  ;;  %v11850_v57 = vmul.f32 %v11621_v42, %v5076_v56  ;;  %vm11862_vm1 = vcmp.eq.f32.partialorder %v5542_v27, 8.507059e+37  ;;  %vm11880_vm3 = vcmp.eq.f32.partialorder %v5497_v11, 8.507059e+37 }
 0xde6   : > { %v5489_v53 = vmul.f32 %v11815_v61, %v11782_v47  ;;  %v5244_v34 = vpop.f32.mrf.mxu3  ;;  %v11834_v63 = vpop.eup %8434  ;;  %v5507_v38 = vadd.f32 %v11787_v48, %v5506_v18  ;;  %v5402_v8 = vmul.f32 1.442695, %v7581_v26  ;;  %v5025_v26 = vsel %vm11858_vm0, %v11776_v12, %v5021_v20 }
 0xde7   : > { %8440 = vrcp.f32 %v11818_v17  ;;  %v11869_v56 = vadd.f32 %v5244_v34, %v11730_v15  ;;  %v5545_v34 = vor.u32 1.1754944e-38, %v5544_v58  ;;  %vm5494_vm4 = vweird.f32 %v11815_v61 }
 0xde8   : > { %v5490_v40 = vsub.f32 1.0, %v5489_v53  ;;  %v5295_v39 = vpop.f32.mrf.mxu0  ;;  %v5027_v53 = vmul.f32 %v11834_v63, %v11785_v52  ;;  %v5511_v0 = vsel %vm11876_vm2, %v11787_v48, %v5507_v38  ;;  %8442 = vpow2.f32 %v5402_v8  ;;  %vm11901_vm6 = vmor %vm5493_vm11, %vm5494_vm4 }
 0xde9   : > { %v8437_v14 = vpop.eup %8436  ;;  %v7580_v11 = vmul.f32 -1.702, %v11869_v56  ;;  %v5077_v20 = vmul.f32 %v5025_v26, %v11655_v22  ;;  %v5516_v22 = vsel %vm11836_vm13, %v5515_v2, %v5511_v0  ;;  %v11912_v47 = vadd.f32 %v5295_v39, %v11717_v59 }
 0xdea   : > { %v5491_v62 = vmul.f32 %v11815_v61, %v5490_v40  ;;  %v5534_v51 = vmul.f32 %v8437_v14, %v11796_v24  ;;  %v11852_v30 = vpop.eup %8438  ;;  %v7762_v40 = vld [vmem:[%s9615_s1] sm:$0xff]  ;;  %vm5539_vm5 = vweird.f32 %v8437_v14  ;;  %v5028_v58 = vmul.f32 %v11834_v63, %v5027_v53 }
 0xdeb   : > { %v5037_v25 = vmul.f32 %v11852_v30, %v11805_v21  ;;  %6155 = vmatpush.bf16.msra.mxu1 %v7762_v40  ;;  %v5400_v16 = vmul.f32 1.442695, %v7580_v11  ;;  %v5529_v40 = vand.u32 2147483648, %v11818_v17  ;;  %vm5540_vm7 = vmor %vm5538_vm15, %vm5539_vm5  ;;  %vm5523_vm9 = vweird.f32 %v11818_v17 }
 0xdec   : > { %v5535_v7 = vsub.f32 1.0, %v5534_v51  ;;  %v5492_v43 = vadd.f32 %v11815_v61, %v5491_v62  ;;  %v5029_v24 = vmul.f32 0.5, %v5028_v58  ;;  %v7583_v55 = vmul.f32 -1.702, %v11912_v47 }
 0xded   : > { %v8441_v3 = vpop.eup %8440  ;;  %v5038_v51 = vmul.f32 %v11852_v30, %v5037_v25  ;;  %8444 = vpow2.f32 %v5400_v16  ;;  %v5969_v39 = vmul.f32 %v5516_v22, %v11725_v29  ;;  %vm5043_vm12 = vweird.f32 %v11852_v30 }
 0xdee   : > { %v5536_v49 = vmul.f32 %v8437_v14, %v5535_v7  ;;  %v5519_v12 = vmul.f32 %v8441_v3, %v11818_v17  ;;  %v5246_v48 = vpop.f32.mrf.mxu3  ;;  %v5527_v7 = vand.u32 2147483647, %v11818_v17  ;;  %v5496_v26 = vsel %vm11901_vm6, %v11815_v61, %v5492_v43 }
 0xdef   : > { %v5039_v25 = vmul.f32 0.5, %v5038_v51  ;;  %vm5524_vm8 = vweird.f32 %v8441_v3  ;;  %v5501_v43 = vsel %vm11880_vm3, %v5500_v5, %v5496_v26  ;;  %v5530_v61 = vor.u32 1.1754944e-38, %v5529_v40 }
 0xdf0   : > { %v5537_v8 = vadd.f32 %v8437_v14, %v5536_v49  ;;  %v5520_v62 = vsub.f32 1.0, %v5519_v12  ;;  %v8443_v12 = vpop.eup %8442  ;;  %vm5525_vm10 = vmor %vm5523_vm9, %vm5524_vm8  ;;  %v5406_v18 = vmul.f32 1.442695, %v7583_v55  ;;  %vm5528_vm11 = vcmp.eq.f32.partialorder %v5527_v7, 8.507059e+37 }
 0xdf1   : > { %v5298_v53 = vpop.f32.mrf.mxu0  ;;  %v11923_v16 = vadd.f32 1.0, %v8443_v12  ;;  %v5030_v29 = vsub.f32 1.5, %v5029_v24  ;;  %v5968_v27 = vmul.f32 %v5501_v43, %v11741_v33  ;;  %vm5033_vm13 = vweird.f32 %v11834_v63 }
 0xdf2   : > { %v5541_v11 = vsel %vm5540_vm7, %v8437_v14, %v5537_v8  ;;  %v5521_v49 = vmul.f32 %v8441_v3, %v5520_v62  ;;  %v5040_v14 = vsub.f32 1.5, %v5039_v25  ;;  %v5096_v8 = vmul.f32 %v11621_v42, %v5077_v20 }
 0xdf3   : > { %v5546_v2 = vsel %vm11862_vm1, %v5545_v34, %v5541_v11  ;;  %8446 = vrcp.f32 %v11923_v16  ;;  %v8445_v17 = vpop.eup %8444  ;;  %vm5042_vm14 = vweird.f32 %v11805_v21  ;;  %v5031_v20 = vmul.f32 %v11834_v63, %v5030_v29 }
 0xdf4   : > { %v5971_v0 = vmul.f32 %v5546_v2, %v11757_v37  ;;  %v5522_v51 = vadd.f32 %v8441_v3, %v5521_v49  ;;  %v11929_v37 = vadd.f32 %v5246_v48, %v11730_v15  ;;  %v11934_v62 = vadd.f32 1.0, %v8445_v17  ;;  %vm11946_vm15 = vmor %vm5042_vm14, %vm5043_vm12 }
 0xdf5   : > { %8448 = vpow2.f32 %v5406_v18  ;;  %v5114_v26 = vadd.f32 %v11629_v31, %v11850_v57  ;;  %v11953_v21 = vadd.f32 %v5298_v53, %v11717_v59  ;;  %vm5032_vm0 = vweird.f32 %v11785_v52 }
 0xdf6   : > { %v6001_v34 = vpack.c.bf16 %v5971_v0, %v5969_v39  ;;  %v5526_v38 = vsel %vm5525_vm10, %v8441_v3, %v5522_v51  ;;  %v5041_v3 = vmul.f32 %v11852_v30, %v5040_v14  ;;  %8450 = vrcp.f32 %v11934_v62  ;;  %vm11969_vm1 = vmor %vm5032_vm0, %vm5033_vm13 }
 0xdf7   : > { %v5531_v58 = vsel %vm5528_vm11, %v5530_v61, %v5526_v38  ;;  %v5249_v7 = vpop.f32.mrf.mxu3  ;;  %v7582_v33 = vmul.f32 -1.702, %v11929_v37  ;;  %v7585_v52 = vmul.f32 -1.702, %v11953_v21  ;;  %vm5568_vm3 = vweird.f32 %v11923_v16 }
 0xdf8   : > { %v5970_v5 = vmul.f32 %v5531_v58, %v11770_v60  ;;  %6205 = vmatmul.bf16.vlgmr.msrb.gmra.mxu2 %v6001_v34  ;;  %v5115_v60 = vadd.f32 %v11629_v31, %v5096_v8  ;;  %v11956_v11 = vadd.f32 %v5249_v7, %v11730_v15  ;;  %v5045_v49 = vsel %vm11946_vm15, %v11852_v30, %v5041_v3 }
 0xdf9   : > { %v5300_v48 = vpop.f32.mrf.mxu0  ;;  %v11944_v22 = vpop.eup %8446  ;;  %v5404_v24 = vmul.f32 1.442695, %v7582_v33  ;;  %v5035_v30 = vsel %vm11969_vm1, %v11834_v63, %v5031_v20  ;;  %v5410_v43 = vmul.f32 1.442695, %v7585_v52  ;;  %v5079_v18 = vmul.f32 %v5045_v49, %v11673_v41 }
 0xdfa   : > { %v6000_v40 = vpack.c.bf16 %v5970_v5, %v5968_v27  ;;  %v5564_v12 = vmul.f32 %v11944_v22, %v11923_v16  ;;  %v11965_v2 = vadd.f32 %v5300_v48, %v11717_v59  ;;  %v5125_v55 = vpack.c.bf16 %v5115_v60, %v5114_v26 }
 0xdfb   : > { %v8449_v57 = vpop.eup %8448  ;;  %v7584_v39 = vmul.f32 -1.702, %v11956_v11  ;;  %8452 = vpow2.f32 %v5404_v24  ;;  %v5078_v38 = vmul.f32 %v5035_v30, %v11666_v54  ;;  %v5098_v8 = vmul.f32 %v11621_v42, %v5079_v18 }
 0xdfc   : > { %6156 = vmatmul.bf16.vlgmr.msra.gmra.mxu1 %v6000_v40  ;;  %v11978_v0 = vadd.f32 1.0, %v8449_v57  ;;  %v5565_v51 = vsub.f32 1.0, %v5564_v12  ;;  %5263 = vmatmul.bf16.gmra.mxu3 %v5125_v55  ;;  %v11980_v14 = vpop.eup %8450  ;;  %v7587_v34 = vmul.f32 -1.702, %v11965_v2  ;;  %v5574_v41 = vand.u32 2147483648, %v11923_v16 }
 0xdfd   : > { %5312 = vmatmul.bf16.gmra.mxu0 %v5125_v55  ;;  %v5408_v61 = vmul.f32 1.442695, %v7584_v39  ;;  %v5549_v17 = vmul.f32 %v11980_v14, %v11934_v62  ;;  %v5097_v5 = vmul.f32 %v11621_v42, %v5078_v38  ;;  %vm5569_vm2 = vweird.f32 %v11944_v22 }
 0xdfe   : > { %8454 = vrcp.f32 %v11978_v0  ;;  %v5566_v63 = vmul.f32 %v11944_v22, %v5565_v51  ;;  %v5414_v29 = vmul.f32 1.442695, %v7587_v34  ;;  %v5117_v20 = vadd.f32 %v11629_v31, %v5098_v8  ;;  %vm12005_vm4 = vmor %vm5568_vm3, %vm5569_vm2 }
 0xdff   : > { %8456 = vpow2.f32 %v5410_v43  ;;  %v5251_v58 = vpop.f32.mrf.mxu3  ;;  %v5550_v48 = vsub.f32 1.0, %v5549_v17  ;;  %v5572_v25 = vand.u32 2147483647, %v11923_v16  ;;  %v5575_v26 = vor.u32 1.1754944e-38, %v5574_v41  ;;  %v4871_v41 = vpop.xlane.xlu1 %4870 }
 0xe00   : > { %8458 = vpow2.f32 %v5408_v61  ;;  %v11995_v54 = vadd.f32 %v5251_v58, %v11730_v15  ;;  %v5567_v40 = vadd.f32 %v11944_v22, %v5566_v63  ;;  %v5116_v49 = vadd.f32 %v11629_v31, %v5097_v5 }
 0xe01   : > { %v8453_v27 = vpop.eup %8452  ;;  %8460 = vpow2.f32 %v5414_v29  ;;  %v5551_v16 = vmul.f32 %v11980_v14, %v5550_v48  ;;  %v5604_v39 = vand.u32 2147483648, %v11978_v0  ;;  %v5602_v43 = vand.u32 2147483647, %v11978_v0 }
 0xe02   : > { %v11992_v3 = vadd.f32 1.0, %v8453_v27  ;;  %v7586_v55 = vmul.f32 -1.702, %v11995_v54  ;;  %v5571_v52 = vsel %vm12005_vm4, %v11944_v22, %v5567_v40  ;;  %v5126_v31 = vpack.c.bf16 %v5117_v20, %v5116_v49 }
 0xe03   : > { %vm5573_vm6 = vcmp.eq.f32.partialorder %v5572_v25, 8.507059e+37  ;;  %vm5553_vm7 = vweird.f32 %v11934_v62  ;;  %vm5598_vm8 = vweird.f32 %v11978_v0  ;;  %v5552_v63 = vadd.f32 %v11980_v14, %v5551_v16 }
 0xe04   : > { %v8455_v7 = vpop.eup %8454  ;;  %8462 = vrcp.f32 %v11992_v3  ;;  %v5576_v61 = vsel %vm5573_vm6, %v5575_v26, %v5571_v52  ;;  %v5412_v38 = vmul.f32 1.442695, %v7586_v55  ;;  %vm5554_vm9 = vweird.f32 %v11980_v14 }
 0xe05   : > { %v8457_v33 = vpop.eup %8456  ;;  %v5594_v60 = vmul.f32 %v8455_v7, %v11978_v0  ;;  %vm5599_vm5 = vweird.f32 %v8455_v7  ;;  %v5605_v17 = vor.u32 1.1754944e-38, %v5604_v39  ;;  %v5559_v0 = vand.u32 2147483648, %v11934_v62  ;;  %vm12037_vm12 = vmor %vm5553_vm7, %vm5554_vm9 }
 0xe06   : > { %v8459_v42 = vpop.eup %8458  ;;  %v12009_v53 = vadd.f32 1.0, %v8457_v33  ;;  %vm5600_vm10 = vmor %vm5598_vm8, %vm5599_vm5  ;;  %vm5603_vm11 = vcmp.eq.f32.partialorder %v5602_v43, 8.507059e+37  ;;  %v5973_v8 = vmul.f32 %v5576_v61, %v11822_v45  ;;  %v5557_v27 = vand.u32 2147483647, %v11934_v62 }
 0xe07   : > { %v5595_v57 = vsub.f32 1.0, %v5594_v60  ;;  %v12011_v24 = vadd.f32 1.0, %v8459_v42  ;;  %v8461_v30 = vpop.eup %8460  ;;  %v5587_v33 = vand.u32 2147483647, %v11992_v3  ;;  %v5589_v45 = vand.u32 2147483648, %v11992_v3 }
 0xe08   : > { %8464 = vrcp.f32 %v12009_v53  ;;  %v12024_v34 = vadd.f32 1.0, %v8461_v30  ;;  %v5556_v42 = vsel %vm12037_vm12, %v11980_v14, %v5552_v63  ;;  %v5560_v26 = vor.u32 1.1754944e-38, %v5559_v0 }
 0xe09   : > { %v5596_v51 = vmul.f32 %v8455_v7, %v5595_v57  ;;  %8466 = vrcp.f32 %v12011_v24  ;;  %v4888_v49 = vmul.f32 %v4871_v41, %v13381_v50  ;;  %vm5558_vm14 = vcmp.eq.f32.partialorder %v5557_v27, 8.507059e+37 }
 0xe0a   : > { %v8463_v22 = vpop.eup %8462  ;;  %8468 = vrcp.f32 %v12024_v34  ;;  %vm5583_vm15 = vweird.f32 %v11992_v3  ;;  %v5561_v52 = vsel %vm5558_vm14, %v5560_v26, %v5556_v42  ;;  %vm5588_vm1 = vcmp.eq.f32.partialorder %v5587_v33, 8.507059e+37 }
 0xe0b   : > { %v5597_v18 = vadd.f32 %v8455_v7, %v5596_v51  ;;  %v5579_v58 = vmul.f32 %v8463_v22, %v11992_v3  ;;  %8470 = vpow2.f32 %v5412_v38  ;;  %vm5584_vm13 = vweird.f32 %v8463_v22 }
 0xe0c   : > { %5268 = vmatmul.bf16.gmra.mxu3 %v5126_v31  ;;  %vm5585_vm0 = vmor %vm5583_vm15, %vm5584_vm13  ;;  %v5590_v16 = vor.u32 1.1754944e-38, %v5589_v45  ;;  %vm5628_vm3 = vweird.f32 %v12009_v53  ;;  %v5632_v3 = vand.u32 2147483647, %v12009_v53  ;;  %v5634_v61 = vand.u32 2147483648, %v12009_v53 }
 0xe0d   : > { %5317 = vmatmul.bf16.gmra.mxu0 %v5126_v31  ;;  %v5601_v29 = vsel %vm5600_vm10, %v8455_v7, %v5597_v18  ;;  %v5580_v40 = vsub.f32 1.0, %v5579_v58  ;;  %v5972_v58 = vmul.f32 %v5561_v52, %v11869_v56  ;;  %v5662_v0 = vand.u32 2147483647, %v12024_v34 }
 0xe0e   : > { %v5606_v5 = vsel %vm5603_vm11, %v5605_v17, %v5601_v29  ;;  %v8465_v48 = vpop.eup %8464  ;;  %v5664_v29 = vand.u32 2147483648, %v12024_v34  ;;  %v5635_v41 = vor.u32 1.1754944e-38, %v5634_v61  ;;  %vm5633_vm6 = vcmp.eq.f32.partialorder %v5632_v3, 8.507059e+37 }
 0xe0f   : > { %v5975_v7 = vmul.f32 %v5606_v5, %v11912_v47  ;;  %v12044_v60 = vpop.eup %8466  ;;  %v5581_v25 = vmul.f32 %v8463_v22, %v5580_v40  ;;  %v5624_v62 = vmul.f32 %v8465_v48, %v12009_v53  ;;  %vm5629_vm2 = vweird.f32 %v8465_v48 }
 0xe10   : > { %v8469_v55 = vpop.eup %8468  ;;  %v5609_v14 = vmul.f32 %v12044_v60, %v12011_v24  ;;  %vm5630_vm4 = vmor %vm5628_vm3, %vm5629_vm2  ;;  %vm5658_vm7 = vweird.f32 %v12024_v34  ;;  %v5665_v56 = vor.u32 1.1754944e-38, %v5664_v29  ;;  %v4904_v20 = vadd.f32 1e-05, %v4888_v49 }
 0xe11   : > { %v6003_v12 = vpack.c.bf16 %v5975_v7, %v5973_v8  ;;  %v5582_v47 = vadd.f32 %v8463_v22, %v5581_v25  ;;  %v5625_v57 = vsub.f32 1.0, %v5624_v62  ;;  %v5654_v30 = vmul.f32 %v8469_v55, %v12024_v34  ;;  %v8471_v51 = vpop.eup %8470 }
 0xe12   : > { %v5466_v17 = vadd.f32 1.0, %v8471_v51  ;;  %vm5659_vm5 = vweird.f32 %v8469_v55  ;;  %vm5663_vm9 = vcmp.eq.f32.partialorder %v5662_v0, 8.507059e+37  ;;  %vm5614_vm10 = vweird.f32 %v12044_v60 }
 0xe13   : > { %6210 = vmatmul.bf16.gmra.mxu2 %v6003_v12  ;;  %v5586_v39 = vsel %vm5585_vm0, %v8463_v22, %v5582_v47  ;;  %v5626_v31 = vmul.f32 %v8465_v48, %v5625_v57  ;;  %v5655_v63 = vsub.f32 1.0, %v5654_v30  ;;  %v5610_v22 = vsub.f32 1.0, %v5609_v14  ;;  %vm5660_vm8 = vmor %vm5658_vm7, %vm5659_vm5 }
 0xe14   : > { %v5591_v43 = vsel %vm5588_vm1, %v5590_v16, %v5586_v39  ;;  %8472 = vrcp.f32 %v5466_v17  ;;  %v5619_v62 = vand.u32 2147483648, %v12011_v24  ;;  %vm5613_vm11 = vweird.f32 %v12011_v24 }
 0xe15   : > { %v5974_v18 = vmul.f32 %v5591_v43, %v11929_v37  ;;  %v5627_v38 = vadd.f32 %v8465_v48, %v5626_v31  ;;  %v5656_v27 = vmul.f32 %v8469_v55, %v5655_v63  ;;  %v5611_v40 = vmul.f32 %v12044_v60, %v5610_v22  ;;  %vm5615_vm12 = vmor %vm5613_vm11, %vm5614_vm10 }
 0xe16   : > { %8474 = vrsqrt.f32 %v4904_v20  ;;  %v5617_v49 = vand.u32 2147483647, %v12011_v24  ;;  %v5649_v47 = vand.u32 2147483648, %v5466_v17  ;;  %vm5643_vm15 = vweird.f32 %v5466_v17 }
 0xe17   : > { %v5631_v8 = vsel %vm5630_vm4, %v8465_v48, %v5627_v38  ;;  %v5657_v53 = vadd.f32 %v8469_v55, %v5656_v27  ;;  %v6002_v37 = vpack.c.bf16 %v5974_v18, %v5972_v58  ;;  %v5612_v25 = vadd.f32 %v12044_v60, %v5611_v40 }
 0xe18   : > { %v5636_v5 = vsel %vm5633_vm6, %v5635_v41, %v5631_v8  ;;  %vm5618_vm14 = vcmp.eq.f32.partialorder %v5617_v49, 8.507059e+37  ;;  %v5650_v39 = vor.u32 1.1754944e-38, %v5649_v47  ;;  %vm5052_vm3 = vweird.f32 %v4904_v20 }
 0xe19   : > { %v5661_v7 = vsel %vm5660_vm8, %v8469_v55, %v5657_v53  ;;  %6161 = vmatmul.bf16.gmra.mxu1 %v6002_v37  ;;  %v5977_v45 = vmul.f32 %v5636_v5, %v11953_v21  ;;  %v5616_v21 = vsel %vm5615_vm12, %v12044_v60, %v5612_v25  ;;  %v5620_v55 = vor.u32 1.1754944e-38, %v5619_v62 }
 0xe1a   : > { %v5666_v33 = vsel %vm5663_vm9, %v5665_v56, %v5661_v7  ;;  %v8473_v48 = vpop.eup %8472 }
 0xe1b   : > { %v5979_v42 = vmul.f32 %v5666_v33, %v11965_v2  ;;  %v5639_v34 = vmul.f32 %v8473_v48, %v5466_v17  ;;  %vm5644_vm13 = vweird.f32 %v8473_v48  ;;  %v5647_v2 = vand.u32 2147483647, %v5466_v17 }
 0xe1c   : > { %v8475_v16 = vpop.eup %8474  ;;  %v5621_v14 = vsel %vm5618_vm14, %v5620_v55, %v5616_v21  ;;  %vm5645_vm0 = vmor %vm5643_vm15, %vm5644_vm13 }
 0xe1d   : > { %v6005_v26 = vpack.c.bf16 %v5979_v42, %v5977_v45  ;;  %v5640_v12 = vsub.f32 1.0, %v5639_v34  ;;  %vm5648_vm1 = vcmp.eq.f32.partialorder %v5647_v2, 8.507059e+37  ;;  %v5047_v30 = vmul.f32 %v8475_v16, %v4904_v20  ;;  %v8590_v20 = vld [vmem:[%s9633_s25] ss:$0 sm:$0xff] }
 0xe1e   : > { %v5976_v51 = vmul.f32 %v5621_v14, %v11956_v11  ;;  %vm5053_vm2 = vweird.f32 %v8475_v16  ;;  %v8591_v34 = vld [vmem:[%s13411_s22] ss:$0 sm:$0xff] }
 0xe1f   : > { %v5641_v57 = vmul.f32 %v8473_v48, %v5640_v12  ;;  %v5048_v3 = vmul.f32 %v8475_v16, %v5047_v30  ;;  %vm5054_vm4 = vmor %vm5052_vm3, %vm5053_vm2 }
 0xe21   : > { %v5642_v52 = vadd.f32 %v8473_v48, %v5641_v57  ;;  %v5049_v63 = vmul.f32 0.5, %v5048_v3 }
 0xe23   : > { %6215 = vmatmul.bf16.gmra.mxu2 %v6005_v26  ;;  %v5646_v31 = vsel %vm5645_vm0, %v8473_v48, %v5642_v52  ;;  %v5050_v17 = vsub.f32 1.5, %v5049_v63 }
 0xe24   : > { %v5651_v24 = vsel %vm5648_vm1, %v5650_v39, %v5646_v31 }
 0xe25   : > { %v5978_v60 = vmul.f32 %v5651_v24, %v11995_v54  ;;  %v5051_v22 = vmul.f32 %v8475_v16, %v5050_v17 }
 0xe27   : > { %v6004_v43 = vpack.c.bf16 %v5978_v60, %v5976_v51  ;;  %v5055_v11 = vsel %vm5054_vm4, %v8475_v16, %v5051_v22 }
 0xe28   : > { %v5080_v41 = vmul.f32 %v5055_v11, %v11682_v1 }
 0xe29   : > { %6166 = vmatmul.bf16.gmra.mxu1 %v6004_v43 }
 0xe2a   : > { %v5099_v7 = vmul.f32 %v8590_v20, %v5080_v41 }
 0xe2c   : > { %v5118_v62 = vadd.f32 %v8591_v34, %v5099_v7 }
 0xe31   : > { %v4873_v61 = vpop.xlane.xlu0 %4872 }
 0xe32   : > { %v4889_v18 = vmul.f32 %v4873_v61, %v13381_v50 }
 0xe34   : > { %v4905_v38 = vadd.f32 1e-05, %v4889_v18 }
 0xe36   : > { %8476 = vrsqrt.f32 %v4905_v38  ;;  %vm5062_vm6 = vweird.f32 %v4905_v38 }
 0xe3c   : > { %v8477_v58 = vpop.eup %8476 }
 0xe3d   : > { %v5057_v0 = vmul.f32 %v8477_v58, %v4905_v38  ;;  %vm5063_vm5 = vweird.f32 %v8477_v58 }
 0xe3e   : > { %vm5064_vm7 = vmor %vm5062_vm6, %vm5063_vm5 }
 0xe3f   : > { %v5058_v29 = vmul.f32 %v8477_v58, %v5057_v0 }
 0xe41   : > { %v5059_v54 = vmul.f32 0.5, %v5058_v29 }
 0xe43   : > { %v5060_v8 = vsub.f32 1.5, %v5059_v54  ;;  %v5303_v27 = vpop.f32.mrf.mxu0 }
 0xe44   : > { %v12077_v50 = vadd.f32 %v5303_v27, %v11717_v59 }
 0xe45   : > { %v5061_v53 = vmul.f32 %v8477_v58, %v5060_v8 }
 0xe46   : > { %v7589_v37 = vmul.f32 -1.702, %v12077_v50 }
 0xe47   : > { %v5065_v5 = vsel %vm5064_vm7, %v8477_v58, %v5061_v53 }
 0xe48   : > { %v5081_v40 = vmul.f32 %v5065_v5, %v11700_v32  ;;  %v5418_v56 = vmul.f32 1.442695, %v7589_v37 }
 0xe49   : > { %v5254_v33 = vpop.f32.mrf.mxu3 }
 0xe4a   : > { %8478 = vpow2.f32 %v5418_v56  ;;  %v12083_v48 = vadd.f32 %v5254_v33, %v11730_v15  ;;  %v5100_v1 = vmul.f32 %v8590_v20, %v5081_v40 }
 0xe4b   : > { %v5305_v45 = vpop.f32.mrf.mxu0 }
 0xe4c   : > { %v7588_v42 = vmul.f32 -1.702, %v12083_v48  ;;  %v12087_v25 = vadd.f32 %v5305_v45, %v11717_v59  ;;  %v5119_v26 = vadd.f32 %v8591_v34, %v5100_v1 }
 0xe4e   : > { %v5416_v32 = vmul.f32 1.442695, %v7588_v42  ;;  %v7591_v49 = vmul.f32 -1.702, %v12087_v25  ;;  %v5127_v12 = vpack.c.bf16 %v5119_v26, %v5118_v62 }
 0xe50   : > { %v8479_v47 = vpop.eup %8478  ;;  %8480 = vpow2.f32 %v5416_v32  ;;  %v5422_v21 = vmul.f32 1.442695, %v7591_v49  ;;  %5273 = vmatmul.bf16.gmra.mxu3 %v5127_v12  ;;  %5322 = vmatmul.bf16.gmra.mxu0 %v5127_v12 }
 0xe51   : > { %v5469_v57 = vadd.f32 1.0, %v8479_v47  ;;  %v5256_v2 = vpop.f32.mrf.mxu3 }
 0xe52   : > { %8482 = vpow2.f32 %v5422_v21  ;;  %v12093_v55 = vadd.f32 %v5256_v2, %v11730_v15 }
 0xe53   : > { %8484 = vrcp.f32 %v5469_v57  ;;  %v5692_v63 = vand.u32 2147483647, %v5469_v57  ;;  %v5694_v58 = vand.u32 2147483648, %v5469_v57  ;;  %vm5688_vm8 = vweird.f32 %v5469_v57 }
 0xe54   : > { %v7590_v52 = vmul.f32 -1.702, %v12093_v55 }
 0xe55   : > { %vm12110_vm10 = vcmp.eq.f32.partialorder %v5692_v63, 8.507059e+37  ;;  %v5695_v5 = vor.u32 1.1754944e-38, %v5694_v58 }
 0xe56   : > { %v8481_v16 = vpop.eup %8480  ;;  %v5420_v14 = vmul.f32 1.442695, %v7590_v52 }
 0xe57   : > { %v12096_v39 = vadd.f32 1.0, %v8481_v16 }
 0xe58   : > { %v8483_v31 = vpop.eup %8482  ;;  %8486 = vpow2.f32 %v5420_v14 }
 0xe59   : > { %v8485_v24 = vpop.eup %8484  ;;  %8488 = vrcp.f32 %v12096_v39  ;;  %v5471_v51 = vadd.f32 1.0, %v8483_v31  ;;  %vm5673_vm11 = vweird.f32 %v12096_v39  ;;  %v5677_v56 = vand.u32 2147483647, %v12096_v39 }
 0xe5a   : > { %v5684_v30 = vmul.f32 %v8485_v24, %v5469_v57  ;;  %v5308_v43 = vpop.f32.mrf.mxu0  ;;  %vm5689_vm9 = vweird.f32 %v8485_v24  ;;  %v5679_v20 = vand.u32 2147483648, %v12096_v39 }
 0xe5b   : > { %8490 = vrcp.f32 %v5471_v51  ;;  %v12100_v61 = vadd.f32 %v5308_v43, %v11717_v59  ;;  %v5722_v54 = vand.u32 2147483647, %v5471_v51  ;;  %v5724_v40 = vand.u32 2147483648, %v5471_v51  ;;  %vm12121_vm12 = vmor %vm5688_vm8, %vm5689_vm9 }
 0xe5c   : > { %v5685_v60 = vsub.f32 1.0, %v5684_v30  ;;  %vm5718_vm13 = vweird.f32 %v5471_v51  ;;  %vm5678_vm6 = vcmp.eq.f32.partialorder %v5677_v56, 8.507059e+37 }
 0xe5d   : > { %v7593_v0 = vmul.f32 -1.702, %v12100_v61  ;;  %vm12126_vm14 = vcmp.eq.f32.partialorder %v5722_v54, 8.507059e+37  ;;  %v5725_v47 = vor.u32 1.1754944e-38, %v5724_v40 }
 0xe5e   : > { %v8487_v3 = vpop.eup %8486  ;;  %v5686_v38 = vmul.f32 %v8485_v24, %v5685_v60 }
 0xe5f   : > { %v12102_v18 = vpop.eup %8488  ;;  %v12104_v17 = vadd.f32 1.0, %v8487_v3  ;;  %v5426_v8 = vmul.f32 1.442695, %v7593_v0 }
 0xe60   : > { %v5669_v22 = vmul.f32 %v12102_v18, %v12096_v39  ;;  %v5687_v27 = vadd.f32 %v8485_v24, %v5686_v38  ;;  %v5259_v37 = vpop.f32.mrf.mxu3  ;;  %vm5674_vm0 = vweird.f32 %v12102_v18 }
 0xe61   : > { %8492 = vrcp.f32 %v12104_v17  ;;  %v8491_v29 = vpop.eup %8490  ;;  %v12118_v33 = vadd.f32 %v5259_v37, %v11730_v15  ;;  %v5707_v52 = vand.u32 2147483647, %v12104_v17  ;;  %v5709_v16 = vand.u32 2147483648, %v12104_v17  ;;  %vm12155_vm3 = vmor %vm5673_vm11, %vm5674_vm0 }
 0xe62   : > { %v5670_v11 = vsub.f32 1.0, %v5669_v22  ;;  %v5714_v53 = vmul.f32 %v8491_v29, %v5471_v51  ;;  %8494 = vpow2.f32 %v5426_v8  ;;  %v5310_v1 = vpop.f32.mrf.mxu0  ;;  %v5691_v32 = vsel %vm12121_vm12, %v8485_v24, %v5687_v27 }
 0xe63   : > { %v12131_v62 = vadd.f32 %v5310_v1, %v11717_v59  ;;  %vm5719_vm15 = vweird.f32 %v8491_v29  ;;  %v7592_v12 = vmul.f32 -1.702, %v12118_v33  ;;  %v5696_v24 = vsel %vm12110_vm10, %v5695_v5, %v5691_v32 }
 0xe64   : > { %v5715_v7 = vsub.f32 1.0, %v5714_v53  ;;  %v5671_v42 = vmul.f32 %v12102_v18, %v5670_v11  ;;  %vm5720_vm1 = vmor %vm5718_vm13, %vm5719_vm15  ;;  %v5981_v11 = vmul.f32 %v5696_v24, %v12077_v50  ;;  %vm5703_vm4 = vweird.f32 %v12104_v17 }
 0xe65   : > { %v7595_v57 = vmul.f32 -1.702, %v12131_v62  ;;  %v5424_v14 = vmul.f32 1.442695, %v7592_v12  ;;  %v5680_v27 = vor.u32 1.1754944e-38, %v5679_v20  ;;  %v5710_v39 = vor.u32 1.1754944e-38, %v5709_v16 }
 0xe66   : > { %v5716_v49 = vmul.f32 %v8491_v29, %v5715_v7  ;;  %v5672_v30 = vadd.f32 %v12102_v18, %v5671_v42  ;;  %vm5708_vm7 = vcmp.eq.f32.partialorder %v5707_v52, 8.507059e+37 }
 0xe67   : > { %v8493_v26 = vpop.eup %8492  ;;  %v5430_v43 = vmul.f32 1.442695, %v7595_v57  ;;  %8496 = vpow2.f32 %v5424_v14 }
 0xe68   : > { %v5699_v21 = vmul.f32 %v8493_v26, %v12104_v17  ;;  %v5717_v2 = vadd.f32 %v8491_v29, %v5716_v49  ;;  %v8495_v31 = vpop.eup %8494  ;;  %vm5704_vm2 = vweird.f32 %v8493_v26  ;;  %v5261_v63 = vpop.f32.mrf.mxu3  ;;  %v5676_v54 = vsel %vm12155_vm3, %v12102_v18, %v5672_v30 }
 0xe69   : > { %v5473_v38 = vadd.f32 1.0, %v8495_v31  ;;  %8498 = vpow2.f32 %v5430_v43  ;;  %v12148_v0 = vadd.f32 %v5261_v63, %v11730_v15  ;;  %vm5705_vm5 = vmor %vm5703_vm4, %vm5704_vm2  ;;  %v5681_v5 = vsel %vm5678_vm6, %v5680_v27, %v5676_v54 }
 0xe6a   : > { %v5700_v60 = vsub.f32 1.0, %v5699_v21  ;;  %v5721_v3 = vsel %vm5720_vm1, %v8491_v29, %v5717_v2  ;;  %v5980_v45 = vmul.f32 %v5681_v5, %v12083_v48 }
 0xe6b   : > { %v5726_v58 = vsel %vm12126_vm14, %v5725_v47, %v5721_v3  ;;  %8500 = vrcp.f32 %v5473_v38  ;;  %v7594_v50 = vmul.f32 -1.702, %v12148_v0  ;;  %v5752_v49 = vand.u32 2147483647, %v5473_v38 }
 0xe6c   : > { %v5701_v22 = vmul.f32 %v8493_v26, %v5700_v60  ;;  %v5983_v29 = vmul.f32 %v5726_v58, %v12087_v25  ;;  %v5754_v12 = vand.u32 2147483648, %v5473_v38  ;;  %vm5748_vm9 = vweird.f32 %v5473_v38 }
 0xe6d   : > { %v5428_v37 = vmul.f32 1.442695, %v7594_v50  ;;  %v8497_v25 = vpop.eup %8496  ;;  %vm12186_vm10 = vcmp.eq.f32.partialorder %v5752_v49, 8.507059e+37 }
 0xe6e   : > { %v5702_v8 = vadd.f32 %v8493_v26, %v5701_v22  ;;  %v6007_v41 = vpack.c.bf16 %v5983_v29, %v5981_v11  ;;  %v12167_v17 = vadd.f32 1.0, %v8497_v25  ;;  %v5755_v60 = vor.u32 1.1754944e-38, %v5754_v12 }
 0xe6f   : > { %v8499_v18 = vpop.eup %8498  ;;  %8502 = vpow2.f32 %v5428_v37 }
 0xe70   : > { %v5706_v53 = vsel %vm5705_vm5, %v8493_v26, %v5702_v8  ;;  %6220 = vmatmul.bf16.gmra.mxu2 %v6007_v41  ;;  %v5475_v1 = vadd.f32 1.0, %v8499_v18  ;;  %8504 = vrcp.f32 %v12167_v17  ;;  %v12176_v26 = vld [vmem:[%s1060_s14] ss:$0 sm:$0xff]  ;;  %vm5733_vm12 = vweird.f32 %v12167_v17  ;;  %s13451_s14 = sld [smem:[#allocation37_spill]] }
 0xe71   : > { %v5711_v40 = vsel %vm5708_vm7, %v5710_v39, %v5706_v53  ;;  %v8501_v20 = vpop.eup %8500  ;;  %v5737_v29 = vand.u32 2147483647, %v12167_v17  ;;  %v5739_v50 = vand.u32 2147483648, %v12167_v17 }
 0xe72   : > { %v5982_v7 = vmul.f32 %v5711_v40, %v12093_v55  ;;  %v5744_v42 = vmul.f32 %v8501_v20, %v5473_v38  ;;  %8506 = vrcp.f32 %v5475_v1  ;;  %vm5749_vm8 = vweird.f32 %v8501_v20 }
 0xe73   : > { %vm12190_vm11 = vmor %vm5748_vm9, %vm5749_vm8  ;;  %v5782_v3 = vand.u32 2147483647, %v5475_v1  ;;  %v5784_v54 = vand.u32 2147483648, %v5475_v1  ;;  %vm5778_vm15 = vweird.f32 %v5475_v1  ;;  %vm5738_vm4 = vcmp.eq.f32.partialorder %v5737_v29, 8.507059e+37 }
 0xe74   : > { %v5745_v56 = vsub.f32 1.0, %v5744_v42  ;;  %v6006_v34 = vpack.c.bf16 %v5982_v7, %v5980_v45 }
 0xe75   : > { %v8503_v55 = vpop.eup %8502  ;;  %vm12210_vm0 = vcmp.eq.f32.partialorder %v5782_v3, 8.507059e+37  ;;  %v5785_v7 = vor.u32 1.1754944e-38, %v5784_v54 }
 0xe76   : > { %v5746_v32 = vmul.f32 %v8501_v20, %v5745_v56  ;;  %6171 = vmatmul.bf16.gmra.mxu1 %v6006_v34  ;;  %v12178_v47 = vadd.f32 1.0, %v8503_v55  ;;  %v12180_v21 = vpop.eup %8504  ;;  %p7672_p13 = scmp.ne.s32.totalorder %s13451_s14, 1 }
 0xe77   : > { %v5729_v16 = vmul.f32 %v12180_v21, %v12167_v17  ;;  %vm5734_vm14 = vweird.f32 %v12180_v21  ;;  %s13452_s10 = scalar_lea.vmem (!%p7672_p13), [#allocation9], %s9568_s9  ;;  %s13456_s15 = sld [smem:[#allocation105_spill]] (!%p7672_p13) }
 0xe78   : > { %v5747_v57 = vadd.f32 %v8501_v20, %v5746_v32  ;;  %v8507_v52 = vpop.eup %8506  ;;  %8508 = vrcp.f32 %v12178_v47  ;;  %v5769_v45 = vand.u32 2147483648, %v12178_v47  ;;  %vm12225_vm2 = vmor %vm5733_vm12, %vm5734_vm14  ;;  %vm5763_vm5 = vweird.f32 %v12178_v47  ;;  %s13459_s6 = sld [smem:[#allocation106_spill]] (!%p7672_p13) }
 0xe79   : > { %v6157_v48 = vpop.f32.mrf.mxu1  ;;  %v5774_v24 = vmul.f32 %v8507_v52, %v5475_v1  ;;  %v5730_v43 = vsub.f32 1.0, %v5729_v16  ;;  %vm5779_vm13 = vweird.f32 %v8507_v52 }
 0xe7a   : > { %v6158_v2 = vadd.f32 %v12176_v26, %v6157_v48  ;;  %v5313_v63 = vpop.f32.mrf.mxu0  ;;  %v5751_v22 = vsel %vm12190_vm11, %v8501_v20, %v5747_v57  ;;  %vm5780_vm1 = vmor %vm5778_vm15, %vm5779_vm13  ;;  %v5767_v20 = vand.u32 2147483647, %v12178_v47 }
 0xe7b   : > { %v6206_v14 = vpop.f32.mrf.mxu2  ;;  %v5775_v38 = vsub.f32 1.0, %v5774_v24  ;;  %v12198_v11 = vadd.f32 %v5313_v63, %v11717_v59  ;;  %v5731_v51 = vmul.f32 %v12180_v21, %v5730_v43  ;;  %v5756_v53 = vsel %vm12186_vm10, %v5755_v60, %v5751_v22 }
 0xe7c   : > { %v6207_v58 = vadd.f32 %v6206_v14, %v6158_v2  ;;  %v5985_v56 = vmul.f32 %v5756_v53, %v12100_v61  ;;  %v5740_v14 = vor.u32 1.1754944e-38, %v5739_v50  ;;  %vm5768_vm7 = vcmp.eq.f32.partialorder %v5767_v20, 8.507059e+37 }
 0xe7d   : > { %v5776_v27 = vmul.f32 %v8507_v52, %v5775_v38  ;;  %v7597_v39 = vmul.f32 -1.702, %v12198_v11  ;;  %v5732_v25 = vadd.f32 %v12180_v21, %v5731_v51 }
 0xe7e   : > { %v12203_v8 = vadd.f32 %v6207_v58, %v11460_v36  ;;  %v8509_v41 = vpop.eup %8508 }
 0xe7f   : > { %v5777_v5 = vadd.f32 %v8507_v52, %v5776_v27  ;;  %v5759_v40 = vmul.f32 %v8509_v41, %v12178_v47  ;;  %v5434_v18 = vmul.f32 1.442695, %v7597_v39  ;;  %v5264_v1 = vpop.f32.mrf.mxu3  ;;  %vm5764_vm3 = vweird.f32 %v8509_v41 }
 0xe80   : > { %6262 = vst [vmem:[#allocation2 + $0x30] sm:$0xff] %v12203_v8  ;;  %v12232_v48 = vadd.f32 %v5264_v1, %v11730_v15  ;;  %v5736_v2 = vsel %vm12225_vm2, %v12180_v21, %v5732_v25  ;;  %vm5765_vm6 = vmor %vm5763_vm5, %vm5764_vm3 }
 0xe81   : > { %v6159_v36 = vpop.f32.mrf.mxu1  ;;  %v5781_v34 = vsel %vm5780_vm1, %v8507_v52, %v5777_v5  ;;  %v5760_v55 = vsub.f32 1.0, %v5759_v40  ;;  %8510 = vpow2.f32 %v5434_v18  ;;  %v5741_v21 = vsel %vm5738_vm4, %v5740_v14, %v5736_v2 }
 0xe82   : > { %v6160_v42 = vadd.f32 %v12176_v26, %v6159_v36  ;;  %v5786_v12 = vsel %vm12210_vm0, %v5785_v7, %v5781_v34  ;;  %v5315_v61 = vpop.f32.mrf.mxu0  ;;  %v7596_v31 = vmul.f32 -1.702, %v12232_v48  ;;  %v5984_v47 = vmul.f32 %v5741_v21, %v12118_v33 }
 0xe83   : > { %v6208_v32 = vpop.f32.mrf.mxu2  ;;  %v5987_v52 = vmul.f32 %v5786_v12, %v12131_v62  ;;  %v5761_v17 = vmul.f32 %v8509_v41, %v5760_v55  ;;  %v12239_v16 = vadd.f32 %v5315_v61, %v11717_v59  ;;  %v5770_v62 = vor.u32 1.1754944e-38, %v5769_v45 }
 0xe84   : > { %v6209_v57 = vadd.f32 %v6208_v32, %v6160_v42  ;;  %v5432_v3 = vmul.f32 1.442695, %v7596_v31 }
 0xe85   : > { %v5762_v30 = vadd.f32 %v8509_v41, %v5761_v17  ;;  %v7599_v60 = vmul.f32 -1.702, %v12239_v16  ;;  %v6009_v43 = vpack.c.bf16 %v5987_v52, %v5985_v56 }
 0xe86   : > { %v12243_v24 = vadd.f32 %v6209_v57, %v11468_v13  ;;  %8512 = vpow2.f32 %v5432_v3 }
 0xe87   : > { %v8511_v63 = vpop.eup %8510  ;;  %v5766_v58 = vsel %vm5765_vm6, %v8509_v41, %v5762_v30  ;;  %v5438_v22 = vmul.f32 1.442695, %v7599_v60  ;;  %6225 = vmatmul.bf16.gmra.mxu2 %v6009_v43  ;;  %v5266_v51 = vpop.f32.mrf.mxu3 }
 0xe88   : > { %6263 = vst [vmem:[#allocation2] sm:$0xff] %v12243_v24  ;;  %v5771_v13 = vsel %vm5768_vm7, %v5770_v62, %v5766_v58  ;;  %v5477_v38 = vadd.f32 1.0, %v8511_v63  ;;  %v12252_v54 = vadd.f32 %v5266_v51, %v11730_v15 }
 0xe89   : > { %v5986_v29 = vmul.f32 %v5771_v13, %v12148_v0  ;;  %8514 = vpow2.f32 %v5438_v22 }
 0xe8a   : > { %8516 = vrcp.f32 %v5477_v38  ;;  %v5318_v50 = vpop.f32.mrf.mxu0  ;;  %v7598_v27 = vmul.f32 -1.702, %v12252_v54  ;;  %v5812_v45 = vand.u32 2147483647, %v5477_v38  ;;  %v5814_v55 = vand.u32 2147483648, %v5477_v38 }
 0xe8b   : > { %v12256_v39 = vadd.f32 %v5318_v50, %v11717_v59  ;;  %v6008_v41 = vpack.c.bf16 %v5986_v29, %v5984_v47  ;;  %vm5808_vm8 = vweird.f32 %v5477_v38 }
 0xe8c   : > { %v5436_v53 = vmul.f32 1.442695, %v7598_v27  ;;  %v8513_v36 = vpop.eup %8512  ;;  %vm12272_vm10 = vcmp.eq.f32.partialorder %v5812_v45, 8.507059e+37  ;;  %v5815_v60 = vor.u32 1.1754944e-38, %v5814_v55 }
 0xe8d   : > { %v7601_v37 = vmul.f32 -1.702, %v12256_v39  ;;  %6176 = vmatmul.bf16.gmra.mxu1 %v6008_v41  ;;  %v12259_v25 = vadd.f32 1.0, %v8513_v36 }
 0xe8e   : > { %8518 = vpow2.f32 %v5436_v53 }
 0xe8f   : > { %v8515_v33 = vpop.eup %8514  ;;  %v5442_v0 = vmul.f32 1.442695, %v7601_v37  ;;  %8520 = vrcp.f32 %v12259_v25  ;;  %v5269_v7 = vpop.f32.mrf.mxu3  ;;  %v5799_v31 = vand.u32 2147483648, %v12259_v25  ;;  %vm5793_vm11 = vweird.f32 %v12259_v25 }
 0xe90   : > { %v8517_v5 = vpop.eup %8516  ;;  %v5479_v40 = vadd.f32 1.0, %v8515_v33  ;;  %v12263_v42 = vadd.f32 %v5269_v7, %v11730_v15  ;;  %v5797_v3 = vand.u32 2147483647, %v12259_v25 }
 0xe91   : > { %v5804_v18 = vmul.f32 %v8517_v5, %v5477_v38  ;;  %vm5809_vm9 = vweird.f32 %v8517_v5  ;;  %v5800_v53 = vor.u32 1.1754944e-38, %v5799_v31 }
 0xe92   : > { %8522 = vrcp.f32 %v5479_v40  ;;  %v5320_v1 = vpop.f32.mrf.mxu0  ;;  %v7600_v57 = vmul.f32 -1.702, %v12263_v42  ;;  %v5842_v21 = vand.u32 2147483647, %v5479_v40  ;;  %vm12288_vm12 = vmor %vm5808_vm8, %vm5809_vm9  ;;  %vm5838_vm13 = vweird.f32 %v5479_v40 }
 0xe93   : > { %v5805_v20 = vsub.f32 1.0, %v5804_v18  ;;  %8524 = vpow2.f32 %v5442_v0  ;;  %v12268_v49 = vadd.f32 %v5320_v1, %v11717_v59  ;;  %v5844_v47 = vand.u32 2147483648, %v5479_v40 }
 0xe94   : > { %v8519_v56 = vpop.eup %8518  ;;  %v5440_v29 = vmul.f32 1.442695, %v7600_v57  ;;  %vm12296_vm15 = vcmp.eq.f32.partialorder %v5842_v21, 8.507059e+37  ;;  %vm5798_vm4 = vcmp.eq.f32.partialorder %v5797_v3, 8.507059e+37 }
 0xe95   : > { %v5806_v34 = vmul.f32 %v8517_v5, %v5805_v20  ;;  %v12265_v32 = vadd.f32 1.0, %v8519_v56  ;;  %v12270_v12 = vpop.eup %8520  ;;  %v7603_v58 = vmul.f32 -1.702, %v12268_v49  ;;  %v5845_v1 = vor.u32 1.1754944e-38, %v5844_v47 }
 0xe96   : > { %v6211_v2 = vpop.f32.mrf.mxu2  ;;  %v5789_v14 = vmul.f32 %v12270_v12, %v12259_v25  ;;  %v6162_v22 = vpop.f32.mrf.mxu1  ;;  %vm5794_vm0 = vweird.f32 %v12270_v12 }
 0xe97   : > { %v5807_v17 = vadd.f32 %v8517_v5, %v5806_v34  ;;  %8526 = vrcp.f32 %v12265_v32  ;;  %v5271_v50 = vpop.f32.mrf.mxu3  ;;  %v5446_v33 = vmul.f32 1.442695, %v7603_v58  ;;  %v5827_v56 = vand.u32 2147483647, %v12265_v32  ;;  %vm12320_vm2 = vmor %vm5793_vm11, %vm5794_vm0 }
 0xe98   : > { %v8523_v52 = vpop.eup %8522  ;;  %v5790_v62 = vsub.f32 1.0, %v5789_v14  ;;  %v12302_v0 = vadd.f32 %v5271_v50, %v11730_v15  ;;  %vm5823_vm5 = vweird.f32 %v12265_v32 }
 0xe99   : > { %v8525_v30 = vpop.eup %8524  ;;  %v5834_v43 = vmul.f32 %v8523_v52, %v5479_v40  ;;  %v5811_v27 = vsel %vm12288_vm12, %v8517_v5, %v5807_v17  ;;  %vm5839_vm14 = vweird.f32 %v8523_v52  ;;  %v6163_v5 = vadd.f32 %v12176_v26, %v6162_v22 }
 0xe9a   : > { %v12283_v63 = vadd.f32 1.0, %v8525_v30  ;;  %v5791_v41 = vmul.f32 %v12270_v12, %v5790_v62  ;;  %v5816_v18 = vsel %vm12272_vm10, %v5815_v60, %v5811_v27  ;;  %vm5840_vm1 = vmor %vm5838_vm13, %vm5839_vm14  ;;  %v7602_v34 = vmul.f32 -1.702, %v12302_v0 }
 0xe9b   : > { %v5835_v51 = vsub.f32 1.0, %v5834_v43  ;;  %v5829_v17 = vand.u32 2147483648, %v12265_v32  ;;  %v6212_v14 = vadd.f32 %v6211_v2, %v6163_v5  ;;  %v5989_v30 = vmul.f32 %v5816_v18, %v12198_v11 }
 0xe9c   : > { %8528 = vrcp.f32 %v12283_v63  ;;  %v5792_v7 = vadd.f32 %v12270_v12, %v5791_v41  ;;  %v5444_v60 = vmul.f32 1.442695, %v7602_v34  ;;  %vm5828_vm7 = vcmp.eq.f32.partialorder %v5827_v56, 8.507059e+37 }
 0xe9d   : > { %v5836_v37 = vmul.f32 %v8523_v52, %v5835_v51  ;;  %8530 = vpow2.f32 %v5440_v29  ;;  %v8527_v36 = vpop.eup %8526  ;;  %v12335_v22 = vadd.f32 %v6212_v14, %v11480_v28  ;;  %vm5868_vm9 = vweird.f32 %v12283_v63 }
 0xe9e   : > { %v5819_v45 = vmul.f32 %v8527_v36, %v12265_v32  ;;  %8532 = vpow2.f32 %v5446_v33  ;;  %v6213_v61 = vpop.f32.mrf.mxu2  ;;  %vm5824_vm3 = vweird.f32 %v8527_v36  ;;  %v6164_v43 = vpop.f32.mrf.mxu1  ;;  %v5796_v21 = vsel %vm12320_vm2, %v12270_v12, %v5792_v7 }
 0xe9f   : > { %v5837_v20 = vadd.f32 %v8523_v52, %v5836_v37  ;;  %8534 = vpow2.f32 %v5444_v60  ;;  %v6165_v13 = vadd.f32 %v12176_v26, %v6164_v43  ;;  %v5801_v29 = vsel %vm5798_vm4, %v5800_v53, %v5796_v21  ;;  %vm5825_vm6 = vmor %vm5823_vm5, %vm5824_vm3  ;;  %6264 = vst [vmem:[#allocation2 + $0x58] sm:$0xff] %v12335_v22 }
 0xea0   : > { %v5820_v57 = vsub.f32 1.0, %v5819_v45  ;;  %v5988_v37 = vmul.f32 %v5801_v29, %v12232_v48 }
 0xea1   : > { %v5841_v55 = vsel %vm5840_vm1, %v8523_v52, %v5837_v20  ;;  %v6214_v41 = vadd.f32 %v6213_v61, %v6165_v13 }
 0xea2   : > { %v12313_v31 = vpop.eup %8528  ;;  %v5846_v52 = vsel %vm12296_vm15, %v5845_v1, %v5841_v55  ;;  %v5821_v62 = vmul.f32 %v8527_v36, %v5820_v57  ;;  %v5874_v1 = vand.u32 2147483648, %v12283_v63 }
 0xea3   : > { %v8531_v2 = vpop.eup %8530  ;;  %v5991_v11 = vmul.f32 %v5846_v52, %v12239_v16  ;;  %v5864_v25 = vmul.f32 %v12313_v31, %v12283_v63  ;;  %v5830_v16 = vor.u32 1.1754944e-38, %v5829_v17  ;;  %v12346_v33 = vadd.f32 %v6214_v41, %v11484_v23 }
 0xea4   : > { %v12332_v58 = vadd.f32 1.0, %v8531_v2  ;;  %v5822_v51 = vadd.f32 %v8527_v36, %v5821_v62  ;;  %v8533_v12 = vpop.eup %8532  ;;  %vm5869_vm8 = vweird.f32 %v12313_v31  ;;  %v5875_v52 = vor.u32 1.1754944e-38, %v5874_v1 }
 0xea5   : > { %v6011_v47 = vpack.c.bf16 %v5991_v11, %v5989_v30  ;;  %v5865_v50 = vsub.f32 1.0, %v5864_v25  ;;  %v5483_v28 = vadd.f32 1.0, %v8533_v12  ;;  %v8535_v53 = vpop.eup %8534  ;;  %6265 = vst [vmem:[#allocation2 + $0x18] sm:$0xff] %v12346_v33  ;;  %vm12362_vm10 = vmor %vm5868_vm9, %vm5869_vm8 }
 0xea6   : > { %8536 = vrcp.f32 %v12332_v58  ;;  %v5826_v27 = vsel %vm5825_vm6, %v8527_v36, %v5822_v51  ;;  %v12348_v5 = vadd.f32 1.0, %v8535_v53  ;;  %v6167_v36 = vpop.f32.mrf.mxu1  ;;  %v6216_v7 = vpop.f32.mrf.mxu2  ;;  %vm5853_vm12 = vweird.f32 %v12332_v58 }
 0xea7   : > { %6230 = vmatmul.bf16.gmra.mxu2 %v6011_v47  ;;  %v5831_v3 = vsel %vm5828_vm7, %v5830_v16, %v5826_v27  ;;  %8538 = vrcp.f32 %v5483_v28  ;;  %v5866_v38 = vmul.f32 %v12313_v31, %v5865_v50  ;;  %v6168_v48 = vadd.f32 %v12176_v26, %v6167_v36 }
 0xea8   : > { %v5990_v32 = vmul.f32 %v5831_v3, %v12252_v54  ;;  %v5872_v54 = vand.u32 2147483647, %v12283_v63  ;;  %8540 = vrcp.f32 %v12348_v5  ;;  %v5902_v60 = vand.u32 2147483647, %v5483_v28 }
 0xea9   : > { %v5867_v23 = vadd.f32 %v12313_v31, %v5866_v38  ;;  %v6217_v56 = vadd.f32 %v6216_v7, %v6168_v48  ;;  %v5904_v2 = vand.u32 2147483648, %v5483_v28  ;;  %v5857_v13 = vand.u32 2147483647, %v12332_v58 }
 0xeaa   : > { %v6010_v18 = vpack.c.bf16 %v5990_v32, %v5988_v37  ;;  %vm12366_vm11 = vcmp.eq.f32.partialorder %v5872_v54, 8.507059e+37  ;;  %v5859_v51 = vand.u32 2147483648, %v12332_v58  ;;  %vm5898_vm15 = vweird.f32 %v5483_v28 }
 0xeab   : > { %v12372_v30 = vadd.f32 %v6217_v56, %v11488_v46  ;;  %v5871_v40 = vsel %vm12362_vm10, %v12313_v31, %v5867_v23  ;;  %vm5903_vm1 = vcmp.eq.f32.partialorder %v5902_v60, 8.507059e+37  ;;  %v5905_v27 = vor.u32 1.1754944e-38, %v5904_v2 }
 0xeac   : > { %v12350_v20 = vpop.eup %8536  ;;  %6181 = vmatmul.bf16.gmra.mxu1 %v6010_v18  ;;  %v5876_v25 = vsel %vm12366_vm11, %v5875_v52, %v5871_v40  ;;  %v5887_v41 = vand.u32 2147483647, %v12348_v5  ;;  %v5889_v3 = vand.u32 2147483648, %v12348_v5  ;;  %vm5858_vm4 = vcmp.eq.f32.partialorder %v5857_v13, 8.507059e+37 }
 0xead   : > { %v5849_v45 = vmul.f32 %v12350_v20, %v12332_v58  ;;  %v8539_v34 = vpop.eup %8538  ;;  %vm5854_vm13 = vweird.f32 %v12350_v20  ;;  %6266 = vst [vmem:[#allocation2 + $0x50] sm:$0xff] %v12372_v30  ;;  %v5860_v53 = vor.u32 1.1754944e-38, %v5859_v51  ;;  %v5993_v18 = vmul.f32 %v5876_v25, %v12256_v39 }
 0xeae   : > { %v5894_v57 = vmul.f32 %v8539_v34, %v5483_v28  ;;  %v8541_v43 = vpop.eup %8540  ;;  %vm5899_vm14 = vweird.f32 %v8539_v34  ;;  %v6169_v21 = vpop.f32.mrf.mxu1  ;;  %vm12389_vm0 = vmor %vm5853_vm12, %vm5854_vm13  ;;  %vm5883_vm5 = vweird.f32 %v12348_v5  ;;  %vm5888_vm7 = vcmp.eq.f32.partialorder %v5887_v41, 8.507059e+37 }
 0xeaf   : > { %v5850_v55 = vsub.f32 1.0, %v5849_v45  ;;  %v5879_v62 = vmul.f32 %v8541_v43, %v12348_v5  ;;  %v6170_v31 = vadd.f32 %v12176_v26, %v6169_v21  ;;  %v6218_v47 = vpop.f32.mrf.mxu2  ;;  %vm5900_vm2 = vmor %vm5898_vm15, %vm5899_vm14  ;;  %vm5884_vm3 = vweird.f32 %v8541_v43 }
 0xeb0   : > { %v5895_v63 = vsub.f32 1.0, %v5894_v57  ;;  %vm5885_vm6 = vmor %vm5883_vm5, %vm5884_vm3 }
 0xeb1   : > { %v5851_v61 = vmul.f32 %v12350_v20, %v5850_v55  ;;  %v5880_v16 = vsub.f32 1.0, %v5879_v62  ;;  %v6219_v50 = vadd.f32 %v6218_v47, %v6170_v31 }
 0xeb2   : > { %v5896_v11 = vmul.f32 %v8539_v34, %v5895_v63 }
 0xeb3   : > { %v5852_v46 = vadd.f32 %v12350_v20, %v5851_v61  ;;  %v5881_v37 = vmul.f32 %v8541_v43, %v5880_v16  ;;  %v12400_v32 = vadd.f32 %v6219_v50, %v11492_v4 }
 0xeb4   : > { %v5897_v29 = vadd.f32 %v8539_v34, %v5896_v11 }
 0xeb5   : > { %v5856_v58 = vsel %vm12389_vm0, %v12350_v20, %v5852_v46  ;;  %v5882_v7 = vadd.f32 %v8541_v43, %v5881_v37  ;;  %6267 = vst [vmem:[#allocation2 + $0x68] sm:$0xff] %v12400_v32  ;;  %v5890_v20 = vor.u32 1.1754944e-38, %v5889_v3 }
 0xeb6   : > { %v5901_v28 = vsel %vm5900_vm2, %v8539_v34, %v5897_v29  ;;  %v5861_v48 = vsel %vm5858_vm4, %v5860_v53, %v5856_v58 }
 0xeb7   : > { %v5906_v38 = vsel %vm5903_vm1, %v5905_v27, %v5901_v28  ;;  %v5886_v54 = vsel %vm5885_vm6, %v8541_v43, %v5882_v7  ;;  %v5992_v23 = vmul.f32 %v5861_v48, %v12263_v42 }
 0xeb8   : > { %v5995_v36 = vmul.f32 %v5906_v38, %v12268_v49  ;;  %v5891_v45 = vsel %vm5888_vm7, %v5890_v20, %v5886_v54 }
 0xeb9   : > { %v5994_v1 = vmul.f32 %v5891_v45, %v12302_v0 }
 0xeba   : > { %v6013_v4 = vpack.c.bf16 %v5995_v36, %v5993_v18 }
 0xebb   : > { %v6012_v39 = vpack.c.bf16 %v5994_v1, %v5992_v23 }
 0xebc   : > { %6235 = vmatmul.bf16.gmra.mxu2 %v6013_v4 }
 0xebd   : > { %6186 = vmatmul.bf16.gmra.mxu1 %v6012_v39 }
 0xecd   : > { %v5323_v49 = vpop.f32.mrf.mxu0 }
 0xece   : > { %v12410_v5 = vadd.f32 %v5323_v49, %v11717_v59 }
 0xed0   : > { %v7605_v56 = vmul.f32 -1.702, %v12410_v5 }
 0xed2   : > { %v5450_v34 = vmul.f32 1.442695, %v7605_v56 }
 0xed3   : > { %v5274_v55 = vpop.f32.mrf.mxu3 }
 0xed4   : > { %8542 = vpow2.f32 %v5450_v34  ;;  %v12414_v57 = vadd.f32 %v5274_v55, %v11730_v15 }
 0xed5   : > { %v5325_v17 = vpop.f32.mrf.mxu0 }
 0xed6   : > { %v7604_v42 = vmul.f32 -1.702, %v12414_v57  ;;  %v12418_v0 = vadd.f32 %v5325_v17, %v11717_v59 }
 0xed8   : > { %v5448_v14 = vmul.f32 1.442695, %v7604_v42  ;;  %v7607_v61 = vmul.f32 -1.702, %v12418_v0 }
 0xeda   : > { %v8543_v40 = vpop.eup %8542  ;;  %8544 = vpow2.f32 %v5448_v14  ;;  %v5454_v52 = vmul.f32 1.442695, %v7607_v61 }
 0xedb   : > { %v5485_v63 = vadd.f32 1.0, %v8543_v40  ;;  %v5276_v60 = vpop.f32.mrf.mxu3 }
 0xedc   : > { %8546 = vpow2.f32 %v5454_v52  ;;  %v12422_v43 = vadd.f32 %v5276_v60, %v11730_v15 }
 0xedd   : > { %8548 = vrcp.f32 %v5485_v63  ;;  %v5932_v3 = vand.u32 2147483647, %v5485_v63  ;;  %v5934_v58 = vand.u32 2147483648, %v5485_v63  ;;  %vm5928_vm9 = vweird.f32 %v5485_v63 }
 0xede   : > { %v7606_v2 = vmul.f32 -1.702, %v12422_v43 }
 0xedf   : > { %vm5933_vm13 = vcmp.eq.f32.partialorder %v5932_v3, 8.507059e+37  ;;  %v5935_v54 = vor.u32 1.1754944e-38, %v5934_v58 }
 0xee0   : > { %v8545_v21 = vpop.eup %8544  ;;  %v5452_v46 = vmul.f32 1.442695, %v7606_v2 }
 0xee1   : > { %v5484_v11 = vadd.f32 1.0, %v8545_v21 }
 0xee2   : > { %v8547_v59 = vpop.eup %8546  ;;  %8550 = vpow2.f32 %v5452_v46 }
 0xee3   : > { %v8549_v62 = vpop.eup %8548  ;;  %8552 = vrcp.f32 %v5484_v11  ;;  %v5487_v25 = vadd.f32 1.0, %v8547_v59  ;;  %vm5913_vm14 = vweird.f32 %v5484_v11  ;;  %v5917_v23 = vand.u32 2147483647, %v5484_v11 }
 0xee4   : > { %v5924_v31 = vmul.f32 %v8549_v62, %v5485_v63  ;;  %vm5929_vm8 = vweird.f32 %v8549_v62  ;;  %v5919_v1 = vand.u32 2147483648, %v5484_v11 }
 0xee5   : > { %8554 = vrcp.f32 %v5487_v25  ;;  %vm12425_vm10 = vmor %vm5928_vm9, %vm5929_vm8  ;;  %v5962_v38 = vand.u32 2147483647, %v5487_v25  ;;  %v5964_v18 = vand.u32 2147483648, %v5487_v25  ;;  %vm5958_vm0 = vweird.f32 %v5487_v25 }
 0xee6   : > { %v5925_v13 = vsub.f32 1.0, %v5924_v31  ;;  %v5920_v21 = vor.u32 1.1754944e-38, %v5919_v1  ;;  %vm5918_vm4 = vcmp.eq.f32.partialorder %v5917_v23, 8.507059e+37 }
 0xee7   : > { %vm5963_vm2 = vcmp.eq.f32.partialorder %v5962_v38, 8.507059e+37  ;;  %v5965_v56 = vor.u32 1.1754944e-38, %v5964_v18 }
 0xee8   : > { %v8551_v51 = vpop.eup %8550  ;;  %v5926_v12 = vmul.f32 %v8549_v62, %v5925_v13 }
 0xee9   : > { %v8553_v47 = vpop.eup %8552  ;;  %v5486_v29 = vadd.f32 1.0, %v8551_v51 }
 0xeea   : > { %v5909_v15 = vmul.f32 %v8553_v47, %v5484_v11  ;;  %v5927_v27 = vadd.f32 %v8549_v62, %v5926_v12  ;;  %vm5914_vm11 = vweird.f32 %v8553_v47 }
 0xeeb   : > { %8556 = vrcp.f32 %v5486_v29  ;;  %v8555_v16 = vpop.eup %8554  ;;  %vm12431_vm15 = vmor %vm5913_vm14, %vm5914_vm11  ;;  %v5947_v42 = vand.u32 2147483647, %v5486_v29  ;;  %v5949_v14 = vand.u32 2147483648, %v5486_v29  ;;  %vm5943_vm5 = vweird.f32 %v5486_v29 }
 0xeec   : > { %v5910_v50 = vsub.f32 1.0, %v5909_v15  ;;  %v5954_v41 = vmul.f32 %v8555_v16, %v5487_v25  ;;  %v5931_v7 = vsel %vm12425_vm10, %v8549_v62, %v5927_v27  ;;  %vm5959_vm12 = vweird.f32 %v8555_v16 }
 0xeed   : > { %v5936_v49 = vsel %vm5933_vm13, %v5935_v54, %v5931_v7  ;;  %vm5960_vm1 = vmor %vm5958_vm0, %vm5959_vm12  ;;  %v5950_v31 = vor.u32 1.1754944e-38, %v5949_v14  ;;  %vm5948_vm7 = vcmp.eq.f32.partialorder %v5947_v42, 8.507059e+37  ;;  %v13448_v42 = vld [vmem:[#allocation50_spill] sm:$0xff] }
 0xeee   : > { %v5911_v28 = vmul.f32 %v8553_v47, %v5910_v50  ;;  %v5955_v37 = vsub.f32 1.0, %v5954_v41  ;;  %v5997_v2 = vmul.f32 %v5936_v49, %v12410_v5  ;;  %v13447_v49 = vld [vmem:[#allocation89_spill] sm:$0xff] }
 0xef0   : > { %v5912_v48 = vadd.f32 %v8553_v47, %v5911_v28  ;;  %v5956_v20 = vmul.f32 %v8555_v16, %v5955_v37 }
 0xef1   : > { %v8557_v36 = vpop.eup %8556 }
 0xef2   : > { %v5939_v4 = vmul.f32 %v8557_v36, %v5486_v29  ;;  %v5957_v39 = vadd.f32 %v8555_v16, %v5956_v20  ;;  %v5916_v55 = vsel %vm12431_vm15, %v8553_v47, %v5912_v48  ;;  %vm5944_vm3 = vweird.f32 %v8557_v36 }
 0xef3   : > { %v6172_v61 = vpop.f32.mrf.mxu1  ;;  %v6221_v40 = vpop.f32.mrf.mxu2  ;;  %v5921_v62 = vsel %vm5918_vm4, %v5920_v21, %v5916_v55  ;;  %vm5945_vm6 = vmor %vm5943_vm5, %vm5944_vm3 }
 0xef4   : > { %v5940_v34 = vsub.f32 1.0, %v5939_v4  ;;  %v5961_v17 = vsel %vm5960_vm1, %v8555_v16, %v5957_v39  ;;  %v6173_v60 = vadd.f32 %v12176_v26, %v6172_v61  ;;  %v5996_v5 = vmul.f32 %v5921_v62, %v12414_v57 }
 0xef5   : > { %v5966_v52 = vsel %vm5963_vm2, %v5965_v56, %v5961_v17 }
 0xef6   : > { %v5941_v63 = vmul.f32 %v8557_v36, %v5940_v34  ;;  %v5999_v46 = vmul.f32 %v5966_v52, %v12418_v0  ;;  %v6222_v59 = vadd.f32 %v6221_v40, %v6173_v60 }
 0xef8   : > { %v5942_v11 = vadd.f32 %v8557_v36, %v5941_v63  ;;  %v6015_v25 = vpack.c.bf16 %v5999_v46, %v5997_v2  ;;  %v12441_v51 = vadd.f32 %v6222_v59, %v11496_v35  ;;  %v13449_v63 = vld [vmem:[#allocation58_spill] sm:$0xff]  ;;  %v13450_v59 = vld [vmem:[#allocation87_spill] sm:$0xff] }
 0xefa   : > { %v5946_v13 = vsel %vm5945_vm6, %v8557_v36, %v5942_v11  ;;  %6240 = vmatmul.bf16.gmra.mxu2 %v6015_v25  ;;  %6268 = vst [vmem:[#allocation2 + $0x8] sm:$0xff] %v12441_v51 }
 0xefb   : > { %v5951_v47 = vsel %vm5948_vm7, %v5950_v31, %v5946_v13  ;;  %v6174_v0 = vpop.f32.mrf.mxu1  ;;  %v6223_v16 = vpop.f32.mrf.mxu2 }
 0xefc   : > { %v5998_v12 = vmul.f32 %v5951_v47, %v12422_v43  ;;  %v6175_v29 = vadd.f32 %v12176_v26, %v6174_v0 }
 0xefe   : > { %v6014_v15 = vpack.c.bf16 %v5998_v12, %v5996_v5  ;;  %v6224_v50 = vadd.f32 %v6223_v16, %v6175_v29 }
 0xf00   : > { %6191 = vmatmul.bf16.gmra.mxu1 %v6014_v15  ;;  %v12448_v27 = vadd.f32 %v6224_v50, %v11510_v19 }
 0xf02   : > { %6269 = vst [vmem:[#allocation2 + $0x48] sm:$0xff] %v12448_v27 }
 0xf0a   : > { %v6177_v35 = vpop.f32.mrf.mxu1  ;;  %v6226_v41 = vpop.f32.mrf.mxu2 }
 0xf0b   : > { %v6178_v57 = vadd.f32 %v12176_v26, %v6177_v35 }
 0xf0d   : > { %v6227_v3 = vadd.f32 %v6226_v41, %v6178_v57 }
 0xf0f   : > { %v12453_v43 = vadd.f32 %v6227_v3, %v11516_v9 }
 0xf11   : > { %6270 = vst [vmem:[#allocation2 + $0x40] sm:$0xff] %v12453_v43 }
 0xf12   : > { %v6179_v58 = vpop.f32.mrf.mxu1  ;;  %v6228_v37 = vpop.f32.mrf.mxu2 }
 0xf13   : > { %v6180_v28 = vadd.f32 %v12176_v26, %v6179_v58 }
 0xf15   : > { %v6229_v53 = vadd.f32 %v6228_v37, %v6180_v28 }
 0xf17   : > { %v12458_v19 = vadd.f32 %v6229_v53, %v11530_v44 }
 0xf19   : > { %6271 = vst [vmem:[#allocation2 + $0x20] sm:$0xff] %v12458_v19 }
 0xf29   : > { %v6182_v38 = vpop.f32.mrf.mxu1 }
 0xf2a   : > { %v6231_v18 = vpop.f32.mrf.mxu2  ;;  %v6183_v36 = vadd.f32 %v12176_v26, %v6182_v38 }
 0xf2c   : > { %v6232_v7 = vadd.f32 %v6231_v18, %v6183_v36 }
 0xf2e   : > { %v12463_v9 = vadd.f32 %v6232_v7, %v11540_v10 }
 0xf30   : > { %6272 = vst [vmem:[#allocation2 + $0x10] sm:$0xff] %v12463_v9 }
 0xf31   : > { %v6184_v48 = vpop.f32.mrf.mxu1 }
 0xf32   : > { %v6185_v20 = vadd.f32 %v12176_v26, %v6184_v48  ;;  %v6233_v54 = vpop.f32.mrf.mxu2 }
 0xf34   : > { %v6234_v4 = vadd.f32 %v6233_v54, %v6185_v20 }
 0xf36   : > { %v12468_v44 = vadd.f32 %v6234_v4, %v11550_v6 }
 0xf38   : > { %6273 = vst [vmem:[#allocation2 + $0x38] sm:$0xff] %v12468_v44 }
 0xf3a   : > { %v6187_v45 = vpop.f32.mrf.mxu1 }
 0xf3b   : > { %v6188_v23 = vadd.f32 %v12176_v26, %v6187_v45 }
 0xf3f   : > { %v6236_v1 = vpop.f32.mrf.mxu2 }
 0xf40   : > { %v6237_v39 = vadd.f32 %v6236_v1, %v6188_v23 }
 0xf42   : > { %v12473_v10 = vadd.f32 %v6237_v39, %v13447_v49  ;;  %v6189_v56 = vpop.f32.mrf.mxu1 }
 0xf43   : > { %v6190_v34 = vadd.f32 %v12176_v26, %v6189_v56 }
 0xf44   : > { %6274 = vst [vmem:[#allocation2 + $0x60] sm:$0xff] %v12473_v10 }
 0xf47   : > { %v6238_v55 = vpop.f32.mrf.mxu2 }
 0xf48   : > { %v6239_v17 = vadd.f32 %v6238_v55, %v6190_v34 }
 0xf4a   : > { %v12478_v6 = vadd.f32 %v6239_v17, %v13448_v42 }
 0xf4c   : > { %6275 = vst [vmem:[#allocation2 + $0x70] sm:$0xff] %v12478_v6 }
 0xf7d   : > { %v6192_v14 = vpop.f32.mrf.mxu1  ;;  %v6241_v40 = vpop.f32.mrf.mxu2 }
 0xf7e   : > { %v6193_v61 = vadd.f32 %v12176_v26, %v6192_v14 }
 0xf80   : > { %v6242_v52 = vadd.f32 %v6241_v40, %v6193_v61 }
 0xf82   : > { %v12483_v60 = vadd.f32 %v6242_v52, %v13449_v63 }
 0xf84   : > { %6276 = vst [vmem:[#allocation2 + $0x78] sm:$0xff] %v12483_v60 }
 0xf85   : > { %v6194_v2 = vpop.f32.mrf.mxu1  ;;  %v6243_v46 = vpop.f32.mrf.mxu2 }
 0xf86   : > { %v6195_v21 = vadd.f32 %v12176_v26, %v6194_v2 }
 0xf88   : > { %v6244_v11 = vadd.f32 %v6243_v46, %v6195_v21  ;;  %6281 = sbr.rel (%p7672_p13) target bundleno = 4465 (0x1171), region = 148 }
 0xf8a   : > { %v12488_v62 = vadd.f32 %v6244_v11, %v13450_v59 }
 0xf8c   : > { %6277 = vst [vmem:[#allocation2 + $0x28] sm:$0xff] %v12488_v62 }
 0xf8d   : > { %6292 = vadd.xlane.f32.xlu2 %v12372_v30  ;;  %6288 = vadd.xlane.f32.xlu1 %v12335_v22  ;;  %v6644_v26 = vlaneseq  ;;  %v12515_v25 = vld [vmem:[%s13452_s10] sm:$0xff] }
 0xf8e   : > { %6284 = vadd.xlane.f32.xlu0 %v12203_v8  ;;  %v6643_v13 = vperm.slane %v12515_v25, 0  ;;  %v6656_v47 = vperm.slane %v12515_v25, 1  ;;  %v6695_v5 = vperm.slane %v12515_v25, 4  ;;  %v6669_v0 = vperm.slane %v12515_v25, 2  ;;  %v13453_v50 = vld [vmem:[#allocation48_spill] sm:$0xff] }
 0xf8f   : > { %v12498_v31 = vshrl.u32 %v6644_v26, 7  ;;  %v6682_v29 = vperm.slane %v12515_v25, 3 }
 0xf91   : > { %8592 = vset.pattern.permute.xlu2 %v12498_v31  ;;  %8593 = vset.pattern.permute.xlu1 %v12498_v31  ;;  %v12523_v12 = vadd.s32 8, %v12498_v31 }
 0xf92   : > { %8597 = vset.pattern.permute.xlu0 %v12498_v31 }
 0xf95   : > { %6294 = vadd.xlane.f32.xlu2 %v12400_v32  ;;  %6290 = vadd.xlane.f32.xlu1 %v12346_v33 }
 0xf96   : > { %6286 = vadd.xlane.f32.xlu0 %v12243_v24 }
 0xf9d   : > { %6300 = vadd.xlane.f32.xlu2 %v12453_v43  ;;  %6298 = vadd.xlane.f32.xlu1 %v12448_v27 }
 0xf9e   : > { %6296 = vadd.xlane.f32.xlu0 %v12441_v51 }
 0xfa5   : > { %6306 = vadd.xlane.f32.xlu2 %v12468_v44  ;;  %6304 = vadd.xlane.f32.xlu1 %v12463_v9 }
 0xfa6   : > { %6302 = vadd.xlane.f32.xlu0 %v12458_v19 }
 0xfad   : > { %6312 = vadd.xlane.f32.xlu2 %v12483_v60  ;;  %6310 = vadd.xlane.f32.xlu1 %v12478_v6 }
 0xfae   : > { %6308 = vadd.xlane.f32.xlu0 %v12473_v10 }
 0xfb6   : > { %6314 = vadd.xlane.f32.xlu0 %v12488_v62 }
 0xfc5   : > { %6648 = vperm.xlu2 %8592, %v6643_v13  }
 0xfc6   : > { %6661 = vperm.xlu1 %8593, %v6656_v47  }
 0xfca   : > { %6700 = vperm.xlu0 %8597, %v6695_v5  }
 0xfcd   : > { %8594 = vset.pattern.permute.xlu2 %v12523_v12 }
 0xfce   : > { %8596 = vset.pattern.permute.xlu1 %v12523_v12 }
 0xfd2   : > { %8598 = vset.pattern.permute.xlu0 %v12523_v12 }
 0xfd5   : > { %6667 = vperm.xlu2 %8594, %v6656_v47  }
 0xfd6   : > { %6680 = vperm.xlu1 %8596, %v6669_v0  }
 0xfdd   : > { %8595 = vset.pattern.permute.xlu2 %v12498_v31 }
 0xfde   : > { %6693 = vperm.xlu1 %8596, %v6682_v29  }
 0xfe5   : > { %6674 = vperm.xlu2 %8595, %v6669_v0  }
 0xfe6   : > { %8600 = vset.pattern.permute.xlu1 %v12498_v31 }
 0xfed   : > { %6687 = vperm.xlu2 %8595, %v6682_v29  }
 0xff5   : > { %8599 = vset.pattern.permute.xlu2 %v12523_v12 }
0x1000   : > { %v6293_v15 = vpop.xlane.xlu2 %6292  ;;  %v6289_v16 = vpop.xlane.xlu1 %6288 }
0x1001   : > { %v6318_v35 = vmul.f32 %v6289_v16, %v13453_v50  ;;  %v6285_v41 = vpop.xlane.xlu0 %6284  ;;  %v6320_v39 = vmul.f32 %v6293_v15, %v13453_v50 }
0x1002   : > { %v6316_v57 = vmul.f32 %v6285_v41, %v13453_v50 }
0x1003   : > { %v12538_v3 = vsub.f32 %v12335_v22, %v6318_v35 }
0x1004   : > { %v12541_v58 = vsub.f32 %v12203_v8, %v6316_v57 }
0x1005   : > { %v6350_v28 = vmul.f32 %v12538_v3, %v12538_v3 }
0x1006   : > { %v6348_v37 = vmul.f32 %v12541_v58, %v12541_v58 }
0x1007   : > { %6368 = vadd.xlane.f32.xlu0 %v6350_v28 }
0x1008   : > { %v6295_v53 = vpop.xlane.xlu2 %6294  ;;  %v6291_v38 = vpop.xlane.xlu1 %6290  ;;  %6364 = vadd.xlane.f32.xlu1 %v6348_v37 }
0x1009   : > { %v6321_v18 = vmul.f32 %v6295_v53, %v13453_v50  ;;  %v6319_v36 = vmul.f32 %v6291_v38, %v13453_v50  ;;  %v6287_v7 = vpop.xlane.xlu0 %6286  ;;  %v6708_v38 = vperm.slane %v12515_v25, 5 }
0x100a   : > { %v6317_v48 = vmul.f32 %v6287_v7, %v13453_v50 }
0x100b   : > { %v12550_v22 = vsub.f32 %v12400_v32, %v6321_v18  ;;  %v12553_v8 = vsub.f32 %v12346_v33, %v6319_v36 }
0x100c   : > { %v12561_v4 = vsub.f32 %v12243_v24, %v6317_v48 }
0x100d   : > { %v6353_v20 = vmul.f32 %v12550_v22, %v12550_v22  ;;  %v6351_v54 = vmul.f32 %v12553_v8, %v12553_v8 }
0x100e   : > { %v6349_v56 = vmul.f32 %v12561_v4, %v12561_v4 }
0x100f   : > { %6374 = vadd.xlane.f32.xlu0 %v6353_v20 }
0x1010   : > { %v6301_v45 = vpop.xlane.xlu2 %6300  ;;  %6370 = vadd.xlane.f32.xlu1 %v6351_v54  ;;  %v6299_v24 = vpop.xlane.xlu1 %6298 }
0x1011   : > { %v6324_v32 = vmul.f32 %v6301_v45, %v13453_v50  ;;  %v6297_v23 = vpop.xlane.xlu0 %6296  ;;  %v6323_v40 = vmul.f32 %v6299_v24, %v13453_v50 }
0x1012   : > { %v6322_v33 = vmul.f32 %v6297_v23, %v13453_v50 }
0x1013   : > { %v12566_v1 = vsub.f32 %v12453_v43, %v6324_v32  ;;  %v12579_v43 = vsub.f32 %v12372_v30, %v6320_v39 }
0x1014   : > { %v12570_v49 = vsub.f32 %v12441_v51, %v6322_v33 }
0x1015   : > { %v6356_v34 = vmul.f32 %v12566_v1, %v12566_v1  ;;  %v6352_v63 = vmul.f32 %v12579_v43, %v12579_v43 }
0x1016   : > { %6366 = vadd.xlane.f32.xlu2 %v6349_v56  ;;  %v6354_v55 = vmul.f32 %v12570_v49, %v12570_v49 }
0x1017   : > { %6380 = vadd.xlane.f32.xlu0 %v6356_v34 }
0x1018   : > { %v6307_v17 = vpop.xlane.xlu2 %6306  ;;  %6376 = vadd.xlane.f32.xlu1 %v6354_v55  ;;  %v6305_v21 = vpop.xlane.xlu1 %6304 }
0x1019   : > { %v6327_v51 = vmul.f32 %v6307_v17, %v13453_v50  ;;  %v6303_v42 = vpop.xlane.xlu0 %6302  ;;  %v6326_v47 = vmul.f32 %v6305_v21, %v13453_v50 }
0x101a   : > { %v6325_v14 = vmul.f32 %v6303_v42, %v13453_v50 }
0x101b   : > { %v12584_v61 = vsub.f32 %v12468_v44, %v6327_v51  ;;  %v12597_v44 = vsub.f32 %v12448_v27, %v6323_v40  ;;  %v12615_v16 = vsub.f32 %v12463_v9, %v6326_v47 }
0x101c   : > { %v12588_v52 = vsub.f32 %v12458_v19, %v6325_v14 }
0x101d   : > { %v6359_v30 = vmul.f32 %v12584_v61, %v12584_v61  ;;  %v6355_v29 = vmul.f32 %v12597_v44, %v12597_v44  ;;  %v6358_v28 = vmul.f32 %v12615_v16, %v12615_v16 }
0x101e   : > { %6372 = vadd.xlane.f32.xlu2 %v6352_v63  ;;  %v6357_v2 = vmul.f32 %v12588_v52, %v12588_v52 }
0x101f   : > { %6386 = vadd.xlane.f32.xlu0 %v6359_v30 }
0x1020   : > { %v6313_v46 = vpop.xlane.xlu2 %6312  ;;  %6382 = vadd.xlane.f32.xlu1 %v6357_v2 }
0x1021   : > { %v6330_v19 = vmul.f32 %v6313_v46, %v13453_v50  ;;  %v6309_v11 = vpop.xlane.xlu0 %6308 }
0x1022   : > { %v6328_v59 = vmul.f32 %v6309_v11, %v13453_v50 }
0x1023   : > { %v12602_v26 = vsub.f32 %v12483_v60, %v6330_v19  ;;  %v6311_v60 = vpop.xlane.xlu1 %6310 }
0x1024   : > { %v12606_v0 = vsub.f32 %v12473_v10, %v6328_v59  ;;  %v6329_v41 = vmul.f32 %v6311_v60, %v13453_v50 }
0x1025   : > { %v6362_v27 = vmul.f32 %v12602_v26, %v12602_v26 }
0x1026   : > { %6378 = vadd.xlane.f32.xlu2 %v6355_v29  ;;  %v6360_v15 = vmul.f32 %v12606_v0, %v12606_v0  ;;  %v12627_v9 = vsub.f32 %v12478_v6, %v6329_v41  ;;  %v6734_v6 = vperm.slane %v12515_v25, 7 }
0x1027   : > { %6392 = vadd.xlane.f32.xlu0 %v6362_v27 }
0x1028   : > { %6388 = vadd.xlane.f32.xlu1 %v6360_v15  ;;  %v6361_v53 = vmul.f32 %v12627_v9, %v12627_v9 }
0x1029   : > { %v6315_v35 = vpop.xlane.xlu0 %6314 }
0x102a   : > { %v6331_v10 = vmul.f32 %v6315_v35, %v13453_v50 }
0x102c   : > { %v12620_v57 = vsub.f32 %v12488_v62, %v6331_v10  ;;  %v6721_v62 = vperm.slane %v12515_v25, 6 }
0x102e   : > { %6384 = vadd.xlane.f32.xlu2 %v6358_v28  ;;  %v6363_v37 = vmul.f32 %v12620_v57, %v12620_v57 }
0x1030   : > { %6394 = vadd.xlane.f32.xlu1 %v6363_v37 }
0x1036   : > { %6390 = vadd.xlane.f32.xlu2 %v6361_v53 }
0x1038   : > { %v12640_v18 = vpop.permute.xlu1 %6661 }
0x103b   : > { %6654 = vperm.xlu0 %8598, %v6643_v13   ;;  %v12642_v13 = vpop.permute.xlu2 %6648 }
0x103c   : > { %v12648_v48 = vpop.permute.xlu0 %6700 }
0x1043   : > { %6732 = vperm.xlu0 %8598, %v6721_v62   ;;  %v12646_v7 = vpop.permute.xlu2 %6667 }
0x1048   : > { %v12644_v36 = vpop.permute.xlu1 %6680 }
0x1049   : > { %6713 = vperm.xlu1 %8600, %v6708_v38  }
0x104b   : > { %v12652_v20 = vpop.permute.xlu2 %6674 }
0x104e   : > { %6706 = vperm.xlu2 %8599, %v6695_v5  }
0x1050   : > { %v12650_v5 = vpop.permute.xlu1 %6693 }
0x1051   : > { %6726 = vperm.xlu1 %8600, %v6721_v62  }
0x1053   : > { %v12658_v23 = vpop.permute.xlu2 %6687 }
0x1056   : > { %6719 = vperm.xlu2 %8599, %v6708_v38  }
0x1059   : > { %8602 = vset.pattern.permute.xlu1 %v12523_v12 }
0x105e   : > { %8601 = vset.pattern.permute.xlu2 %v12498_v31 }
0x1061   : > { %6745 = vperm.xlu1 %8602, %v6734_v6  }
0x1066   : > { %6739 = vperm.xlu2 %8601, %v6734_v6  }
0x107a   : > { %v6369_v12 = vpop.xlane.xlu0 %6368 }
0x107b   : > { %v6398_v25 = vmul.f32 %v6369_v12, %v13453_v50  ;;  %v6365_v31 = vpop.xlane.xlu1 %6364 }
0x107c   : > { %v6396_v54 = vmul.f32 %v6365_v31, %v13453_v50 }
0x107d   : > { %v6414_v45 = vadd.f32 1e-05, %v6398_v25 }
0x107e   : > { %v12656_v32 = vadd.f32 1e-05, %v6396_v54 }
0x107f   : > { %8605 = vrsqrt.f32 %v6414_v45  ;;  %vm6454_vm9 = vweird.f32 %v6414_v45 }
0x1080   : > { %8607 = vrsqrt.f32 %v12656_v32  ;;  %vm6434_vm2 = vweird.f32 %v12656_v32 }
0x1082   : > { %v6375_v33 = vpop.xlane.xlu0 %6374 }
0x1083   : > { %v6401_v39 = vmul.f32 %v6375_v33, %v13453_v50  ;;  %v6371_v56 = vpop.xlane.xlu1 %6370 }
0x1084   : > { %v6399_v24 = vmul.f32 %v6371_v56, %v13453_v50 }
0x1085   : > { %v8606_v34 = vpop.eup %8605  ;;  %v6417_v55 = vadd.f32 1e-05, %v6401_v39 }
0x1086   : > { %v6449_v17 = vmul.f32 %v8606_v34, %v6414_v45  ;;  %v6415_v51 = vadd.f32 1e-05, %v6399_v24  ;;  %v12663_v42 = vpop.eup %8607  ;;  %vm6455_vm8 = vweird.f32 %v8606_v34  ;;  %v12698_v24 = vld [vmem:[%s13456_s15] ss:$0 sm:$0xff] }
0x1087   : > { %8609 = vrsqrt.f32 %v6417_v55  ;;  %v6429_v21 = vmul.f32 %v12663_v42, %v12656_v32  ;;  %vm12679_vm10 = vmor %vm6454_vm9, %vm6455_vm8  ;;  %vm6484_vm11 = vweird.f32 %v6417_v55  ;;  %vm6435_vm1 = vweird.f32 %v12663_v42 }
0x1088   : > { %v6450_v14 = vmul.f32 %v8606_v34, %v6449_v17  ;;  %8611 = vrsqrt.f32 %v6415_v51  ;;  %vm6464_vm15 = vweird.f32 %v6415_v51  ;;  %vm12753_vm3 = vmor %vm6434_vm2, %vm6435_vm1 }
0x1089   : > { %v6367_v40 = vpop.xlane.xlu2 %6366  ;;  %v6430_v10 = vmul.f32 %v12663_v42, %v6429_v21 }
0x108a   : > { %v6451_v63 = vmul.f32 0.5, %v6450_v14  ;;  %v6397_v30 = vmul.f32 %v6367_v40, %v13453_v50  ;;  %v6381_v2 = vpop.xlane.xlu0 %6380 }
0x108b   : > { %v6404_v46 = vmul.f32 %v6381_v2, %v13453_v50  ;;  %v6377_v19 = vpop.xlane.xlu1 %6376  ;;  %v6431_v54 = vmul.f32 0.5, %v6430_v10  ;;  %v12727_v10 = vld [vmem:[%s13459_s6] ss:$0 sm:$0xff] }
0x108c   : > { %v6452_v11 = vsub.f32 1.5, %v6451_v63  ;;  %v12669_v59 = vadd.f32 1e-05, %v6397_v30  ;;  %v6402_v27 = vmul.f32 %v6377_v19, %v13453_v50 }
0x108d   : > { %v12671_v47 = vpop.eup %8609  ;;  %v12673_v29 = vadd.f32 1e-05, %v6404_v46  ;;  %v6432_v46 = vsub.f32 1.5, %v6431_v54 }
0x108e   : > { %v8612_v15 = vpop.eup %8611  ;;  %v6453_v60 = vmul.f32 %v8606_v34, %v6452_v11  ;;  %v6479_v35 = vmul.f32 %v12671_v47, %v6417_v55  ;;  %8613 = vrsqrt.f32 %v12669_v59  ;;  %v12687_v38 = vadd.f32 1e-05, %v6402_v27 }
0x108f   : > { %v6459_v41 = vmul.f32 %v8612_v15, %v6415_v51  ;;  %8615 = vrsqrt.f32 %v12673_v29  ;;  %vm6485_vm12 = vweird.f32 %v12671_v47  ;;  %vm6465_vm13 = vweird.f32 %v8612_v15 }
0x1090   : > { %v6480_v37 = vmul.f32 %v12671_v47, %v6479_v35  ;;  %v6457_v53 = vsel %vm12679_vm10, %v8606_v34, %v6453_v60  ;;  %8617 = vrsqrt.f32 %v12687_v38  ;;  %vm12715_vm14 = vmor %vm6484_vm11, %vm6485_vm12  ;;  %vm6514_vm4 = vweird.f32 %v12673_v29 }
0x1091   : > { %v6460_v62 = vmul.f32 %v8612_v15, %v6459_v41  ;;  %v6373_v6 = vpop.xlane.xlu2 %6372  ;;  %v6590_v56 = vmul.f32 %v6457_v53, %v12538_v3  ;;  %vm6466_vm0 = vmor %vm6464_vm15, %vm6465_vm13  ;;  %vm6494_vm5 = vweird.f32 %v12687_v38  ;;  %vm6444_vm10 = vweird.f32 %v12669_v59 }
0x1092   : > { %v6481_v12 = vmul.f32 0.5, %v6480_v37  ;;  %v6400_v25 = vmul.f32 %v6373_v6, %v13453_v50  ;;  %v6387_v31 = vpop.xlane.xlu0 %6386 }
0x1093   : > { %v6461_v45 = vmul.f32 0.5, %v6460_v62  ;;  %v6383_v33 = vpop.xlane.xlu1 %6382  ;;  %v6407_v14 = vmul.f32 %v6387_v31, %v13453_v50  ;;  %v6609_v60 = vmul.f32 %v12698_v24, %v6590_v56 }
0x1094   : > { %v12692_v39 = vpop.eup %8613  ;;  %v6482_v34 = vsub.f32 1.5, %v6481_v12  ;;  %v12700_v17 = vadd.f32 1e-05, %v6400_v25  ;;  %v6405_v21 = vmul.f32 %v6383_v33, %v13453_v50  ;;  %v6433_v12 = vmul.f32 %v12663_v42, %v6432_v46 }
0x1095   : > { %v6462_v40 = vsub.f32 1.5, %v6461_v45  ;;  %v6439_v63 = vmul.f32 %v12692_v39, %v12669_v59  ;;  %v12705_v30 = vpop.eup %8615  ;;  %v12709_v3 = vadd.f32 1e-05, %v6407_v14  ;;  %v6628_v54 = vadd.f32 %v12727_v10, %v6609_v60 }
0x1096   : > { %v6483_v2 = vmul.f32 %v12671_v47, %v6482_v34  ;;  %8619 = vrsqrt.f32 %v12700_v17  ;;  %v6509_v27 = vmul.f32 %v12705_v30, %v12673_v29  ;;  %v12722_v35 = vpop.eup %8617  ;;  %v12738_v6 = vadd.f32 1e-05, %v6405_v21 }
0x1097   : > { %v6463_v11 = vmul.f32 %v8612_v15, %v6462_v40  ;;  %v6440_v51 = vmul.f32 %v12692_v39, %v6439_v63  ;;  %v6489_v62 = vmul.f32 %v12722_v35, %v12687_v38  ;;  %8621 = vrsqrt.f32 %v12709_v3 }
0x1098   : > { %v6487_v55 = vsel %vm12715_vm14, %v12671_v47, %v6483_v2  ;;  %v6510_v28 = vmul.f32 %v12705_v30, %v6509_v27  ;;  %8623 = vrsqrt.f32 %v12738_v6  ;;  %v6437_v2 = vsel %vm12753_vm3, %v12663_v42, %v6433_v12 }
0x1099   : > { %v6467_v41 = vsel %vm6466_vm0, %v8612_v15, %v6463_v11  ;;  %v6379_v37 = vpop.xlane.xlu2 %6378  ;;  %v6593_v25 = vmul.f32 %v6487_v55, %v12550_v22  ;;  %v6441_v14 = vmul.f32 0.5, %v6440_v51  ;;  %vm6495_vm6 = vweird.f32 %v12722_v35 }
0x109a   : > { %v6591_v53 = vmul.f32 %v6467_v41, %v12553_v8  ;;  %v6403_v47 = vmul.f32 %v6379_v37, %v13453_v50  ;;  %v6490_v8 = vmul.f32 %v12722_v35, %v6489_v62  ;;  %v6511_v45 = vmul.f32 0.5, %v6510_v28  ;;  %v6393_v21 = vpop.xlane.xlu0 %6392  ;;  %vm12780_vm8 = vmor %vm6494_vm5, %vm6495_vm6 }
0x109b   : > { %v6389_v56 = vpop.xlane.xlu1 %6388  ;;  %v6612_v19 = vmul.f32 %v12698_v24, %v6593_v25  ;;  %vm6474_vm7 = vweird.f32 %v12700_v17  ;;  %v6749_v51 = vmul.f32 %v12640_v18, %v6628_v54  ;;  %v6442_v28 = vsub.f32 1.5, %v6441_v14 }
0x109c   : > { %v12743_v15 = vpop.eup %8619  ;;  %v6610_v31 = vmul.f32 %v12698_v24, %v6591_v53  ;;  %v6491_v40 = vmul.f32 0.5, %v6490_v8  ;;  %v12758_v63 = vadd.f32 1e-05, %v6403_v47  ;;  %v6512_v60 = vsub.f32 1.5, %v6511_v45 }
0x109d   : > { %v6469_v33 = vmul.f32 %v12743_v15, %v12700_v17  ;;  %v12766_v46 = vpop.eup %8621  ;;  %v6410_v53 = vmul.f32 %v6393_v21, %v13453_v50  ;;  %vm6475_vm9 = vweird.f32 %v12743_v15  ;;  %v6631_v47 = vadd.f32 %v12727_v10, %v6612_v19 }
0x109e   : > { %v6629_v22 = vadd.f32 %v12727_v10, %v6610_v31  ;;  %v6492_v11 = vsub.f32 1.5, %v6491_v40  ;;  %8625 = vrsqrt.f32 %v12758_v63  ;;  %v12773_v41 = vpop.eup %8623  ;;  %v6539_v12 = vmul.f32 %v12766_v46, %v12709_v3  ;;  %vm6476_vm13 = vmor %vm6474_vm7, %vm6475_vm9 }
0x109f   : > { %v6470_v32 = vmul.f32 %v12743_v15, %v6469_v33  ;;  %v6519_v18 = vmul.f32 %v12773_v41, %v12738_v6  ;;  %v12794_v25 = vadd.f32 1e-05, %v6410_v53  ;;  %v6408_v31 = vmul.f32 %v6389_v56, %v13453_v50 }
0x10a0   : > { %v6750_v27 = vmul.f32 %v12646_v7, %v6629_v22  ;;  %v6493_v37 = vmul.f32 %v12722_v35, %v6492_v11  ;;  %v6513_v54 = vmul.f32 %v12705_v30, %v6512_v60  ;;  %vm6515_vm11 = vweird.f32 %v12705_v30 }
0x10a1   : > { %v6471_v42 = vmul.f32 0.5, %v6470_v32  ;;  %v6385_v55 = vpop.xlane.xlu2 %6384  ;;  %v6588_v34 = vmul.f32 %v6437_v2, %v12541_v58  ;;  %vm6445_vm12 = vweird.f32 %v12692_v39  ;;  %8627 = vrsqrt.f32 %v12794_v25  ;;  %vm12821_vm14 = vmor %vm6514_vm4, %vm6515_vm11 }
0x10a2   : > { %v6497_v38 = vsel %vm12780_vm8, %v12722_v35, %v6493_v37  ;;  %v6770_v8 = vadd.f32 %v6750_v27, %v6749_v51  ;;  %v12809_v35 = vadd.f32 1e-05, %v6408_v31  ;;  %v6540_v14 = vmul.f32 %v12766_v46, %v6539_v12  ;;  %vm12850_vm0 = vmor %vm6444_vm10, %vm6445_vm12 }
0x10a3   : > { %v6472_v7 = vsub.f32 1.5, %v6471_v42  ;;  %v6594_v56 = vmul.f32 %v6497_v38, %v12570_v49  ;;  %v6520_v40 = vmul.f32 %v12773_v41, %v6519_v18  ;;  %v6395_v58 = vpop.xlane.xlu1 %6394  ;;  %v6752_v2 = vmul.f32 %v12644_v36, %v6631_v47 }
0x10a4   : > { %v12800_v33 = vpop.eup %8625  ;;  %v6443_v32 = vmul.f32 %v12692_v39, %v6442_v28  ;;  %v6771_v21 = vrot.slane %v6770_v8, 4  ;;  %v6517_v36 = vsel %vm12821_vm14, %v12705_v30, %v6513_v54  ;;  %vm6504_vm15 = vweird.f32 %v12758_v63 }
0x10a5   : > { %v6473_v45 = vmul.f32 %v12743_v15, %v6472_v7  ;;  %8629 = vrsqrt.f32 %v12809_v35  ;;  %v6406_v27 = vmul.f32 %v6385_v55, %v13453_v50  ;;  %v6613_v60 = vmul.f32 %v12698_v24, %v6594_v56 }
0x10a6   : > { %v6541_v42 = vmul.f32 0.5, %v6540_v14  ;;  %v6521_v51 = vmul.f32 0.5, %v6520_v40  ;;  %v6772_v12 = vadd.f32 %v6771_v21, %v6770_v8  ;;  %vm6524_vm1 = vweird.f32 %v12738_v6 }
0x10a7   : > { %v6477_v22 = vsel %vm6476_vm13, %v12743_v15, %v6473_v45  ;;  %v6499_v15 = vmul.f32 %v12800_v33, %v12758_v63  ;;  %v12839_v30 = vpop.eup %8627  ;;  %v12842_v62 = vadd.f32 1e-05, %v6406_v27  ;;  %vm6505_vm2 = vweird.f32 %v12800_v33 }
0x10a8   : > { %v6592_v49 = vmul.f32 %v6477_v22, %v12579_v43  ;;  %v6411_v43 = vmul.f32 %v6395_v58, %v13453_v50  ;;  %v6447_v59 = vsel %vm12850_vm0, %v12692_v39, %v6443_v32  ;;  %v6542_v8 = vsub.f32 1.5, %v6541_v42  ;;  %vm6506_vm3 = vmor %vm6504_vm15, %vm6505_vm2 }
0x10a9   : > { %v6391_v19 = vpop.xlane.xlu2 %6390  ;;  %v6500_v11 = vmul.f32 %v12800_v33, %v6499_v15  ;;  %8631 = vrsqrt.f32 %v12842_v62  ;;  %v6522_v54 = vsub.f32 1.5, %v6521_v51  ;;  %v6632_v56 = vadd.f32 %v12727_v10, %v6613_v60 }
0x10aa   : > { %v6611_v29 = vmul.f32 %v12698_v24, %v6592_v49  ;;  %v6409_v28 = vmul.f32 %v6391_v19, %v13453_v50  ;;  %v12844_v7 = vadd.f32 1e-05, %v6411_v43  ;;  %v6569_v50 = vmul.f32 %v12839_v30, %v12794_v25 }
0x10ab   : > { %v6501_v53 = vmul.f32 0.5, %v6500_v11  ;;  %v12865_v31 = vpop.eup %8629  ;;  %v6596_v40 = vmul.f32 %v6517_v36, %v12566_v1  ;;  %v6589_v39 = vmul.f32 %v6447_v59, %v12561_v4  ;;  %v6607_v58 = vmul.f32 %v12698_v24, %v6588_v34 }
0x10ac   : > { %v6630_v37 = vadd.f32 %v12727_v10, %v6611_v29  ;;  %v12858_v18 = vadd.f32 1e-05, %v6409_v28  ;;  %v6570_v45 = vmul.f32 %v12839_v30, %v6569_v50  ;;  %8633 = vrsqrt.f32 %v12844_v7 }
0x10ad   : > { %v6502_v38 = vsub.f32 1.5, %v6501_v53  ;;  %v6549_v14 = vmul.f32 %v12865_v31, %v12809_v35  ;;  %v6773_v32 = vrot.slane %v6772_v12, 2  ;;  %vm6544_vm4 = vweird.f32 %v12709_v3  ;;  %v6655_v60 = vpop.permute.xlu0 %6654 }
0x10ae   : > { %v6751_v47 = vmul.f32 %v12652_v20, %v6630_v37  ;;  %8635 = vrsqrt.f32 %v12858_v18  ;;  %vm6545_vm5 = vweird.f32 %v12766_v46  ;;  %v12884_v17 = vmul.f32 0.5, %v6570_v45  ;;  %v7785_v45 = vld [vmem:[#allocation22 + $0x38] sm:$0xff] }
0x10af   : > { %v6503_v20 = vmul.f32 %v12800_v33, %v6502_v38  ;;  %v6550_v1 = vmul.f32 %v12865_v31, %v6549_v14  ;;  %v6523_v63 = vmul.f32 %v12773_v41, %v6522_v54  ;;  %vm6525_vm6 = vweird.f32 %v12773_v41  ;;  %v12891_v34 = vpop.eup %8631  ;;  %6923 = vmatpush.bf16.msra.mxu0 %v7785_v45  ;;  %vm12946_vm15 = vmor %vm6544_vm4, %vm6545_vm5 }
0x10b0   : > { %v6777_v22 = vadd.f32 %v6752_v2, %v6751_v47  ;;  %v6608_v4 = vmul.f32 %v12698_v24, %v6589_v39  ;;  %v6753_v15 = vmul.f32 %v12658_v23, %v6632_v56  ;;  %v12895_v36 = vmul.f32 %v12766_v46, %v6542_v8  ;;  %vm12906_vm8 = vmor %vm6524_vm1, %vm6525_vm6 }
0x10b1   : > { %v6507_v2 = vsel %vm6506_vm3, %v12800_v33, %v6503_v20  ;;  %v6551_v33 = vmul.f32 0.5, %v6550_v1  ;;  %v6529_v11 = vmul.f32 %v12891_v34, %v12842_v62  ;;  %vm6534_vm7 = vweird.f32 %v12842_v62  ;;  %v6707_v54 = vpop.permute.xlu2 %6706 }
0x10b2   : > { %v6595_v49 = vmul.f32 %v6507_v2, %v12597_v44  ;;  %v6778_v21 = vrot.slane %v6777_v22, 4  ;;  %v12897_v19 = vpop.eup %8633  ;;  %v6626_v44 = vadd.f32 %v12727_v10, %v6607_v58  ;;  %v6572_v27 = vsub.f32 1.5, %v12884_v17 }
0x10b3   : > { %vm6555_vm9 = vweird.f32 %v12865_v31  ;;  %v6579_v43 = vmul.f32 %v12897_v19, %v12844_v7  ;;  %v12914_v42 = vadd.f32 %v6773_v32, %v6772_v12  ;;  %vm6554_vm10 = vweird.f32 %v12809_v35  ;;  %v7784_v32 = vld [vmem:[#allocation22 + $0x30] sm:$0xff] }
0x10b4   : > { %v6614_v29 = vmul.f32 %v12698_v24, %v6595_v49  ;;  %v12916_v51 = vpop.eup %8635  ;;  %v6530_v6 = vmul.f32 %v12891_v34, %v6529_v11  ;;  %v6627_v37 = vadd.f32 %v12727_v10, %v6608_v4  ;;  %v6527_v53 = vsel %vm12906_vm8, %v12773_v41, %v6523_v63  ;;  %6924 = vmatpush.bf16.msra.mxu0 %v7784_v32  ;;  %vm12969_vm3 = vmor %vm6554_vm10, %vm6555_vm9 }
0x10b5   : > { %v12925_v55 = vadd.f32 %v6778_v21, %v6777_v22  ;;  %v6552_v50 = vsub.f32 1.5, %v6551_v33  ;;  %v6580_v12 = vmul.f32 %v12897_v19, %v6579_v43  ;;  %v6559_v47 = vmul.f32 %v12916_v51, %v12858_v18 }
0x10b6   : > { %v6633_v28 = vadd.f32 %v12727_v10, %v6614_v29  ;;  %vm6574_vm11 = vweird.f32 %v12794_v25  ;;  %vm6575_vm12 = vweird.f32 %v12839_v30  ;;  %v6531_v59 = vmul.f32 0.5, %v6530_v6  ;;  %v7783_v6 = vld [vmem:[#allocation22 + $0x28] sm:$0xff] }
0x10b7   : > { %vm6564_vm13 = vweird.f32 %v12858_v18  ;;  %v6747_v8 = vmul.f32 %v12642_v13, %v6626_v44  ;;  %v6748_v41 = vmul.f32 %v6655_v60, %v6627_v37  ;;  %v6581_v56 = vmul.f32 0.5, %v6580_v12  ;;  %v7782_v18 = vld [vmem:[#allocation22 + $0x20] sm:$0xff]  ;;  %vm13001_vm6 = vmor %vm6574_vm11, %vm6575_vm12 }
0x10b8   : > { %v6754_v38 = vmul.f32 %v12650_v5, %v6633_v28  ;;  %v6560_v22 = vmul.f32 %v12916_v51, %v6559_v47  ;;  %v6597_v20 = vmul.f32 %v6527_v53, %v12588_v52  ;;  %v6615_v14 = vmul.f32 %v12698_v24, %v6596_v40  ;;  %6925 = vmatpush.bf16.msra.mxu0 %v7783_v6 }
0x10b9   : > { %v6532_v39 = vsub.f32 1.5, %v6531_v59  ;;  %vm6535_vm14 = vweird.f32 %v12891_v34  ;;  %v6763_v58 = vadd.f32 %v6748_v41, %v6747_v8  ;;  %v6775_v13 = vrot.slane %v12914_v42, 1  ;;  %v6720_v12 = vpop.permute.xlu2 %6719 }
0x10ba   : > { %v6784_v5 = vadd.f32 %v6754_v38, %v6753_v15  ;;  %v6561_v2 = vmul.f32 0.5, %v6560_v22  ;;  %v6616_v17 = vmul.f32 %v12698_v24, %v6597_v20  ;;  %v6634_v1 = vadd.f32 %v12727_v10, %v6615_v14  ;;  %vm6536_vm2 = vmor %vm6534_vm7, %vm6535_vm14 }
0x10bb   : > { %v6553_v40 = vmul.f32 %v12865_v31, %v6552_v50  ;;  %v6533_v63 = vmul.f32 %v12891_v34, %v6532_v39  ;;  %vm6584_vm0 = vweird.f32 %v12844_v7  ;;  %vm6565_vm1 = vweird.f32 %v12916_v51  ;;  %v6714_v33 = vpop.permute.xlu1 %6713 }
0x10bc   : > { %v6764_v49 = vrot.slane %v6763_v58, 4  ;;  %v6785_v4 = vrot.slane %v6784_v5, 4  ;;  %v6582_v3 = vsub.f32 1.5, %v6581_v56  ;;  %v6562_v15 = vsub.f32 1.5, %v6561_v2  ;;  %vm12986_vm5 = vmor %vm6564_vm13, %vm6565_vm1  ;;  %6926 = vmatpush.bf16.msra.mxu0 %v7782_v18 }
0x10bd   : > { %v6635_v21 = vadd.f32 %v12727_v10, %v6616_v17  ;;  %v6755_v11 = vmul.f32 %v12648_v48, %v6634_v1  ;;  %v6547_v44 = vsel %vm12946_vm15, %v12766_v46, %v12895_v36  ;;  %v6537_v23 = vsel %vm6536_vm2, %v12891_v34, %v6533_v63  ;;  %v6733_v1 = vpop.permute.xlu0 %6732 }
0x10be   : > { %v6765_v29 = vadd.f32 %v6764_v49, %v6763_v58  ;;  %v6563_v43 = vmul.f32 %v12916_v51, %v6562_v15  ;;  %v6599_v48 = vmul.f32 %v6547_v44, %v12584_v61  ;;  %v6598_v28 = vmul.f32 %v6537_v23, %v12615_v16  ;;  %v7781_v58 = vld [vmem:[#allocation22 + $0x18] sm:$0xff] }
0x10bf   : > { %v6756_v60 = vmul.f32 %v6707_v54, %v6635_v21  ;;  %v6780_v46 = vrot.slane %v12925_v55, 2  ;;  %v6573_v34 = vmul.f32 %v12839_v30, %v6572_v27  ;;  %v6557_v35 = vsel %vm12969_vm3, %v12865_v31, %v6553_v40 }
0x10c0   : > { %v6766_v36 = vrot.slane %v6765_v29, 2  ;;  %vm6585_vm4 = vweird.f32 %v12897_v19  ;;  %v6618_v37 = vmul.f32 %v12698_v24, %v6599_v48  ;;  %v6617_v27 = vmul.f32 %v12698_v24, %v6598_v28  ;;  %6927 = vmatpush.bf16.msra.mxu0 %v7781_v58 }
0x10c1   : > { %v6791_v16 = vadd.f32 %v6756_v60, %v6755_v11  ;;  %v6583_v53 = vmul.f32 %v12897_v19, %v6582_v3  ;;  %v6600_v31 = vmul.f32 %v6557_v35, %v12606_v0  ;;  %v6567_v47 = vsel %vm12986_vm5, %v12916_v51, %v6563_v43  ;;  %vm13016_vm7 = vmor %vm6584_vm0, %vm6585_vm4 }
0x10c2   : > { %v6767_v50 = vadd.f32 %v6766_v36, %v6765_v29  ;;  %v6786_v38 = vadd.f32 %v6785_v4, %v6784_v5  ;;  %v6637_v41 = vadd.f32 %v12727_v10, %v6618_v37  ;;  %v6636_v0 = vadd.f32 %v12727_v10, %v6617_v27  ;;  %v7779_v36 = vld [vmem:[#allocation22 + $0x8] sm:$0xff]  ;;  %v6740_v27 = vpop.permute.xlu2 %6739 }
0x10c3   : > { %v6792_v8 = vrot.slane %v6791_v16, 4  ;;  %v6577_v51 = vsel %vm13001_vm6, %v12839_v30, %v6573_v34  ;;  %v6619_v45 = vmul.f32 %v12698_v24, %v6600_v31  ;;  %v6601_v56 = vmul.f32 %v6567_v47, %v12627_v9  ;;  %v6727_v17 = vpop.permute.xlu1 %6726 }
0x10c4   : > { %v6768_v54 = vrot.slane %v6767_v50, 1  ;;  %v6758_v20 = vmul.f32 %v6720_v12, %v6637_v41  ;;  %v6757_v14 = vmul.f32 %v6714_v33, %v6636_v0  ;;  %v6776_v39 = vadd.f32 %v6775_v13, %v12914_v42 }
0x10c5   : > { %v6793_v22 = vadd.f32 %v6792_v8, %v6791_v16  ;;  %v6620_v30 = vmul.f32 %v12698_v24, %v6601_v56  ;;  %v6587_v9 = vsel %vm13016_vm7, %v12897_v19, %v6583_v53  ;;  %v6602_v2 = vmul.f32 %v6577_v51, %v12602_v26  ;;  %v7780_v26 = vld [vmem:[#allocation22 + $0x10] sm:$0xff] }
0x10c6   : > { %v6769_v5 = vadd.f32 %v6768_v54, %v6767_v50  ;;  %v6798_v7 = vadd.f32 %v6758_v20, %v6757_v14  ;;  %v6781_v52 = vadd.f32 %v6780_v46, %v12925_v55  ;;  %v6638_v63 = vadd.f32 %v12727_v10, %v6619_v45  ;;  %6928 = vmatpush.bf16.msra.mxu0 %v7780_v26 }
0x10c7   : > { %v6794_v32 = vrot.slane %v6793_v22, 2  ;;  %v6639_v42 = vadd.f32 %v12727_v10, %v6620_v30  ;;  %v6787_v13 = vrot.slane %v6786_v38, 2  ;;  %v6603_v19 = vmul.f32 %v6587_v9, %v12620_v57 }
0x10c8   : > { %v6819_v40 = vpack.c.bf16 %v6769_v5, %v6769_v5  ;;  %v6799_v4 = vrot.slane %v6798_v7, 4  ;;  %v6782_v3 = vrot.slane %v6781_v52, 1  ;;  %v6820_v15 = vpack.c.bf16 %v6776_v39, %v6776_v39 }
0x10c9   : > { %v6795_v49 = vadd.f32 %v6794_v32, %v6793_v22  ;;  %v6759_v21 = vmul.f32 %v6727_v17, %v6638_v63  ;;  %v6760_v33 = vmul.f32 %v6733_v1, %v6639_v42  ;;  %v6788_v29 = vadd.f32 %v6787_v13, %v6786_v38  ;;  %v7778_v38 = vld [vmem:[#allocation22] sm:$0xff] }
0x10ca   : > { %vm6859_vm8 = vcmask 1041409   ;;  %v6800_v55 = vadd.f32 %v6799_v4, %v6798_v7  ;;  %v6783_v44 = vadd.f32 %v6782_v3, %v6781_v52  ;;  %v6851_v23 = vunpack.c.l.b16 %v6819_v40  ;;  %6929 = vmatpush.bf16.msra.mxu0 %v7779_v36 }
0x10cb   : > { %v6796_v11 = vrot.slane %v6795_v49, 1  ;;  %v6621_v62 = vmul.f32 %v12698_v24, %v6602_v2  ;;  %v6805_v43 = vadd.f32 %v6760_v33, %v6759_v21  ;;  %v6789_v60 = vrot.slane %v6788_v29, 1 }
0x10cc   : > { %v6801_v28 = vrot.slane %v6800_v55, 2  ;;  %v6622_v57 = vmul.f32 %v12698_v24, %v6603_v19  ;;  %v6821_v6 = vpack.c.bf16 %v6783_v44, %v6783_v44  ;;  %v6852_v46 = vunpack.c.l.b16 %v6820_v15 }
0x10cd   : > { %v6797_v48 = vadd.f32 %v6796_v11, %v6795_v49  ;;  %v6806_v34 = vrot.slane %v6805_v43, 4  ;;  %v6790_v35 = vadd.f32 %v6789_v60, %v6788_v29  ;;  %vm6861_vm9 = vcmask 1042434  }
0x10ce   : > { %v6853_v16 = vunpack.c.l.b16 %v6821_v6  ;;  %v6860_v37 = vsel %vm6859_vm8, %v6852_v46, %v6851_v23  ;;  %v6802_v12 = vadd.f32 %v6801_v28, %v6800_v55  ;;  %v6640_v31 = vadd.f32 %v12727_v10, %v6621_v62  ;;  %6930 = vmatpush.bf16.msra.mxu0 %v7778_v38 }
0x10cf   : > { %v6823_v61 = vpack.c.bf16 %v6797_v48, %v6797_v48  ;;  %v6807_v53 = vadd.f32 %v6806_v34, %v6805_v43  ;;  %v6822_v50 = vpack.c.bf16 %v6790_v35, %v6790_v35  ;;  %v6641_v47 = vadd.f32 %v12727_v10, %v6622_v57 }
0x10d0   : > { %vm6863_vm10 = vcmask 1043459   ;;  %vm6865_vm11 = vcmask 1044484   ;;  %v6761_v41 = vmul.f32 %v6740_v27, %v6640_v31  ;;  %v6862_v54 = vsel %vm6861_vm9, %v6853_v16, %v6860_v37 }
0x10d1   : > { %v6808_v24 = vrot.slane %v6807_v53, 2  ;;  %v6854_v59 = vunpack.c.l.b16 %v6822_v50  ;;  %v6855_v8 = vunpack.c.l.b16 %v6823_v61  ;;  %v6803_v56 = vrot.slane %v6802_v12, 1 }
0x10d2   : > { %vm6867_vm12 = vcmask 1045509   ;;  %vm6869_vm13 = vcmask 1046534   ;;  %vm6871_vm14 = vcmask 1047559  }
0x10d3   : > { %v6746_v18 = vpop.permute.xlu1 %6745  ;;  %v6809_v51 = vadd.f32 %v6808_v24, %v6807_v53  ;;  %v6864_v45 = vsel %vm6863_vm10, %v6854_v59, %v6862_v54  ;;  %v6804_v10 = vadd.f32 %v6803_v56, %v6802_v12 }
0x10d4   : > { %v6762_v0 = vmul.f32 %v6746_v18, %v6641_v47  ;;  %v6866_v22 = vsel %vm6865_vm11, %v6855_v8, %v6864_v45 }
0x10d5   : > { %v6810_v20 = vrot.slane %v6809_v51, 1  ;;  %v6824_v9 = vpack.c.bf16 %v6804_v10, %v6804_v10 }
0x10d6   : > { %v6812_v25 = vadd.f32 %v6762_v0, %v6761_v41 }
0x10d7   : > { %v6811_v39 = vadd.f32 %v6810_v20, %v6809_v51  ;;  %v6856_v2 = vunpack.c.l.b16 %v6824_v9 }
0x10d8   : > { %v6813_v14 = vrot.slane %v6812_v25, 4 }
0x10d9   : > { %v6825_v32 = vpack.c.bf16 %v6811_v39, %v6811_v39  ;;  %v6868_v63 = vsel %vm6867_vm12, %v6856_v2, %v6866_v22 }
0x10da   : > { %v6814_v5 = vadd.f32 %v6813_v14, %v6812_v25 }
0x10db   : > { %v6857_v1 = vunpack.c.l.b16 %v6825_v32 }
0x10dc   : > { %v6815_v30 = vrot.slane %v6814_v5, 2 }
0x10dd   : > { %v6870_v42 = vsel %vm6869_vm13, %v6857_v1, %v6868_v63 }
0x10de   : > { %v6816_v58 = vadd.f32 %v6815_v30, %v6814_v5 }
0x10e0   : > { %v6817_v7 = vrot.slane %v6816_v58, 1 }
0x10e2   : > { %v6818_v17 = vadd.f32 %v6817_v7, %v6816_v58 }
0x10e4   : > { %v6826_v52 = vpack.c.bf16 %v6818_v17, %v6818_v17 }
0x10e6   : > { %v6858_v40 = vunpack.c.l.b16 %v6826_v52 }
0x10e8   : > { %v6872_v13 = vsel %vm6871_vm14, %v6858_v40, %v6870_v42 }
0x10e9   : > { %v6873_v49 = vpack.c.b16 %v6872_v13, %v6872_v13 }
0x10eb   : > { %6931 = vmatmul.bf16.vlgmr.msra.gmra.mxu0 %v6873_v49 }
0x1168   : > { %v6932_v4 = vpop.f32.mrf.mxu0 }
0x1169   : > { %6936 = vst [vmem:[%s1046_s27] sm:$0xff] %v6932_v4 }
0x1170   : > { %v6934_v19 = vpop.f32.mrf.mxu0 }
0x1171 PF: > { %s13480_s26 = sld [smem:[#allocation38_spill]]  ;;  %s6950_s3 = sshll.u32 %s1046_s27, 4  ;;  %s6951_s3 = int_to_ptr.vmem [resolvable:$true] %s6950_s3 }
0x1172   : > { %s13482_s8 = sld [smem:[#allocation108_spill]]  ;;  %s6938_s28 = scalar_lea.sflag [#allocation6], %s9554_s0 }
0x1177   : > { %s7706_s23 = sshll.u32 %s13480_s26, 3 }
0x1178   : > { %s6948_s20 = scalar_lea.hbm %s13482_s8, %s7706_s23  ;;  %s9017_s12 = scalar_lea.hbm %s13482_s8, 16 }
0x1179   : > { %s6952_s17 = sshll.u32 %s6948_s20, 4  ;;  %s6953_s17 = int_to_ptr.hbm [resolvable:$true] %s6952_s17 }
0x117a   : > { %s9011_s13 = sshra.s32 %s6953_s17, 4  ;;  %s9012_s13 = int_to_ptr.hbm [resolvable:$true] %s9011_s13 }
0x117b   : > { %s9013_s16 = scalar_lea.hbm %s9012_s13, 8  ;;  %p9018_p3 = scmp.lt.s32.totalorder %s9012_s13, %s13482_s8 }
0x117c   : > { %p9014_p8 = scmp.ne.s32.totalorder %s9012_s13, %s9013_s16  ;;  %p9019_p9 = scmp.lt.s32.totalorder %s9017_s12, %s9013_s16 }
0x117e   : > { %p9015_p2 = pnand %p9014_p8, %p9374_p4  ;;  %p9020_p11 = por %p9019_p9, %p9018_p3 }
0x1180   : > { %p9016_p1 = pneg %p9015_p2 }
0x1182   : > { %p9021_p12 = pnand %p9020_p11, %p9016_p1 }
0x1184   : > { %9024 = shalt.err (!%p9021_p12)
}
0x1185   : > { %7834 = dma.vmem_to_hbm [thread:$0]  (%p9374_p4), %s6951_s3, 128, %s6953_s17, %s6938_s28  }
0x1186 PF: > { %s13483_s0 = sld [smem:[#allocation34_spill]]  ;;  %p7881_p0 = scmp.ge.s32.totalorder %s9143_s2, 2 }
0x1188   : > { %p7875_p5 = pnand %p7881_p0, %p9381_p10 }
0x118a   : > { %p7876_p7 = pneg %p7875_p5 }
0x118c   : > { %s6964_s27 = sand.u32 1, %s13483_s0  }
0x118d   : > { %s6965_s14 = scalar_lea.sflag [#allocation6], %s6964_s27 }
0x118e   : > { %9098 = dma.done.wait (%p7876_p7), %s6965_s14, 128  }
0x118f   : > { %9100 = vsyncadd (%p7876_p7), %s6965_s14, 4294967168  ;;  %s50_s2 = sadd.s32 1, %s9143_s2   ;;  %s13485_s27 = sld [smem:[#allocation33_spill]] }
0x1190   : > { %p47_p6 = scmp.ge.s32.totalorder %s50_s2, 6   ;;  %s13486_s10 = sld [smem:[#allocation43_spill]] }
0x1191   : > { %s13487_s30 = sld [smem:[#allocation35_spill]]  ;;  %s13493_s28 = smov %s9111_s29 }
0x1192   : > { %s13488_s0 = sld [smem:[#allocation36_spill]]  ;;  %s13495_s1 = smov %s9135_s21 }
0x1193   : > { %s13489_s19 = sld [smem:[#allocation44_spill]] }
0x1194   : > { %s13490_s20 = sld [smem:[#allocation39_spill]] }
0x1195   : > { %s13491_s18 = sld [smem:[#allocation40_spill]] }
0x1196   : > { %s13492_s22 = sld [smem:[#allocation41_spill]]  ;;  %s13494_s29 = smov %s13486_s10 }
0x1197   :  { %49 = sbr.rel (!%p47_p6) target bundleno = 40 (0x28), region = 281 }
0x119b   : > { %s13496_s21 = smov %s13491_s18 }
0x119c   :  { %6971 = vsyncpa [#allocation5], 1 }
0x119d   :  { %6973 = vsyncpa [#allocation5 + $0x1], 1 }
0x119e   :  { %6974 = vsyncpa [#allocation8], 1 }
0x119f   :  { %6976 = vsyncpa [#allocation8 + $0x1], 1 }
0x11a0   :  { %6977 = vsyncpa [#allocation11], 1 }
0x11a1   :  { %6979 = vsyncpa [#allocation11 + $0x1], 1 }
0x11a2   :  { %6980 = vsyncpa [#allocation14], 1 }
0x11a3   :  { %6982 = vsyncpa [#allocation14 + $0x1], 1 }
0x11a4   :  { %6983 = vsyncpa [#allocation17], 1 }
0x11a5   :  { %6985 = vsyncpa [#allocation17 + $0x1], 1 }
0x11a6   :  { %6986 = vsyncpa [#allocation20], 1 }
0x11a7   :  { %6988 = vsyncpa [#allocation20 + $0x1], 1 }
0x11a8   :  { %6989 = vsyncpa [#allocation23], 1 }
0x11a9   :  { %6990 = vsyncpa [#allocation6], 1 }
0x11aa   :  { %6992 = vsyncpa [#allocation6 + $0x1], 1 }

</bundles_post_ra>
